<compile_context>
chip_gen: v7x
topology: tpu7x:2x2x1
jax: 0.10.0
libtpu: 0.0.40
codegen_flags: <defaults>
</compile_context>

<pallas_src>
import jax
import jax.numpy as jnp
from jax import lax
from jax.experimental import pallas as pl
from jax.experimental.pallas import tpu as pltpu

BN_EPS = 1e-5
MXU_DTYPE = jnp.bfloat16  # MXU operand dtype for conv layers 2 & 3; accumulation stays f32.


def _make_fused_kernel(H, W):
    """Build the fused forward kernel for images with (H, W) spatial size."""
    # Flat-row offset of tap (di, dj) on the original grid, tap-major order (di, dj).
    offsets = tuple(di * W + dj for di in range(3) for dj in range(3))
    shrink = 2 * W + 2  # rows at the tail that can no longer be computed after one valid conv

    def _bias_relu_bn(acc, p_ref):
        # p_ref rows: [conv bias, bn scale, bn shift], each (1, Cout). Conv -> ReLU -> BN order.
        bias = p_ref[pl.ds(0, 1), :]
        scale = p_ref[pl.ds(1, 1), :]
        shift = p_ref[pl.ds(2, 1), :]
        return jnp.maximum(acc + bias, 0.0) * scale + shift

    def _conv_relu_bn_mxu(a_ref, w_ref, p_ref, out_rows):
        """3x3 valid conv on a flat (M, Cin) slab as nine shifted-slice MXU matmuls."""
        cin = a_ref.shape[1]
        cout = w_ref.shape[1]
        acc = jnp.zeros((out_rows, cout), jnp.float32)
        for k, off in enumerate(offsets):
            tap = a_ref[pl.ds(off, out_rows), :].astype(MXU_DTYPE)      # (out_rows, Cin)
            wk = w_ref[pl.ds(k * cin, cin), :]                          # (Cin, Cout), bf16
            acc = acc + jnp.dot(tap, wk, preferred_element_type=jnp.float32)
        return _bias_relu_bn(acc, p_ref)

    def kernel(x_ref, w1_ref, p1_ref, w2_ref, p2_ref, w3_ref, p3_ref,
               pool_ref, cw_ref, cb_ref, o_ref, a1_ref, a2_ref):
        # ---- Layer 1 (Cin = 1): nine VPU broadcast-FMA taps. ----
        m1 = a1_ref.shape[0]
        cout1 = w1_ref.shape[1]
        acc = jnp.zeros((m1, cout1), jnp.float32)
        for k, off in enumerate(offsets):
            tap = x_ref[pl.ds(off, m1), :]          # (m1, 1)
            wk = w1_ref[pl.ds(k, 1), :]             # (1, Cout1)
            acc = acc + tap * wk                    # lane/sublane broadcast FMA (VPU)
        a1_ref[...] = _bias_relu_bn(acc, p1_ref)    # (m1, 32) f32, VMEM resident

        # ---- Layers 2 & 3: shifted-slice MXU matmuls. ----
        a2_ref[...] = _conv_relu_bn_mxu(a1_ref, w2_ref, p2_ref, a2_ref.shape[0])
        a3 = _conv_relu_bn_mxu(a2_ref, w3_ref, p3_ref, a2_ref.shape[0] - shrink)

        # ---- Global average pool (one matmul with host-built selection matrix) + classifier. ----
        pooled = jnp.dot(pool_ref[...], a3, preferred_element_type=jnp.float32)   # (B, 128)
        o_ref[...] = jnp.dot(pooled, cw_ref[...],
                             preferred_element_type=jnp.float32) + cb_ref[...]    # (B, 2)

    return kernel


def _fused_forward(x2d, w1, p1, w2, p2, w3, p3, pool_mat, cls_w, cls_b, *, H, W):
    B = pool_mat.shape[0]
    shrink = 2 * W + 2
    m0 = x2d.shape[0]              # B*H*W
    m1 = m0 - shrink               # rows computable after conv 1
    m2 = m0 - 2 * shrink           # rows computable after conv 2
    vmem = pl.BlockSpec(memory_space=pltpu.MemorySpace.VMEM)
    # Single pallas_call, no grid: the whole model (< 1 MiB of weights + activations) runs in
    # one step with everything resident in VMEM — no HBM round trips between layers.
    return pl.pallas_call(
        _make_fused_kernel(H, W),
        out_shape=jax.ShapeDtypeStruct((B, cls_w.shape[1]), jnp.float32),
        in_specs=[vmem] * 10,
        out_specs=vmem,
        scratch_shapes=[
            pltpu.VMEM((m1, w1.shape[1]), jnp.float32),   # layer-1 activations
            pltpu.VMEM((m2, w2.shape[1]), jnp.float32),   # layer-2 activations
        ],
    )(x2d, w1, p1, w2, p2, w3, p3, pool_mat, cls_w, cls_b)


def _prep_block(blk, w_dtype):
    """Host-side prep: flatten HWIO weight tap-major, fuse eval-mode BN into scale/shift."""
    w = blk["w"]                                              # (3, 3, Cin, Cout) f32
    cin, cout = w.shape[2], w.shape[3]
    w_flat = w.reshape(9 * cin, cout).astype(w_dtype)         # rows ordered (di, dj, cin)
    bn_scale = blk["gamma"] * lax.rsqrt(blk["var"] + BN_EPS)  # (1, Cout)
    bn_shift = blk["beta"] - blk["mean"] * bn_scale           # (1, Cout)
    p = jnp.concatenate([blk["b"], bn_scale, bn_shift], axis=0).astype(jnp.float32)  # (3, Cout)
    return w_flat, p


def _pool_matrix(B, H, W, Hv, Wv, m_out):
    """(B, m_out) matrix: 1/(Hv*Wv) at flat rows (b, i<Hv, j<Wv), 0 elsewhere (built on host)."""
    r = jnp.arange(m_out, dtype=jnp.int32)
    b = r // (H * W)
    i = (r // W) % H
    j = r % W
    valid = (i < Hv) & (j < Wv)
    sel = (b[None, :] == jnp.arange(B, dtype=jnp.int32)[:, None]) & valid[None, :]
    return sel.astype(jnp.float32) * (1.0 / (Hv * Wv))


@jax.jit
def segmentation_model(x_nchw, params):
    B, C, H, W = x_nchw.shape
    assert C == 1, "model expects a single input channel"
    # NCHW with C=1 flattens directly to row index r = b*H*W + i*W + j.
    x2d = x_nchw.reshape(B * H * W, 1).astype(jnp.float32)
    w1, p1 = _prep_block(params["blocks"][0], jnp.float32)    # layer 1 runs on the VPU
    w2, p2 = _prep_block(params["blocks"][1], MXU_DTYPE)
    w3, p3 = _prep_block(params["blocks"][2], MXU_DTYPE)
    Hv, Wv = H - 6, W - 6                                     # valid region after 3 convs
    m3 = B * H * W - 3 * (2 * W + 2)                          # rows of the final activation slab
    pool_mat = _pool_matrix(B, H, W, Hv, Wv, m3)
    return _fused_forward(x2d, w1, p1, w2, p2, w3, p3, pool_mat,
                          params["cls_w"], params["cls_b"], H=H, W=W)


def _reference_forward(x_nchw, params):
    """Pure-JAX reference (matches the PyTorch module's eval-mode forward)."""
    x = jnp.transpose(x_nchw, (0, 2, 3, 1)).astype(jnp.float32)        # NHWC
    for blk in params["blocks"]:
        x = lax.conv_general_dilated(x, blk["w"], (1, 1), "VALID",
                                     dimension_numbers=("NHWC", "HWIO", "NHWC"))
        x = jnp.maximum(x + blk["b"].reshape(1, 1, 1, -1), 0.0)        # conv bias + ReLU
        scale = blk["gamma"] * lax.rsqrt(blk["var"] + BN_EPS)
        shift = blk["beta"] - blk["mean"] * scale
        x = x * scale.reshape(1, 1, 1, -1) + shift.reshape(1, 1, 1, -1)
    pooled = jnp.mean(x, axis=(1, 2))
    return pooled @ params["cls_w"] + params["cls_b"]


def init_conv_block(key, cin, cout):
    kw, kb, kg, kbe, km, kv = jax.random.split(key, 6)
    scale = (cin * 9) ** -0.5
    return dict(
        w=jax.random.normal(kw, (3, 3, cin, cout), jnp.float32) * scale,
        b=jax.random.normal(kb, (1, cout), jnp.float32) * 0.01,
        gamma=1.0 + 0.1 * jax.random.normal(kg, (1, cout), jnp.float32),
        beta=0.1 * jax.random.normal(kbe, (1, cout), jnp.float32),
        mean=0.1 * jax.random.normal(km, (1, cout), jnp.float32),
        var=1.0 + 0.1 * jnp.abs(jax.random.normal(kv, (1, cout), jnp.float32)),
    )


if __name__ == "__main__":
    key = jax.random.PRNGKey(0)
    k_in, k1, k2, k3, kcw, kcb = jax.random.split(key, 6)

    # NCHW input consistent with Conv2d(in_channels=1, ...): (batch=2, 1, 16, 16)
    x = jax.random.normal(k_in, (2, 1, 16, 16), jnp.float32)

    params = {
        "blocks": [
            init_conv_block(k1, 1, 32),    # 16x16 -> 14x14, C=32
            init_conv_block(k2, 32, 64),   # 14x14 -> 12x12, C=64
            init_conv_block(k3, 64, 128),  # 12x12 -> 10x10, C=128
        ],
        "cls_w": jax.random.normal(kcw, (128, 2), jnp.float32) * (128 ** -0.5),
        "cls_b": jax.random.normal(kcb, (1, 2), jnp.float32) * 0.01,
    }

    logits = jax.block_until_ready(segmentation_model(x, params))
    assert logits.shape == (2, 2)
    assert bool(jnp.all(jnp.isfinite(logits)))

    ref = jax.block_until_ready(_reference_forward(x, params))
    max_err = float(jnp.max(jnp.abs(logits - ref)))
    assert max_err < 1e-1, f"kernel deviates from reference: max abs err = {max_err}"

    print("KERNEL_OK")
</pallas_src>

<mosaic_0001>
module attributes {stable_mosaic.version = 11 : i64} {
  func.func @kernel(%arg0: memref<512x1xf32, #tpu.memory_space<vmem>>, %arg1: memref<9x32xf32, #tpu.memory_space<vmem>>, %arg2: memref<3x32xf32, #tpu.memory_space<vmem>>, %arg3: memref<288x64xbf16, #tpu.memory_space<vmem>>, %arg4: memref<3x64xf32, #tpu.memory_space<vmem>>, %arg5: memref<576x128xbf16, #tpu.memory_space<vmem>>, %arg6: memref<3x128xf32, #tpu.memory_space<vmem>>, %arg7: memref<2x410xf32, #tpu.memory_space<vmem>>, %arg8: memref<128x2xf32, #tpu.memory_space<vmem>>, %arg9: memref<1x2xf32, #tpu.memory_space<vmem>>, %arg10: memref<2x2xf32, #tpu.memory_space<vmem>>, %arg11: memref<478x32xf32, #tpu.memory_space<vmem>>, %arg12: memref<444x64xf32, #tpu.memory_space<vmem>>) attributes {dimension_semantics = [], scalar_prefetch = 0 : i64, scratch_operands = 2 : i64, tpu.core_type = #tpu.core_type<tc>} {
    %cst = arith.constant 0.000000e+00 : f32
    %0 = vector.broadcast %cst : f32 to vector<478x32xf32>
    %c0 = arith.constant 0 : index
    %c0_0 = arith.constant 0 : index
    %1 = vector.load %arg0[%c0, %c0_0] : memref<512x1xf32, #tpu.memory_space<vmem>>, vector<478x1xf32>
    %c0_1 = arith.constant 0 : index
    %c0_2 = arith.constant 0 : index
    %2 = vector.load %arg1[%c0_1, %c0_2] : memref<9x32xf32, #tpu.memory_space<vmem>>, vector<1x32xf32>
    %3 = vector.broadcast %1 : vector<478x1xf32> to vector<478x32xf32>
    %4 = vector.broadcast %2 : vector<1x32xf32> to vector<478x32xf32>
    %5 = arith.mulf %3, %4 : vector<478x32xf32>
    %6 = arith.addf %0, %5 : vector<478x32xf32>
    %c1 = arith.constant 1 : index
    %c0_3 = arith.constant 0 : index
    %7 = vector.load %arg0[%c1, %c0_3] : memref<512x1xf32, #tpu.memory_space<vmem>>, vector<478x1xf32>
    %c1_4 = arith.constant 1 : index
    %c0_5 = arith.constant 0 : index
    %8 = vector.load %arg1[%c1_4, %c0_5] : memref<9x32xf32, #tpu.memory_space<vmem>>, vector<1x32xf32>
    %9 = vector.broadcast %7 : vector<478x1xf32> to vector<478x32xf32>
    %10 = vector.broadcast %8 : vector<1x32xf32> to vector<478x32xf32>
    %11 = arith.mulf %9, %10 : vector<478x32xf32>
    %12 = arith.addf %6, %11 : vector<478x32xf32>
    %c2 = arith.constant 2 : index
    %c0_6 = arith.constant 0 : index
    %13 = vector.load %arg0[%c2, %c0_6] : memref<512x1xf32, #tpu.memory_space<vmem>>, vector<478x1xf32>
    %c2_7 = arith.constant 2 : index
    %c0_8 = arith.constant 0 : index
    %14 = vector.load %arg1[%c2_7, %c0_8] : memref<9x32xf32, #tpu.memory_space<vmem>>, vector<1x32xf32>
    %15 = vector.broadcast %13 : vector<478x1xf32> to vector<478x32xf32>
    %16 = vector.broadcast %14 : vector<1x32xf32> to vector<478x32xf32>
    %17 = arith.mulf %15, %16 : vector<478x32xf32>
    %18 = arith.addf %12, %17 : vector<478x32xf32>
    %c16 = arith.constant 16 : index
    %c0_9 = arith.constant 0 : index
    %19 = vector.load %arg0[%c16, %c0_9] : memref<512x1xf32, #tpu.memory_space<vmem>>, vector<478x1xf32>
    %c3 = arith.constant 3 : index
    %c0_10 = arith.constant 0 : index
    %20 = vector.load %arg1[%c3, %c0_10] : memref<9x32xf32, #tpu.memory_space<vmem>>, vector<1x32xf32>
    %21 = vector.broadcast %19 : vector<478x1xf32> to vector<478x32xf32>
    %22 = vector.broadcast %20 : vector<1x32xf32> to vector<478x32xf32>
    %23 = arith.mulf %21, %22 : vector<478x32xf32>
    %24 = arith.addf %18, %23 : vector<478x32xf32>
    %c17 = arith.constant 17 : index
    %c0_11 = arith.constant 0 : index
    %25 = vector.load %arg0[%c17, %c0_11] : memref<512x1xf32, #tpu.memory_space<vmem>>, vector<478x1xf32>
    %c4 = arith.constant 4 : index
    %c0_12 = arith.constant 0 : index
    %26 = vector.load %arg1[%c4, %c0_12] : memref<9x32xf32, #tpu.memory_space<vmem>>, vector<1x32xf32>
    %27 = vector.broadcast %25 : vector<478x1xf32> to vector<478x32xf32>
    %28 = vector.broadcast %26 : vector<1x32xf32> to vector<478x32xf32>
    %29 = arith.mulf %27, %28 : vector<478x32xf32>
    %30 = arith.addf %24, %29 : vector<478x32xf32>
    %c18 = arith.constant 18 : index
    %c0_13 = arith.constant 0 : index
    %31 = vector.load %arg0[%c18, %c0_13] : memref<512x1xf32, #tpu.memory_space<vmem>>, vector<478x1xf32>
    %c5 = arith.constant 5 : index
    %c0_14 = arith.constant 0 : index
    %32 = vector.load %arg1[%c5, %c0_14] : memref<9x32xf32, #tpu.memory_space<vmem>>, vector<1x32xf32>
    %33 = vector.broadcast %31 : vector<478x1xf32> to vector<478x32xf32>
    %34 = vector.broadcast %32 : vector<1x32xf32> to vector<478x32xf32>
    %35 = arith.mulf %33, %34 : vector<478x32xf32>
    %36 = arith.addf %30, %35 : vector<478x32xf32>
    %c32 = arith.constant 32 : index
    %c0_15 = arith.constant 0 : index
    %37 = vector.load %arg0[%c32, %c0_15] : memref<512x1xf32, #tpu.memory_space<vmem>>, vector<478x1xf32>
    %c6 = arith.constant 6 : index
    %c0_16 = arith.constant 0 : index
    %38 = vector.load %arg1[%c6, %c0_16] : memref<9x32xf32, #tpu.memory_space<vmem>>, vector<1x32xf32>
    %39 = vector.broadcast %37 : vector<478x1xf32> to vector<478x32xf32>
    %40 = vector.broadcast %38 : vector<1x32xf32> to vector<478x32xf32>
    %41 = arith.mulf %39, %40 : vector<478x32xf32>
    %42 = arith.addf %36, %41 : vector<478x32xf32>
    %c33 = arith.constant 33 : index
    %c0_17 = arith.constant 0 : index
    %43 = vector.load %arg0[%c33, %c0_17] : memref<512x1xf32, #tpu.memory_space<vmem>>, vector<478x1xf32>
    %c7 = arith.constant 7 : index
    %c0_18 = arith.constant 0 : index
    %44 = vector.load %arg1[%c7, %c0_18] : memref<9x32xf32, #tpu.memory_space<vmem>>, vector<1x32xf32>
    %45 = vector.broadcast %43 : vector<478x1xf32> to vector<478x32xf32>
    %46 = vector.broadcast %44 : vector<1x32xf32> to vector<478x32xf32>
    %47 = arith.mulf %45, %46 : vector<478x32xf32>
    %48 = arith.addf %42, %47 : vector<478x32xf32>
    %c34 = arith.constant 34 : index
    %c0_19 = arith.constant 0 : index
    %49 = vector.load %arg0[%c34, %c0_19] : memref<512x1xf32, #tpu.memory_space<vmem>>, vector<478x1xf32>
    %c8 = arith.constant 8 : index
    %c0_20 = arith.constant 0 : index
    %50 = vector.load %arg1[%c8, %c0_20] : memref<9x32xf32, #tpu.memory_space<vmem>>, vector<1x32xf32>
    %51 = vector.broadcast %49 : vector<478x1xf32> to vector<478x32xf32>
    %52 = vector.broadcast %50 : vector<1x32xf32> to vector<478x32xf32>
    %53 = arith.mulf %51, %52 : vector<478x32xf32>
    %54 = arith.addf %48, %53 : vector<478x32xf32>
    %c0_21 = arith.constant 0 : index
    %c0_22 = arith.constant 0 : index
    %55 = vector.load %arg2[%c0_21, %c0_22] : memref<3x32xf32, #tpu.memory_space<vmem>>, vector<1x32xf32>
    %c1_23 = arith.constant 1 : index
    %c0_24 = arith.constant 0 : index
    %56 = vector.load %arg2[%c1_23, %c0_24] : memref<3x32xf32, #tpu.memory_space<vmem>>, vector<1x32xf32>
    %c2_25 = arith.constant 2 : index
    %c0_26 = arith.constant 0 : index
    %57 = vector.load %arg2[%c2_25, %c0_26] : memref<3x32xf32, #tpu.memory_space<vmem>>, vector<1x32xf32>
    %58 = vector.broadcast %55 : vector<1x32xf32> to vector<478x32xf32>
    %59 = arith.addf %54, %58 : vector<478x32xf32>
    %cst_27 = arith.constant 0.000000e+00 : f32
    %60 = vector.broadcast %cst_27 : f32 to vector<478x32xf32>
    %61 = arith.maximumf %59, %60 : vector<478x32xf32>
    %62 = vector.broadcast %56 : vector<1x32xf32> to vector<478x32xf32>
    %63 = arith.mulf %61, %62 : vector<478x32xf32>
    %64 = vector.broadcast %57 : vector<1x32xf32> to vector<478x32xf32>
    %65 = arith.addf %63, %64 : vector<478x32xf32>
    %c0_28 = arith.constant 0 : index
    %c0_29 = arith.constant 0 : index
    %66 = vector.load %arg11[%c0_28, %c0_29] : memref<478x32xf32, #tpu.memory_space<vmem>>, vector<478x32xf32>
    tpu.vector_store %arg11[%c0_28, %c0_29], %65 {strides = array<i32>} : memref<478x32xf32, #tpu.memory_space<vmem>>, vector<478x32xf32>,
    %cst_30 = arith.constant 0.000000e+00 : f32
    %67 = vector.broadcast %cst_30 : f32 to vector<444x64xf32>
    %c0_31 = arith.constant 0 : index
    %c0_32 = arith.constant 0 : index
    %68 = vector.load %arg11[%c0_31, %c0_32] : memref<478x32xf32, #tpu.memory_space<vmem>>, vector<444x32xf32>
    %69 = arith.truncf %68 : vector<444x32xf32> to vector<444x32xbf16>
    %c0_33 = arith.constant 0 : index
    %c0_34 = arith.constant 0 : index
    %70 = vector.load %arg3[%c0_33, %c0_34] : memref<288x64xbf16, #tpu.memory_space<vmem>>, vector<32x64xbf16>
    %cst_35 = arith.constant dense<0.000000e+00> : vector<444x64xf32>
    %71 = tpu.matmul %69, %70, %cst_35 {dimension_numbers = #tpu.dot_dimension_numbers<[1], [0], [0], [1], [0, 0, 1, 1], [], []>} : vector<444x32xbf16>, vector<32x64xbf16>, vector<444x64xf32> -> vector<444x64xf32>
    %72 = arith.addf %67, %71 : vector<444x64xf32>
    %c1_36 = arith.constant 1 : index
    %c0_37 = arith.constant 0 : index
    %73 = vector.load %arg11[%c1_36, %c0_37] : memref<478x32xf32, #tpu.memory_space<vmem>>, vector<444x32xf32>
    %74 = arith.truncf %73 : vector<444x32xf32> to vector<444x32xbf16>
    %c32_38 = arith.constant 32 : index
    %c0_39 = arith.constant 0 : index
    %75 = vector.load %arg3[%c32_38, %c0_39] : memref<288x64xbf16, #tpu.memory_space<vmem>>, vector<32x64xbf16>
    %cst_40 = arith.constant dense<0.000000e+00> : vector<444x64xf32>
    %76 = tpu.matmul %74, %75, %cst_40 {dimension_numbers = #tpu.dot_dimension_numbers<[1], [0], [0], [1], [0, 0, 1, 1], [], []>} : vector<444x32xbf16>, vector<32x64xbf16>, vector<444x64xf32> -> vector<444x64xf32>
    %77 = arith.addf %72, %76 : vector<444x64xf32>
    %c2_41 = arith.constant 2 : index
    %c0_42 = arith.constant 0 : index
    %78 = vector.load %arg11[%c2_41, %c0_42] : memref<478x32xf32, #tpu.memory_space<vmem>>, vector<444x32xf32>
    %79 = arith.truncf %78 : vector<444x32xf32> to vector<444x32xbf16>
    %c64 = arith.constant 64 : index
    %c0_43 = arith.constant 0 : index
    %80 = vector.load %arg3[%c64, %c0_43] : memref<288x64xbf16, #tpu.memory_space<vmem>>, vector<32x64xbf16>
    %cst_44 = arith.constant dense<0.000000e+00> : vector<444x64xf32>
    %81 = tpu.matmul %79, %80, %cst_44 {dimension_numbers = #tpu.dot_dimension_numbers<[1], [0], [0], [1], [0, 0, 1, 1], [], []>} : vector<444x32xbf16>, vector<32x64xbf16>, vector<444x64xf32> -> vector<444x64xf32>
    %82 = arith.addf %77, %81 : vector<444x64xf32>
    %c16_45 = arith.constant 16 : index
    %c0_46 = arith.constant 0 : index
    %83 = vector.load %arg11[%c16_45, %c0_46] : memref<478x32xf32, #tpu.memory_space<vmem>>, vector<444x32xf32>
    %84 = arith.truncf %83 : vector<444x32xf32> to vector<444x32xbf16>
    %c96 = arith.constant 96 : index
    %c0_47 = arith.constant 0 : index
    %85 = vector.load %arg3[%c96, %c0_47] : memref<288x64xbf16, #tpu.memory_space<vmem>>, vector<32x64xbf16>
    %cst_48 = arith.constant dense<0.000000e+00> : vector<444x64xf32>
    %86 = tpu.matmul %84, %85, %cst_48 {dimension_numbers = #tpu.dot_dimension_numbers<[1], [0], [0], [1], [0, 0, 1, 1], [], []>} : vector<444x32xbf16>, vector<32x64xbf16>, vector<444x64xf32> -> vector<444x64xf32>
    %87 = arith.addf %82, %86 : vector<444x64xf32>
    %c17_49 = arith.constant 17 : index
    %c0_50 = arith.constant 0 : index
    %88 = vector.load %arg11[%c17_49, %c0_50] : memref<478x32xf32, #tpu.memory_space<vmem>>, vector<444x32xf32>
    %89 = arith.truncf %88 : vector<444x32xf32> to vector<444x32xbf16>
    %c128 = arith.constant 128 : index
    %c0_51 = arith.constant 0 : index
    %90 = vector.load %arg3[%c128, %c0_51] : memref<288x64xbf16, #tpu.memory_space<vmem>>, vector<32x64xbf16>
    %cst_52 = arith.constant dense<0.000000e+00> : vector<444x64xf32>
    %91 = tpu.matmul %89, %90, %cst_52 {dimension_numbers = #tpu.dot_dimension_numbers<[1], [0], [0], [1], [0, 0, 1, 1], [], []>} : vector<444x32xbf16>, vector<32x64xbf16>, vector<444x64xf32> -> vector<444x64xf32>
    %92 = arith.addf %87, %91 : vector<444x64xf32>
    %c18_53 = arith.constant 18 : index
    %c0_54 = arith.constant 0 : index
    %93 = vector.load %arg11[%c18_53, %c0_54] : memref<478x32xf32, #tpu.memory_space<vmem>>, vector<444x32xf32>
    %94 = arith.truncf %93 : vector<444x32xf32> to vector<444x32xbf16>
    %c160 = arith.constant 160 : index
    %c0_55 = arith.constant 0 : index
    %95 = vector.load %arg3[%c160, %c0_55] : memref<288x64xbf16, #tpu.memory_space<vmem>>, vector<32x64xbf16>
    %cst_56 = arith.constant dense<0.000000e+00> : vector<444x64xf32>
    %96 = tpu.matmul %94, %95, %cst_56 {dimension_numbers = #tpu.dot_dimension_numbers<[1], [0], [0], [1], [0, 0, 1, 1], [], []>} : vector<444x32xbf16>, vector<32x64xbf16>, vector<444x64xf32> -> vector<444x64xf32>
    %97 = arith.addf %92, %96 : vector<444x64xf32>
    %c32_57 = arith.constant 32 : index
    %c0_58 = arith.constant 0 : index
    %98 = vector.load %arg11[%c32_57, %c0_58] : memref<478x32xf32, #tpu.memory_space<vmem>>, vector<444x32xf32>
    %99 = arith.truncf %98 : vector<444x32xf32> to vector<444x32xbf16>
    %c192 = arith.constant 192 : index
    %c0_59 = arith.constant 0 : index
    %100 = vector.load %arg3[%c192, %c0_59] : memref<288x64xbf16, #tpu.memory_space<vmem>>, vector<32x64xbf16>
    %cst_60 = arith.constant dense<0.000000e+00> : vector<444x64xf32>
    %101 = tpu.matmul %99, %100, %cst_60 {dimension_numbers = #tpu.dot_dimension_numbers<[1], [0], [0], [1], [0, 0, 1, 1], [], []>} : vector<444x32xbf16>, vector<32x64xbf16>, vector<444x64xf32> -> vector<444x64xf32>
    %102 = arith.addf %97, %101 : vector<444x64xf32>
    %c33_61 = arith.constant 33 : index
    %c0_62 = arith.constant 0 : index
    %103 = vector.load %arg11[%c33_61, %c0_62] : memref<478x32xf32, #tpu.memory_space<vmem>>, vector<444x32xf32>
    %104 = arith.truncf %103 : vector<444x32xf32> to vector<444x32xbf16>
    %c224 = arith.constant 224 : index
    %c0_63 = arith.constant 0 : index
    %105 = vector.load %arg3[%c224, %c0_63] : memref<288x64xbf16, #tpu.memory_space<vmem>>, vector<32x64xbf16>
    %cst_64 = arith.constant dense<0.000000e+00> : vector<444x64xf32>
    %106 = tpu.matmul %104, %105, %cst_64 {dimension_numbers = #tpu.dot_dimension_numbers<[1], [0], [0], [1], [0, 0, 1, 1], [], []>} : vector<444x32xbf16>, vector<32x64xbf16>, vector<444x64xf32> -> vector<444x64xf32>
    %107 = arith.addf %102, %106 : vector<444x64xf32>
    %c34_65 = arith.constant 34 : index
    %c0_66 = arith.constant 0 : index
    %108 = vector.load %arg11[%c34_65, %c0_66] : memref<478x32xf32, #tpu.memory_space<vmem>>, vector<444x32xf32>
    %109 = arith.truncf %108 : vector<444x32xf32> to vector<444x32xbf16>
    %c256 = arith.constant 256 : index
    %c0_67 = arith.constant 0 : index
    %110 = vector.load %arg3[%c256, %c0_67] : memref<288x64xbf16, #tpu.memory_space<vmem>>, vector<32x64xbf16>
    %cst_68 = arith.constant dense<0.000000e+00> : vector<444x64xf32>
    %111 = tpu.matmul %109, %110, %cst_68 {dimension_numbers = #tpu.dot_dimension_numbers<[1], [0], [0], [1], [0, 0, 1, 1], [], []>} : vector<444x32xbf16>, vector<32x64xbf16>, vector<444x64xf32> -> vector<444x64xf32>
    %112 = arith.addf %107, %111 : vector<444x64xf32>
    %c0_69 = arith.constant 0 : index
    %c0_70 = arith.constant 0 : index
    %113 = vector.load %arg4[%c0_69, %c0_70] : memref<3x64xf32, #tpu.memory_space<vmem>>, vector<1x64xf32>
    %c1_71 = arith.constant 1 : index
    %c0_72 = arith.constant 0 : index
    %114 = vector.load %arg4[%c1_71, %c0_72] : memref<3x64xf32, #tpu.memory_space<vmem>>, vector<1x64xf32>
    %c2_73 = arith.constant 2 : index
    %c0_74 = arith.constant 0 : index
    %115 = vector.load %arg4[%c2_73, %c0_74] : memref<3x64xf32, #tpu.memory_space<vmem>>, vector<1x64xf32>
    %116 = vector.broadcast %113 : vector<1x64xf32> to vector<444x64xf32>
    %117 = arith.addf %112, %116 : vector<444x64xf32>
    %cst_75 = arith.constant 0.000000e+00 : f32
    %118 = vector.broadcast %cst_75 : f32 to vector<444x64xf32>
    %119 = arith.maximumf %117, %118 : vector<444x64xf32>
    %120 = vector.broadcast %114 : vector<1x64xf32> to vector<444x64xf32>
    %121 = arith.mulf %119, %120 : vector<444x64xf32>
    %122 = vector.broadcast %115 : vector<1x64xf32> to vector<444x64xf32>
    %123 = arith.addf %121, %122 : vector<444x64xf32>
    %c0_76 = arith.constant 0 : index
    %c0_77 = arith.constant 0 : index
    %124 = vector.load %arg12[%c0_76, %c0_77] : memref<444x64xf32, #tpu.memory_space<vmem>>, vector<444x64xf32>
    tpu.vector_store %arg12[%c0_76, %c0_77], %123 {strides = array<i32>} : memref<444x64xf32, #tpu.memory_space<vmem>>, vector<444x64xf32>,
    %cst_78 = arith.constant 0.000000e+00 : f32
    %125 = vector.broadcast %cst_78 : f32 to vector<410x128xf32>
    %c0_79 = arith.constant 0 : index
    %c0_80 = arith.constant 0 : index
    %126 = vector.load %arg12[%c0_79, %c0_80] : memref<444x64xf32, #tpu.memory_space<vmem>>, vector<410x64xf32>
    %127 = arith.truncf %126 : vector<410x64xf32> to vector<410x64xbf16>
    %c0_81 = arith.constant 0 : index
    %c0_82 = arith.constant 0 : index
    %128 = vector.load %arg5[%c0_81, %c0_82] : memref<576x128xbf16, #tpu.memory_space<vmem>>, vector<64x128xbf16>
    %cst_83 = arith.constant dense<0.000000e+00> : vector<410x128xf32>
    %129 = tpu.matmul %127, %128, %cst_83 {dimension_numbers = #tpu.dot_dimension_numbers<[1], [0], [0], [1], [0, 0, 1, 1], [], []>} : vector<410x64xbf16>, vector<64x128xbf16>, vector<410x128xf32> -> vector<410x128xf32>
    %130 = arith.addf %125, %129 : vector<410x128xf32>
    %c1_84 = arith.constant 1 : index
    %c0_85 = arith.constant 0 : index
    %131 = vector.load %arg12[%c1_84, %c0_85] : memref<444x64xf32, #tpu.memory_space<vmem>>, vector<410x64xf32>
    %132 = arith.truncf %131 : vector<410x64xf32> to vector<410x64xbf16>
    %c64_86 = arith.constant 64 : index
    %c0_87 = arith.constant 0 : index
    %133 = vector.load %arg5[%c64_86, %c0_87] : memref<576x128xbf16, #tpu.memory_space<vmem>>, vector<64x128xbf16>
    %cst_88 = arith.constant dense<0.000000e+00> : vector<410x128xf32>
    %134 = tpu.matmul %132, %133, %cst_88 {dimension_numbers = #tpu.dot_dimension_numbers<[1], [0], [0], [1], [0, 0, 1, 1], [], []>} : vector<410x64xbf16>, vector<64x128xbf16>, vector<410x128xf32> -> vector<410x128xf32>
    %135 = arith.addf %130, %134 : vector<410x128xf32>
    %c2_89 = arith.constant 2 : index
    %c0_90 = arith.constant 0 : index
    %136 = vector.load %arg12[%c2_89, %c0_90] : memref<444x64xf32, #tpu.memory_space<vmem>>, vector<410x64xf32>
    %137 = arith.truncf %136 : vector<410x64xf32> to vector<410x64xbf16>
    %c128_91 = arith.constant 128 : index
    %c0_92 = arith.constant 0 : index
    %138 = vector.load %arg5[%c128_91, %c0_92] : memref<576x128xbf16, #tpu.memory_space<vmem>>, vector<64x128xbf16>
    %cst_93 = arith.constant dense<0.000000e+00> : vector<410x128xf32>
    %139 = tpu.matmul %137, %138, %cst_93 {dimension_numbers = #tpu.dot_dimension_numbers<[1], [0], [0], [1], [0, 0, 1, 1], [], []>} : vector<410x64xbf16>, vector<64x128xbf16>, vector<410x128xf32> -> vector<410x128xf32>
    %140 = arith.addf %135, %139 : vector<410x128xf32>
    %c16_94 = arith.constant 16 : index
    %c0_95 = arith.constant 0 : index
    %141 = vector.load %arg12[%c16_94, %c0_95] : memref<444x64xf32, #tpu.memory_space<vmem>>, vector<410x64xf32>
    %142 = arith.truncf %141 : vector<410x64xf32> to vector<410x64xbf16>
    %c192_96 = arith.constant 192 : index
    %c0_97 = arith.constant 0 : index
    %143 = vector.load %arg5[%c192_96, %c0_97] : memref<576x128xbf16, #tpu.memory_space<vmem>>, vector<64x128xbf16>
    %cst_98 = arith.constant dense<0.000000e+00> : vector<410x128xf32>
    %144 = tpu.matmul %142, %143, %cst_98 {dimension_numbers = #tpu.dot_dimension_numbers<[1], [0], [0], [1], [0, 0, 1, 1], [], []>} : vector<410x64xbf16>, vector<64x128xbf16>, vector<410x128xf32> -> vector<410x128xf32>
    %145 = arith.addf %140, %144 : vector<410x128xf32>
    %c17_99 = arith.constant 17 : index
    %c0_100 = arith.constant 0 : index
    %146 = vector.load %arg12[%c17_99, %c0_100] : memref<444x64xf32, #tpu.memory_space<vmem>>, vector<410x64xf32>
    %147 = arith.truncf %146 : vector<410x64xf32> to vector<410x64xbf16>
    %c256_101 = arith.constant 256 : index
    %c0_102 = arith.constant 0 : index
    %148 = vector.load %arg5[%c256_101, %c0_102] : memref<576x128xbf16, #tpu.memory_space<vmem>>, vector<64x128xbf16>
    %cst_103 = arith.constant dense<0.000000e+00> : vector<410x128xf32>
    %149 = tpu.matmul %147, %148, %cst_103 {dimension_numbers = #tpu.dot_dimension_numbers<[1], [0], [0], [1], [0, 0, 1, 1], [], []>} : vector<410x64xbf16>, vector<64x128xbf16>, vector<410x128xf32> -> vector<410x128xf32>
    %150 = arith.addf %145, %149 : vector<410x128xf32>
    %c18_104 = arith.constant 18 : index
    %c0_105 = arith.constant 0 : index
    %151 = vector.load %arg12[%c18_104, %c0_105] : memref<444x64xf32, #tpu.memory_space<vmem>>, vector<410x64xf32>
    %152 = arith.truncf %151 : vector<410x64xf32> to vector<410x64xbf16>
    %c320 = arith.constant 320 : index
    %c0_106 = arith.constant 0 : index
    %153 = vector.load %arg5[%c320, %c0_106] : memref<576x128xbf16, #tpu.memory_space<vmem>>, vector<64x128xbf16>
    %cst_107 = arith.constant dense<0.000000e+00> : vector<410x128xf32>
    %154 = tpu.matmul %152, %153, %cst_107 {dimension_numbers = #tpu.dot_dimension_numbers<[1], [0], [0], [1], [0, 0, 1, 1], [], []>} : vector<410x64xbf16>, vector<64x128xbf16>, vector<410x128xf32> -> vector<410x128xf32>
    %155 = arith.addf %150, %154 : vector<410x128xf32>
    %c32_108 = arith.constant 32 : index
    %c0_109 = arith.constant 0 : index
    %156 = vector.load %arg12[%c32_108, %c0_109] : memref<444x64xf32, #tpu.memory_space<vmem>>, vector<410x64xf32>
    %157 = arith.truncf %156 : vector<410x64xf32> to vector<410x64xbf16>
    %c384 = arith.constant 384 : index
    %c0_110 = arith.constant 0 : index
    %158 = vector.load %arg5[%c384, %c0_110] : memref<576x128xbf16, #tpu.memory_space<vmem>>, vector<64x128xbf16>
    %cst_111 = arith.constant dense<0.000000e+00> : vector<410x128xf32>
    %159 = tpu.matmul %157, %158, %cst_111 {dimension_numbers = #tpu.dot_dimension_numbers<[1], [0], [0], [1], [0, 0, 1, 1], [], []>} : vector<410x64xbf16>, vector<64x128xbf16>, vector<410x128xf32> -> vector<410x128xf32>
    %160 = arith.addf %155, %159 : vector<410x128xf32>
    %c33_112 = arith.constant 33 : index
    %c0_113 = arith.constant 0 : index
    %161 = vector.load %arg12[%c33_112, %c0_113] : memref<444x64xf32, #tpu.memory_space<vmem>>, vector<410x64xf32>
    %162 = arith.truncf %161 : vector<410x64xf32> to vector<410x64xbf16>
    %c448 = arith.constant 448 : index
    %c0_114 = arith.constant 0 : index
    %163 = vector.load %arg5[%c448, %c0_114] : memref<576x128xbf16, #tpu.memory_space<vmem>>, vector<64x128xbf16>
    %cst_115 = arith.constant dense<0.000000e+00> : vector<410x128xf32>
    %164 = tpu.matmul %162, %163, %cst_115 {dimension_numbers = #tpu.dot_dimension_numbers<[1], [0], [0], [1], [0, 0, 1, 1], [], []>} : vector<410x64xbf16>, vector<64x128xbf16>, vector<410x128xf32> -> vector<410x128xf32>
    %165 = arith.addf %160, %164 : vector<410x128xf32>
    %c34_116 = arith.constant 34 : index
    %c0_117 = arith.constant 0 : index
    %166 = vector.load %arg12[%c34_116, %c0_117] : memref<444x64xf32, #tpu.memory_space<vmem>>, vector<410x64xf32>
    %167 = arith.truncf %166 : vector<410x64xf32> to vector<410x64xbf16>
    %c512 = arith.constant 512 : index
    %c0_118 = arith.constant 0 : index
    %168 = vector.load %arg5[%c512, %c0_118] : memref<576x128xbf16, #tpu.memory_space<vmem>>, vector<64x128xbf16>
    %cst_119 = arith.constant dense<0.000000e+00> : vector<410x128xf32>
    %169 = tpu.matmul %167, %168, %cst_119 {dimension_numbers = #tpu.dot_dimension_numbers<[1], [0], [0], [1], [0, 0, 1, 1], [], []>} : vector<410x64xbf16>, vector<64x128xbf16>, vector<410x128xf32> -> vector<410x128xf32>
    %170 = arith.addf %165, %169 : vector<410x128xf32>
    %c0_120 = arith.constant 0 : index
    %c0_121 = arith.constant 0 : index
    %171 = vector.load %arg6[%c0_120, %c0_121] : memref<3x128xf32, #tpu.memory_space<vmem>>, vector<1x128xf32>
    %c1_122 = arith.constant 1 : index
    %c0_123 = arith.constant 0 : index
    %172 = vector.load %arg6[%c1_122, %c0_123] : memref<3x128xf32, #tpu.memory_space<vmem>>, vector<1x128xf32>
    %c2_124 = arith.constant 2 : index
    %c0_125 = arith.constant 0 : index
    %173 = vector.load %arg6[%c2_124, %c0_125] : memref<3x128xf32, #tpu.memory_space<vmem>>, vector<1x128xf32>
    %174 = vector.broadcast %171 : vector<1x128xf32> to vector<410x128xf32>
    %175 = arith.addf %170, %174 : vector<410x128xf32>
    %cst_126 = arith.constant 0.000000e+00 : f32
    %176 = vector.broadcast %cst_126 : f32 to vector<410x128xf32>
    %177 = arith.maximumf %175, %176 : vector<410x128xf32>
    %178 = vector.broadcast %172 : vector<1x128xf32> to vector<410x128xf32>
    %179 = arith.mulf %177, %178 : vector<410x128xf32>
    %180 = vector.broadcast %173 : vector<1x128xf32> to vector<410x128xf32>
    %181 = arith.addf %179, %180 : vector<410x128xf32>
    %c0_127 = arith.constant 0 : index
    %c0_128 = arith.constant 0 : index
    %182 = vector.load %arg7[%c0_127, %c0_128] : memref<2x410xf32, #tpu.memory_space<vmem>>, vector<2x410xf32>
    %cst_129 = arith.constant dense<0.000000e+00> : vector<2x128xf32>
    %183 = tpu.matmul %182, %181, %cst_129 {dimension_numbers = #tpu.dot_dimension_numbers<[1], [0], [0], [1], [0, 0, 1, 1], [], []>} : vector<2x410xf32>, vector<410x128xf32>, vector<2x128xf32> -> vector<2x128xf32>
    %c0_130 = arith.constant 0 : index
    %c0_131 = arith.constant 0 : index
    %184 = vector.load %arg8[%c0_130, %c0_131] : memref<128x2xf32, #tpu.memory_space<vmem>>, vector<128x2xf32>
    %cst_132 = arith.constant dense<0.000000e+00> : vector<2x2xf32>
    %185 = tpu.matmul %183, %184, %cst_132 {dimension_numbers = #tpu.dot_dimension_numbers<[1], [0], [0], [1], [0, 0, 1, 1], [], []>} : vector<2x128xf32>, vector<128x2xf32>, vector<2x2xf32> -> vector<2x2xf32>
    %c0_133 = arith.constant 0 : index
    %c0_134 = arith.constant 0 : index
    %186 = vector.load %arg9[%c0_133, %c0_134] : memref<1x2xf32, #tpu.memory_space<vmem>>, vector<1x2xf32>
    %187 = vector.broadcast %186 : vector<1x2xf32> to vector<2x2xf32>
    %188 = arith.addf %185, %187 : vector<2x2xf32>
    %c0_135 = arith.constant 0 : index
    %c0_136 = arith.constant 0 : index
    %189 = vector.load %arg10[%c0_135, %c0_136] : memref<2x2xf32, #tpu.memory_space<vmem>>, vector<2x2xf32>
    tpu.vector_store %arg10[%c0_135, %c0_136], %188 {strides = array<i32>} : memref<2x2xf32, #tpu.memory_space<vmem>>, vector<2x2xf32>,
    return
  }
}

</mosaic_0001>

<bundles_post_ra>
// kernel: segmentation_model.1
= control target key start
LH: loop header
LB: loop body
LE: loop exit
PB: predicated region body
PF: predicated region fallthrough
CT: control target
= control target key end

     0   :  { %v17462_v2 = vmov 0   ;;  %s22923_s0 = inlined_call_operand.vmem [shape: f32[512,1], index: 0, kind: input, shape index: {}]   ;;  %s22924_s1 = inlined_call_operand.vmem [shape: f32[9,32], index: 1, kind: input, shape index: {}]   ;;  %s22925_s2 = inlined_call_operand.vmem [shape: f32[3,32], index: 2, kind: input, shape index: {}]   ;;  %s22926_s3 = inlined_call_operand.vmem [shape: bf16[288,64], index: 3, kind: input, shape index: {}]   ;;  %s22927_s4 = inlined_call_operand.vmem [shape: f32[3,64], index: 4, kind: input, shape index: {}]   ;;  %s22928_s5 = inlined_call_operand.vmem [shape: bf16[576,128], index: 5, kind: input, shape index: {}]   ;;  %s22929_s6 = inlined_call_operand.vmem [shape: f32[3,128], index: 6, kind: input, shape index: {}]   ;;  %s22930_s7 = inlined_call_operand.vmem [shape: f32[2,410], index: 7, kind: input, shape index: {}]   ;;  %s22931_s8 = inlined_call_operand.vmem [shape: f32[128,2], index: 8, kind: input, shape index: {}]   ;;  %s22932_s9 = inlined_call_operand.vmem [shape: f32[1,2], index: 9, kind: input, shape index: {}]   ;;  %s22933_s10 = inlined_call_operand.hbm [shape: f32[2,2], index: 10, kind: output, shape index: {}]  }
   0x1   :  { %v39_v0 = vld [vmem:[%s22923_s0 + $0x10] sm:$0xff]  ;;  %v37_v1 = vld [vmem:[%s22923_s0] sm:$0xff]  ;;  %17334 = vset.pattern.permute.xlu1 %v17462_v2  ;;  %17333 = vset.pattern.permute.xlu0 %v17462_v2  ;;  %v38_v4 = vld [vmem:[%s22923_s0 + $0x8] sm:$0xff] }
   0x2   :  { %110 = vperm.xlu1 %17334, %v39_v0   ;;  %100 = vperm.xlu0 %17333, %v37_v1   ;;  %v522_v3 = vld [vmem:[%s22923_s0 + $0x1] sm:$0xff]  ;;  %v524_v5 = vld [vmem:[%s22923_s0 + $0x11] sm:$0xff]  ;;  %v523_v6 = vld [vmem:[%s22923_s0 + $0x9] sm:$0xff] }
   0x3   :  { %v41_v7 = vld [vmem:[%s22923_s0 + $0x20] sm:$0xff]  ;;  %v40_v8 = vld [vmem:[%s22923_s0 + $0x18] sm:$0xff]  ;;  %v1008_v11 = vld [vmem:[%s22923_s0 + $0xa] sm:$0xff] }
   0x4   :  { %v526_v9 = vld [vmem:[%s22923_s0 + $0x21] sm:$0xff]  ;;  %v525_v10 = vld [vmem:[%s22923_s0 + $0x19] sm:$0xff]  ;;  %v1496_v16 = vld [vmem:[%s22923_s0 + $0x30] sm:$0xff] }
   0x5   :  { %v1007_v12 = vld [vmem:[%s22923_s0 + $0x2] sm:$0xff]  ;;  %v1010_v13 = vld [vmem:[%s22923_s0 + $0x1a] sm:$0xff]  ;;  %v1009_v14 = vld [vmem:[%s22923_s0 + $0x12] sm:$0xff] }
   0x6   :  { %585 = vperm.xlu1 %17334, %v522_v3   ;;  %105 = vperm.xlu0 %17333, %v38_v4   ;;  %v1011_v15 = vld [vmem:[%s22923_s0 + $0x22] sm:$0xff]  ;;  %v1981_v19 = vld [vmem:[%s22923_s0 + $0x31] sm:$0xff] }
   0x7   :  { %v1495_v17 = vld [vmem:[%s22923_s0 + $0x28] sm:$0xff] }
   0x8   :  { %v1980_v18 = vld [vmem:[%s22923_s0 + $0x29] sm:$0xff] }
   0xa   :  { %595 = vperm.xlu1 %17334, %v524_v5   ;;  %590 = vperm.xlu0 %17333, %v523_v6  }
   0xe   :  { %120 = vperm.xlu1 %17334, %v41_v7   ;;  %115 = vperm.xlu0 %17333, %v40_v8  }
  0x12   :  { %605 = vperm.xlu1 %17334, %v526_v9   ;;  %600 = vperm.xlu0 %17333, %v525_v10  }
  0x16   :  { %1075 = vperm.xlu1 %17334, %v1008_v11   ;;  %1070 = vperm.xlu0 %17333, %v1007_v12  }
  0x1a   :  { %1085 = vperm.xlu1 %17334, %v1010_v13   ;;  %1080 = vperm.xlu0 %17333, %v1009_v14  }
  0x1e   :  { %1555 = vperm.xlu1 %17334, %v39_v0   ;;  %1090 = vperm.xlu0 %17333, %v1011_v15  }
  0x22   :  { %1565 = vperm.xlu1 %17334, %v41_v7   ;;  %1560 = vperm.xlu0 %17333, %v40_v8  }
  0x26   :  { %1575 = vperm.xlu1 %17334, %v1496_v16   ;;  %1570 = vperm.xlu0 %17333, %v1495_v17  }
  0x2a   :  { %2045 = vperm.xlu1 %17334, %v525_v10   ;;  %2040 = vperm.xlu0 %17333, %v524_v5  }
  0x2e   :  { %2055 = vperm.xlu1 %17334, %v1980_v18   ;;  %2050 = vperm.xlu0 %17333, %v526_v9  }
  0x32   :  { %125 = vperm.xlu1 %17334, %v1495_v17   ;;  %2060 = vperm.xlu0 %17333, %v1981_v19  }
  0x33   :  { %15 = vsyncpa [#allocation5], 0  ;;  %v45_v20 = vld [vmem:[%s22923_s0 + $0x40] sm:$0xff]  ;;  %v44_v21 = vld [vmem:[%s22923_s0 + $0x38] sm:$0xff]  ;;  %vm4657_vm0 = vcmask 261120   ;;  %vm4717_vm1 = vcmask 259072  }
  0x34   :  { %v530_v22 = vld [vmem:[%s22923_s0 + $0x41] sm:$0xff]  ;;  %v529_v23 = vld [vmem:[%s22923_s0 + $0x39] sm:$0xff]  ;;  %v2465_v25 = vld [vmem:[%s22923_s0 + $0x2a] sm:$0xff]  ;;  %vm9319_vm2 = vcmask 523264   ;;  %vm9375_vm3 = vcmask 519168   ;;  %vm13847_vm4 = vcmask 211968  }
  0x35   :  { %v2466_v24 = vld [vmem:[%s22923_s0 + $0x32] sm:$0xff]  ;;  %v1014_v26 = vld [vmem:[%s22923_s0 + $0x3a] sm:$0xff]  ;;  %v1015_v27 = vld [vmem:[%s22923_s0 + $0x42] sm:$0xff]  ;;  %vm13850_vm5 = vcmask 1041408   ;;  %vm17465_vm6 = vmmov 1   ;;  %vm17466_vm8 = vmmov 0  }
  0x36   :  { %610 = vperm.xlu1 %17334, %v1980_v18   ;;  %130 = vperm.xlu0 %17333, %v1496_v16   ;;  %v17608_v28 = vld [vmem:[%s22923_s0 + $0x50] sm:$0xff]  ;;  %v1499_v29 = vld [vmem:[%s22923_s0 + $0x48] sm:$0xff]  ;;  %v48_v38 = vld [vmem:[%s22923_s0 + $0x58] sm:$0xff]  ;;  %s17468_s12 = smov [#allocation4]   ;;  %vm14087_vm9 = vcmask 9216  }
  0x37   :  { %v17617_v30 = vld [vmem:[%s22923_s0 + $0x49] sm:$0xff]  ;;  %v17623_v31 = vld [vmem:[%s22923_s0 + $0x51] sm:$0xff]  ;;  %v533_v41 = vld [vmem:[%s22923_s0 + $0x59] sm:$0xff] }
  0x38   :  { %v49_v42 = vld [vmem:[%s22923_s0 + $0x60] sm:$0xff]  ;;  %v17335_v43 = vld [vmem:[%s22926_s3 + $0x10] sm:$0xff]   ;;  %v17336_v48 = vld [vmem:[%s22926_s3 + $0x18] sm:$0xff]  }
  0x39   :  { %15256 = vmatprep.subr.bf16.mxu0 %v17335_v43  ;;  %16458 = vmatprep.subr.bf16.mxu1 %v17335_v43  ;;  %v2469_v46 = vld [vmem:[%s22923_s0 + $0x4a] sm:$0xff]  ;;  %v534_v47 = vld [vmem:[%s22923_s0 + $0x61] sm:$0xff]  ;;  %v2470_v51 = vld [vmem:[%s22923_s0 + $0x52] sm:$0xff] }
  0x3a   :  { %2525 = vperm.xlu1 %17334, %v1009_v14   ;;  %615 = vperm.xlu0 %17333, %v1981_v19   ;;  %v1018_v56 = vld [vmem:[%s22923_s0 + $0x5a] sm:$0xff]  ;;  %v1019_v59 = vld [vmem:[%s22923_s0 + $0x62] sm:$0xff]  ;;  %v17723_v5 = vld [vmem:[%s22923_s0 + $0x70] sm:$0xff] }
  0x3b   :  { %15257 = vmatpush3.bf16.msra.mxu0 %v17335_v43  ;;  %16460 = vmatpush3.bf16.msra.mxu1 %v17335_v43  ;;  %v17712_v2 = vld [vmem:[%s22923_s0 + $0x68] sm:$0xff]  ;;  %v17819_v43 = vld [vmem:[%s22923_s0 + $0x72] sm:$0xff]  ;;  %vm16432_vm7 = vmpackc.low %vm13850_vm5, %vm17465_vm6 }
  0x3c   :  { %15258 = vmatprep.subr.bf16.mxu0 %v17336_v48  ;;  %16459 = vmatprep.subr.bf16.mxu1 %v17336_v48  ;;  %v17741_v12 = vld [vmem:[%s22923_s0 + $0x69] sm:$0xff] }
  0x3e   :  { %2535 = vperm.xlu1 %17334, %v1011_v15   ;;  %2530 = vperm.xlu0 %17333, %v1010_v13  }
  0x3f   :  { %15259 = vmatpush3.bf16.msra.mxu0 %v17336_v48  ;;  %16461 = vmatpush3.bf16.msra.mxu1 %v17336_v48  ;;  %v17828_v48 = vld [vmem:[%s22924_s1 + $0x1] ss:$0 sm:$0xff] }
  0x42   :  { %140 = vperm.xlu1 %17334, %v45_v20   ;;  %135 = vperm.xlu0 %17333, %v44_v21  }
  0x46   :  { %625 = vperm.xlu1 %17334, %v530_v22   ;;  %620 = vperm.xlu0 %17333, %v529_v23  }
  0x4a   :  { %2545 = vperm.xlu1 %17334, %v2466_v24   ;;  %2540 = vperm.xlu0 %17333, %v2465_v25  }
  0x4e   :  { %1100 = vperm.xlu1 %17334, %v2466_v24   ;;  %1095 = vperm.xlu0 %17333, %v2465_v25  }
  0x52   :  { %3015 = vperm.xlu1 %17334, %v1495_v17   ;;  %3010 = vperm.xlu0 %17333, %v41_v7  }
  0x56   :  { %1105 = vperm.xlu1 %17334, %v1014_v26   ;;  %3020 = vperm.xlu0 %17333, %v1496_v16  }
  0x5a   :  { %3025 = vperm.xlu1 %17334, %v44_v21   ;;  %1110 = vperm.xlu0 %17333, %v1015_v27  }
  0x5e   :  { %1580 = vperm.xlu1 %17334, %v44_v21   ;;  %3030 = vperm.xlu0 %17333, %v45_v20  }
  0x62   :  { %3495 = vperm.xlu1 %17334, %v526_v9   ;;  %1585 = vperm.xlu0 %17333, %v45_v20  }
  0x66   :  { %3505 = vperm.xlu1 %17334, %v1981_v19   ;;  %3500 = vperm.xlu0 %17333, %v1980_v18  }
  0x6a   :  { %1595 = vperm.xlu1 %17334, %v17608_v28   ;;  %1590 = vperm.xlu0 %17333, %v1499_v29  }
  0x6e   :  { %3515 = vperm.xlu1 %17334, %v530_v22   ;;  %3510 = vperm.xlu0 %17333, %v529_v23  }
  0x72   :  { %2070 = vperm.xlu1 %17334, %v530_v22   ;;  %2065 = vperm.xlu0 %17333, %v529_v23  }
  0x76   :  { %3985 = vperm.xlu1 %17334, %v2465_v25   ;;  %3980 = vperm.xlu0 %17333, %v1011_v15   ;;  %v17751_v15 = vld [vmem:[%s22923_s0 + $0x71] sm:$0xff] }
  0x7a   :  { %2075 = vperm.xlu1 %17334, %v17617_v30   ;;  %3990 = vperm.xlu0 %17333, %v2466_v24   ;;  %v17777_v24 = vld [vmem:[%s22923_s0 + $0x78] sm:$0xff] }
  0x7e   :  { %3995 = vperm.xlu1 %17334, %v1014_v26   ;;  %2080 = vperm.xlu0 %17333, %v17623_v31  }
  0x81   :  { %v17626_v32 = vpop.permute.xlu1 %110  ;;  %v17628_v33 = vpop.permute.xlu0 %100 }
  0x82   :  { %145 = vperm.xlu1 %17334, %v1499_v29   ;;  %4000 = vperm.xlu0 %17333, %v1015_v27  }
  0x85   :  { %v17630_v34 = vpop.permute.xlu1 %585  ;;  %v17632_v35 = vpop.permute.xlu0 %105 }
  0x86   :  { %630 = vperm.xlu1 %17334, %v17617_v30   ;;  %150 = vperm.xlu0 %17333, %v17608_v28  }
  0x89   :  { %v17636_v36 = vpop.permute.xlu1 %595  ;;  %v17638_v37 = vpop.permute.xlu0 %590 }
  0x8a   :  { %2550 = vperm.xlu1 %17334, %v1014_v26   ;;  %635 = vperm.xlu0 %17333, %v17623_v31  }
  0x8d   :  { %v17644_v39 = vpop.permute.xlu1 %120  ;;  %v17646_v40 = vpop.permute.xlu0 %115 }
  0x8e   :  { %155 = vperm.xlu1 %17334, %v48_v38   ;;  %2555 = vperm.xlu0 %17333, %v1015_v27   ;;  %v17787_v27 = vld [vmem:[%s22923_s0 + $0x79] sm:$0xff] }
  0x91   :  { %v17657_v44 = vpop.permute.xlu1 %605  ;;  %v17659_v45 = vpop.permute.xlu0 %600 }
  0x92   :  { %640 = vperm.xlu1 %17334, %v533_v41   ;;  %160 = vperm.xlu0 %17333, %v49_v42  }
  0x95   :  { %v17670_v49 = vpop.permute.xlu1 %1075  ;;  %v17672_v50 = vpop.permute.xlu0 %1070 }
  0x96   :  { %2560 = vperm.xlu1 %17334, %v2469_v46   ;;  %645 = vperm.xlu0 %17333, %v534_v47  }
  0x99   :  { %v17677_v52 = vpop.permute.xlu1 %1085  ;;  %v17679_v53 = vpop.permute.xlu0 %1080 }
  0x9a   :  { %1115 = vperm.xlu1 %17334, %v2469_v46   ;;  %2565 = vperm.xlu0 %17333, %v2470_v51  }
  0x9d   :  { %v17681_v54 = vpop.permute.xlu1 %1555  ;;  %v17683_v55 = vpop.permute.xlu0 %1090 }
  0x9e   :  { %3035 = vperm.xlu1 %17334, %v1499_v29   ;;  %1120 = vperm.xlu0 %17333, %v2470_v51  }
  0xa1   :  { %v17688_v57 = vpop.permute.xlu1 %1565  ;;  %v17690_v58 = vpop.permute.xlu0 %1560 }
  0xa2   :  { %1125 = vperm.xlu1 %17334, %v1018_v56   ;;  %3040 = vperm.xlu0 %17333, %v17608_v28   ;;  %v17792_v28 = vld [vmem:[%s22923_s0 + $0x80] sm:$0xff] }
  0xa5   :  { %v17696_v60 = vpop.permute.xlu1 %1575  ;;  %v17698_v61 = vpop.permute.xlu0 %1570 }
  0xa6   :  { %3045 = vperm.xlu1 %17334, %v48_v38   ;;  %1130 = vperm.xlu0 %17333, %v1019_v59  }
  0xa9   :  { %v17700_v62 = vpop.permute.xlu1 %2045  ;;  %v17702_v63 = vpop.permute.xlu0 %2040 }
  0xaa   :  { %1600 = vperm.xlu1 %17334, %v48_v38   ;;  %3050 = vperm.xlu0 %17333, %v49_v42   ;;  %v17808_v38 = vld [vmem:[%s22923_s0 + $0x81] sm:$0xff] }
  0xad   :  { %v17704_v0 = vpop.permute.xlu1 %2055  ;;  %v17706_v1 = vpop.permute.xlu0 %2050 }
  0xae   :  { %3520 = vperm.xlu1 %17334, %v17617_v30   ;;  %1605 = vperm.xlu0 %17333, %v49_v42  }
  0xb1   :  { %v17714_v3 = vpop.permute.xlu1 %125  ;;  %v17716_v4 = vpop.permute.xlu0 %2060 }
  0xb2   :  { %1610 = vperm.xlu1 %17334, %v17712_v2   ;;  %3525 = vperm.xlu0 %17333, %v17623_v31   ;;  %v17803_v31 = vld [vmem:[%s22923_s0 + $0x6a] sm:$0xff] }
  0xb5   :  { %v17725_v6 = vpop.permute.xlu1 %610  ;;  %v17727_v7 = vpop.permute.xlu0 %130 }
  0xb6   :  { %22942 = vst [vmem:[#allocation7_spill] sm:$0xff] %v17727_v7  ;;  %3530 = vperm.xlu1 %17334, %v533_v41   ;;  %1615 = vperm.xlu0 %17333, %v17723_v5  }
  0xb9   :  { %v17730_v8 = vpop.permute.xlu1 %2525  ;;  %v17732_v9 = vpop.permute.xlu0 %615 }
  0xba   :  { %22943 = vst [vmem:[#allocation8_spill] sm:$0xff] %v17732_v9  ;;  %2085 = vperm.xlu1 %17334, %v533_v41   ;;  %3535 = vperm.xlu0 %17333, %v534_v47  }
  0xbd   :  { %v17734_v10 = vpop.permute.xlu1 %2535  ;;  %v17736_v11 = vpop.permute.xlu0 %2530 }
  0xbe   :  { %4005 = vperm.xlu1 %17334, %v2469_v46   ;;  %2090 = vperm.xlu0 %17333, %v534_v47  }
  0xc1   :  { %v17743_v13 = vpop.permute.xlu1 %140  ;;  %v17745_v14 = vpop.permute.xlu0 %135 }
  0xc2   :  { %22944 = vst [vmem:[#allocation9_spill] sm:$0xff] %v17743_v13  ;;  %22945 = vst [vmem:[#allocation10_spill] sm:$0xff] %v17745_v14  ;;  %2095 = vperm.xlu1 %17334, %v17741_v12   ;;  %4010 = vperm.xlu0 %17333, %v2470_v51   ;;  %v17835_v51 = vld [vmem:[%s22924_s1] ss:$0 sm:$0xff]  ;;  %v17853_v14 = vld [vmem:[%s22924_s1 + $0x3] ss:$0 sm:$0xff] }
  0xc3   :  { %v1857_v7 = vmul.f32 %v17853_v14, %v17681_v54 }
  0xc5   :  { %v17753_v16 = vpop.permute.xlu1 %625  ;;  %v17755_v17 = vpop.permute.xlu0 %620 }
  0xc6   :  { %22946 = vst [vmem:[#allocation11_spill] sm:$0xff] %v17753_v16  ;;  %22947 = vst [vmem:[#allocation12_spill] sm:$0xff] %v17755_v17  ;;  %4015 = vperm.xlu1 %17334, %v1018_v56   ;;  %2100 = vperm.xlu0 %17333, %v17751_v15   ;;  %v889_v16 = vmul.f32 %v17828_v48, %v17636_v36  ;;  %v17864_v36 = vld [vmem:[%s22923_s0 + $0x7a] sm:$0xff]  ;;  %v403_v17 = vmul.f32 %v17835_v51, %v17632_v35 }
  0xc9   :  { %v17758_v18 = vpop.permute.xlu1 %2545  ;;  %v17760_v19 = vpop.permute.xlu0 %2540 }
  0xca   :  { %165 = vperm.xlu1 %17334, %v17712_v2   ;;  %4020 = vperm.xlu0 %17333, %v1019_v59  }
  0xcd   :  { %v17763_v20 = vpop.permute.xlu1 %1100  ;;  %v17765_v21 = vpop.permute.xlu0 %1095 }
  0xce   :  { %22948 = vst [vmem:[#allocation13_spill] sm:$0xff] %v17763_v20  ;;  %22949 = vst [vmem:[#allocation14_spill] sm:$0xff] %v17765_v21  ;;  %650 = vperm.xlu1 %17334, %v17741_v12   ;;  %170 = vperm.xlu0 %17333, %v17723_v5   ;;  %v891_v20 = vmul.f32 %v17828_v48, %v17657_v44  ;;  %v17890_v21 = vld [vmem:[%s22924_s1 + $0x5] ss:$0 sm:$0xff]  ;;  %v406_v44 = vmul.f32 %v17835_v51, %v17644_v39 }
  0xd1   :  { %v17769_v22 = vpop.permute.xlu1 %3015  ;;  %v17771_v23 = vpop.permute.xlu0 %3010 }
  0xd2   :  { %2570 = vperm.xlu1 %17334, %v1018_v56   ;;  %655 = vperm.xlu0 %17333, %v17751_v15   ;;  %v17840_v56 = vld [vmem:[%s22924_s1 + $0x2] ss:$0 sm:$0xff] }
  0xd5   :  { %v17779_v25 = vpop.permute.xlu1 %1105  ;;  %v17781_v26 = vpop.permute.xlu0 %3020 }
  0xd6   :  { %22950 = vst [vmem:[#allocation15_spill] sm:$0xff] %v17779_v25  ;;  %175 = vperm.xlu1 %17334, %v17777_v24   ;;  %2575 = vperm.xlu0 %17333, %v1019_v59   ;;  %v887_v59 = vmul.f32 %v17828_v48, %v17630_v34  ;;  %v888_v25 = vmul.f32 %v17828_v48, %v17638_v37 }
  0xd7   :  { %v402_v34 = vmul.f32 %v17835_v51, %v17628_v33  ;;  %v404_v37 = vmul.f32 %v17835_v51, %v17626_v32  ;;  %v17875_v33 = vld [vmem:[%s22924_s1 + $0x4] ss:$0 sm:$0xff] }
  0xd8   :  { %v948_v9 = vadd.f32 %v888_v25, %v403_v17  ;;  %v2342_v17 = vmul.f32 %v17875_v33, %v17702_v63  ;;  %v405_v25 = vmul.f32 %v17835_v51, %v17646_v40  ;;  %v2343_v39 = vmul.f32 %v17875_v33, %v17700_v62 }
  0xd9   :  { %v17794_v29 = vpop.permute.xlu1 %3025  ;;  %v17796_v30 = vpop.permute.xlu0 %1110  ;;  %v949_v35 = vadd.f32 %v889_v16, %v404_v37  ;;  %v1374_v16 = vmul.f32 %v17840_v56, %v17679_v53  ;;  %v17914_v53 = vld [vmem:[%s22924_s1 + $0x6] ss:$0 sm:$0xff]  ;;  %v951_v63 = vadd.f32 %v891_v20, %v406_v44  ;;  %v2827_v40 = vmul.f32 %v17890_v21, %v17730_v8 }
  0xda   :  { %22951 = vst [vmem:[#allocation16_spill] sm:$0xff] %v17796_v30  ;;  %660 = vperm.xlu1 %17334, %v17787_v27   ;;  %180 = vperm.xlu0 %17333, %v17792_v28   ;;  %v2344_v20 = vmul.f32 %v17875_v33, %v17706_v1  ;;  %v3313_v44 = vmul.f32 %v17914_v53, %v17769_v22 }
  0xdb   :  { %v1376_v22 = vmul.f32 %v17840_v56, %v17683_v55  ;;  %v2830_v55 = vmul.f32 %v17890_v21, %v17760_v19  ;;  %v2346_v19 = vmul.f32 %v17875_v33, %v17716_v4  ;;  %v2831_v4 = vmul.f32 %v17890_v21, %v17758_v18 }
  0xdd   :  { %v17810_v41 = vpop.permute.xlu1 %1580  ;;  %v17812_v42 = vpop.permute.xlu0 %3030 }
  0xde   :  { %22952 = vst [vmem:[#allocation17_spill] sm:$0xff] %v17810_v41  ;;  %2580 = vperm.xlu1 %17334, %v17803_v31   ;;  %665 = vperm.xlu0 %17333, %v17808_v38   ;;  %v3316_v18 = vmul.f32 %v17914_v53, %v17812_v42 }
  0xe1   :  { %v17821_v46 = vpop.permute.xlu1 %3495  ;;  %v17823_v47 = vpop.permute.xlu0 %1585 }
  0xe2   :  { %22953 = vst [vmem:[#allocation18_spill] sm:$0xff] %v17823_v47  ;;  %1135 = vperm.xlu1 %17334, %v17803_v31   ;;  %2585 = vperm.xlu0 %17333, %v17819_v43   ;;  %v1372_v47 = vmul.f32 %v17840_v56, %v17672_v50  ;;  %v947_v50 = vadd.f32 %v887_v59, %v402_v34 }
  0xe3   :  { %v1859_v34 = vmul.f32 %v17853_v14, %v17688_v57  ;;  %v1434_v57 = vadd.f32 %v1374_v16, %v949_v35  ;;  %v2829_v35 = vmul.f32 %v17890_v21, %v17734_v10  ;;  %v2345_v10 = vmul.f32 %v17875_v33, %v17704_v0 }
  0xe4   :  { %v1432_v54 = vadd.f32 %v1372_v47, %v947_v50 }
  0xe5   :  { %v17844_v30 = vpop.permute.xlu1 %3505  ;;  %v3501_v13 = vpop.permute.xlu0 %3500 }
  0xe6   :  { %3055 = vperm.xlu1 %17334, %v17712_v2   ;;  %1140 = vperm.xlu0 %17333, %v17819_v43   ;;  %v1373_v2 = vmul.f32 %v17840_v56, %v17670_v49  ;;  %v1858_v49 = vmul.f32 %v17853_v14, %v17690_v58  ;;  %v17903_v58 = vld [vmem:[%s22923_s0 + $0x82] sm:$0xff]  ;;  %v1917_v47 = vadd.f32 %v1857_v7, %v1432_v54 }
  0xe7   :  { %v17929_v7 = vld [vmem:[%s22924_s1 + $0x7] ss:$0 sm:$0xff]  ;;  %v1919_v54 = vadd.f32 %v1859_v34, %v1434_v57  ;;  %v3314_v34 = vmul.f32 %v17914_v53, %v17781_v26  ;;  %v1436_v26 = vadd.f32 %v1376_v22, %v951_v63 }
  0xe8   :  { %v1433_v59 = vadd.f32 %v1373_v2, %v948_v9  ;;  %v1375_v9 = vmul.f32 %v17840_v56, %v17677_v52  ;;  %v2828_v2 = vmul.f32 %v17890_v21, %v17736_v11  ;;  %v2402_v8 = vadd.f32 %v2342_v17, %v1917_v47 }
  0xe9   :  { %v17881_v41 = vpop.permute.xlu1 %1595  ;;  %v17883_v32 = vpop.permute.xlu0 %1590  ;;  %v3312_v52 = vmul.f32 %v17914_v53, %v17771_v23  ;;  %v1860_v11 = vmul.f32 %v17853_v14, %v17698_v61  ;;  %v3797_v16 = vmul.f32 %v17929_v7, %v17821_v46  ;;  %v3798_v61 = vmul.f32 %v17929_v7, %v3501_v13 }
  0xea   :  { %1145 = vperm.xlu1 %17334, %v17864_v36   ;;  %3060 = vperm.xlu0 %17333, %v17723_v5   ;;  %v890_v5 = vmul.f32 %v17828_v48, %v17659_v45  ;;  %v1918_v62 = vadd.f32 %v1858_v49, %v1433_v59  ;;  %v2887_v59 = vadd.f32 %v2827_v40, %v2402_v8 }
  0xeb   :  { %v1861_v13 = vmul.f32 %v17853_v14, %v17696_v60 }
  0xec   :  { %v950_v50 = vadd.f32 %v890_v5, %v405_v25  ;;  %v2403_v49 = vadd.f32 %v2343_v39, %v1918_v62  ;;  %v2404_v5 = vadd.f32 %v2344_v20, %v1919_v54  ;;  %v3372_v46 = vadd.f32 %v3312_v52, %v2887_v59  ;;  %v17959_v39 = vld [vmem:[%s22924_s1 + $0x8] ss:$0 sm:$0xff] }
  0xed   :  { %v17920_v37 = vpop.permute.xlu1 %3515  ;;  %v3511_v45 = vpop.permute.xlu0 %3510  ;;  %v3315_v52 = vmul.f32 %v17914_v53, %v17794_v29 }
  0xee   :  { %3065 = vperm.xlu1 %17334, %v17777_v24   ;;  %1150 = vperm.xlu0 %17333, %v17903_v58   ;;  %v1435_v23 = vadd.f32 %v1375_v9, %v950_v50  ;;  %v2888_v25 = vadd.f32 %v2828_v2, %v2403_v49  ;;  %v2889_v40 = vadd.f32 %v2829_v35, %v2404_v5  ;;  %v17985_v50 = vld [vmem:[%s22923_s0 + $0x88] sm:$0xff] }
  0xef   :  { %v3857_v0 = vadd.f32 %v3797_v16, %v3372_v46  ;;  %v3799_v9 = vmul.f32 %v17929_v7, %v17844_v30  ;;  %v17980_v30 = vld [vmem:[%s22925_s2] ss:$0 sm:$0xff]  ;;  %v3800_v29 = vmul.f32 %v17929_v7, %v3511_v45  ;;  %v18001_v45 = vld [vmem:[%s22925_s2 + $0x1] ss:$0 sm:$0xff]  ;;  %v18007_v46 = vld [vmem:[%s22923_s0 + $0x90] sm:$0xff] }
  0xf0   :  { %v1920_v47 = vadd.f32 %v1860_v11, %v1435_v23  ;;  %v1921_v11 = vadd.f32 %v1861_v13, %v1436_v26 }
  0xf1   :  { %v17945_v1 = vpop.permute.xlu1 %2070  ;;  %v17947_v17 = vpop.permute.xlu0 %2065 }
  0xf2   :  { %1620 = vperm.xlu1 %17334, %v17777_v24   ;;  %3070 = vperm.xlu0 %17333, %v17792_v28   ;;  %v3373_v24 = vadd.f32 %v3313_v44, %v2888_v25  ;;  %v2405_v20 = vadd.f32 %v2345_v10, %v1920_v47  ;;  %v2406_v25 = vadd.f32 %v2346_v19, %v1921_v11 }
  0xf3   :  { %v3801_v47 = vmul.f32 %v17929_v7, %v17920_v37 }
  0xf4   :  { %v3858_v57 = vadd.f32 %v3798_v61, %v3373_v24  ;;  %v2890_v49 = vadd.f32 %v2830_v55, %v2405_v20  ;;  %v2891_v13 = vadd.f32 %v2831_v4, %v2406_v25  ;;  %v18014_v24 = vld [vmem:[%s22925_s2 + $0x2] ss:$0 sm:$0xff] }
  0xf5   :  { %v3986_v62 = vpop.permute.xlu1 %3985  ;;  %v3981_v2 = vpop.permute.xlu0 %3980 }
  0xf6   :  { %v4283_v8 = vmul.f32 %v17959_v39, %v3986_v62  ;;  %v4282_v60 = vmul.f32 %v17959_v39, %v3981_v2  ;;  %3540 = vperm.xlu1 %17334, %v17741_v12   ;;  %1625 = vperm.xlu0 %17333, %v17792_v28   ;;  %v3374_v12 = vadd.f32 %v3314_v34, %v2889_v40 }
  0xf7   :  { %v3375_v61 = vadd.f32 %v3315_v52, %v2890_v49  ;;  %v3376_v37 = vadd.f32 %v3316_v18, %v2891_v13 }
  0xf8   :  { %v4343_v28 = vadd.f32 %v4283_v8, %v3858_v57  ;;  %v4342_v63 = vadd.f32 %v4282_v60, %v3857_v0  ;;  %v3859_v59 = vadd.f32 %v3799_v9, %v3374_v12 }
  0xf9   :  { %v17990_v44 = vpop.permute.xlu1 %2075  ;;  %v3991_v54 = vpop.permute.xlu0 %3990  ;;  %v3860_v42 = vadd.f32 %v3800_v29, %v3375_v61  ;;  %v3861_v20 = vadd.f32 %v3801_v47, %v3376_v37  ;;  %v18095_v37 = vld [vmem:[%s22923_s0 + $0x98] sm:$0xff] }
  0xfa   :  { %v4410_v35 = vadd.f32 %v17980_v30, %v4343_v28  ;;  %v4409_v16 = vadd.f32 %v17980_v30, %v4342_v63  ;;  %v4284_v23 = vmul.f32 %v17959_v39, %v3991_v54  ;;  %1630 = vperm.xlu1 %17334, %v17985_v50   ;;  %3545 = vperm.xlu0 %17333, %v17751_v15  }
  0xfc   :  { %v4470_v22 = vmax.f32 %v4410_v35, 0.0  ;;  %v4469_v10 = vmax.f32 %v4409_v16, 0.0  ;;  %v4344_v5 = vadd.f32 %v4284_v23, %v3859_v59 }
  0xfd   :  { %v3996_v34 = vpop.permute.xlu1 %3995  ;;  %v18016_v15 = vpop.permute.xlu0 %2080 }
  0xfe   :  { %v4534_v40 = vmul.f32 %v18001_v45, %v4470_v22  ;;  %v4533_v55 = vmul.f32 %v18001_v45, %v4469_v10  ;;  %v4411_v0 = vadd.f32 %v17980_v30, %v4344_v5  ;;  %v4285_v9 = vmul.f32 %v17959_v39, %v3996_v34  ;;  %3550 = vperm.xlu1 %17334, %v17787_v27  }
  0xff   :  { %1635 = vperm.xlu0 %17333, %v18007_v46  }
 0x100   :  { %v4598_v62 = vadd.f32 %v18014_v24, %v4534_v40  ;;  %v4597_v2 = vadd.f32 %v18014_v24, %v4533_v55  ;;  %v4471_v57 = vmax.f32 %v4411_v0, 0.0  ;;  %v4345_v8 = vadd.f32 %v4285_v9, %v3860_v42 }
 0x101   :  { %v18026_v60 = vpop.permute.xlu1 %145  ;;  %v4001_v26 = vpop.permute.xlu0 %4000 }
 0x102   :  { %4659 = vst.msk [vmem:[#allocation2 + $0x8] sm:$0xff] %vm4657_vm0, %v4598_v62  ;;  %4658 = vst.msk [vmem:[#allocation2] sm:$0xff] %vm4657_vm0, %v4597_v2  ;;  %v4535_v19 = vmul.f32 %v18001_v45, %v4471_v57  ;;  %v4412_v52 = vadd.f32 %v17980_v30, %v4345_v8  ;;  %v4286_v12 = vmul.f32 %v17959_v39, %v4001_v26  ;;  %2105 = vperm.xlu1 %17334, %v17787_v27   ;;  %v18048_v27 = vld [vmem:[%s22923_s0 + $0x89] sm:$0xff]  ;;  %v18104_v57 = vld [vmem:[%s22923_s0 + $0x99] sm:$0xff] }
 0x103   :  { %3555 = vperm.xlu0 %17333, %v17808_v38  }
 0x104   :  { %v4599_v28 = vadd.f32 %v18014_v24, %v4535_v19  ;;  %v4472_v63 = vmax.f32 %v4412_v52, 0.0  ;;  %v4346_v11 = vadd.f32 %v4286_v12, %v3861_v20  ;;  %v18125_v20 = vld [vmem:[%s22923_s0 + $0xa1] sm:$0xff]  ;;  %v18136_v12 = vld [vmem:[%s22923_s0 + $0x92] sm:$0xff] }
 0x105   :  { %v18036_v4 = vpop.permute.xlu1 %630  ;;  %v18038_v49 = vpop.permute.xlu0 %150 }
 0x106   :  { %4660 = vst.msk [vmem:[#allocation2 + $0x10] sm:$0xff] %vm4657_vm0, %v4599_v28  ;;  %v4536_v29 = vmul.f32 %v18001_v45, %v4472_v63  ;;  %v4413_v54 = vadd.f32 %v17980_v30, %v4346_v11  ;;  %4025 = vperm.xlu1 %17334, %v17803_v31  }
 0x107   :  { %2110 = vperm.xlu0 %17333, %v17808_v38   ;;  %v18063_v38 = vld [vmem:[%s22923_s0 + $0x91] sm:$0xff] }
 0x108   :  { %v4600_v59 = vadd.f32 %v18014_v24, %v4536_v29  ;;  %v4473_v35 = vmax.f32 %v4413_v54, 0.0  ;;  %v892_v54 = vmul.f32 %v17828_v48, %v17725_v6  ;;  %v22964_v6 = vld [vmem:[#allocation8_spill] sm:$0xff] }
 0x109   :  { %v18051_v16 = vpop.permute.xlu1 %2550  ;;  %v18053_v23 = vpop.permute.xlu0 %635  ;;  %v4807_v22 = vld [vmem:[#allocation2 + $0x1] sm:$0xff] }
 0x10a   :  { %4661 = vst.msk [vmem:[#allocation2 + $0x18] sm:$0xff] %vm4657_vm0, %v4600_v59  ;;  %v4537_v25 = vmul.f32 %v18001_v45, %v4473_v35  ;;  %2115 = vperm.xlu1 %17334, %v18048_v27   ;;  %v18153_v59 = vld [vmem:[%s22923_s0 + $0x9a] sm:$0xff]  ;;  %v407_v35 = vmul.f32 %v17835_v51, %v17714_v3 }
 0x10b   :  { %4030 = vperm.xlu0 %17333, %v17819_v43  }
 0x10c   :  { %v4601_v31 = vadd.f32 %v18014_v24, %v4537_v25  ;;  %v22962_v25 = vld [vmem:[#allocation14_spill] sm:$0xff] }
 0x10d   :  { %v18065_v61 = vpop.permute.xlu1 %155  ;;  %v18067_v18 = vpop.permute.xlu0 %2555  ;;  %v4808_v10 = vld [vmem:[#allocation2 + $0x9] sm:$0xff] }
 0x10e   :  { %22954 = vst [vmem:[#allocation19_spill] sm:$0xff] %v18065_v61  ;;  %4662 = vst.msk [vmem:[#allocation2 + $0x20] sm:$0xff] %vm4657_vm0, %v4601_v31  ;;  %4035 = vperm.xlu1 %17334, %v17864_v36   ;;  %v4863_v5 = vpack.c.bf16 %v4808_v10, %v4807_v22  ;;  %v1377_v31 = vmul.f32 %v17840_v56, %v22962_v25  ;;  %v22972_v61 = vld [vmem:[#allocation15_spill] sm:$0xff] }
 0x10f   :  { %2120 = vperm.xlu0 %17333, %v18063_v38  }
 0x110   :  { %15260 = vmatprep.mubr.msk.bf16.mxu0 %vm4657_vm0, %v4863_v5  ;;  %v952_v5 = vadd.f32 %v892_v54, %v407_v35  ;;  %v2347_v54 = vmul.f32 %v17875_v33, %v17947_v17  ;;  %v18176_v35 = vld [vmem:[%s22923_s0 + $0xa2] sm:$0xff]  ;;  %v22971_v17 = vld [vmem:[#allocation10_spill] sm:$0xff] }
 0x111   :  { %v18073_v43 = vpop.permute.xlu1 %640  ;;  %v18075_v13 = vpop.permute.xlu0 %160  ;;  %v4809_v34 = vld [vmem:[#allocation2 + $0x11] sm:$0xff] }
 0x112   :  { %22955 = vst [vmem:[#allocation20_spill] sm:$0xff] %v18073_v43  ;;  %22956 = vst [vmem:[#allocation21_spill] sm:$0xff] %v18075_v13  ;;  %185 = vperm.xlu1 %17334, %v17985_v50   ;;  %v1437_v13 = vadd.f32 %v1377_v31, %v952_v5  ;;  %v2832_v31 = vmul.f32 %v17890_v21, %v18051_v16  ;;  %v409_v5 = vmul.f32 %v17835_v51, %v22971_v17 }
 0x113   :  { %4040 = vperm.xlu0 %17333, %v17903_v58  }
 0x115   :  { %v18079_v47 = vpop.permute.xlu1 %2560  ;;  %v18081_v42 = vpop.permute.xlu0 %645  ;;  %v4810_v40 = vld [vmem:[#allocation2 + $0x19] sm:$0xff] }
 0x116   :  { %22957 = vst [vmem:[#allocation22_spill] sm:$0xff] %v18081_v42  ;;  %670 = vperm.xlu1 %17334, %v18048_v27   ;;  %v4864_v55 = vpack.c.bf16 %v4810_v40, %v4809_v34  ;;  %v22965_v34 = vld [vmem:[#allocation17_spill] sm:$0xff] }
 0x117   :  { %190 = vperm.xlu0 %17333, %v18007_v46   ;;  %v1862_v40 = vmul.f32 %v17853_v14, %v22965_v34 }
 0x118   :  { %15261 = vmatmul.mubr.msk.bf16.vlgmr.msra.gmra.mrb[0].mxu0 %vm4657_vm0, %v4864_v55  ;;  %v22966_v55 = vld [vmem:[#allocation7_spill] sm:$0xff] }
 0x119   :  { %v18086_v0 = vpop.permute.xlu1 %1115  ;;  %v18088_v9 = vpop.permute.xlu0 %2565  ;;  %v408_v3 = vmul.f32 %v17835_v51, %v22966_v55  ;;  %v1922_v55 = vadd.f32 %v1862_v40, %v1437_v13  ;;  %v2348_v13 = vmul.f32 %v17875_v33, %v17945_v1  ;;  %v22973_v40 = vld [vmem:[#allocation11_spill] sm:$0xff] }
 0x11a   :  { %2590 = vperm.xlu1 %17334, %v17864_v36   ;;  %v18109_v36 = vld [vmem:[%s22923_s0 + $0xa0] sm:$0xff]  ;;  %v895_v16 = vmul.f32 %v17828_v48, %v22973_v40 }
 0x11b   :  { %675 = vperm.xlu0 %17333, %v18063_v38  }
 0x11d   :  { %v3036_v62 = vpop.permute.xlu1 %3035  ;;  %v18097_v2 = vpop.permute.xlu0 %1120 }
 0x11e   :  { %22958 = vst [vmem:[#allocation23_spill] sm:$0xff] %v18097_v2  ;;  %195 = vperm.xlu1 %17334, %v18095_v37  }
 0x11f   :  { %2595 = vperm.xlu0 %17333, %v17903_v58   ;;  %v18120_v58 = vld [vmem:[%s22923_s0 + $0x8a] sm:$0xff] }
 0x121   :  { %v18111_v8 = vpop.permute.xlu1 %1125  ;;  %v18113_v26 = vpop.permute.xlu0 %3040 }
 0x122   :  { %22959 = vst [vmem:[#allocation24_spill] sm:$0xff] %v18111_v8  ;;  %680 = vperm.xlu1 %17334, %v18104_v57   ;;  %v22970_v8 = vld [vmem:[#allocation18_spill] sm:$0xff] }
 0x123   :  { %200 = vperm.xlu0 %17333, %v18109_v36  }
 0x125   :  { %v18127_v19 = vpop.permute.xlu1 %3045  ;;  %v18129_v52 = vpop.permute.xlu0 %1130 }
 0x126   :  { %22960 = vst [vmem:[#allocation25_spill] sm:$0xff] %v18129_v52  ;;  %2600 = vperm.xlu1 %17334, %v18120_v58   ;;  %v22967_v52 = vld [vmem:[#allocation13_spill] sm:$0xff] }
 0x127   :  { %685 = vperm.xlu0 %17333, %v18125_v20   ;;  %v1378_v25 = vmul.f32 %v17840_v56, %v22967_v52  ;;  %v1863_v52 = vmul.f32 %v17853_v14, %v22970_v8  ;;  %v3317_v8 = vmul.f32 %v17914_v53, %v3036_v62  ;;  %v22974_v62 = vld [vmem:[#allocation9_spill] sm:$0xff] }
 0x129   :  { %v18138_v28 = vpop.permute.xlu1 %1600  ;;  %v18140_v63 = vpop.permute.xlu0 %3050 }
 0x12a   :  { %1155 = vperm.xlu1 %17334, %v18120_v58  }
 0x12b   :  { %2605 = vperm.xlu0 %17333, %v18136_v12  }
 0x12d   :  { %v3521_v11 = vpop.permute.xlu1 %3520  ;;  %v18144_v29 = vpop.permute.xlu0 %1605 }
 0x12e   :  { %22961 = vst [vmem:[#allocation26_spill] sm:$0xff] %v18144_v29  ;;  %3075 = vperm.xlu1 %17334, %v17985_v50   ;;  %v893_v50 = vmul.f32 %v17828_v48, %v22964_v6  ;;  %v22968_v6 = vld [vmem:[#allocation12_spill] sm:$0xff]  ;;  %v1379_v29 = vmul.f32 %v17840_v56, %v22972_v61  ;;  %v3802_v1 = vmul.f32 %v17929_v7, %v3521_v11 }
 0x12f   :  { %1160 = vperm.xlu0 %17333, %v18136_v12   ;;  %v894_v34 = vmul.f32 %v17828_v48, %v22968_v6 }
 0x131   :  { %v18159_v22 = vpop.permute.xlu1 %1610  ;;  %v3526_v10 = vpop.permute.xlu0 %3525 }
 0x132   :  { %22963 = vst [vmem:[#allocation14_spill] sm:$0xff] %v18159_v22  ;;  %1165 = vperm.xlu1 %17334, %v18153_v59   ;;  %v953_v22 = vadd.f32 %v893_v50, %v408_v3  ;;  %v2407_v50 = vadd.f32 %v2347_v54, %v1922_v55  ;;  %v954_v3 = vadd.f32 %v894_v34, %v409_v5  ;;  %v22975_v34 = vld [vmem:[#allocation16_spill] sm:$0xff] }
 0x133   :  { %3080 = vperm.xlu0 %17333, %v18007_v46   ;;  %v1380_v55 = vmul.f32 %v17840_v56, %v22975_v34  ;;  %v3320_v34 = vmul.f32 %v17914_v53, %v18140_v63 }
 0x134   :  { %v1438_v6 = vadd.f32 %v1378_v25, %v953_v22  ;;  %v2892_v2 = vadd.f32 %v2832_v31, %v2407_v50  ;;  %v2833_v22 = vmul.f32 %v17890_v21, %v18067_v18  ;;  %v410_v25 = vmul.f32 %v17835_v51, %v22974_v62 }
 0x135   :  { %v3531_v42 = vpop.permute.xlu1 %3530  ;;  %v18180_v46 = vpop.permute.xlu0 %1615  ;;  %v1439_v54 = vadd.f32 %v1379_v29, %v954_v3  ;;  %v3318_v18 = vmul.f32 %v17914_v53, %v18113_v26  ;;  %v2834_v29 = vmul.f32 %v17890_v21, %v18079_v47  ;;  %v3803_v3 = vmul.f32 %v17929_v7, %v3526_v10  ;;  %v18231_v47 = vld [vmem:[%s22923_s0 + $0xa8] sm:$0xff] }
 0x136   :  { %22969 = vst [vmem:[#allocation8_spill] sm:$0xff] %v18180_v46  ;;  %3085 = vperm.xlu1 %17334, %v18095_v37   ;;  %v1864_v46 = vmul.f32 %v17853_v14, %v17883_v32  ;;  %v1923_v61 = vadd.f32 %v1863_v52, %v1438_v6  ;;  %v2349_v32 = vmul.f32 %v17875_v33, %v17990_v44 }
 0x137   :  { %1170 = vperm.xlu0 %17333, %v18176_v35   ;;  %v3377_v31 = vadd.f32 %v3317_v8, %v2892_v2  ;;  %v955_v11 = vadd.f32 %v895_v16, %v410_v25 }
 0x138   :  { %v2408_v52 = vadd.f32 %v2348_v13, %v1923_v61  ;;  %v1924_v5 = vadd.f32 %v1864_v46, %v1439_v54  ;;  %v3319_v46 = vmul.f32 %v17914_v53, %v18127_v19 }
 0x139   :  { %v18199_v17 = vpop.permute.xlu1 %2085  ;;  %v3536_v43 = vpop.permute.xlu0 %3535  ;;  %v3862_v44 = vadd.f32 %v3802_v1, %v3377_v31  ;;  %v1440_v26 = vadd.f32 %v1380_v55, %v955_v11 }
 0x13a   :  { %1640 = vperm.xlu1 %17334, %v18095_v37   ;;  %v1865_v37 = vmul.f32 %v17853_v14, %v17881_v41  ;;  %v2893_v40 = vadd.f32 %v2833_v22, %v2408_v52  ;;  %v2409_v13 = vadd.f32 %v2349_v32, %v1924_v5  ;;  %v2350_v41 = vmul.f32 %v17875_v33, %v18016_v15 }
 0x13b   :  { %3090 = vperm.xlu0 %17333, %v18109_v36   ;;  %v3804_v22 = vmul.f32 %v17929_v7, %v3531_v42  ;;  %v18247_v42 = vld [vmem:[%s22923_s0 + $0xb0] sm:$0xff]  ;;  %v3805_v11 = vmul.f32 %v17929_v7, %v3536_v43 }
 0x13c   :  { %v3378_v10 = vadd.f32 %v3318_v18, %v2893_v40  ;;  %v1925_v16 = vadd.f32 %v1865_v37, %v1440_v26  ;;  %v2894_v61 = vadd.f32 %v2834_v29, %v2409_v13 }
 0x13d   :  { %v4006_v6 = vpop.permute.xlu1 %4005  ;;  %v18218_v50 = vpop.permute.xlu0 %2090 }
 0x13e   :  { %v4287_v2 = vmul.f32 %v17959_v39, %v4006_v6  ;;  %3560 = vperm.xlu1 %17334, %v18048_v27   ;;  %v2835_v27 = vmul.f32 %v17890_v21, %v18088_v9  ;;  %v3863_v19 = vadd.f32 %v3803_v3, %v3378_v10  ;;  %v2410_v25 = vadd.f32 %v2350_v41, %v1925_v16 }
 0x13f   :  { %1645 = vperm.xlu0 %17333, %v18109_v36   ;;  %v3379_v54 = vadd.f32 %v3319_v46, %v2894_v61 }
 0x140   :  { %v4347_v8 = vadd.f32 %v4287_v2, %v3862_v44  ;;  %v2895_v32 = vadd.f32 %v2835_v27, %v2410_v25 }
 0x141   :  { %v18236_v15 = vpop.permute.xlu1 %2095  ;;  %v4011_v1 = vpop.permute.xlu0 %4010  ;;  %v3864_v52 = vadd.f32 %v3804_v22, %v3379_v54 }
 0x142   :  { %v4414_v36 = vadd.f32 %v17980_v30, %v4347_v8  ;;  %v4288_v62 = vmul.f32 %v17959_v39, %v4011_v1  ;;  %1650 = vperm.xlu1 %17334, %v18231_v47   ;;  %v3380_v5 = vadd.f32 %v3320_v34, %v2895_v32 }
 0x143   :  { %3565 = vperm.xlu0 %17333, %v18063_v38  }
 0x144   :  { %v4474_v9 = vmax.f32 %v4414_v36, 0.0  ;;  %v4348_v55 = vadd.f32 %v4288_v62, %v3863_v19  ;;  %v3865_v2 = vadd.f32 %v3805_v11, %v3380_v5 }
 0x145   :  { %v4016_v31 = vpop.permute.xlu1 %4015  ;;  %v18249_v18 = vpop.permute.xlu0 %2100 }
 0x146   :  { %v4538_v37 = vmul.f32 %v18001_v45, %v4474_v9  ;;  %v4415_v38 = vadd.f32 %v17980_v30, %v4348_v55  ;;  %v4289_v63 = vmul.f32 %v17959_v39, %v4016_v31  ;;  %3570 = vperm.xlu1 %17334, %v18104_v57  }
 0x147   :  { %1655 = vperm.xlu0 %17333, %v18247_v42  }
 0x148   :  { %v4602_v29 = vadd.f32 %v18014_v24, %v4538_v37  ;;  %v4475_v6 = vmax.f32 %v4415_v38, 0.0  ;;  %v4349_v40 = vadd.f32 %v4289_v63, %v3864_v52 }
 0x149   :  { %v18258_v44 = vpop.permute.xlu1 %165  ;;  %v4021_v3 = vpop.permute.xlu0 %4020 }
 0x14a   :  { %4663 = vst.msk [vmem:[#allocation2 + $0x28] sm:$0xff] %vm4657_vm0, %v4602_v29  ;;  %v4539_v43 = vmul.f32 %v18001_v45, %v4475_v6  ;;  %v4416_v26 = vadd.f32 %v17980_v30, %v4349_v40  ;;  %v4290_v13 = vmul.f32 %v17959_v39, %v4021_v3  ;;  %2125 = vperm.xlu1 %17334, %v18104_v57   ;;  %v18279_v57 = vld [vmem:[%s22923_s0 + $0xa9] sm:$0xff]  ;;  %v60_v29 = vld [vmem:[%s22923_s0 + $0xb8] sm:$0xff] }
 0x14b   :  { %3575 = vperm.xlu0 %17333, %v18125_v20   ;;  %v18332_v3 = vld [vmem:[%s22923_s0 + $0xb9] sm:$0xff] }
 0x14c   :  { %v4603_v41 = vadd.f32 %v18014_v24, %v4539_v43  ;;  %v4476_v46 = vmax.f32 %v4416_v26, 0.0  ;;  %v4350_v10 = vadd.f32 %v4290_v13, %v3865_v2  ;;  %v18353_v26 = vld [vmem:[%s22923_s0 + $0xc1] sm:$0xff] }
 0x14d   :  { %v18267_v8 = vpop.permute.xlu1 %650  ;;  %v18269_v16 = vpop.permute.xlu0 %170 }
 0x14e   :  { %4664 = vst.msk [vmem:[#allocation2 + $0x30] sm:$0xff] %vm4657_vm0, %v4603_v41  ;;  %v4540_v61 = vmul.f32 %v18001_v45, %v4476_v46  ;;  %v4417_v27 = vadd.f32 %v17980_v30, %v4350_v10  ;;  %4045 = vperm.xlu1 %17334, %v18120_v58   ;;  %v18364_v46 = vld [vmem:[%s22923_s0 + $0xb2] sm:$0xff] }
 0x14f   :  { %2130 = vperm.xlu0 %17333, %v18125_v20   ;;  %v18294_v20 = vld [vmem:[%s22923_s0 + $0xb1] sm:$0xff] }
 0x150   :  { %v4604_v22 = vadd.f32 %v18014_v24, %v4540_v61  ;;  %v4477_v1 = vmax.f32 %v4417_v27, 0.0 }
 0x151   :  { %v18282_v19 = vpop.permute.xlu1 %2570  ;;  %v18284_v36 = vpop.permute.xlu0 %655  ;;  %v4811_v34 = vld [vmem:[#allocation2 + $0x21] sm:$0xff] }
 0x152   :  { %4665 = vst.msk [vmem:[#allocation2 + $0x38] sm:$0xff] %vm4657_vm0, %v4604_v22  ;;  %v4541_v62 = vmul.f32 %v18001_v45, %v4477_v1  ;;  %2135 = vperm.xlu1 %17334, %v18279_v57   ;;  %v896_v1 = vmul.f32 %v17828_v48, %v18036_v4  ;;  %v1866_v4 = vmul.f32 %v17853_v14, %v18138_v28 }
 0x153   :  { %4050 = vperm.xlu0 %17333, %v18136_v12   ;;  %v412_v28 = vmul.f32 %v17835_v51, %v18038_v49  ;;  %v22988_v49 = vld [vmem:[#allocation19_spill] sm:$0xff] }
 0x154   :  { %v4605_v58 = vadd.f32 %v18014_v24, %v4541_v62  ;;  %v18381_v62 = vld [vmem:[%s22923_s0 + $0xba] sm:$0xff] }
 0x155   :  { %v18296_v25 = vpop.permute.xlu1 %175  ;;  %v18298_v54 = vpop.permute.xlu0 %2575  ;;  %v4812_v9 = vld [vmem:[#allocation2 + $0x29] sm:$0xff] }
 0x156   :  { %22976 = vst [vmem:[#allocation17_spill] sm:$0xff] %v18296_v25  ;;  %4666 = vst.msk [vmem:[#allocation2 + $0x40] sm:$0xff] %vm4657_vm0, %v4605_v58  ;;  %4055 = vperm.xlu1 %17334, %v18153_v59   ;;  %v4865_v55 = vpack.c.bf16 %v4812_v9, %v4811_v34  ;;  %v411_v58 = vmul.f32 %v17835_v51, %v18026_v60  ;;  %v1381_v34 = vmul.f32 %v17840_v56, %v18086_v0  ;;  %v18400_v0 = vld [vmem:[%s22923_s0 + $0xc2] sm:$0xff] }
 0x157   :  { %2140 = vperm.xlu0 %17333, %v18294_v20   ;;  %v2351_v60 = vmul.f32 %v17875_v33, %v18199_v17 }
 0x158   :  { %15264 = vmatprep.mubr.msk.bf16.mxu0 %vm4657_vm0, %v4865_v55  ;;  %v956_v55 = vadd.f32 %v896_v1, %v411_v58 }
 0x159   :  { %v18304_v12 = vpop.permute.xlu1 %660  ;;  %v18306_v32 = vpop.permute.xlu0 %180  ;;  %v4813_v11 = vld [vmem:[#allocation2 + $0x31] sm:$0xff] }
 0x15a   :  { %22977 = vst [vmem:[#allocation7_spill] sm:$0xff] %v18304_v12  ;;  %22978 = vst [vmem:[#allocation13_spill] sm:$0xff] %v18306_v32  ;;  %205 = vperm.xlu1 %17334, %v18231_v47   ;;  %v22987_v32 = vld [vmem:[#allocation26_spill] sm:$0xff] }
 0x15b   :  { %4060 = vperm.xlu0 %17333, %v18176_v35   ;;  %v22991_v12 = vld [vmem:[#allocation22_spill] sm:$0xff] }
 0x15d   :  { %v18310_v52 = vpop.permute.xlu1 %2580  ;;  %v18312_v31 = vpop.permute.xlu0 %665  ;;  %v4814_v37 = vld [vmem:[#allocation2 + $0x39] sm:$0xff] }
 0x15e   :  { %22979 = vst [vmem:[#allocation12_spill] sm:$0xff] %v18312_v31  ;;  %690 = vperm.xlu1 %17334, %v18279_v57   ;;  %v4866_v38 = vpack.c.bf16 %v4814_v37, %v4813_v11  ;;  %v897_v11 = vmul.f32 %v17828_v48, %v18053_v23  ;;  %v1441_v37 = vadd.f32 %v1381_v34, %v956_v55 }
 0x15f   :  { %210 = vperm.xlu0 %17333, %v18247_v42   ;;  %v2836_v34 = vmul.f32 %v17890_v21, %v18282_v19  ;;  %v1867_v31 = vmul.f32 %v17853_v14, %v22987_v32  ;;  %v2352_v19 = vmul.f32 %v17875_v33, %v18218_v50 }
 0x160   :  { %15265 = vmatmul.mubr.msk.bf16.gmra.mrb[4].mxu0 %vm4657_vm0, %v4866_v38  ;;  %v22984_v38 = vld [vmem:[#allocation23_spill] sm:$0xff]  ;;  %v957_v55 = vadd.f32 %v897_v11, %v412_v28  ;;  %v22990_v28 = vld [vmem:[#allocation14_spill] sm:$0xff] }
 0x161   :  { %v18317_v63 = vpop.permute.xlu1 %1135  ;;  %v18319_v5 = vpop.permute.xlu0 %2585  ;;  %v1382_v1 = vmul.f32 %v17840_v56, %v22984_v38  ;;  %v413_v38 = vmul.f32 %v17835_v51, %v22988_v49  ;;  %v1868_v32 = vmul.f32 %v17853_v14, %v22990_v28 }
 0x162   :  { %2610 = vperm.xlu1 %17334, %v18153_v59   ;;  %v18337_v59 = vld [vmem:[%s22923_s0 + $0xc0] sm:$0xff] }
 0x163   :  { %695 = vperm.xlu0 %17333, %v18294_v20  }
 0x165   :  { %v3056_v6 = vpop.permute.xlu1 %3055  ;;  %v18326_v40 = vpop.permute.xlu0 %1140 }
 0x166   :  { %215 = vperm.xlu1 %17334, %v60_v29  }
 0x167   :  { %2615 = vperm.xlu0 %17333, %v18176_v35   ;;  %v18348_v35 = vld [vmem:[%s22923_s0 + $0xaa] sm:$0xff] }
 0x169   :  { %v18339_v2 = vpop.permute.xlu1 %1145  ;;  %v18341_v43 = vpop.permute.xlu0 %3060 }
 0x16a   :  { %22980 = vst [vmem:[#allocation18_spill] sm:$0xff] %v18339_v2  ;;  %700 = vperm.xlu1 %17334, %v18332_v3  }
 0x16b   :  { %220 = vperm.xlu0 %17333, %v18337_v59  }
 0x16d   :  { %v18355_v13 = vpop.permute.xlu1 %3065  ;;  %v18357_v41 = vpop.permute.xlu0 %1150 }
 0x16e   :  { %22981 = vst [vmem:[#allocation10_spill] sm:$0xff] %v18357_v41  ;;  %2620 = vperm.xlu1 %17334, %v18348_v35   ;;  %v22985_v41 = vld [vmem:[#allocation20_spill] sm:$0xff] }
 0x16f   :  { %705 = vperm.xlu0 %17333, %v18353_v26   ;;  %v898_v23 = vmul.f32 %v17828_v48, %v22985_v41 }
 0x171   :  { %v18366_v10 = vpop.permute.xlu1 %1620  ;;  %v18368_v61 = vpop.permute.xlu0 %3070  ;;  %v958_v11 = vadd.f32 %v898_v23, %v413_v38 }
 0x172   :  { %1175 = vperm.xlu1 %17334, %v18348_v35  }
 0x173   :  { %2625 = vperm.xlu0 %17333, %v18364_v46  }
 0x175   :  { %v3541_v27 = vpop.permute.xlu1 %3540  ;;  %v18372_v22 = vpop.permute.xlu0 %1625 }
 0x176   :  { %22982 = vst [vmem:[#allocation15_spill] sm:$0xff] %v18372_v22  ;;  %3095 = vperm.xlu1 %17334, %v18231_v47   ;;  %v3806_v22 = vmul.f32 %v17929_v7, %v3541_v27  ;;  %v22993_v27 = vld [vmem:[#allocation25_spill] sm:$0xff] }
 0x177   :  { %1180 = vperm.xlu0 %17333, %v18364_v46  }
 0x179   :  { %v18387_v9 = vpop.permute.xlu1 %1630  ;;  %v3546_v47 = vpop.permute.xlu0 %3545 }
 0x17a   :  { %22983 = vst [vmem:[#allocation11_spill] sm:$0xff] %v18387_v9  ;;  %1185 = vperm.xlu1 %17334, %v18381_v62   ;;  %v22989_v9 = vld [vmem:[#allocation24_spill] sm:$0xff] }
 0x17b   :  { %3100 = vperm.xlu0 %17333, %v18247_v42   ;;  %v1926_v42 = vadd.f32 %v1866_v4, %v1441_v37  ;;  %v1383_v2 = vmul.f32 %v17840_v56, %v22989_v9  ;;  %v3321_v4 = vmul.f32 %v17914_v53, %v3056_v6  ;;  %v1442_v37 = vadd.f32 %v1382_v1, %v957_v55 }
 0x17c   :  { %v899_v9 = vmul.f32 %v17828_v48, %v22991_v12  ;;  %v2837_v6 = vmul.f32 %v17890_v21, %v18298_v54  ;;  %v2353_v1 = vmul.f32 %v17875_v33, %v18236_v15  ;;  %v3322_v48 = vmul.f32 %v17914_v53, %v18341_v43 }
 0x17d   :  { %v3551_v58 = vpop.permute.xlu1 %3550  ;;  %v2411_v41 = vadd.f32 %v2351_v60, %v1926_v42  ;;  %v1927_v60 = vadd.f32 %v1867_v31, %v1442_v37  ;;  %v1443_v50 = vadd.f32 %v1383_v2, %v958_v11  ;;  %v22992_v42 = vld [vmem:[#allocation21_spill] sm:$0xff]  ;;  %v2838_v54 = vmul.f32 %v17890_v21, %v18310_v52  ;;  %v18453_v52 = vld [vmem:[%s22923_s0 + $0xc8] sm:$0xff] }
 0x17e   :  { %v18410_v17 = vpop.permute.xlu0 %1635  ;;  %3105 = vperm.xlu1 %17334, %v60_v29  }
 0x17f   :  { %22986 = vst [vmem:[#allocation9_spill] sm:$0xff] %v18410_v17  ;;  %1190 = vperm.xlu0 %17333, %v18400_v0   ;;  %v2896_v25 = vadd.f32 %v2836_v34, %v2411_v41  ;;  %v414_v34 = vmul.f32 %v17835_v51, %v22992_v42  ;;  %v2412_v55 = vadd.f32 %v2352_v19, %v1927_v60 }
 0x180   :  { %v1928_v31 = vadd.f32 %v1868_v32, %v1443_v50  ;;  %v2354_v19 = vmul.f32 %v17875_v33, %v18249_v18 }
 0x181   :  { %v18422_v17 = vpop.permute.xlu1 %2105  ;;  %v3381_v23 = vadd.f32 %v3321_v4, %v2896_v25  ;;  %v959_v51 = vadd.f32 %v899_v9, %v414_v34  ;;  %v22994_v25 = vld [vmem:[#allocation8_spill] sm:$0xff]  ;;  %v2897_v41 = vadd.f32 %v2837_v6, %v2412_v55  ;;  %v3807_v4 = vmul.f32 %v17929_v7, %v3546_v47 }
 0x182   :  { %v3556_v49 = vpop.permute.xlu0 %3555  ;;  %1660 = vperm.xlu1 %17334, %v60_v29   ;;  %v1384_v29 = vmul.f32 %v17840_v56, %v22993_v27  ;;  %v1869_v56 = vmul.f32 %v17853_v14, %v22994_v25  ;;  %v2413_v43 = vadd.f32 %v2353_v1, %v1928_v31  ;;  %v3324_v1 = vmul.f32 %v17914_v53, %v18368_v61 }
 0x183   :  { %3110 = vperm.xlu0 %17333, %v18337_v59   ;;  %v3866_v2 = vadd.f32 %v3806_v22, %v3381_v23  ;;  %v3323_v22 = vmul.f32 %v17914_v53, %v18355_v13  ;;  %v3382_v14 = vadd.f32 %v3322_v48, %v2897_v41  ;;  %v2839_v13 = vmul.f32 %v17890_v21, %v18319_v5 }
 0x184   :  { %v2898_v47 = vadd.f32 %v2838_v54, %v2413_v43 }
 0x185   :  { %v4026_v12 = vpop.permute.xlu1 %4025  ;;  %v3867_v60 = vadd.f32 %v3807_v4, %v3382_v14 }
 0x186   :  { %v4291_v38 = vmul.f32 %v17959_v39, %v4026_v12  ;;  %v18443_v15 = vpop.permute.xlu0 %2110  ;;  %3580 = vperm.xlu1 %17334, %v18279_v57   ;;  %v1444_v57 = vadd.f32 %v1384_v29, %v959_v51  ;;  %v3383_v33 = vadd.f32 %v3323_v22, %v2898_v47  ;;  %v3809_v29 = vmul.f32 %v17929_v7, %v3556_v49 }
 0x187   :  { %1665 = vperm.xlu0 %17333, %v18337_v59   ;;  %v3808_v59 = vmul.f32 %v17929_v7, %v3551_v58  ;;  %v18471_v58 = vld [vmem:[%s22923_s0 + $0xd0] sm:$0xff] }
 0x188   :  { %v4351_v37 = vadd.f32 %v4291_v38, %v3866_v2  ;;  %v1929_v9 = vadd.f32 %v1869_v56, %v1444_v57 }
 0x189   :  { %v18459_v11 = vpop.permute.xlu1 %2115  ;;  %v3868_v34 = vadd.f32 %v3808_v59, %v3383_v33 }
 0x18a   :  { %v4418_v28 = vadd.f32 %v17980_v30, %v4351_v37  ;;  %v4031_v32 = vpop.permute.xlu0 %4030  ;;  %1670 = vperm.xlu1 %17334, %v18453_v52   ;;  %v2414_v50 = vadd.f32 %v2354_v19, %v1929_v9 }
 0x18b   :  { %v4292_v6 = vmul.f32 %v17959_v39, %v4031_v32  ;;  %3585 = vperm.xlu0 %17333, %v18294_v20  }
 0x18c   :  { %v4478_v18 = vmax.f32 %v4418_v28, 0.0  ;;  %v2899_v20 = vadd.f32 %v2839_v13, %v2414_v50  ;;  %v18552_v50 = vld [vmem:[%s22923_s0 + $0xd8] sm:$0xff] }
 0x18d   :  { %v4352_v23 = vadd.f32 %v4292_v6, %v3867_v60  ;;  %v4036_v42 = vpop.permute.xlu1 %4035 }
 0x18e   :  { %v4542_v21 = vmul.f32 %v18001_v45, %v4478_v18  ;;  %v4293_v5 = vmul.f32 %v17959_v39, %v4036_v42  ;;  %v18477_v27 = vpop.permute.xlu0 %2120  ;;  %3590 = vperm.xlu1 %17334, %v18332_v3   ;;  %v3384_v48 = vadd.f32 %v3324_v1, %v2899_v20  ;;  %v18561_v42 = vld [vmem:[%s22923_s0 + $0xd9] sm:$0xff] }
 0x18f   :  { %v4419_v55 = vadd.f32 %v17980_v30, %v4352_v23  ;;  %1675 = vperm.xlu0 %17333, %v18471_v58  }
 0x190   :  { %v4606_v53 = vadd.f32 %v18014_v24, %v4542_v21  ;;  %v4353_v61 = vadd.f32 %v4293_v5, %v3868_v34  ;;  %v3869_v38 = vadd.f32 %v3809_v29, %v3384_v48  ;;  %v18582_v5 = vld [vmem:[%s22923_s0 + $0xe1] sm:$0xff] }
 0x191   :  { %v4479_v12 = vmax.f32 %v4419_v55, 0.0  ;;  %v18484_v31 = vpop.permute.xlu1 %185  ;;  %v18593_v55 = vld [vmem:[%s22923_s0 + $0xd2] sm:$0xff] }
 0x192   :  { %4667 = vst.msk [vmem:[#allocation2 + $0x48] sm:$0xff] %vm4657_vm0, %v4606_v53  ;;  %v4420_v54 = vadd.f32 %v17980_v30, %v4353_v61  ;;  %v4041_v2 = vpop.permute.xlu0 %4040  ;;  %2145 = vperm.xlu1 %17334, %v18332_v3  }
 0x193   :  { %v4543_v7 = vmul.f32 %v18001_v45, %v4479_v12  ;;  %v4294_v49 = vmul.f32 %v17959_v39, %v4041_v2  ;;  %3595 = vperm.xlu0 %17333, %v18353_v26   ;;  %v18505_v39 = vld [vmem:[%s22923_s0 + $0xc9] sm:$0xff]  ;;  %v18604_v12 = vld [vmem:[%s22924_s1 + $0x1] ss:$0 sm:$0xff] }
 0x194   :  { %v4480_v51 = vmax.f32 %v4420_v54, 0.0  ;;  %v900_v54 = vmul.f32 %v18604_v12, %v18267_v8  ;;  %v18627_v8 = vld [vmem:[%s22924_s1 + $0x2] ss:$0 sm:$0xff] }
 0x195   :  { %v4607_v25 = vadd.f32 %v18014_v24, %v4543_v7  ;;  %v4354_v56 = vadd.f32 %v4294_v49, %v3869_v38  ;;  %v18493_v41 = vpop.permute.xlu1 %670  ;;  %v18615_v38 = vld [vmem:[%s22923_s0 + $0xda] sm:$0xff] }
 0x196   :  { %v4544_v4 = vmul.f32 %v18001_v45, %v4480_v51  ;;  %v18496_v43 = vpop.permute.xlu0 %190  ;;  %4065 = vperm.xlu1 %17334, %v18348_v35   ;;  %v18519_v35 = vld [vmem:[%s22923_s0 + $0xd1] sm:$0xff]  ;;  %v18620_v7 = vld [vmem:[%s22924_s1] ss:$0 sm:$0xff] }
 0x197   :  { %4668 = vst.msk [vmem:[#allocation2 + $0x50] sm:$0xff] %vm4657_vm0, %v4607_v25  ;;  %v4421_v3 = vadd.f32 %v17980_v30, %v4354_v56  ;;  %2150 = vperm.xlu0 %17333, %v18353_v26   ;;  %v415_v49 = vmul.f32 %v18620_v7, %v18258_v44  ;;  %v18636_v56 = vld [vmem:[%s22924_s1 + $0x3] ss:$0 sm:$0xff] }
 0x198   :  { %v4608_v22 = vadd.f32 %v18014_v24, %v4544_v4  ;;  %v1870_v4 = vmul.f32 %v18636_v56, %v18366_v10  ;;  %v18654_v10 = vld [vmem:[%s22923_s0 + $0xe2] sm:$0xff] }
 0x199   :  { %v4481_v37 = vmax.f32 %v4421_v3, 0.0  ;;  %v18508_v57 = vpop.permute.xlu1 %2590  ;;  %v4815_v59 = vld [vmem:[#allocation2 + $0x41] sm:$0xff]  ;;  %v960_v25 = vadd.f32 %v900_v54, %v415_v49  ;;  %v901_v3 = vmul.f32 %v18604_v12, %v18284_v36  ;;  %v1386_v36 = vmul.f32 %v18627_v8, %v18326_v40 }
 0x19a   :  { %4669 = vst.msk [vmem:[#allocation2 + $0x58] sm:$0xff] %vm4657_vm0, %v4608_v22  ;;  %v18511_v19 = vpop.permute.xlu0 %675  ;;  %2155 = vperm.xlu1 %17334, %v18505_v39   ;;  %v18647_v22 = vld [vmem:[%s22924_s1 + $0x4] ss:$0 sm:$0xff]  ;;  %v23000_v49 = vld [vmem:[#allocation18_spill] sm:$0xff] }
 0x19b   :  { %v4545_v30 = vmul.f32 %v18001_v45, %v4481_v37  ;;  %4070 = vperm.xlu0 %17333, %v18364_v46   ;;  %v2355_v37 = vmul.f32 %v18647_v22, %v18422_v17  ;;  %v18665_v17 = vld [vmem:[%s22924_s1 + $0x5] ss:$0 sm:$0xff] }
 0x19d   :  { %v4609_v26 = vadd.f32 %v18014_v24, %v4545_v30  ;;  %v18522_v14 = vpop.permute.xlu1 %195  ;;  %v416_v30 = vmul.f32 %v18620_v7, %v18269_v16 }
 0x19e   :  { %v18524_v47 = vpop.permute.xlu0 %2595  ;;  %4075 = vperm.xlu1 %17334, %v18381_v62   ;;  %v4816_v28 = vld [vmem:[#allocation2 + $0x49] sm:$0xff] }
 0x19f   :  { %4670 = vst.msk [vmem:[#allocation2 + $0x60] sm:$0xff] %vm4657_vm0, %v4609_v26  ;;  %2160 = vperm.xlu0 %17333, %v18519_v35   ;;  %v4867_v45 = vpack.c.bf16 %v4816_v28, %v4815_v59  ;;  %v22996_v26 = vld [vmem:[#allocation7_spill] sm:$0xff]  ;;  %v961_v16 = vadd.f32 %v901_v3, %v416_v30 }
 0x1a0   :  { %v902_v59 = vmul.f32 %v18604_v12, %v22996_v26 }
 0x1a1   :  { %15268 = vmatprep.mubr.msk.bf16.mxu0 %vm4657_vm0, %v4867_v45  ;;  %v18530_v46 = vpop.permute.xlu1 %680  ;;  %v4817_v13 = vld [vmem:[#allocation2 + $0x51] sm:$0xff]  ;;  %v2840_v45 = vmul.f32 %v18665_v17, %v18508_v57  ;;  %v18682_v57 = vld [vmem:[%s22924_s1 + $0x6] ss:$0 sm:$0xff]  ;;  %v1446_v3 = vadd.f32 %v1386_v36, %v961_v16  ;;  %v2357_v16 = vmul.f32 %v18647_v22, %v18459_v11  ;;  %v18716_v11 = vld [vmem:[%s22924_s1 + $0x8] ss:$0 sm:$0xff] }
 0x1a2   :  { %v18532_v32 = vpop.permute.xlu0 %200  ;;  %225 = vperm.xlu1 %17334, %v18453_v52  }
 0x1a3   :  { %4080 = vperm.xlu0 %17333, %v18400_v0  }
 0x1a5   :  { %v18536_v24 = vpop.permute.xlu1 %2600 }
 0x1a6   :  { %v18538_v9 = vpop.permute.xlu0 %685  ;;  %710 = vperm.xlu1 %17334, %v18505_v39   ;;  %v4818_v60 = vld [vmem:[#allocation2 + $0x59] sm:$0xff] }
 0x1a7   :  { %230 = vperm.xlu0 %17333, %v18471_v58   ;;  %v4868_v6 = vpack.c.bf16 %v4818_v60, %v4817_v13  ;;  %v22998_v60 = vld [vmem:[#allocation15_spill] sm:$0xff] }
 0x1a8   :  { %v1871_v40 = vmul.f32 %v18636_v56, %v22998_v60  ;;  %v23001_v60 = vld [vmem:[#allocation11_spill] sm:$0xff] }
 0x1a9   :  { %15269 = vmatmul.mubr.msk.bf16.gmra.mrb[8].mxu0 %vm4657_vm0, %v4868_v6  ;;  %v18543_v33 = vpop.permute.xlu1 %1155  ;;  %v22999_v6 = vld [vmem:[#allocation17_spill] sm:$0xff] }
 0x1aa   :  { %v18545_v18 = vpop.permute.xlu0 %2605  ;;  %2630 = vperm.xlu1 %17334, %v18381_v62   ;;  %v18566_v62 = vld [vmem:[%s22923_s0 + $0xe0] sm:$0xff]  ;;  %v417_v54 = vmul.f32 %v18620_v7, %v22999_v6  ;;  %v1872_v6 = vmul.f32 %v18636_v56, %v23001_v60  ;;  %v1931_v36 = vadd.f32 %v1871_v40, %v1446_v3 }
 0x1ab   :  { %715 = vperm.xlu0 %17333, %v18519_v35   ;;  %v23004_v60 = vld [vmem:[#allocation10_spill] sm:$0xff] }
 0x1ac   :  { %v962_v26 = vadd.f32 %v902_v59, %v417_v54  ;;  %v2841_v59 = vmul.f32 %v18665_v17, %v18524_v47  ;;  %v2842_v47 = vmul.f32 %v18665_v17, %v18536_v24  ;;  %v18729_v24 = vld [vmem:[%s22923_s0 + $0xe8] sm:$0xff] }
 0x1ad   :  { %v3076_v1 = vpop.permute.xlu1 %3075 }
 0x1ae   :  { %v18554_v23 = vpop.permute.xlu0 %1160  ;;  %235 = vperm.xlu1 %17334, %v18552_v50  }
 0x1af   :  { %2635 = vperm.xlu0 %17333, %v18400_v0   ;;  %v18577_v0 = vld [vmem:[%s22923_s0 + $0xca] sm:$0xff] }
 0x1b1   :  { %v18568_v34 = vpop.permute.xlu1 %1165 }
 0x1b2   :  { %v18570_v21 = vpop.permute.xlu0 %3080  ;;  %720 = vperm.xlu1 %17334, %v18561_v42  }
 0x1b3   :  { %240 = vperm.xlu0 %17333, %v18566_v62   ;;  %v3326_v40 = vmul.f32 %v18682_v57, %v18570_v21 }
 0x1b5   :  { %v18584_v20 = vpop.permute.xlu1 %3085 }
 0x1b6   :  { %v18586_v29 = vpop.permute.xlu0 %1170  ;;  %2640 = vperm.xlu1 %17334, %v18577_v0  }
 0x1b7   :  { %22995 = vst [vmem:[#allocation16_spill] sm:$0xff] %v18586_v29  ;;  %725 = vperm.xlu0 %17333, %v18582_v5  }
 0x1b9   :  { %v18595_v53 = vpop.permute.xlu1 %1640 }
 0x1ba   :  { %v18597_v61 = vpop.permute.xlu0 %3090  ;;  %1195 = vperm.xlu1 %17334, %v18577_v0  }
 0x1bb   :  { %2645 = vperm.xlu0 %17333, %v18593_v55  }
 0x1bd   :  { %v3561_v48 = vpop.permute.xlu1 %3560 }
 0x1be   :  { %v18608_v2 = vpop.permute.xlu0 %1645  ;;  %3115 = vperm.xlu1 %17334, %v18453_v52   ;;  %v1385_v52 = vmul.f32 %v18627_v8, %v18317_v63 }
 0x1bf   :  { %1200 = vperm.xlu0 %17333, %v18593_v55  }
 0x1c0   :  { %v1445_v63 = vadd.f32 %v1385_v52, %v960_v25  ;;  %v1387_v52 = vmul.f32 %v18627_v8, %v23000_v49 }
 0x1c1   :  { %v18631_v51 = vpop.permute.xlu1 %1650 }
 0x1c2   :  { %v3566_v44 = vpop.permute.xlu0 %3565  ;;  %1205 = vperm.xlu1 %17334, %v18615_v38   ;;  %v1930_v28 = vadd.f32 %v1870_v4, %v1445_v63  ;;  %v3325_v4 = vmul.f32 %v18682_v57, %v3076_v1  ;;  %v2356_v63 = vmul.f32 %v18647_v22, %v18443_v15  ;;  %v23002_v1 = vld [vmem:[#allocation12_spill] sm:$0xff] }
 0x1c3   :  { %3120 = vperm.xlu0 %17333, %v18471_v58   ;;  %v903_v15 = vmul.f32 %v18604_v12, %v23002_v1 }
 0x1c4   :  { %v2415_v25 = vadd.f32 %v2355_v37, %v1930_v28  ;;  %v18694_v37 = vld [vmem:[%s22924_s1 + $0x7] ss:$0 sm:$0xff]  ;;  %v2416_v29 = vadd.f32 %v2356_v63, %v1931_v36 }
 0x1c5   :  { %v3571_v58 = vpop.permute.xlu1 %3570  ;;  %v3810_v28 = vmul.f32 %v18694_v37, %v3561_v48  ;;  %v3811_v36 = vmul.f32 %v18694_v37, %v3566_v44 }
 0x1c6   :  { %v18669_v13 = vpop.permute.xlu0 %1655  ;;  %3125 = vperm.xlu1 %17334, %v18552_v50  }
 0x1c7   :  { %22997 = vst [vmem:[#allocation23_spill] sm:$0xff] %v18669_v13  ;;  %1210 = vperm.xlu0 %17333, %v18654_v10   ;;  %v2900_v13 = vadd.f32 %v2840_v45, %v2415_v25  ;;  %v1447_v45 = vadd.f32 %v1387_v52, %v962_v26  ;;  %v23003_v25 = vld [vmem:[#allocation13_spill] sm:$0xff] }
 0x1c8   :  { %v418_v48 = vmul.f32 %v18620_v7, %v23003_v25  ;;  %v23005_v26 = vld [vmem:[#allocation9_spill] sm:$0xff] }
 0x1c9   :  { %v18687_v30 = vpop.permute.xlu1 %2125  ;;  %v3385_v54 = vadd.f32 %v3325_v4, %v2900_v13  ;;  %v1932_v1 = vadd.f32 %v1872_v6, %v1447_v45  ;;  %v1873_v21 = vmul.f32 %v18636_v56, %v23005_v26  ;;  %v2901_v6 = vadd.f32 %v2841_v59, %v2416_v29  ;;  %v18741_v59 = vld [vmem:[%s22925_s2] ss:$0 sm:$0xff] }
 0x1ca   :  { %v3576_v49 = vpop.permute.xlu0 %3575  ;;  %1680 = vperm.xlu1 %17334, %v18552_v50   ;;  %v1388_v50 = vmul.f32 %v18627_v8, %v23004_v60  ;;  %v963_v63 = vadd.f32 %v903_v15, %v418_v48  ;;  %v3327_v45 = vmul.f32 %v18682_v57, %v18584_v20  ;;  %v2358_v15 = vmul.f32 %v18647_v22, %v18477_v27 }
 0x1cb   :  { %3130 = vperm.xlu0 %17333, %v18566_v62   ;;  %v3870_v52 = vadd.f32 %v3810_v28, %v3385_v54  ;;  %v2417_v28 = vadd.f32 %v2357_v16, %v1932_v1  ;;  %v3386_v25 = vadd.f32 %v3326_v40, %v2901_v6  ;;  %v2843_v27 = vmul.f32 %v18665_v17, %v18545_v18  ;;  %v18759_v18 = vld [vmem:[%s22925_s2 + $0x1] ss:$0 sm:$0xff] }
 0x1cd   :  { %v4046_v3 = vpop.permute.xlu1 %4045  ;;  %v2902_v44 = vadd.f32 %v2842_v47, %v2417_v28  ;;  %v3871_v60 = vadd.f32 %v3811_v36, %v3386_v25  ;;  %v3328_v47 = vmul.f32 %v18682_v57, %v18597_v61  ;;  %v3813_v36 = vmul.f32 %v18694_v37, %v3576_v49  ;;  %v18772_v28 = vld [vmem:[%s22925_s2 + $0x2] ss:$0 sm:$0xff] }
 0x1ce   :  { %v4295_v13 = vmul.f32 %v18716_v11, %v4046_v3  ;;  %v18719_v4 = vpop.permute.xlu0 %2130  ;;  %3600 = vperm.xlu1 %17334, %v18505_v39   ;;  %v1448_v39 = vadd.f32 %v1388_v50, %v963_v63  ;;  %v18752_v3 = vld [vmem:[%s22923_s0 + $0xf0] sm:$0xff] }
 0x1cf   :  { %1685 = vperm.xlu0 %17333, %v18566_v62   ;;  %v3812_v62 = vmul.f32 %v18694_v37, %v3571_v58  ;;  %v3387_v58 = vadd.f32 %v3327_v45, %v2902_v44 }
 0x1d0   :  { %v4355_v54 = vadd.f32 %v4295_v13, %v3870_v52  ;;  %v1933_v20 = vadd.f32 %v1873_v21, %v1448_v39 }
 0x1d1   :  { %v18735_v29 = vpop.permute.xlu1 %2135  ;;  %v3872_v63 = vadd.f32 %v3812_v62, %v3387_v58 }
 0x1d2   :  { %v4422_v16 = vadd.f32 %v18741_v59, %v4355_v54  ;;  %v4051_v48 = vpop.permute.xlu0 %4050  ;;  %1690 = vperm.xlu1 %17334, %v18729_v24   ;;  %v2418_v1 = vadd.f32 %v2358_v15, %v1933_v20 }
 0x1d3   :  { %v4296_v50 = vmul.f32 %v18716_v11, %v4051_v48  ;;  %3605 = vperm.xlu0 %17333, %v18519_v35  }
 0x1d4   :  { %v4482_v40 = vmax.f32 %v4422_v16, 0.0  ;;  %v2903_v6 = vadd.f32 %v2843_v27, %v2418_v1  ;;  %v18796_v1 = vld [vmem:[%s22923_s0 + $0xe9] sm:$0xff] }
 0x1d5   :  { %v4356_v52 = vadd.f32 %v4296_v50, %v3871_v60  ;;  %v4056_v13 = vpop.permute.xlu1 %4055 }
 0x1d6   :  { %v4546_v35 = vmul.f32 %v18759_v18, %v4482_v40  ;;  %v4297_v26 = vmul.f32 %v18716_v11, %v4056_v13  ;;  %v18763_v21 = vpop.permute.xlu0 %2140  ;;  %3610 = vperm.xlu1 %17334, %v18561_v42   ;;  %v3388_v39 = vadd.f32 %v3328_v47, %v2903_v6 }
 0x1d7   :  { %v4423_v61 = vadd.f32 %v18741_v59, %v4356_v52  ;;  %1695 = vperm.xlu0 %17333, %v18752_v3  }
 0x1d8   :  { %v4610_v45 = vadd.f32 %v18772_v28, %v4546_v35  ;;  %v4357_v54 = vadd.f32 %v4297_v26, %v3872_v63  ;;  %v3873_v62 = vadd.f32 %v3813_v36, %v3388_v39 }
 0x1d9   :  { %v4483_v15 = vmax.f32 %v4423_v61, 0.0  ;;  %v18775_v25 = vpop.permute.xlu1 %205 }
 0x1da   :  { %4671 = vst.msk [vmem:[#allocation2 + $0x68] sm:$0xff] %vm4657_vm0, %v4610_v45  ;;  %v4424_v49 = vadd.f32 %v18741_v59, %v4357_v54  ;;  %v4061_v44 = vpop.permute.xlu0 %4060  ;;  %2165 = vperm.xlu1 %17334, %v18561_v42  }
 0x1db   :  { %v4547_v16 = vmul.f32 %v18759_v18, %v4483_v15  ;;  %v4298_v48 = vmul.f32 %v18716_v11, %v4061_v44  ;;  %3615 = vperm.xlu0 %17333, %v18582_v5  }
 0x1dc   :  { %v4484_v20 = vmax.f32 %v4424_v49, 0.0 }
 0x1dd   :  { %v4611_v27 = vadd.f32 %v18772_v28, %v4547_v16  ;;  %v4358_v60 = vadd.f32 %v4298_v48, %v3873_v62  ;;  %v18784_v50 = vpop.permute.xlu1 %690 }
 0x1de   :  { %v4548_v58 = vmul.f32 %v18759_v18, %v4484_v20  ;;  %v18787_v40 = vpop.permute.xlu0 %210  ;;  %4085 = vperm.xlu1 %17334, %v18577_v0   ;;  %v68_v20 = vld [vmem:[%s22923_s0 + $0xf8] sm:$0xff] }
 0x1df   :  { %4672 = vst.msk [vmem:[#allocation2 + $0x70] sm:$0xff] %vm4657_vm0, %v4611_v27  ;;  %v4425_v42 = vadd.f32 %v18741_v59, %v4358_v60  ;;  %2170 = vperm.xlu0 %17333, %v18582_v5   ;;  %v18810_v5 = vld [vmem:[%s22923_s0 + $0xf1] sm:$0xff] }
 0x1e0   :  { %v4612_v47 = vadd.f32 %v18772_v28, %v4548_v58  ;;  %v18849_v58 = vld [vmem:[%s22923_s0 + $0xf9] sm:$0xff] }
 0x1e1   :  { %v4485_v52 = vmax.f32 %v4425_v42, 0.0  ;;  %v18799_v13 = vpop.permute.xlu1 %2610  ;;  %v4819_v36 = vld [vmem:[#allocation2 + $0x61] sm:$0xff] }
 0x1e2   :  { %4673 = vst.msk [vmem:[#allocation2 + $0x78] sm:$0xff] %vm4657_vm0, %v4612_v47  ;;  %v18802_v63 = vpop.permute.xlu0 %695  ;;  %2175 = vperm.xlu1 %17334, %v18796_v1  }
 0x1e3   :  { %v4549_v0 = vmul.f32 %v18759_v18, %v4485_v52  ;;  %4090 = vperm.xlu0 %17333, %v18593_v55   ;;  %v18870_v52 = vld [vmem:[%s22923_s0 + $0x101] sm:$0xff] }
 0x1e5   :  { %v4613_v35 = vadd.f32 %v18772_v28, %v4549_v0  ;;  %v18813_v26 = vpop.permute.xlu1 %215 }
 0x1e6   :  { %23006 = vst [vmem:[#allocation20_spill] sm:$0xff] %v18813_v26  ;;  %v18815_v6 = vpop.permute.xlu0 %2615  ;;  %4095 = vperm.xlu1 %17334, %v18615_v38   ;;  %v4820_v61 = vld [vmem:[#allocation2 + $0x69] sm:$0xff]  ;;  %v1874_v26 = vmul.f32 %v18636_v56, %v18595_v53  ;;  %v420_v53 = vmul.f32 %v18620_v7, %v18496_v43  ;;  %v421_v43 = vmul.f32 %v18620_v7, %v18522_v14 }
 0x1e7   :  { %4674 = vst.msk [vmem:[#allocation2 + $0x80] sm:$0xff] %vm4657_vm0, %v4613_v35  ;;  %2180 = vperm.xlu0 %17333, %v18810_v5   ;;  %v4869_v55 = vpack.c.bf16 %v4820_v61, %v4819_v36  ;;  %v18881_v36 = vld [vmem:[%s22923_s0 + $0xf2] sm:$0xff] }
 0x1e9   :  { %15272 = vmatprep.mubr.msk.bf16.mxu0 %vm4657_vm0, %v4869_v55  ;;  %v18821_v45 = vpop.permute.xlu1 %700  ;;  %v4821_v49 = vld [vmem:[#allocation2 + $0x71] sm:$0xff] }
 0x1ea   :  { %23007 = vst [vmem:[#allocation26_spill] sm:$0xff] %v18821_v45  ;;  %v18823_v54 = vpop.permute.xlu0 %220  ;;  %245 = vperm.xlu1 %17334, %v18729_v24  }
 0x1eb   :  { %23008 = vst [vmem:[#allocation19_spill] sm:$0xff] %v18823_v54  ;;  %4100 = vperm.xlu0 %17333, %v18654_v10   ;;  %v419_v54 = vmul.f32 %v18620_v7, %v18484_v31  ;;  %v2359_v31 = vmul.f32 %v18647_v22, %v18687_v30 }
 0x1ed   :  { %v18827_v39 = vpop.permute.xlu1 %2620 }
 0x1ee   :  { %v18829_v15 = vpop.permute.xlu0 %705  ;;  %730 = vperm.xlu1 %17334, %v18796_v1   ;;  %v4822_v44 = vld [vmem:[#allocation2 + $0x79] sm:$0xff] }
 0x1ef   :  { %23009 = vst [vmem:[#allocation24_spill] sm:$0xff] %v18829_v15  ;;  %250 = vperm.xlu0 %17333, %v18752_v3   ;;  %v4870_v62 = vpack.c.bf16 %v4822_v44, %v4821_v49  ;;  %v904_v44 = vmul.f32 %v18604_v12, %v18493_v41  ;;  %v1389_v15 = vmul.f32 %v18627_v8, %v18543_v33  ;;  %v18917_v33 = vld [vmem:[%s22923_s0 + $0x102] sm:$0xff] }
 0x1f1   :  { %15273 = vmatmul.mubr.msk.bf16.gmra.mrb[12].mxu0 %vm4657_vm0, %v4870_v62  ;;  %v18834_v16 = vpop.permute.xlu1 %1175  ;;  %v964_v41 = vadd.f32 %v904_v44, %v419_v54  ;;  %v1390_v54 = vmul.f32 %v18627_v8, %v18554_v23  ;;  %v1391_v23 = vmul.f32 %v18627_v8, %v18568_v34  ;;  %v907_v34 = vmul.f32 %v18604_v12, %v18538_v9 }
 0x1f2   :  { %v18836_v48 = vpop.permute.xlu0 %2625  ;;  %2650 = vperm.xlu1 %17334, %v18615_v38   ;;  %v18854_v38 = vld [vmem:[%s22923_s0 + $0x100] sm:$0xff] }
 0x1f3   :  { %735 = vperm.xlu0 %17333, %v18810_v5   ;;  %v1449_v45 = vadd.f32 %v1389_v15, %v964_v41  ;;  %v2844_v15 = vmul.f32 %v18665_v17, %v18799_v13  ;;  %v2360_v13 = vmul.f32 %v18647_v22, %v18719_v4 }
 0x1f5   :  { %v3096_v27 = vpop.permute.xlu1 %3095 }
 0x1f6   :  { %v18843_v60 = vpop.permute.xlu0 %1180  ;;  %255 = vperm.xlu1 %17334, %v68_v20  }
 0x1f7   :  { %23010 = vst [vmem:[#allocation14_spill] sm:$0xff] %v18843_v60  ;;  %2655 = vperm.xlu0 %17333, %v18654_v10   ;;  %v18865_v10 = vld [vmem:[%s22923_s0 + $0xea] sm:$0xff] }
 0x1f9   :  { %v18856_v42 = vpop.permute.xlu1 %1185 }
 0x1fa   :  { %23011 = vst [vmem:[#allocation22_spill] sm:$0xff] %v18856_v42  ;;  %v18858_v47 = vpop.permute.xlu0 %3100  ;;  %740 = vperm.xlu1 %17334, %v18849_v58  }
 0x1fb   :  { %260 = vperm.xlu0 %17333, %v18854_v38   ;;  %v3330_v9 = vmul.f32 %v18682_v57, %v18858_v47 }
 0x1fd   :  { %v18872_v0 = vpop.permute.xlu1 %3105 }
 0x1fe   :  { %v18874_v35 = vpop.permute.xlu0 %1190  ;;  %2660 = vperm.xlu1 %17334, %v18865_v10   ;;  %v3331_v47 = vmul.f32 %v18682_v57, %v18872_v0  ;;  %v2847_v0 = vmul.f32 %v18665_v17, %v18836_v48 }
 0x1ff   :  { %23012 = vst [vmem:[#allocation21_spill] sm:$0xff] %v18874_v35  ;;  %745 = vperm.xlu0 %17333, %v18870_v52   ;;  %v18898_v35 = vld [vmem:[%s22923_s0 + $0xfa] sm:$0xff] }
 0x201   :  { %v18883_v61 = vpop.permute.xlu1 %1660 }
 0x202   :  { %v18885_v55 = vpop.permute.xlu0 %3110  ;;  %1215 = vperm.xlu1 %17334, %v18865_v10  }
 0x203   :  { %2665 = vperm.xlu0 %17333, %v18881_v36  }
 0x205   :  { %v3581_v49 = vpop.permute.xlu1 %3580 }
 0x206   :  { %v18891_v62 = vpop.permute.xlu0 %1665  ;;  %3135 = vperm.xlu1 %17334, %v18729_v24   ;;  %v3814_v60 = vmul.f32 %v18694_v37, %v3581_v49  ;;  %v23016_v49 = vld [vmem:[#allocation16_spill] sm:$0xff] }
 0x207   :  { %23013 = vst [vmem:[#allocation25_spill] sm:$0xff] %v18891_v62  ;;  %1220 = vperm.xlu0 %17333, %v18881_v36   ;;  %v905_v62 = vmul.f32 %v18604_v12, %v18511_v19  ;;  %v906_v19 = vmul.f32 %v18604_v12, %v18530_v46 }
 0x209   :  { %v18904_v42 = vpop.permute.xlu1 %1670  ;;  %v965_v41 = vadd.f32 %v905_v62, %v420_v53  ;;  %v966_v62 = vadd.f32 %v906_v19, %v421_v43 }
 0x20a   :  { %23014 = vst [vmem:[#allocation8_spill] sm:$0xff] %v18904_v42  ;;  %v3586_v24 = vpop.permute.xlu0 %3585  ;;  %1225 = vperm.xlu1 %17334, %v18898_v35   ;;  %v1875_v42 = vmul.f32 %v18636_v56, %v18608_v2  ;;  %v1876_v2 = vmul.f32 %v18636_v56, %v18631_v51  ;;  %v422_v51 = vmul.f32 %v18620_v7, %v18532_v32 }
 0x20b   :  { %3140 = vperm.xlu0 %17333, %v18752_v3   ;;  %v1934_v3 = vadd.f32 %v1874_v26, %v1449_v45  ;;  %v3329_v26 = vmul.f32 %v18682_v57, %v3096_v27  ;;  %v1450_v45 = vadd.f32 %v1390_v54, %v965_v41  ;;  %v2845_v27 = vmul.f32 %v18665_v17, %v18815_v6 }
 0x20c   :  { %v1451_v4 = vadd.f32 %v1391_v23, %v966_v62  ;;  %v2361_v54 = vmul.f32 %v18647_v22, %v18735_v29  ;;  %v2846_v6 = vmul.f32 %v18665_v17, %v18827_v39  ;;  %v967_v32 = vadd.f32 %v907_v34, %v422_v51  ;;  %v23017_v23 = vld [vmem:[#allocation23_spill] sm:$0xff] }
 0x20d   :  { %v3591_v44 = vpop.permute.xlu1 %3590  ;;  %v2419_v46 = vadd.f32 %v2359_v31, %v1934_v3  ;;  %v1935_v31 = vadd.f32 %v1875_v42, %v1450_v45  ;;  %v3815_v45 = vmul.f32 %v18694_v37, %v3586_v24  ;;  %v18970_v39 = vld [vmem:[%s22923_s0 + $0x108] sm:$0xff]  ;;  %v2362_v62 = vmul.f32 %v18647_v22, %v18763_v21 }
 0x20e   :  { %v18927_v30 = vpop.permute.xlu0 %1675  ;;  %3145 = vperm.xlu1 %17334, %v68_v20  }
 0x20f   :  { %23015 = vst [vmem:[#allocation7_spill] sm:$0xff] %v18927_v30  ;;  %1230 = vperm.xlu0 %17333, %v18917_v33   ;;  %v2904_v53 = vadd.f32 %v2844_v15, %v2419_v46  ;;  %v2420_v3 = vadd.f32 %v2360_v13, %v1935_v31  ;;  %v1936_v15 = vadd.f32 %v1876_v2, %v1451_v4 }
 0x210   :  { %v1877_v46 = vmul.f32 %v18636_v56, %v23017_v23 }
 0x211   :  { %v18939_v30 = vpop.permute.xlu1 %2145  ;;  %v3389_v19 = vadd.f32 %v3329_v26, %v2904_v53  ;;  %v2905_v26 = vadd.f32 %v2845_v27, %v2420_v3 }
 0x212   :  { %v3596_v14 = vpop.permute.xlu0 %3595  ;;  %1700 = vperm.xlu1 %17334, %v68_v20   ;;  %v1392_v20 = vmul.f32 %v18627_v8, %v23016_v49  ;;  %v3332_v49 = vmul.f32 %v18682_v57, %v18885_v55 }
 0x213   :  { %3150 = vperm.xlu0 %17333, %v18854_v38   ;;  %v3874_v41 = vadd.f32 %v3814_v60, %v3389_v19  ;;  %v2421_v60 = vadd.f32 %v2361_v54, %v1936_v15  ;;  %v3390_v2 = vadd.f32 %v3330_v9, %v2905_v26 }
 0x215   :  { %v4066_v42 = vpop.permute.xlu1 %4065  ;;  %v2906_v24 = vadd.f32 %v2846_v6, %v2421_v60  ;;  %v3875_v4 = vadd.f32 %v3815_v45, %v3390_v2  ;;  %v3817_v6 = vmul.f32 %v18694_v37, %v3596_v14 }
 0x216   :  { %v4299_v43 = vmul.f32 %v18716_v11, %v4066_v42  ;;  %v18960_v29 = vpop.permute.xlu0 %2150  ;;  %3620 = vperm.xlu1 %17334, %v18796_v1   ;;  %v1452_v1 = vadd.f32 %v1392_v20, %v967_v32 }
 0x217   :  { %1705 = vperm.xlu0 %17333, %v18854_v38   ;;  %v3816_v38 = vmul.f32 %v18694_v37, %v3591_v44  ;;  %v3391_v21 = vadd.f32 %v3331_v47, %v2906_v24  ;;  %v18988_v44 = vld [vmem:[%s22923_s0 + $0x110] sm:$0xff] }
 0x218   :  { %v4359_v13 = vadd.f32 %v4299_v43, %v3874_v41  ;;  %v1937_v27 = vadd.f32 %v1877_v46, %v1452_v1 }
 0x219   :  { %v18976_v53 = vpop.permute.xlu1 %2155  ;;  %v3876_v9 = vadd.f32 %v3816_v38, %v3391_v21 }
 0x21a   :  { %v4426_v34 = vadd.f32 %v18741_v59, %v4359_v13  ;;  %v4071_v31 = vpop.permute.xlu0 %4070  ;;  %1710 = vperm.xlu1 %17334, %v18970_v39   ;;  %v2422_v51 = vadd.f32 %v2362_v62, %v1937_v27 }
 0x21b   :  { %v4300_v54 = vmul.f32 %v18716_v11, %v4071_v31  ;;  %3625 = vperm.xlu0 %17333, %v18810_v5  }
 0x21c   :  { %v4486_v19 = vmax.f32 %v4426_v34, 0.0  ;;  %v2907_v5 = vadd.f32 %v2847_v0, %v2422_v51  ;;  %v19022_v34 = vld [vmem:[%s22923_s0 + $0x109] sm:$0xff] }
 0x21d   :  { %v4360_v20 = vadd.f32 %v4300_v54, %v3875_v4  ;;  %v4076_v3 = vpop.permute.xlu1 %4075 }
 0x21e   :  { %v4550_v48 = vmul.f32 %v18759_v18, %v4486_v19  ;;  %v4301_v42 = vmul.f32 %v18716_v11, %v4076_v3  ;;  %v18994_v15 = vpop.permute.xlu0 %2160  ;;  %3630 = vperm.xlu1 %17334, %v18849_v58   ;;  %v3392_v32 = vadd.f32 %v3332_v49, %v2907_v5 }
 0x21f   :  { %v4427_v41 = vadd.f32 %v18741_v59, %v4360_v20  ;;  %1715 = vperm.xlu0 %17333, %v18988_v44  }
 0x220   :  { %v4614_v55 = vadd.f32 %v18772_v28, %v4550_v48  ;;  %v4361_v43 = vadd.f32 %v4301_v42, %v3876_v9  ;;  %v3877_v60 = vadd.f32 %v3817_v6, %v3392_v32 }
 0x221   :  { %v4487_v23 = vmax.f32 %v4427_v41, 0.0  ;;  %v19001_v46 = vpop.permute.xlu1 %225 }
 0x222   :  { %4675 = vst.msk [vmem:[#allocation2 + $0x88] sm:$0xff] %vm4657_vm0, %v4614_v55  ;;  %v4428_v26 = vadd.f32 %v18741_v59, %v4361_v43  ;;  %v4081_v45 = vpop.permute.xlu0 %4080  ;;  %2185 = vperm.xlu1 %17334, %v18849_v58   ;;  %v72_v43 = vld [vmem:[%s22923_s0 + $0x118] sm:$0xff] }
 0x223   :  { %v4551_v14 = vmul.f32 %v18759_v18, %v4487_v23  ;;  %v4302_v47 = vmul.f32 %v18716_v11, %v4081_v45  ;;  %3635 = vperm.xlu0 %17333, %v18870_v52  }
 0x224   :  { %v4488_v13 = vmax.f32 %v4428_v26, 0.0  ;;  %v19075_v26 = vld [vmem:[%s22923_s0 + $0x119] sm:$0xff] }
 0x225   :  { %v4615_v1 = vadd.f32 %v18772_v28, %v4551_v14  ;;  %v4362_v62 = vadd.f32 %v4302_v47, %v3877_v60  ;;  %v19010_v2 = vpop.permute.xlu1 %710  ;;  %v19096_v14 = vld [vmem:[%s22923_s0 + $0x121] sm:$0xff] }
 0x226   :  { %v4552_v24 = vmul.f32 %v18759_v18, %v4488_v13  ;;  %v19013_v38 = vpop.permute.xlu0 %230  ;;  %4105 = vperm.xlu1 %17334, %v18865_v10  }
 0x227   :  { %4676 = vst.msk [vmem:[#allocation2 + $0x90] sm:$0xff] %vm4657_vm0, %v4615_v1  ;;  %v4429_v58 = vadd.f32 %v18741_v59, %v4362_v62  ;;  %2190 = vperm.xlu0 %17333, %v18870_v52   ;;  %v19036_v52 = vld [vmem:[%s22923_s0 + $0x111] sm:$0xff] }
 0x228   :  { %v4616_v31 = vadd.f32 %v18772_v28, %v4552_v24  ;;  %v19107_v1 = vld [vmem:[%s22923_s0 + $0x112] sm:$0xff] }
 0x229   :  { %v4489_v27 = vmax.f32 %v4429_v58, 0.0  ;;  %v19025_v0 = vpop.permute.xlu1 %2630  ;;  %v4823_v51 = vld [vmem:[#allocation2 + $0x81] sm:$0xff] }
 0x22a   :  { %4677 = vst.msk [vmem:[#allocation2 + $0x98] sm:$0xff] %vm4657_vm0, %v4616_v31  ;;  %v19028_v4 = vpop.permute.xlu0 %715  ;;  %2195 = vperm.xlu1 %17334, %v19022_v34   ;;  %v908_v31 = vmul.f32 %v18604_v12, %v18784_v50 }
 0x22b   :  { %v4553_v10 = vmul.f32 %v18759_v18, %v4489_v27  ;;  %4110 = vperm.xlu0 %17333, %v18881_v36  }
 0x22d   :  { %v4617_v54 = vadd.f32 %v18772_v28, %v4553_v10  ;;  %v19039_v21 = vpop.permute.xlu1 %235  ;;  %v19124_v10 = vld [vmem:[%s22923_s0 + $0x11a] sm:$0xff] }
 0x22e   :  { %23018 = vst [vmem:[#allocation15_spill] sm:$0xff] %v19039_v21  ;;  %v19041_v19 = vpop.permute.xlu0 %2635  ;;  %4115 = vperm.xlu1 %17334, %v18898_v35   ;;  %v4824_v49 = vld [vmem:[#allocation2 + $0x89] sm:$0xff] }
 0x22f   :  { %4678 = vst.msk [vmem:[#allocation2 + $0xa0] sm:$0xff] %vm4657_vm0, %v4617_v54  ;;  %2200 = vperm.xlu0 %17333, %v19036_v52   ;;  %v4871_v36 = vpack.c.bf16 %v4824_v49, %v4823_v51  ;;  %v423_v54 = vmul.f32 %v18620_v7, %v18775_v25  ;;  %v1393_v51 = vmul.f32 %v18627_v8, %v18834_v16  ;;  %v19143_v16 = vld [vmem:[%s22923_s0 + $0x122] sm:$0xff] }
 0x230   :  { %v2363_v25 = vmul.f32 %v18647_v22, %v18939_v30 }
 0x231   :  { %15276 = vmatprep.mubr.msk.bf16.mxu0 %vm4657_vm0, %v4871_v36  ;;  %v19047_v20 = vpop.permute.xlu1 %720  ;;  %v4825_v42 = vld [vmem:[#allocation2 + $0x91] sm:$0xff]  ;;  %v968_v50 = vadd.f32 %v908_v31, %v423_v54  ;;  %v1878_v36 = vmul.f32 %v18636_v56, %v18883_v61  ;;  %v424_v61 = vmul.f32 %v18620_v7, %v18787_v40 }
 0x232   :  { %23019 = vst [vmem:[#allocation17_spill] sm:$0xff] %v19047_v20  ;;  %v19049_v3 = vpop.permute.xlu0 %240  ;;  %265 = vperm.xlu1 %17334, %v18970_v39   ;;  %v23030_v40 = vld [vmem:[#allocation20_spill] sm:$0xff] }
 0x233   :  { %23020 = vst [vmem:[#allocation18_spill] sm:$0xff] %v19049_v3  ;;  %4120 = vperm.xlu0 %17333, %v18917_v33   ;;  %v23029_v3 = vld [vmem:[#allocation25_spill] sm:$0xff]  ;;  %v23033_v20 = vld [vmem:[#allocation24_spill] sm:$0xff] }
 0x235   :  { %v19053_v9 = vpop.permute.xlu1 %2640 }
 0x236   :  { %v19055_v48 = vpop.permute.xlu0 %725  ;;  %750 = vperm.xlu1 %17334, %v19022_v34   ;;  %v4826_v5 = vld [vmem:[#allocation2 + $0x99] sm:$0xff] }
 0x237   :  { %23021 = vst [vmem:[#allocation11_spill] sm:$0xff] %v19055_v48  ;;  %270 = vperm.xlu0 %17333, %v18988_v44   ;;  %v4872_v6 = vpack.c.bf16 %v4826_v5, %v4825_v42  ;;  %v909_v42 = vmul.f32 %v18604_v12, %v18802_v63  ;;  %v1453_v5 = vadd.f32 %v1393_v51, %v968_v50 }
 0x238   :  { %v2848_v51 = vmul.f32 %v18665_v17, %v19025_v0  ;;  %v1879_v48 = vmul.f32 %v18636_v56, %v23029_v3  ;;  %v2364_v0 = vmul.f32 %v18647_v22, %v18960_v29 }
 0x239   :  { %15277 = vmatmul.mubr.msk.bf16.gmra.mrb[16].mxu0 %vm4657_vm0, %v4872_v6  ;;  %v19060_v41 = vpop.permute.xlu1 %1195  ;;  %v23026_v6 = vld [vmem:[#allocation14_spill] sm:$0xff]  ;;  %v969_v50 = vadd.f32 %v909_v42, %v424_v61  ;;  %v23032_v61 = vld [vmem:[#allocation8_spill] sm:$0xff] }
 0x23a   :  { %v19062_v55 = vpop.permute.xlu0 %2645  ;;  %2670 = vperm.xlu1 %17334, %v18898_v35   ;;  %v19080_v35 = vld [vmem:[%s22923_s0 + $0x120] sm:$0xff]  ;;  %v1394_v31 = vmul.f32 %v18627_v8, %v23026_v6  ;;  %v425_v6 = vmul.f32 %v18620_v7, %v23030_v40  ;;  %v1880_v3 = vmul.f32 %v18636_v56, %v23032_v61 }
 0x23b   :  { %755 = vperm.xlu0 %17333, %v19036_v52  }
 0x23d   :  { %v3116_v32 = vpop.permute.xlu1 %3115 }
 0x23e   :  { %v19069_v23 = vpop.permute.xlu0 %1200  ;;  %275 = vperm.xlu1 %17334, %v72_v43  }
 0x23f   :  { %2675 = vperm.xlu0 %17333, %v18917_v33   ;;  %v19091_v33 = vld [vmem:[%s22923_s0 + $0x10a] sm:$0xff] }
 0x241   :  { %v19082_v45 = vpop.permute.xlu1 %1205 }
 0x242   :  { %23022 = vst [vmem:[#allocation12_spill] sm:$0xff] %v19082_v45  ;;  %v19084_v60 = vpop.permute.xlu0 %3120  ;;  %760 = vperm.xlu1 %17334, %v19075_v26  }
 0x243   :  { %280 = vperm.xlu0 %17333, %v19080_v35  }
 0x245   :  { %v19098_v47 = vpop.permute.xlu1 %3125 }
 0x246   :  { %v19100_v13 = vpop.permute.xlu0 %1210  ;;  %2680 = vperm.xlu1 %17334, %v19091_v33  }
 0x247   :  { %23023 = vst [vmem:[#allocation13_spill] sm:$0xff] %v19100_v13  ;;  %765 = vperm.xlu0 %17333, %v19096_v14   ;;  %v23027_v13 = vld [vmem:[#allocation26_spill] sm:$0xff] }
 0x248   :  { %v910_v63 = vmul.f32 %v18604_v12, %v23027_v13 }
 0x249   :  { %v19109_v62 = vpop.permute.xlu1 %1680 }
 0x24a   :  { %v19111_v24 = vpop.permute.xlu0 %3130  ;;  %1235 = vperm.xlu1 %17334, %v19091_v33   ;;  %v970_v42 = vadd.f32 %v910_v63, %v425_v6 }
 0x24b   :  { %2685 = vperm.xlu0 %17333, %v19107_v1  }
 0x24d   :  { %v3601_v58 = vpop.permute.xlu1 %3600 }
 0x24e   :  { %v19117_v27 = vpop.permute.xlu0 %1685  ;;  %3155 = vperm.xlu1 %17334, %v18970_v39  }
 0x24f   :  { %23024 = vst [vmem:[#allocation10_spill] sm:$0xff] %v19117_v27  ;;  %1240 = vperm.xlu0 %17333, %v19107_v1   ;;  %v3818_v27 = vmul.f32 %v18694_v37, %v3601_v58  ;;  %v23035_v58 = vld [vmem:[#allocation21_spill] sm:$0xff] }
 0x251   :  { %v19130_v49 = vpop.permute.xlu1 %1690 }
 0x252   :  { %23025 = vst [vmem:[#allocation9_spill] sm:$0xff] %v19130_v49  ;;  %v3606_v39 = vpop.permute.xlu0 %3605  ;;  %1245 = vperm.xlu1 %17334, %v19124_v10   ;;  %v23031_v49 = vld [vmem:[#allocation22_spill] sm:$0xff] }
 0x253   :  { %3160 = vperm.xlu0 %17333, %v18988_v44   ;;  %v1938_v44 = vadd.f32 %v1878_v36, %v1453_v5  ;;  %v1395_v45 = vmul.f32 %v18627_v8, %v23031_v49  ;;  %v3333_v36 = vmul.f32 %v18682_v57, %v3116_v32  ;;  %v1454_v5 = vadd.f32 %v1394_v31, %v969_v50 }
 0x254   :  { %v911_v49 = vmul.f32 %v18604_v12, %v23033_v20  ;;  %v2849_v32 = vmul.f32 %v18665_v17, %v19041_v19  ;;  %v2365_v31 = vmul.f32 %v18647_v22, %v18976_v53  ;;  %v3334_v12 = vmul.f32 %v18682_v57, %v19084_v60 }
 0x255   :  { %v3611_v54 = vpop.permute.xlu1 %3610  ;;  %v2423_v13 = vadd.f32 %v2363_v25, %v1938_v44  ;;  %v1939_v25 = vadd.f32 %v1879_v48, %v1454_v5  ;;  %v1455_v29 = vadd.f32 %v1395_v45, %v970_v42  ;;  %v23034_v44 = vld [vmem:[#allocation19_spill] sm:$0xff]  ;;  %v2850_v19 = vmul.f32 %v18665_v17, %v19053_v9 }
 0x256   :  { %v19153_v30 = vpop.permute.xlu0 %1695  ;;  %3165 = vperm.xlu1 %17334, %v72_v43   ;;  %v19196_v9 = vld [vmem:[%s22923_s0 + $0x128] sm:$0xff] }
 0x257   :  { %23028 = vst [vmem:[#allocation16_spill] sm:$0xff] %v19153_v30  ;;  %1250 = vperm.xlu0 %17333, %v19143_v16   ;;  %v2908_v21 = vadd.f32 %v2848_v51, %v2423_v13  ;;  %v426_v51 = vmul.f32 %v18620_v7, %v23034_v44  ;;  %v2424_v50 = vadd.f32 %v2364_v0, %v1939_v25 }
 0x258   :  { %v1940_v48 = vadd.f32 %v1880_v3, %v1455_v29  ;;  %v2366_v0 = vmul.f32 %v18647_v22, %v18994_v15 }
 0x259   :  { %v19165_v30 = vpop.permute.xlu1 %2165  ;;  %v3393_v63 = vadd.f32 %v3333_v36, %v2908_v21  ;;  %v971_v7 = vadd.f32 %v911_v49, %v426_v51  ;;  %v23036_v21 = vld [vmem:[#allocation7_spill] sm:$0xff]  ;;  %v2909_v13 = vadd.f32 %v2849_v32, %v2424_v50  ;;  %v3819_v36 = vmul.f32 %v18694_v37, %v3606_v39 }
 0x25a   :  { %v3616_v40 = vpop.permute.xlu0 %3615  ;;  %1720 = vperm.xlu1 %17334, %v72_v43   ;;  %v1396_v43 = vmul.f32 %v18627_v8, %v23035_v58  ;;  %v1881_v8 = vmul.f32 %v18636_v56, %v23036_v21  ;;  %v2425_v60 = vadd.f32 %v2365_v31, %v1940_v48  ;;  %v3336_v31 = vmul.f32 %v18682_v57, %v19111_v24 }
 0x25b   :  { %3170 = vperm.xlu0 %17333, %v19080_v35   ;;  %v3878_v45 = vadd.f32 %v3818_v27, %v3393_v63  ;;  %v3335_v27 = vmul.f32 %v18682_v57, %v19098_v47  ;;  %v3394_v56 = vadd.f32 %v3334_v12, %v2909_v13  ;;  %v2851_v47 = vmul.f32 %v18665_v17, %v19062_v55 }
 0x25c   :  { %v2910_v39 = vadd.f32 %v2850_v19, %v2425_v60 }
 0x25d   :  { %v4086_v20 = vpop.permute.xlu1 %4085  ;;  %v3879_v25 = vadd.f32 %v3819_v36, %v3394_v56 }
 0x25e   :  { %v4303_v6 = vmul.f32 %v18716_v11, %v4086_v20  ;;  %v19186_v53 = vpop.permute.xlu0 %2170  ;;  %3640 = vperm.xlu1 %17334, %v19022_v34   ;;  %v1456_v34 = vadd.f32 %v1396_v43, %v971_v7  ;;  %v3395_v22 = vadd.f32 %v3335_v27, %v2910_v39  ;;  %v3821_v43 = vmul.f32 %v18694_v37, %v3616_v40 }
 0x25f   :  { %1725 = vperm.xlu0 %17333, %v19080_v35   ;;  %v3820_v35 = vmul.f32 %v18694_v37, %v3611_v54  ;;  %v19214_v54 = vld [vmem:[%s22923_s0 + $0x130] sm:$0xff] }
 0x260   :  { %v4363_v5 = vadd.f32 %v4303_v6, %v3878_v45  ;;  %v1941_v49 = vadd.f32 %v1881_v8, %v1456_v34 }
 0x261   :  { %v19202_v42 = vpop.permute.xlu1 %2175  ;;  %v3880_v51 = vadd.f32 %v3820_v35, %v3395_v22 }
 0x262   :  { %v4430_v61 = vadd.f32 %v18741_v59, %v4363_v5  ;;  %v4091_v3 = vpop.permute.xlu0 %4090  ;;  %1730 = vperm.xlu1 %17334, %v19196_v9   ;;  %v2426_v29 = vadd.f32 %v2366_v0, %v1941_v49 }
 0x263   :  { %v4304_v32 = vmul.f32 %v18716_v11, %v4091_v3  ;;  %3645 = vperm.xlu0 %17333, %v19036_v52  }
 0x264   :  { %v4490_v15 = vmax.f32 %v4430_v61, 0.0  ;;  %v2911_v52 = vadd.f32 %v2851_v47, %v2426_v29  ;;  %v19295_v29 = vld [vmem:[%s22923_s0 + $0x138] sm:$0xff] }
 0x265   :  { %v4364_v63 = vadd.f32 %v4304_v32, %v3879_v25  ;;  %v4096_v44 = vpop.permute.xlu1 %4095 }
 0x266   :  { %v4554_v17 = vmul.f32 %v18759_v18, %v4490_v15  ;;  %v4305_v55 = vmul.f32 %v18716_v11, %v4096_v44  ;;  %v19220_v58 = vpop.permute.xlu0 %2180  ;;  %3650 = vperm.xlu1 %17334, %v19075_v26   ;;  %v3396_v12 = vadd.f32 %v3336_v31, %v2911_v52  ;;  %v19304_v44 = vld [vmem:[%s22923_s0 + $0x139] sm:$0xff] }
 0x267   :  { %v4431_v50 = vadd.f32 %v18741_v59, %v4364_v63  ;;  %1735 = vperm.xlu0 %17333, %v19214_v54  }
 0x268   :  { %v4618_v57 = vadd.f32 %v18772_v28, %v4554_v17  ;;  %v4365_v24 = vadd.f32 %v4305_v55, %v3880_v51  ;;  %v3881_v6 = vadd.f32 %v3821_v43, %v3396_v12  ;;  %v19325_v55 = vld [vmem:[%s22923_s0 + $0x141] sm:$0xff] }
 0x269   :  { %v4491_v20 = vmax.f32 %v4431_v50, 0.0  ;;  %v19227_v48 = vpop.permute.xlu1 %245  ;;  %v19336_v50 = vld [vmem:[%s22923_s0 + $0x132] sm:$0xff] }
 0x26a   :  { %4679 = vst.msk [vmem:[#allocation2 + $0xa8] sm:$0xff] %vm4657_vm0, %v4618_v57  ;;  %v4432_v19 = vadd.f32 %v18741_v59, %v4365_v24  ;;  %v4101_v45 = vpop.permute.xlu0 %4100  ;;  %2205 = vperm.xlu1 %17334, %v19075_v26  }
 0x26b   :  { %v4555_v37 = vmul.f32 %v18759_v18, %v4491_v20  ;;  %v4306_v40 = vmul.f32 %v18716_v11, %v4101_v45  ;;  %3655 = vperm.xlu0 %17333, %v19096_v14   ;;  %v19248_v11 = vld [vmem:[%s22923_s0 + $0x129] sm:$0xff]  ;;  %v19347_v20 = vld [vmem:[%s22924_s1 + $0x1] ss:$0 sm:$0xff] }
 0x26c   :  { %v4492_v7 = vmax.f32 %v4432_v19, 0.0  ;;  %v912_v19 = vmul.f32 %v19347_v20, %v19010_v2  ;;  %v19370_v2 = vld [vmem:[%s22924_s1 + $0x2] ss:$0 sm:$0xff] }
 0x26d   :  { %v4619_v21 = vadd.f32 %v18772_v28, %v4555_v37  ;;  %v4366_v8 = vadd.f32 %v4306_v40, %v3881_v6  ;;  %v19236_v13 = vpop.permute.xlu1 %730  ;;  %v19358_v6 = vld [vmem:[%s22923_s0 + $0x13a] sm:$0xff] }
 0x26e   :  { %v4556_v36 = vmul.f32 %v18759_v18, %v4492_v7  ;;  %v19239_v60 = vpop.permute.xlu0 %250  ;;  %4125 = vperm.xlu1 %17334, %v19091_v33   ;;  %v19262_v33 = vld [vmem:[%s22923_s0 + $0x131] sm:$0xff]  ;;  %v19363_v37 = vld [vmem:[%s22924_s1] ss:$0 sm:$0xff] }
 0x26f   :  { %4680 = vst.msk [vmem:[#allocation2 + $0xb0] sm:$0xff] %vm4657_vm0, %v4619_v21  ;;  %v4433_v26 = vadd.f32 %v18741_v59, %v4366_v8  ;;  %2210 = vperm.xlu0 %17333, %v19096_v14   ;;  %v427_v40 = vmul.f32 %v19363_v37, %v19001_v46  ;;  %v19379_v8 = vld [vmem:[%s22924_s1 + $0x3] ss:$0 sm:$0xff] }
 0x270   :  { %v4620_v27 = vadd.f32 %v18772_v28, %v4556_v36  ;;  %v1882_v36 = vmul.f32 %v19379_v8, %v19109_v62  ;;  %v19397_v62 = vld [vmem:[%s22923_s0 + $0x142] sm:$0xff] }
 0x271   :  { %v4493_v5 = vmax.f32 %v4433_v26, 0.0  ;;  %v19251_v34 = vpop.permute.xlu1 %2650  ;;  %v4827_v35 = vld [vmem:[#allocation2 + $0xa1] sm:$0xff]  ;;  %v972_v21 = vadd.f32 %v912_v19, %v427_v40  ;;  %v913_v26 = vmul.f32 %v19347_v20, %v19028_v4  ;;  %v1398_v4 = vmul.f32 %v19370_v2, %v19069_v23  ;;  %v23042_v40 = vld [vmem:[#allocation12_spill] sm:$0xff] }
 0x272   :  { %4681 = vst.msk [vmem:[#allocation2 + $0xb8] sm:$0xff] %vm4657_vm0, %v4620_v27  ;;  %v19254_v0 = vpop.permute.xlu0 %735  ;;  %2215 = vperm.xlu1 %17334, %v19248_v11   ;;  %v19390_v27 = vld [vmem:[%s22924_s1 + $0x4] ss:$0 sm:$0xff] }
 0x273   :  { %v4557_v59 = vmul.f32 %v18759_v18, %v4493_v5  ;;  %4130 = vperm.xlu0 %17333, %v19107_v1   ;;  %v2367_v5 = vmul.f32 %v19390_v27, %v19165_v30  ;;  %v19408_v30 = vld [vmem:[%s22924_s1 + $0x5] ss:$0 sm:$0xff] }
 0x275   :  { %v4621_v14 = vadd.f32 %v18772_v28, %v4557_v59  ;;  %v19265_v56 = vpop.permute.xlu1 %255  ;;  %v428_v59 = vmul.f32 %v19363_v37, %v19013_v38 }
 0x276   :  { %v19267_v39 = vpop.permute.xlu0 %2655  ;;  %4135 = vperm.xlu1 %17334, %v19124_v10   ;;  %v4828_v61 = vld [vmem:[#allocation2 + $0xa9] sm:$0xff] }
 0x277   :  { %4682 = vst.msk [vmem:[#allocation2 + $0xc0] sm:$0xff] %vm4657_vm0, %v4621_v14  ;;  %2220 = vperm.xlu0 %17333, %v19262_v33   ;;  %v4873_v18 = vpack.c.bf16 %v4828_v61, %v4827_v35  ;;  %v23038_v14 = vld [vmem:[#allocation17_spill] sm:$0xff]  ;;  %v973_v38 = vadd.f32 %v913_v26, %v428_v59 }
 0x278   :  { %v914_v35 = vmul.f32 %v19347_v20, %v23038_v14 }
 0x279   :  { %15280 = vmatprep.mubr.msk.bf16.mxu0 %vm4657_vm0, %v4873_v18  ;;  %v19273_v1 = vpop.permute.xlu1 %740  ;;  %v4829_v47 = vld [vmem:[#allocation2 + $0xb1] sm:$0xff]  ;;  %v2852_v18 = vmul.f32 %v19408_v30, %v19251_v34  ;;  %v19425_v34 = vld [vmem:[%s22924_s1 + $0x6] ss:$0 sm:$0xff]  ;;  %v1458_v26 = vadd.f32 %v1398_v4, %v973_v38  ;;  %v2369_v38 = vmul.f32 %v19390_v27, %v19202_v42  ;;  %v19459_v42 = vld [vmem:[%s22924_s1 + $0x8] ss:$0 sm:$0xff] }
 0x27a   :  { %v19275_v3 = vpop.permute.xlu0 %260  ;;  %285 = vperm.xlu1 %17334, %v19196_v9  }
 0x27b   :  { %4140 = vperm.xlu0 %17333, %v19143_v16  }
 0x27d   :  { %v19279_v28 = vpop.permute.xlu1 %2660 }
 0x27e   :  { %v19281_v49 = vpop.permute.xlu0 %745  ;;  %770 = vperm.xlu1 %17334, %v19248_v11   ;;  %v4830_v25 = vld [vmem:[#allocation2 + $0xb9] sm:$0xff] }
 0x27f   :  { %290 = vperm.xlu0 %17333, %v19214_v54   ;;  %v4874_v32 = vpack.c.bf16 %v4830_v25, %v4829_v47  ;;  %v23040_v25 = vld [vmem:[#allocation10_spill] sm:$0xff] }
 0x280   :  { %v1883_v23 = vmul.f32 %v19379_v8, %v23040_v25  ;;  %v23043_v25 = vld [vmem:[#allocation9_spill] sm:$0xff] }
 0x281   :  { %15281 = vmatmul.mubr.msk.bf16.gmra.mrb[20].mxu0 %vm4657_vm0, %v4874_v32  ;;  %v19286_v22 = vpop.permute.xlu1 %1215  ;;  %v23041_v32 = vld [vmem:[#allocation15_spill] sm:$0xff] }
 0x282   :  { %v19288_v15 = vpop.permute.xlu0 %2665  ;;  %2690 = vperm.xlu1 %17334, %v19124_v10   ;;  %v19309_v10 = vld [vmem:[%s22923_s0 + $0x140] sm:$0xff]  ;;  %v429_v19 = vmul.f32 %v19363_v37, %v23041_v32  ;;  %v1884_v32 = vmul.f32 %v19379_v8, %v23043_v25  ;;  %v1943_v4 = vadd.f32 %v1883_v23, %v1458_v26  ;;  %v23046_v25 = vld [vmem:[#allocation13_spill] sm:$0xff] }
 0x283   :  { %775 = vperm.xlu0 %17333, %v19262_v33  }
 0x284   :  { %v974_v14 = vadd.f32 %v914_v35, %v429_v19  ;;  %v2853_v35 = vmul.f32 %v19408_v30, %v19267_v39  ;;  %v2854_v39 = vmul.f32 %v19408_v30, %v19279_v28  ;;  %v19472_v28 = vld [vmem:[%s22923_s0 + $0x148] sm:$0xff] }
 0x285   :  { %v3136_v31 = vpop.permute.xlu1 %3135 }
 0x286   :  { %v19297_v63 = vpop.permute.xlu0 %1220  ;;  %295 = vperm.xlu1 %17334, %v19295_v29  }
 0x287   :  { %2695 = vperm.xlu0 %17333, %v19143_v16   ;;  %v19320_v16 = vld [vmem:[%s22923_s0 + $0x12a] sm:$0xff] }
 0x289   :  { %v19311_v51 = vpop.permute.xlu1 %1225 }
 0x28a   :  { %v19313_v17 = vpop.permute.xlu0 %3140  ;;  %780 = vperm.xlu1 %17334, %v19304_v44  }
 0x28b   :  { %300 = vperm.xlu0 %17333, %v19309_v10   ;;  %v3338_v23 = vmul.f32 %v19425_v34, %v19313_v17 }
 0x28d   :  { %v19327_v52 = vpop.permute.xlu1 %3145 }
 0x28e   :  { %v19329_v43 = vpop.permute.xlu0 %1230  ;;  %2700 = vperm.xlu1 %17334, %v19320_v16  }
 0x28f   :  { %23037 = vst [vmem:[#allocation23_spill] sm:$0xff] %v19329_v43  ;;  %785 = vperm.xlu0 %17333, %v19325_v55  }
 0x291   :  { %v19338_v57 = vpop.permute.xlu1 %1700 }
 0x292   :  { %v19340_v24 = vpop.permute.xlu0 %3150  ;;  %1255 = vperm.xlu1 %17334, %v19320_v16  }
 0x293   :  { %2705 = vperm.xlu0 %17333, %v19336_v50  }
 0x295   :  { %v3621_v12 = vpop.permute.xlu1 %3620 }
 0x296   :  { %v19351_v45 = vpop.permute.xlu0 %1705  ;;  %3175 = vperm.xlu1 %17334, %v19196_v9   ;;  %v1397_v9 = vmul.f32 %v19370_v2, %v19060_v41 }
 0x297   :  { %1260 = vperm.xlu0 %17333, %v19336_v50  }
 0x298   :  { %v1457_v41 = vadd.f32 %v1397_v9, %v972_v21  ;;  %v1399_v9 = vmul.f32 %v19370_v2, %v23042_v40 }
 0x299   :  { %v19374_v7 = vpop.permute.xlu1 %1710 }
 0x29a   :  { %v3626_v46 = vpop.permute.xlu0 %3625  ;;  %1265 = vperm.xlu1 %17334, %v19358_v6   ;;  %v1942_v61 = vadd.f32 %v1882_v36, %v1457_v41  ;;  %v3337_v36 = vmul.f32 %v19425_v34, %v3136_v31  ;;  %v2368_v41 = vmul.f32 %v19390_v27, %v19186_v53  ;;  %v23044_v31 = vld [vmem:[#allocation11_spill] sm:$0xff] }
 0x29b   :  { %3180 = vperm.xlu0 %17333, %v19214_v54   ;;  %v915_v53 = vmul.f32 %v19347_v20, %v23044_v31 }
 0x29c   :  { %v2427_v21 = vadd.f32 %v2367_v5, %v1942_v61  ;;  %v19437_v5 = vld [vmem:[%s22924_s1 + $0x7] ss:$0 sm:$0xff]  ;;  %v2428_v43 = vadd.f32 %v2368_v41, %v1943_v4 }
 0x29d   :  { %v3631_v54 = vpop.permute.xlu1 %3630  ;;  %v3822_v61 = vmul.f32 %v19437_v5, %v3621_v12  ;;  %v3823_v4 = vmul.f32 %v19437_v5, %v3626_v46 }
 0x29e   :  { %v19412_v47 = vpop.permute.xlu0 %1715  ;;  %3185 = vperm.xlu1 %17334, %v19295_v29  }
 0x29f   :  { %23039 = vst [vmem:[#allocation14_spill] sm:$0xff] %v19412_v47  ;;  %1270 = vperm.xlu0 %17333, %v19397_v62   ;;  %v2912_v47 = vadd.f32 %v2852_v18, %v2427_v21  ;;  %v1459_v18 = vadd.f32 %v1399_v9, %v974_v14  ;;  %v23045_v21 = vld [vmem:[#allocation18_spill] sm:$0xff]  ;;  %v23047_v14 = vld [vmem:[#allocation16_spill] sm:$0xff] }
 0x2a0   :  { %v430_v12 = vmul.f32 %v19363_v37, %v23045_v21  ;;  %v1885_v17 = vmul.f32 %v19379_v8, %v23047_v14 }
 0x2a1   :  { %v19430_v59 = vpop.permute.xlu1 %2185  ;;  %v3397_v19 = vadd.f32 %v3337_v36, %v2912_v47  ;;  %v1944_v31 = vadd.f32 %v1884_v32, %v1459_v18  ;;  %v2913_v32 = vadd.f32 %v2853_v35, %v2428_v43  ;;  %v3339_v18 = vmul.f32 %v19425_v34, %v19327_v52  ;;  %v19484_v35 = vld [vmem:[%s22925_s2] ss:$0 sm:$0xff] }
 0x2a2   :  { %v3636_v40 = vpop.permute.xlu0 %3635  ;;  %1740 = vperm.xlu1 %17334, %v19295_v29   ;;  %v1400_v29 = vmul.f32 %v19370_v2, %v23046_v25  ;;  %v975_v41 = vadd.f32 %v915_v53, %v430_v12  ;;  %v2370_v53 = vmul.f32 %v19390_v27, %v19220_v58  ;;  %v2855_v58 = vmul.f32 %v19408_v30, %v19288_v15  ;;  %v19502_v15 = vld [vmem:[%s22925_s2 + $0x1] ss:$0 sm:$0xff] }
 0x2a3   :  { %3190 = vperm.xlu0 %17333, %v19309_v10   ;;  %v3882_v9 = vadd.f32 %v3822_v61, %v3397_v19  ;;  %v2429_v61 = vadd.f32 %v2369_v38, %v1944_v31  ;;  %v3398_v21 = vadd.f32 %v3338_v23, %v2913_v32 }
 0x2a5   :  { %v4106_v26 = vpop.permute.xlu1 %4105  ;;  %v2914_v46 = vadd.f32 %v2854_v39, %v2429_v61  ;;  %v3883_v25 = vadd.f32 %v3823_v4, %v3398_v21  ;;  %v3340_v39 = vmul.f32 %v19425_v34, %v19340_v24  ;;  %v3825_v4 = vmul.f32 %v19437_v5, %v3636_v40  ;;  %v19515_v61 = vld [vmem:[%s22925_s2 + $0x2] ss:$0 sm:$0xff] }
 0x2a6   :  { %v4307_v47 = vmul.f32 %v19459_v42, %v4106_v26  ;;  %v19462_v36 = vpop.permute.xlu0 %2190  ;;  %3660 = vperm.xlu1 %17334, %v19248_v11   ;;  %v1460_v11 = vadd.f32 %v1400_v29, %v975_v41  ;;  %v19495_v26 = vld [vmem:[%s22923_s0 + $0x150] sm:$0xff] }
 0x2a7   :  { %1745 = vperm.xlu0 %17333, %v19309_v10   ;;  %v3824_v10 = vmul.f32 %v19437_v5, %v3631_v54  ;;  %v3399_v54 = vadd.f32 %v3339_v18, %v2914_v46 }
 0x2a8   :  { %v4367_v19 = vadd.f32 %v4307_v47, %v3882_v9  ;;  %v1945_v52 = vadd.f32 %v1885_v17, %v1460_v11 }
 0x2a9   :  { %v19478_v43 = vpop.permute.xlu1 %2195  ;;  %v3884_v41 = vadd.f32 %v3824_v10, %v3399_v54 }
 0x2aa   :  { %v4434_v38 = vadd.f32 %v19484_v35, %v4367_v19  ;;  %v4111_v12 = vpop.permute.xlu0 %4110  ;;  %1750 = vperm.xlu1 %17334, %v19472_v28   ;;  %v2430_v31 = vadd.f32 %v2370_v53, %v1945_v52 }
 0x2ab   :  { %v4308_v29 = vmul.f32 %v19459_v42, %v4111_v12  ;;  %3665 = vperm.xlu0 %17333, %v19262_v33  }
 0x2ac   :  { %v4494_v23 = vmax.f32 %v4434_v38, 0.0  ;;  %v2915_v32 = vadd.f32 %v2855_v58, %v2430_v31  ;;  %v19539_v31 = vld [vmem:[%s22923_s0 + $0x149] sm:$0xff] }
 0x2ad   :  { %v4368_v9 = vadd.f32 %v4308_v29, %v3883_v25  ;;  %v4116_v47 = vpop.permute.xlu1 %4115 }
 0x2ae   :  { %v4558_v33 = vmul.f32 %v19502_v15, %v4494_v23  ;;  %v4309_v14 = vmul.f32 %v19459_v42, %v4116_v47  ;;  %v19506_v17 = vpop.permute.xlu0 %2200  ;;  %3670 = vperm.xlu1 %17334, %v19304_v44   ;;  %v3400_v11 = vadd.f32 %v3340_v39, %v2915_v32 }
 0x2af   :  { %v4435_v24 = vadd.f32 %v19484_v35, %v4368_v9  ;;  %1755 = vperm.xlu0 %17333, %v19495_v26  }
 0x2b0   :  { %v4622_v18 = vadd.f32 %v19515_v61, %v4558_v33  ;;  %v4369_v19 = vadd.f32 %v4309_v14, %v3884_v41  ;;  %v3885_v10 = vadd.f32 %v3825_v4, %v3400_v11 }
 0x2b1   :  { %v4495_v53 = vmax.f32 %v4435_v24, 0.0  ;;  %v19518_v21 = vpop.permute.xlu1 %265 }
 0x2b2   :  { %4683 = vst.msk [vmem:[#allocation2 + $0xc8] sm:$0xff] %vm4657_vm0, %v4622_v18  ;;  %v4436_v40 = vadd.f32 %v19484_v35, %v4369_v19  ;;  %v4121_v46 = vpop.permute.xlu0 %4120  ;;  %2225 = vperm.xlu1 %17334, %v19304_v44  }
 0x2b3   :  { %v4559_v38 = vmul.f32 %v19502_v15, %v4495_v53  ;;  %v4310_v12 = vmul.f32 %v19459_v42, %v4121_v46  ;;  %3675 = vperm.xlu0 %17333, %v19325_v55  }
 0x2b4   :  { %v4496_v52 = vmax.f32 %v4436_v40, 0.0 }
 0x2b5   :  { %v4623_v58 = vadd.f32 %v19515_v61, %v4559_v38  ;;  %v4370_v25 = vadd.f32 %v4310_v12, %v3885_v10  ;;  %v19527_v29 = vpop.permute.xlu1 %750 }
 0x2b6   :  { %v4560_v54 = vmul.f32 %v19502_v15, %v4496_v52  ;;  %v19530_v23 = vpop.permute.xlu0 %270  ;;  %4145 = vperm.xlu1 %17334, %v19320_v16   ;;  %v80_v52 = vld [vmem:[%s22923_s0 + $0x158] sm:$0xff] }
 0x2b7   :  { %4684 = vst.msk [vmem:[#allocation2 + $0xd0] sm:$0xff] %vm4657_vm0, %v4623_v58  ;;  %v4437_v44 = vadd.f32 %v19484_v35, %v4370_v25  ;;  %2230 = vperm.xlu0 %17333, %v19325_v55   ;;  %v19553_v55 = vld [vmem:[%s22923_s0 + $0x151] sm:$0xff] }
 0x2b8   :  { %v4624_v39 = vadd.f32 %v19515_v61, %v4560_v54  ;;  %v19592_v54 = vld [vmem:[%s22923_s0 + $0x159] sm:$0xff] }
 0x2b9   :  { %v4497_v9 = vmax.f32 %v4437_v44, 0.0  ;;  %v19542_v47 = vpop.permute.xlu1 %2670  ;;  %v4831_v4 = vld [vmem:[#allocation2 + $0xc1] sm:$0xff] }
 0x2ba   :  { %4685 = vst.msk [vmem:[#allocation2 + $0xd8] sm:$0xff] %vm4657_vm0, %v4624_v39  ;;  %v19545_v41 = vpop.permute.xlu0 %755  ;;  %2235 = vperm.xlu1 %17334, %v19539_v31  }
 0x2bb   :  { %v4561_v16 = vmul.f32 %v19502_v15, %v4497_v9  ;;  %4150 = vperm.xlu0 %17333, %v19336_v50   ;;  %v19613_v9 = vld [vmem:[%s22923_s0 + $0x161] sm:$0xff] }
 0x2bd   :  { %v4625_v33 = vadd.f32 %v19515_v61, %v4561_v16  ;;  %v19556_v14 = vpop.permute.xlu1 %275 }
 0x2be   :  { %23048 = vst [vmem:[#allocation26_spill] sm:$0xff] %v19556_v14  ;;  %v19558_v32 = vpop.permute.xlu0 %2675  ;;  %4155 = vperm.xlu1 %17334, %v19358_v6   ;;  %v4832_v24 = vld [vmem:[#allocation2 + $0xc9] sm:$0xff]  ;;  %v1886_v14 = vmul.f32 %v19379_v8, %v19338_v57  ;;  %v432_v57 = vmul.f32 %v19363_v37, %v19239_v60  ;;  %v433_v60 = vmul.f32 %v19363_v37, %v19265_v56 }
 0x2bf   :  { %4686 = vst.msk [vmem:[#allocation2 + $0xe0] sm:$0xff] %vm4657_vm0, %v4625_v33  ;;  %2240 = vperm.xlu0 %17333, %v19553_v55   ;;  %v4875_v50 = vpack.c.bf16 %v4832_v24, %v4831_v4  ;;  %v19624_v4 = vld [vmem:[%s22923_s0 + $0x152] sm:$0xff] }
 0x2c1   :  { %15284 = vmatprep.mubr.msk.bf16.mxu0 %vm4657_vm0, %v4875_v50  ;;  %v19564_v18 = vpop.permute.xlu1 %760  ;;  %v4833_v40 = vld [vmem:[#allocation2 + $0xd1] sm:$0xff] }
 0x2c2   :  { %23049 = vst [vmem:[#allocation25_spill] sm:$0xff] %v19564_v18  ;;  %v19566_v19 = vpop.permute.xlu0 %280  ;;  %305 = vperm.xlu1 %17334, %v19472_v28  }
 0x2c3   :  { %23050 = vst [vmem:[#allocation20_spill] sm:$0xff] %v19566_v19  ;;  %4160 = vperm.xlu0 %17333, %v19397_v62   ;;  %v431_v19 = vmul.f32 %v19363_v37, %v19227_v48  ;;  %v2371_v48 = vmul.f32 %v19390_v27, %v19430_v59 }
 0x2c5   :  { %v19570_v11 = vpop.permute.xlu1 %2680 }
 0x2c6   :  { %v19572_v53 = vpop.permute.xlu0 %765  ;;  %790 = vperm.xlu1 %17334, %v19539_v31   ;;  %v4834_v46 = vld [vmem:[#allocation2 + $0xd9] sm:$0xff] }
 0x2c7   :  { %23051 = vst [vmem:[#allocation22_spill] sm:$0xff] %v19572_v53  ;;  %310 = vperm.xlu0 %17333, %v19495_v26   ;;  %v4876_v10 = vpack.c.bf16 %v4834_v46, %v4833_v40  ;;  %v916_v46 = vmul.f32 %v19347_v20, %v19236_v13  ;;  %v1401_v53 = vmul.f32 %v19370_v2, %v19286_v22  ;;  %v19660_v22 = vld [vmem:[%s22923_s0 + $0x162] sm:$0xff] }
 0x2c9   :  { %15285 = vmatmul.mubr.msk.bf16.gmra.mrb[24].mxu0 %vm4657_vm0, %v4876_v10  ;;  %v19577_v38 = vpop.permute.xlu1 %1235  ;;  %v976_v13 = vadd.f32 %v916_v46, %v431_v19  ;;  %v1402_v19 = vmul.f32 %v19370_v2, %v19297_v63  ;;  %v1403_v63 = vmul.f32 %v19370_v2, %v19311_v51  ;;  %v919_v51 = vmul.f32 %v19347_v20, %v19281_v49 }
 0x2ca   :  { %v19579_v12 = vpop.permute.xlu0 %2685  ;;  %2710 = vperm.xlu1 %17334, %v19358_v6   ;;  %v19597_v6 = vld [vmem:[%s22923_s0 + $0x160] sm:$0xff] }
 0x2cb   :  { %795 = vperm.xlu0 %17333, %v19553_v55   ;;  %v1461_v18 = vadd.f32 %v1401_v53, %v976_v13  ;;  %v2856_v53 = vmul.f32 %v19408_v30, %v19542_v47  ;;  %v2372_v47 = vmul.f32 %v19390_v27, %v19462_v36 }
 0x2cd   :  { %v3156_v58 = vpop.permute.xlu1 %3155 }
 0x2ce   :  { %v19586_v25 = vpop.permute.xlu0 %1240  ;;  %315 = vperm.xlu1 %17334, %v80_v52  }
 0x2cf   :  { %23052 = vst [vmem:[#allocation8_spill] sm:$0xff] %v19586_v25  ;;  %2715 = vperm.xlu0 %17333, %v19397_v62   ;;  %v19608_v62 = vld [vmem:[%s22923_s0 + $0x14a] sm:$0xff] }
 0x2d1   :  { %v19599_v44 = vpop.permute.xlu1 %1245 }
 0x2d2   :  { %23053 = vst [vmem:[#allocation24_spill] sm:$0xff] %v19599_v44  ;;  %v19601_v39 = vpop.permute.xlu0 %3160  ;;  %800 = vperm.xlu1 %17334, %v19592_v54  }
 0x2d3   :  { %320 = vperm.xlu0 %17333, %v19597_v6   ;;  %v3342_v49 = vmul.f32 %v19425_v34, %v19601_v39 }
 0x2d5   :  { %v19615_v16 = vpop.permute.xlu1 %3165 }
 0x2d6   :  { %v19617_v33 = vpop.permute.xlu0 %1250  ;;  %2720 = vperm.xlu1 %17334, %v19608_v62   ;;  %v3343_v39 = vmul.f32 %v19425_v34, %v19615_v16  ;;  %v2859_v16 = vmul.f32 %v19408_v30, %v19579_v12 }
 0x2d7   :  { %23054 = vst [vmem:[#allocation19_spill] sm:$0xff] %v19617_v33  ;;  %805 = vperm.xlu0 %17333, %v19613_v9   ;;  %v19641_v33 = vld [vmem:[%s22923_s0 + $0x15a] sm:$0xff] }
 0x2d9   :  { %v19626_v24 = vpop.permute.xlu1 %1720 }
 0x2da   :  { %v19628_v50 = vpop.permute.xlu0 %3170  ;;  %1275 = vperm.xlu1 %17334, %v19608_v62  }
 0x2db   :  { %2725 = vperm.xlu0 %17333, %v19624_v4  }
 0x2dd   :  { %v3641_v40 = vpop.permute.xlu1 %3640 }
 0x2de   :  { %v19634_v10 = vpop.permute.xlu0 %1725  ;;  %3195 = vperm.xlu1 %17334, %v19472_v28   ;;  %v3826_v25 = vmul.f32 %v19437_v5, %v3641_v40  ;;  %v23058_v40 = vld [vmem:[#allocation23_spill] sm:$0xff] }
 0x2df   :  { %23055 = vst [vmem:[#allocation21_spill] sm:$0xff] %v19634_v10  ;;  %1280 = vperm.xlu0 %17333, %v19624_v4   ;;  %v917_v10 = vmul.f32 %v19347_v20, %v19254_v0  ;;  %v918_v0 = vmul.f32 %v19347_v20, %v19273_v1 }
 0x2e1   :  { %v19647_v44 = vpop.permute.xlu1 %1730  ;;  %v977_v13 = vadd.f32 %v917_v10, %v432_v57  ;;  %v978_v10 = vadd.f32 %v918_v0, %v433_v60 }
 0x2e2   :  { %23056 = vst [vmem:[#allocation7_spill] sm:$0xff] %v19647_v44  ;;  %v3646_v28 = vpop.permute.xlu0 %3645  ;;  %1285 = vperm.xlu1 %17334, %v19641_v33   ;;  %v1887_v44 = vmul.f32 %v19379_v8, %v19351_v45  ;;  %v1888_v45 = vmul.f32 %v19379_v8, %v19374_v7  ;;  %v434_v7 = vmul.f32 %v19363_v37, %v19275_v3 }
 0x2e3   :  { %3200 = vperm.xlu0 %17333, %v19495_v26   ;;  %v1946_v26 = vadd.f32 %v1886_v14, %v1461_v18  ;;  %v3341_v14 = vmul.f32 %v19425_v34, %v3156_v58  ;;  %v1462_v18 = vadd.f32 %v1402_v19, %v977_v13  ;;  %v2857_v58 = vmul.f32 %v19408_v30, %v19558_v32 }
 0x2e4   :  { %v1463_v36 = vadd.f32 %v1403_v63, %v978_v10  ;;  %v2373_v19 = vmul.f32 %v19390_v27, %v19478_v43  ;;  %v2858_v32 = vmul.f32 %v19408_v30, %v19570_v11  ;;  %v979_v3 = vadd.f32 %v919_v51, %v434_v7  ;;  %v23059_v63 = vld [vmem:[#allocation14_spill] sm:$0xff]  ;;  %v19713_v11 = vld [vmem:[%s22923_s0 + $0x168] sm:$0xff] }
 0x2e5   :  { %v3651_v46 = vpop.permute.xlu1 %3650  ;;  %v2431_v1 = vadd.f32 %v2371_v48, %v1946_v26  ;;  %v1947_v48 = vadd.f32 %v1887_v44, %v1462_v18  ;;  %v3827_v18 = vmul.f32 %v19437_v5, %v3646_v28  ;;  %v2374_v10 = vmul.f32 %v19390_v27, %v19506_v17 }
 0x2e6   :  { %v19670_v59 = vpop.permute.xlu0 %1735  ;;  %3205 = vperm.xlu1 %17334, %v80_v52  }
 0x2e7   :  { %23057 = vst [vmem:[#allocation17_spill] sm:$0xff] %v19670_v59  ;;  %1290 = vperm.xlu0 %17333, %v19660_v22   ;;  %v2916_v57 = vadd.f32 %v2856_v53, %v2431_v1  ;;  %v2432_v26 = vadd.f32 %v2372_v47, %v1947_v48  ;;  %v1948_v53 = vadd.f32 %v1888_v45, %v1463_v36 }
 0x2e8   :  { %v1889_v1 = vmul.f32 %v19379_v8, %v23059_v63 }
 0x2e9   :  { %v19682_v59 = vpop.permute.xlu1 %2205  ;;  %v3401_v0 = vadd.f32 %v3341_v14, %v2916_v57  ;;  %v2917_v14 = vadd.f32 %v2857_v58, %v2432_v26 }
 0x2ea   :  { %v3656_v56 = vpop.permute.xlu0 %3655  ;;  %1760 = vperm.xlu1 %17334, %v80_v52   ;;  %v1404_v52 = vmul.f32 %v19370_v2, %v23058_v40  ;;  %v3344_v40 = vmul.f32 %v19425_v34, %v19628_v50 }
 0x2eb   :  { %3210 = vperm.xlu0 %17333, %v19597_v6   ;;  %v3886_v13 = vadd.f32 %v3826_v25, %v3401_v0  ;;  %v2433_v25 = vadd.f32 %v2373_v19, %v1948_v53  ;;  %v3402_v45 = vadd.f32 %v3342_v49, %v2917_v14 }
 0x2ed   :  { %v4126_v44 = vpop.permute.xlu1 %4125  ;;  %v2918_v28 = vadd.f32 %v2858_v32, %v2433_v25  ;;  %v3887_v36 = vadd.f32 %v3827_v18, %v3402_v45  ;;  %v3829_v32 = vmul.f32 %v19437_v5, %v3656_v56 }
 0x2ee   :  { %v4311_v60 = vmul.f32 %v19459_v42, %v4126_v44  ;;  %v19703_v43 = vpop.permute.xlu0 %2210  ;;  %3680 = vperm.xlu1 %17334, %v19539_v31   ;;  %v1464_v31 = vadd.f32 %v1404_v52, %v979_v3 }
 0x2ef   :  { %1765 = vperm.xlu0 %17333, %v19597_v6   ;;  %v3828_v6 = vmul.f32 %v19437_v5, %v3651_v46  ;;  %v3403_v17 = vadd.f32 %v3343_v39, %v2918_v28  ;;  %v19731_v46 = vld [vmem:[%s22923_s0 + $0x170] sm:$0xff] }
 0x2f0   :  { %v4371_v47 = vadd.f32 %v4311_v60, %v3886_v13  ;;  %v1949_v58 = vadd.f32 %v1889_v1, %v1464_v31 }
 0x2f1   :  { %v19719_v57 = vpop.permute.xlu1 %2215  ;;  %v3888_v49 = vadd.f32 %v3828_v6, %v3403_v17 }
 0x2f2   :  { %v4438_v51 = vadd.f32 %v19484_v35, %v4371_v47  ;;  %v4131_v48 = vpop.permute.xlu0 %4130  ;;  %1770 = vperm.xlu1 %17334, %v19713_v11   ;;  %v2434_v7 = vadd.f32 %v2374_v10, %v1949_v58 }
 0x2f3   :  { %v4312_v19 = vmul.f32 %v19459_v42, %v4131_v48  ;;  %3685 = vperm.xlu0 %17333, %v19553_v55  }
 0x2f4   :  { %v4498_v0 = vmax.f32 %v4438_v51, 0.0  ;;  %v2919_v55 = vadd.f32 %v2859_v16, %v2434_v7  ;;  %v19765_v51 = vld [vmem:[%s22923_s0 + $0x169] sm:$0xff] }
 0x2f5   :  { %v4372_v52 = vadd.f32 %v4312_v19, %v3887_v36  ;;  %v4136_v26 = vpop.permute.xlu1 %4135 }
 0x2f6   :  { %v4562_v12 = vmul.f32 %v19502_v15, %v4498_v0  ;;  %v4313_v44 = vmul.f32 %v19459_v42, %v4136_v26  ;;  %v19737_v53 = vpop.permute.xlu0 %2220  ;;  %3690 = vperm.xlu1 %17334, %v19592_v54   ;;  %v3404_v3 = vadd.f32 %v3344_v40, %v2919_v55 }
 0x2f7   :  { %v4439_v13 = vadd.f32 %v19484_v35, %v4372_v52  ;;  %1775 = vperm.xlu0 %17333, %v19731_v46  }
 0x2f8   :  { %v4626_v50 = vadd.f32 %v19515_v61, %v4562_v12  ;;  %v4373_v60 = vadd.f32 %v4313_v44, %v3888_v49  ;;  %v3889_v25 = vadd.f32 %v3829_v32, %v3404_v3 }
 0x2f9   :  { %v4499_v63 = vmax.f32 %v4439_v13, 0.0  ;;  %v19744_v1 = vpop.permute.xlu1 %285 }
 0x2fa   :  { %4687 = vst.msk [vmem:[#allocation2 + $0xe8] sm:$0xff] %vm4657_vm0, %v4626_v50  ;;  %v4440_v14 = vadd.f32 %v19484_v35, %v4373_v60  ;;  %v4141_v18 = vpop.permute.xlu0 %4140  ;;  %2245 = vperm.xlu1 %17334, %v19592_v54   ;;  %v84_v60 = vld [vmem:[%s22923_s0 + $0x178] sm:$0xff] }
 0x2fb   :  { %v4563_v56 = vmul.f32 %v19502_v15, %v4499_v63  ;;  %v4314_v39 = vmul.f32 %v19459_v42, %v4141_v18  ;;  %3695 = vperm.xlu0 %17333, %v19613_v9  }
 0x2fc   :  { %v4500_v47 = vmax.f32 %v4440_v14, 0.0  ;;  %v19818_v14 = vld [vmem:[%s22923_s0 + $0x179] sm:$0xff] }
 0x2fd   :  { %v4627_v31 = vadd.f32 %v19515_v61, %v4563_v56  ;;  %v4374_v10 = vadd.f32 %v4314_v39, %v3889_v25  ;;  %v19753_v45 = vpop.permute.xlu1 %770  ;;  %v19839_v56 = vld [vmem:[%s22923_s0 + $0x181] sm:$0xff] }
 0x2fe   :  { %v4564_v28 = vmul.f32 %v19502_v15, %v4500_v47  ;;  %v19756_v6 = vpop.permute.xlu0 %290  ;;  %4165 = vperm.xlu1 %17334, %v19608_v62  }
 0x2ff   :  { %4688 = vst.msk [vmem:[#allocation2 + $0xf0] sm:$0xff] %vm4657_vm0, %v4627_v31  ;;  %v4441_v54 = vadd.f32 %v19484_v35, %v4374_v10  ;;  %2250 = vperm.xlu0 %17333, %v19613_v9   ;;  %v19779_v9 = vld [vmem:[%s22923_s0 + $0x171] sm:$0xff] }
 0x300   :  { %v4628_v48 = vadd.f32 %v19515_v61, %v4564_v28  ;;  %v19850_v31 = vld [vmem:[%s22923_s0 + $0x172] sm:$0xff] }
 0x301   :  { %v4501_v58 = vmax.f32 %v4441_v54, 0.0  ;;  %v19768_v16 = vpop.permute.xlu1 %2690  ;;  %v4835_v7 = vld [vmem:[#allocation2 + $0xe1] sm:$0xff] }
 0x302   :  { %4689 = vst.msk [vmem:[#allocation2 + $0xf8] sm:$0xff] %vm4657_vm0, %v4628_v48  ;;  %v19771_v36 = vpop.permute.xlu0 %775  ;;  %2255 = vperm.xlu1 %17334, %v19765_v51   ;;  %v920_v48 = vmul.f32 %v19347_v20, %v19527_v29 }
 0x303   :  { %v4565_v62 = vmul.f32 %v19502_v15, %v4501_v58  ;;  %4170 = vperm.xlu0 %17333, %v19624_v4  }
 0x305   :  { %v4629_v19 = vadd.f32 %v19515_v61, %v4565_v62  ;;  %v19782_v17 = vpop.permute.xlu1 %295  ;;  %v19867_v62 = vld [vmem:[%s22923_s0 + $0x17a] sm:$0xff] }
 0x306   :  { %23060 = vst [vmem:[#allocation10_spill] sm:$0xff] %v19782_v17  ;;  %v19784_v0 = vpop.permute.xlu0 %2695  ;;  %4175 = vperm.xlu1 %17334, %v19641_v33   ;;  %v4836_v40 = vld [vmem:[#allocation2 + $0xe9] sm:$0xff] }
 0x307   :  { %4690 = vst.msk [vmem:[#allocation2 + $0x100] sm:$0xff] %vm4657_vm0, %v4629_v19  ;;  %2260 = vperm.xlu0 %17333, %v19779_v9   ;;  %v4877_v4 = vpack.c.bf16 %v4836_v40, %v4835_v7  ;;  %v435_v19 = vmul.f32 %v19363_v37, %v19518_v21  ;;  %v1405_v7 = vmul.f32 %v19370_v2, %v19577_v38  ;;  %v19886_v38 = vld [vmem:[%s22923_s0 + $0x182] sm:$0xff] }
 0x308   :  { %v2375_v21 = vmul.f32 %v19390_v27, %v19682_v59 }
 0x309   :  { %15288 = vmatprep.mubr.msk.bf16.mxu0 %vm4657_vm0, %v4877_v4  ;;  %v19790_v52 = vpop.permute.xlu1 %780  ;;  %v4837_v44 = vld [vmem:[#allocation2 + $0xf1] sm:$0xff]  ;;  %v980_v29 = vadd.f32 %v920_v48, %v435_v19  ;;  %v1890_v4 = vmul.f32 %v19379_v8, %v19626_v24  ;;  %v436_v24 = vmul.f32 %v19363_v37, %v19530_v23  ;;  %v23072_v23 = vld [vmem:[#allocation26_spill] sm:$0xff] }
 0x30a   :  { %23061 = vst [vmem:[#allocation15_spill] sm:$0xff] %v19790_v52  ;;  %v19792_v26 = vpop.permute.xlu0 %300  ;;  %325 = vperm.xlu1 %17334, %v19713_v11   ;;  %v23075_v52 = vld [vmem:[#allocation22_spill] sm:$0xff] }
 0x30b   :  { %23062 = vst [vmem:[#allocation12_spill] sm:$0xff] %v19792_v26  ;;  %4180 = vperm.xlu0 %17333, %v19660_v22   ;;  %v23071_v26 = vld [vmem:[#allocation21_spill] sm:$0xff] }
 0x30d   :  { %v19796_v49 = vpop.permute.xlu1 %2700 }
 0x30e   :  { %v19798_v12 = vpop.permute.xlu0 %785  ;;  %810 = vperm.xlu1 %17334, %v19765_v51   ;;  %v4838_v55 = vld [vmem:[#allocation2 + $0xf9] sm:$0xff] }
 0x30f   :  { %23063 = vst [vmem:[#allocation9_spill] sm:$0xff] %v19798_v12  ;;  %330 = vperm.xlu0 %17333, %v19731_v46   ;;  %v4878_v32 = vpack.c.bf16 %v4838_v55, %v4837_v44  ;;  %v921_v44 = vmul.f32 %v19347_v20, %v19545_v41  ;;  %v1465_v55 = vadd.f32 %v1405_v7, %v980_v29 }
 0x310   :  { %v2860_v7 = vmul.f32 %v19408_v30, %v19768_v16  ;;  %v1891_v12 = vmul.f32 %v19379_v8, %v23071_v26  ;;  %v2376_v16 = vmul.f32 %v19390_v27, %v19703_v43 }
 0x311   :  { %15289 = vmatmul.mubr.msk.bf16.gmra.mrb[28].mxu0 %vm4657_vm0, %v4878_v32  ;;  %v19803_v13 = vpop.permute.xlu1 %1255  ;;  %v23068_v32 = vld [vmem:[#allocation8_spill] sm:$0xff]  ;;  %v981_v29 = vadd.f32 %v921_v44, %v436_v24  ;;  %v23074_v24 = vld [vmem:[#allocation7_spill] sm:$0xff] }
 0x312   :  { %v19805_v50 = vpop.permute.xlu0 %2705  ;;  %2730 = vperm.xlu1 %17334, %v19641_v33   ;;  %v19823_v33 = vld [vmem:[%s22923_s0 + $0x180] sm:$0xff]  ;;  %v1406_v48 = vmul.f32 %v19370_v2, %v23068_v32  ;;  %v437_v32 = vmul.f32 %v19363_v37, %v23072_v23  ;;  %v1892_v26 = vmul.f32 %v19379_v8, %v23074_v24 }
 0x313   :  { %815 = vperm.xlu0 %17333, %v19779_v9  }
 0x315   :  { %v3176_v3 = vpop.permute.xlu1 %3175 }
 0x316   :  { %v19812_v63 = vpop.permute.xlu0 %1260  ;;  %335 = vperm.xlu1 %17334, %v84_v60  }
 0x317   :  { %2735 = vperm.xlu0 %17333, %v19660_v22   ;;  %v19834_v22 = vld [vmem:[%s22923_s0 + $0x16a] sm:$0xff] }
 0x319   :  { %v19825_v18 = vpop.permute.xlu1 %1265 }
 0x31a   :  { %23064 = vst [vmem:[#allocation11_spill] sm:$0xff] %v19825_v18  ;;  %v19827_v25 = vpop.permute.xlu0 %3180  ;;  %820 = vperm.xlu1 %17334, %v19818_v14  }
 0x31b   :  { %340 = vperm.xlu0 %17333, %v19823_v33  }
 0x31d   :  { %v19841_v39 = vpop.permute.xlu1 %3185 }
 0x31e   :  { %v19843_v47 = vpop.permute.xlu0 %1270  ;;  %2740 = vperm.xlu1 %17334, %v19834_v22  }
 0x31f   :  { %23065 = vst [vmem:[#allocation18_spill] sm:$0xff] %v19843_v47  ;;  %825 = vperm.xlu0 %17333, %v19839_v56   ;;  %v23069_v47 = vld [vmem:[#allocation25_spill] sm:$0xff] }
 0x320   :  { %v922_v41 = vmul.f32 %v19347_v20, %v23069_v47 }
 0x321   :  { %v19852_v10 = vpop.permute.xlu1 %1740 }
 0x322   :  { %v19854_v28 = vpop.permute.xlu0 %3190  ;;  %1295 = vperm.xlu1 %17334, %v19834_v22   ;;  %v982_v44 = vadd.f32 %v922_v41, %v437_v32 }
 0x323   :  { %2745 = vperm.xlu0 %17333, %v19850_v31  }
 0x325   :  { %v3661_v54 = vpop.permute.xlu1 %3660 }
 0x326   :  { %v19860_v58 = vpop.permute.xlu0 %1745  ;;  %3215 = vperm.xlu1 %17334, %v19713_v11  }
 0x327   :  { %23066 = vst [vmem:[#allocation13_spill] sm:$0xff] %v19860_v58  ;;  %1300 = vperm.xlu0 %17333, %v19850_v31   ;;  %v3830_v58 = vmul.f32 %v19437_v5, %v3661_v54  ;;  %v23077_v54 = vld [vmem:[#allocation19_spill] sm:$0xff] }
 0x329   :  { %v19873_v40 = vpop.permute.xlu1 %1750 }
 0x32a   :  { %23067 = vst [vmem:[#allocation16_spill] sm:$0xff] %v19873_v40  ;;  %v3666_v11 = vpop.permute.xlu0 %3665  ;;  %1305 = vperm.xlu1 %17334, %v19867_v62   ;;  %v23073_v40 = vld [vmem:[#allocation24_spill] sm:$0xff] }
 0x32b   :  { %3220 = vperm.xlu0 %17333, %v19731_v46   ;;  %v1950_v46 = vadd.f32 %v1890_v4, %v1465_v55  ;;  %v1407_v18 = vmul.f32 %v19370_v2, %v23073_v40  ;;  %v3345_v4 = vmul.f32 %v19425_v34, %v3176_v3  ;;  %v1466_v55 = vadd.f32 %v1406_v48, %v981_v29 }
 0x32c   :  { %v923_v40 = vmul.f32 %v19347_v20, %v23075_v52  ;;  %v2861_v3 = vmul.f32 %v19408_v30, %v19784_v0  ;;  %v2377_v48 = vmul.f32 %v19390_v27, %v19719_v57  ;;  %v3346_v20 = vmul.f32 %v19425_v34, %v19827_v25 }
 0x32d   :  { %v3671_v19 = vpop.permute.xlu1 %3670  ;;  %v2435_v47 = vadd.f32 %v2375_v21, %v1950_v46  ;;  %v1951_v21 = vadd.f32 %v1891_v12, %v1466_v55  ;;  %v1467_v43 = vadd.f32 %v1407_v18, %v982_v44  ;;  %v23076_v46 = vld [vmem:[#allocation20_spill] sm:$0xff]  ;;  %v2862_v0 = vmul.f32 %v19408_v30, %v19796_v49 }
 0x32e   :  { %v19896_v59 = vpop.permute.xlu0 %1755  ;;  %3225 = vperm.xlu1 %17334, %v84_v60   ;;  %v19939_v49 = vld [vmem:[%s22923_s0 + $0x188] sm:$0xff] }
 0x32f   :  { %23070 = vst [vmem:[#allocation23_spill] sm:$0xff] %v19896_v59  ;;  %1310 = vperm.xlu0 %17333, %v19886_v38   ;;  %v2920_v17 = vadd.f32 %v2860_v7, %v2435_v47  ;;  %v438_v7 = vmul.f32 %v19363_v37, %v23076_v46  ;;  %v2436_v29 = vadd.f32 %v2376_v16, %v1951_v21 }
 0x330   :  { %v1952_v12 = vadd.f32 %v1892_v26, %v1467_v43  ;;  %v2378_v16 = vmul.f32 %v19390_v27, %v19737_v53 }
 0x331   :  { %v19908_v59 = vpop.permute.xlu1 %2225  ;;  %v3405_v41 = vadd.f32 %v3345_v4, %v2920_v17  ;;  %v983_v37 = vadd.f32 %v923_v40, %v438_v7  ;;  %v23078_v17 = vld [vmem:[#allocation17_spill] sm:$0xff]  ;;  %v2921_v47 = vadd.f32 %v2861_v3, %v2436_v29  ;;  %v3831_v4 = vmul.f32 %v19437_v5, %v3666_v11 }
 0x332   :  { %v3676_v23 = vpop.permute.xlu0 %3675  ;;  %1780 = vperm.xlu1 %17334, %v84_v60   ;;  %v1408_v60 = vmul.f32 %v19370_v2, %v23077_v54  ;;  %v1893_v2 = vmul.f32 %v19379_v8, %v23078_v17  ;;  %v2437_v25 = vadd.f32 %v2377_v48, %v1952_v12  ;;  %v3348_v48 = vmul.f32 %v19425_v34, %v19854_v28 }
 0x333   :  { %3230 = vperm.xlu0 %17333, %v19823_v33   ;;  %v3890_v18 = vadd.f32 %v3830_v58, %v3405_v41  ;;  %v3347_v58 = vmul.f32 %v19425_v34, %v19841_v39  ;;  %v3406_v8 = vadd.f32 %v3346_v20, %v2921_v47  ;;  %v2863_v39 = vmul.f32 %v19408_v30, %v19805_v50 }
 0x334   :  { %v2922_v11 = vadd.f32 %v2862_v0, %v2437_v25 }
 0x335   :  { %v4146_v52 = vpop.permute.xlu1 %4145  ;;  %v3891_v21 = vadd.f32 %v3831_v4, %v3406_v8 }
 0x336   :  { %v4315_v32 = vmul.f32 %v19459_v42, %v4146_v52  ;;  %v19929_v57 = vpop.permute.xlu0 %2230  ;;  %3700 = vperm.xlu1 %17334, %v19765_v51   ;;  %v1468_v51 = vadd.f32 %v1408_v60, %v983_v37  ;;  %v3407_v27 = vadd.f32 %v3347_v58, %v2922_v11  ;;  %v3833_v60 = vmul.f32 %v19437_v5, %v3676_v23 }
 0x337   :  { %1785 = vperm.xlu0 %17333, %v19823_v33   ;;  %v3832_v33 = vmul.f32 %v19437_v5, %v3671_v19  ;;  %v19957_v19 = vld [vmem:[%s22923_s0 + $0x190] sm:$0xff] }
 0x338   :  { %v4375_v55 = vadd.f32 %v4315_v32, %v3890_v18  ;;  %v1953_v40 = vadd.f32 %v1893_v2, %v1468_v51 }
 0x339   :  { %v19945_v44 = vpop.permute.xlu1 %2235  ;;  %v3892_v7 = vadd.f32 %v3832_v33, %v3407_v27 }
 0x33a   :  { %v4442_v24 = vadd.f32 %v19484_v35, %v4375_v55  ;;  %v4151_v26 = vpop.permute.xlu0 %4150  ;;  %1790 = vperm.xlu1 %17334, %v19939_v49   ;;  %v2438_v43 = vadd.f32 %v2378_v16, %v1953_v40 }
 0x33b   :  { %v4316_v3 = vmul.f32 %v19459_v42, %v4151_v26  ;;  %3705 = vperm.xlu0 %17333, %v19779_v9  }
 0x33c   :  { %v4502_v53 = vmax.f32 %v4442_v24, 0.0  ;;  %v2923_v9 = vadd.f32 %v2863_v39, %v2438_v43 }
 0x33d   :  { %v4376_v41 = vadd.f32 %v4316_v3, %v3891_v21  ;;  %v4156_v46 = vpop.permute.xlu1 %4155 }
 0x33e   :  { %v4566_v30 = vmul.f32 %v19502_v15, %v4502_v53  ;;  %v4317_v50 = vmul.f32 %v19459_v42, %v4156_v46  ;;  %v19963_v54 = vpop.permute.xlu0 %2240  ;;  %3710 = vperm.xlu1 %17334, %v19818_v14   ;;  %v3408_v20 = vadd.f32 %v3348_v48, %v2923_v9  ;;  %v20057_v46 = vld [vmem:[%s22923_s0 + $0x1a0] sm:$0xff] }
 0x33f   :  { %v4443_v29 = vadd.f32 %v19484_v35, %v4376_v41  ;;  %1795 = vperm.xlu0 %17333, %v19957_v19  }
 0x340   :  { %v4630_v34 = vadd.f32 %v19515_v61, %v4566_v30  ;;  %v4377_v28 = vadd.f32 %v4317_v50, %v3892_v7  ;;  %v3893_v32 = vadd.f32 %v3833_v60, %v3408_v20  ;;  %v20068_v50 = vld [vmem:[%s22923_s0 + $0x199] sm:$0xff] }
 0x341   :  { %v4503_v52 = vmax.f32 %v4443_v29, 0.0  ;;  %v19970_v12 = vpop.permute.xlu1 %305  ;;  %v20079_v29 = vld [vmem:[%s22923_s0 + $0x1a1] sm:$0xff] }
 0x342   :  { %4691 = vst.msk [vmem:[#allocation2 + $0x108] sm:$0xff] %vm4657_vm0, %v4630_v34  ;;  %v4444_v0 = vadd.f32 %v19484_v35, %v4377_v28  ;;  %v4161_v18 = vpop.permute.xlu0 %4160  ;;  %2265 = vperm.xlu1 %17334, %v19818_v14   ;;  %v20090_v20 = vld [vmem:[%s22923_s0 + $0x19a] sm:$0xff] }
 0x343   :  { %v4567_v5 = vmul.f32 %v19502_v15, %v4503_v52  ;;  %v4318_v23 = vmul.f32 %v19459_v42, %v4161_v18  ;;  %3715 = vperm.xlu0 %17333, %v19839_v56   ;;  %v19991_v42 = vld [vmem:[%s22923_s0 + $0x189] sm:$0xff] }
 0x344   :  { %v4504_v37 = vmax.f32 %v4444_v0, 0.0  ;;  %v20095_v0 = vld [vmem:[%s22924_s1 + $0x1] ss:$0 sm:$0xff] }
 0x345   :  { %v4631_v17 = vadd.f32 %v19515_v61, %v4567_v5  ;;  %v4378_v2 = vadd.f32 %v4318_v23, %v3893_v32  ;;  %v19979_v47 = vpop.permute.xlu1 %790  ;;  %v924_v18 = vmul.f32 %v20095_v0, %v19753_v45  ;;  %v20106_v5 = vld [vmem:[%s22924_s1] ss:$0 sm:$0xff] }
 0x346   :  { %v4568_v4 = vmul.f32 %v19502_v15, %v4504_v37  ;;  %v19982_v25 = vpop.permute.xlu0 %310  ;;  %4185 = vperm.xlu1 %17334, %v19834_v22   ;;  %v20005_v22 = vld [vmem:[%s22923_s0 + $0x191] sm:$0xff]  ;;  %v439_v23 = vmul.f32 %v20106_v5, %v19744_v1  ;;  %v20113_v37 = vld [vmem:[%s22924_s1 + $0x2] ss:$0 sm:$0xff]  ;;  %v20127_v1 = vld [vmem:[%s22924_s1 + $0x3] ss:$0 sm:$0xff] }
 0x347   :  { %4692 = vst.msk [vmem:[#allocation2 + $0x110] sm:$0xff] %vm4657_vm0, %v4631_v17  ;;  %v4445_v14 = vadd.f32 %v19484_v35, %v4378_v2  ;;  %2270 = vperm.xlu0 %17333, %v19839_v56   ;;  %v1409_v45 = vmul.f32 %v20113_v37, %v19803_v13  ;;  %v20120_v17 = vld [vmem:[%s22923_s0 + $0x1a2] sm:$0xff]  ;;  %v925_v13 = vmul.f32 %v20095_v0, %v19771_v36 }
 0x348   :  { %v4632_v58 = vadd.f32 %v19515_v61, %v4568_v4  ;;  %v984_v4 = vadd.f32 %v924_v18, %v439_v23  ;;  %v23082_v18 = vld [vmem:[#allocation10_spill] sm:$0xff] }
 0x349   :  { %v4505_v55 = vmax.f32 %v4445_v14, 0.0  ;;  %v19994_v51 = vpop.permute.xlu1 %2710  ;;  %v4839_v33 = vld [vmem:[#allocation2 + $0x101] sm:$0xff]  ;;  %v1894_v14 = vmul.f32 %v20127_v1, %v19852_v10  ;;  %v440_v10 = vmul.f32 %v20106_v5, %v19756_v6  ;;  %v441_v23 = vmul.f32 %v20106_v5, %v23082_v18 }
 0x34a   :  { %4693 = vst.msk [vmem:[#allocation2 + $0x118] sm:$0xff] %vm4657_vm0, %v4632_v58  ;;  %v19997_v16 = vpop.permute.xlu0 %795  ;;  %2275 = vperm.xlu1 %17334, %v19991_v42  }
 0x34b   :  { %v4569_v35 = vmul.f32 %v19502_v15, %v4505_v55  ;;  %4190 = vperm.xlu0 %17333, %v19850_v31   ;;  %v1469_v55 = vadd.f32 %v1409_v45, %v984_v4  ;;  %v985_v6 = vadd.f32 %v925_v13, %v440_v10  ;;  %v23083_v45 = vld [vmem:[#allocation11_spill] sm:$0xff] }
 0x34c   :  { %v1411_v4 = vmul.f32 %v20113_v37, %v23083_v45 }
 0x34d   :  { %v4633_v56 = vadd.f32 %v19515_v61, %v4569_v35  ;;  %v20008_v8 = vpop.permute.xlu1 %315  ;;  %v20025_v61 = vld [vmem:[%s22923_s0 + $0x18a] sm:$0xff]  ;;  %v20138_v35 = vld [vmem:[%s22924_s1 + $0x4] ss:$0 sm:$0xff] }
 0x34e   :  { %v20010_v11 = vpop.permute.xlu0 %2715  ;;  %4195 = vperm.xlu1 %17334, %v19867_v62   ;;  %v4840_v24 = vld [vmem:[#allocation2 + $0x109] sm:$0xff] }
 0x34f   :  { %4694 = vst.msk [vmem:[#allocation2 + $0x120] sm:$0xff] %vm4657_vm0, %v4633_v56  ;;  %2280 = vperm.xlu0 %17333, %v20005_v22   ;;  %v4879_v15 = vpack.c.bf16 %v4840_v24, %v4839_v33  ;;  %v2379_v56 = vmul.f32 %v20138_v35, %v19908_v59  ;;  %v23079_v24 = vld [vmem:[#allocation15_spill] sm:$0xff] }
 0x350   :  { %v926_v36 = vmul.f32 %v20095_v0, %v23079_v24  ;;  %v23084_v24 = vld [vmem:[#allocation16_spill] sm:$0xff] }
 0x351   :  { %15292 = vmatprep.mubr.msk.bf16.mxu0 %vm4657_vm0, %v4879_v15  ;;  %v20016_v31 = vpop.permute.xlu1 %800  ;;  %v4841_v21 = vld [vmem:[#allocation2 + $0x111] sm:$0xff]  ;;  %v1954_v15 = vadd.f32 %v1894_v14, %v1469_v55  ;;  %v2380_v55 = vmul.f32 %v20138_v35, %v19929_v57 }
 0x352   :  { %v20018_v26 = vpop.permute.xlu0 %320  ;;  %2750 = vperm.xlu1 %17334, %v19867_v62   ;;  %v20036_v62 = vld [vmem:[%s22923_s0 + $0x192] sm:$0xff] }
 0x353   :  { %4200 = vperm.xlu0 %17333, %v19886_v38   ;;  %v2439_v14 = vadd.f32 %v2379_v56, %v1954_v15  ;;  %v20180_v56 = vld [vmem:[%s22924_s1 + $0x7] ss:$0 sm:$0xff] }
 0x355   :  { %v20027_v40 = vpop.permute.xlu1 %2720 }
 0x356   :  { %v20029_v39 = vpop.permute.xlu0 %805  ;;  %2760 = vperm.xlu1 %17334, %v20025_v61   ;;  %v4842_v3 = vld [vmem:[#allocation2 + $0x119] sm:$0xff] }
 0x357   :  { %2755 = vperm.xlu0 %17333, %v19886_v38   ;;  %v4880_v27 = vpack.c.bf16 %v4842_v3, %v4841_v21  ;;  %v20048_v38 = vld [vmem:[%s22923_s0 + $0x198] sm:$0xff]  ;;  %v20151_v21 = vld [vmem:[%s22924_s1 + $0x5] ss:$0 sm:$0xff] }
 0x358   :  { %v2864_v3 = vmul.f32 %v20151_v21, %v19994_v51  ;;  %v20168_v51 = vld [vmem:[%s22924_s1 + $0x6] ss:$0 sm:$0xff] }
 0x359   :  { %15293 = vmatmul.mubr.msk.bf16.gmra.mrb[32].mxu0 %vm4657_vm0, %v4880_v27  ;;  %v20039_v53 = vpop.permute.xlu1 %1275  ;;  %v23081_v27 = vld [vmem:[#allocation13_spill] sm:$0xff] }
 0x35a   :  { %v20041_v43 = vpop.permute.xlu0 %2725  ;;  %3235 = vperm.xlu1 %17334, %v19939_v49   ;;  %v2924_v18 = vadd.f32 %v2864_v3, %v2439_v14  ;;  %v23086_v14 = vld [vmem:[#allocation12_spill] sm:$0xff] }
 0x35b   :  { %2765 = vperm.xlu0 %17333, %v20036_v62  }
 0x35d   :  { %v3196_v48 = vpop.permute.xlu1 %3195 }
 0x35e   :  { %v20050_v41 = vpop.permute.xlu0 %1280  ;;  %3245 = vperm.xlu1 %17334, %v20048_v38  }
 0x35f   :  { %3240 = vperm.xlu0 %17333, %v19957_v19  }
 0x361   :  { %v20059_v7 = vpop.permute.xlu1 %1285 }
 0x362   :  { %v20061_v30 = vpop.permute.xlu0 %3200  ;;  %3720 = vperm.xlu1 %17334, %v19991_v42  }
 0x363   :  { %3250 = vperm.xlu0 %17333, %v20057_v46  }
 0x365   :  { %v20070_v9 = vpop.permute.xlu1 %3205 }
 0x366   :  { %v20072_v60 = vpop.permute.xlu0 %1290  ;;  %3730 = vperm.xlu1 %17334, %v20068_v50  }
 0x367   :  { %3725 = vperm.xlu0 %17333, %v20005_v22  }
 0x369   :  { %v20081_v34 = vpop.permute.xlu1 %1760 }
 0x36a   :  { %v20083_v28 = vpop.permute.xlu0 %3210  ;;  %4205 = vperm.xlu1 %17334, %v20025_v61  }
 0x36b   :  { %3735 = vperm.xlu0 %17333, %v20079_v29  }
 0x36d   :  { %v3681_v52 = vpop.permute.xlu1 %3680 }
 0x36e   :  { %v20099_v32 = vpop.permute.xlu0 %1765  ;;  %4215 = vperm.xlu1 %17334, %v20090_v20   ;;  %v3834_v15 = vmul.f32 %v20180_v56, %v3681_v52  ;;  %v442_v52 = vmul.f32 %v20106_v5, %v23086_v14  ;;  %v2382_v14 = vmul.f32 %v20138_v35, %v19963_v54  ;;  %v2867_v54 = vmul.f32 %v20151_v21, %v20041_v43  ;;  %v20238_v43 = vld [vmem:[%s22925_s2 + $0x1] ss:$0 sm:$0xff] }
 0x36f   :  { %4210 = vperm.xlu0 %17333, %v20036_v62  }
 0x371   :  { %v20122_v2 = vpop.permute.xlu1 %1770 }
 0x372   :  { %v3686_v58 = vpop.permute.xlu0 %3685  ;;  %345 = vperm.xlu1 %17334, %v19939_v49   ;;  %v1410_v49 = vmul.f32 %v20113_v37, %v19812_v63  ;;  %v1895_v63 = vmul.f32 %v20127_v1, %v23081_v27  ;;  %v1896_v27 = vmul.f32 %v20127_v1, %v23084_v24  ;;  %v23087_v24 = vld [vmem:[#allocation18_spill] sm:$0xff] }
 0x373   :  { %4220 = vperm.xlu0 %17333, %v20120_v17  }
 0x374   :  { %v1470_v13 = vadd.f32 %v1410_v49, %v985_v6  ;;  %v2381_v6 = vmul.f32 %v20138_v35, %v19945_v44  ;;  %v20202_v44 = vld [vmem:[%s22924_s1 + $0x8] ss:$0 sm:$0xff] }
 0x375   :  { %v3691_v33 = vpop.permute.xlu1 %3690 }
 0x376   :  { %v20155_v59 = vpop.permute.xlu0 %1775  ;;  %350 = vperm.xlu1 %17334, %v19957_v19   ;;  %v3349_v19 = vmul.f32 %v20168_v51, %v3196_v48  ;;  %v23085_v48 = vld [vmem:[#allocation9_spill] sm:$0xff]  ;;  %v1955_v49 = vadd.f32 %v1895_v63, %v1470_v13  ;;  %v3350_v63 = vmul.f32 %v20168_v51, %v20061_v30 }
 0x377   :  { %23080 = vst [vmem:[#allocation14_spill] sm:$0xff] %v20155_v59  ;;  %830 = vperm.xlu0 %17333, %v19991_v42   ;;  %v986_v42 = vadd.f32 %v926_v36, %v441_v23  ;;  %v927_v57 = vmul.f32 %v20095_v0, %v23085_v48  ;;  %v2865_v36 = vmul.f32 %v20151_v21, %v20010_v11 }
 0x378   :  { %v3409_v23 = vadd.f32 %v3349_v19, %v2924_v18  ;;  %v2440_v59 = vadd.f32 %v2380_v55, %v1955_v49  ;;  %v2866_v11 = vmul.f32 %v20151_v21, %v20027_v40  ;;  %v23088_v18 = vld [vmem:[#allocation23_spill] sm:$0xff]  ;;  %v3835_v49 = vmul.f32 %v20180_v56, %v3686_v58  ;;  %v20222_v58 = vld [vmem:[%s22925_s2] ss:$0 sm:$0xff] }
 0x379   :  { %v20173_v10 = vpop.permute.xlu1 %2245  ;;  %v1471_v3 = vadd.f32 %v1411_v4, %v986_v42  ;;  %v987_v55 = vadd.f32 %v927_v57, %v442_v52  ;;  %v1897_v30 = vmul.f32 %v20127_v1, %v23088_v18  ;;  %v3836_v52 = vmul.f32 %v20180_v56, %v3691_v33 }
 0x37a   :  { %v3696_v45 = vpop.permute.xlu0 %3695  ;;  %835 = vperm.xlu1 %17334, %v20005_v22   ;;  %v1412_v22 = vmul.f32 %v20113_v37, %v23087_v24  ;;  %v3894_v4 = vadd.f32 %v3834_v15, %v3409_v23  ;;  %v3351_v15 = vmul.f32 %v20168_v51, %v20070_v9 }
 0x37b   :  { %355 = vperm.xlu0 %17333, %v20048_v38   ;;  %v1956_v48 = vadd.f32 %v1896_v27, %v1471_v3  ;;  %v2925_v27 = vadd.f32 %v2865_v36, %v2440_v59 }
 0x37c   :  { %v1472_v23 = vadd.f32 %v1412_v22, %v987_v55 }
 0x37d   :  { %v4166_v13 = vpop.permute.xlu1 %4165  ;;  %v2441_v40 = vadd.f32 %v2381_v6, %v1956_v48  ;;  %v3410_v24 = vadd.f32 %v3350_v63, %v2925_v27  ;;  %v3352_v48 = vmul.f32 %v20168_v51, %v20083_v28  ;;  %v3837_v27 = vmul.f32 %v20180_v56, %v3696_v45 }
 0x37e   :  { %v4319_v19 = vmul.f32 %v20202_v44, %v4166_v13  ;;  %v20205_v42 = vpop.permute.xlu0 %2250  ;;  %1315 = vperm.xlu1 %17334, %v20025_v61   ;;  %v1957_v9 = vadd.f32 %v1897_v30, %v1472_v23  ;;  %v20257_v23 = vld [vmem:[%s22923_s0 + $0x1a8] sm:$0xff] }
 0x37f   :  { %840 = vperm.xlu0 %17333, %v20068_v50   ;;  %v2926_v57 = vadd.f32 %v2866_v11, %v2441_v40  ;;  %v3895_v6 = vadd.f32 %v3835_v49, %v3410_v24  ;;  %v20251_v40 = vld [vmem:[%s22925_s2 + $0x2] ss:$0 sm:$0xff] }
 0x380   :  { %v4379_v3 = vadd.f32 %v4319_v19, %v3894_v4  ;;  %v2442_v13 = vadd.f32 %v2382_v14, %v1957_v9  ;;  %v17337_v19 = vld [vmem:[%s22926_s3] sm:$0xff]   ;;  %v20270_v9 = vld [vmem:[%s22923_s0 + $0x1a9] sm:$0xff] }
 0x381   :  { %v20216_v61 = vpop.permute.xlu1 %2255  ;;  %v3411_v33 = vadd.f32 %v3351_v15, %v2926_v57  ;;  %15316 = vmatprep.subr.bf16.mxu0 %v17337_v19 }
 0x382   :  { %v4446_v59 = vadd.f32 %v20222_v58, %v4379_v3  ;;  %v4171_v36 = vpop.permute.xlu0 %4170  ;;  %1325 = vperm.xlu1 %17334, %v20090_v20   ;;  %v2927_v28 = vadd.f32 %v2867_v54, %v2442_v13  ;;  %15317 = vmatpush3.bf16.msra.mxu0 %v17337_v19  ;;  %v17338_v54 = vld [vmem:[%s22926_s3 + $0x8] sm:$0xff]  }
 0x383   :  { %v4320_v22 = vmul.f32 %v20202_v44, %v4171_v36  ;;  %1320 = vperm.xlu0 %17333, %v20036_v62   ;;  %v3896_v55 = vadd.f32 %v3836_v52, %v3411_v33  ;;  %15318 = vmatprep.subr.bf16.mxu0 %v17338_v54 }
 0x384   :  { %v4506_v63 = vmax.f32 %v4446_v59, 0.0  ;;  %v3412_v45 = vadd.f32 %v3352_v48, %v2927_v28 }
 0x385   :  { %v4380_v11 = vadd.f32 %v4320_v22, %v3895_v6  ;;  %v4176_v4 = vpop.permute.xlu1 %4175 }
 0x386   :  { %v4570_v62 = vmul.f32 %v20238_v43, %v4506_v63  ;;  %v4321_v18 = vmul.f32 %v20202_v44, %v4176_v4  ;;  %v20242_v30 = vpop.permute.xlu0 %2260  ;;  %1805 = vperm.xlu1 %17334, %v20057_v46   ;;  %v3897_v52 = vadd.f32 %v3837_v27, %v3412_v45  ;;  %15319 = vmatpush3.bf16.msra.mxu0 %v17338_v54  ;;  %v91_v45 = vld [vmem:[%s22923_s0 + $0x1b0] sm:$0xff] }
 0x387   :  { %v4447_v49 = vadd.f32 %v20222_v58, %v4380_v11  ;;  %1800 = vperm.xlu0 %17333, %v20048_v38  }
 0x388   :  { %v4634_v15 = vadd.f32 %v20251_v40, %v4570_v62  ;;  %v4381_v3 = vadd.f32 %v4321_v18, %v3896_v55 }
 0x389   :  { %v4507_v14 = vmax.f32 %v4447_v49, 0.0  ;;  %v20259_v24 = vpop.permute.xlu1 %325 }
 0x38a   :  { %4695 = vst.msk [vmem:[#allocation2 + $0x128] sm:$0xff] %vm4657_vm0, %v4634_v15  ;;  %v4448_v38 = vadd.f32 %v20222_v58, %v4381_v3  ;;  %v4181_v57 = vpop.permute.xlu0 %4180  ;;  %2285 = vperm.xlu1 %17334, %v20068_v50  }
 0x38b   :  { %v4571_v59 = vmul.f32 %v20238_v43, %v4507_v14  ;;  %v4322_v36 = vmul.f32 %v20202_v44, %v4181_v57  ;;  %1810 = vperm.xlu0 %17333, %v20257_v23  }
 0x38c   :  { %v4508_v6 = vmax.f32 %v4448_v38, 0.0  ;;  %v20314_v38 = vld [vmem:[%s22923_s0 + $0x1b1] sm:$0xff] }
 0x38d   :  { %v4635_v22 = vadd.f32 %v20251_v40, %v4571_v59  ;;  %v4382_v50 = vadd.f32 %v4322_v36, %v3897_v52  ;;  %v20276_v33 = vpop.permute.xlu1 %810 }
 0x38e   :  { %v4572_v63 = vmul.f32 %v20238_v43, %v4508_v6  ;;  %v20279_v13 = vpop.permute.xlu0 %330  ;;  %2295 = vperm.xlu1 %17334, %v20270_v9  }
 0x38f   :  { %4696 = vst.msk [vmem:[#allocation2 + $0x130] sm:$0xff] %vm4657_vm0, %v4635_v22  ;;  %v4449_v48 = vadd.f32 %v20222_v58, %v4382_v50  ;;  %2290 = vperm.xlu0 %17333, %v20079_v29   ;;  %v20339_v50 = vld [vmem:[%s22923_s0 + $0x1aa] sm:$0xff] }
 0x390   :  { %v4636_v11 = vadd.f32 %v20251_v40, %v4572_v63 }
 0x391   :  { %v4509_v4 = vmax.f32 %v4449_v48, 0.0  ;;  %v20286_v19 = vpop.permute.xlu1 %2730  ;;  %v4843_v49 = vld [vmem:[#allocation2 + $0x121] sm:$0xff] }
 0x392   :  { %4697 = vst.msk [vmem:[#allocation2 + $0x138] sm:$0xff] %vm4657_vm0, %v4636_v11  ;;  %v20289_v55 = vpop.permute.xlu0 %815  ;;  %365 = vperm.xlu1 %17334, %v20257_v23  }
 0x393   :  { %v4573_v62 = vmul.f32 %v20238_v43, %v4509_v4  ;;  %360 = vperm.xlu0 %17333, %v20057_v46  }
 0x395   :  { %v4637_v18 = vadd.f32 %v20251_v40, %v4573_v62  ;;  %v20295_v28 = vpop.permute.xlu1 %335  ;;  %v20354_v62 = vld [vmem:[%s22923_s0 + $0x1ba] sm:$0xff] }
 0x396   :  { %23089 = vst [vmem:[#allocation8_spill] sm:$0xff] %v20295_v28  ;;  %v20297_v27 = vpop.permute.xlu0 %2735  ;;  %850 = vperm.xlu1 %17334, %v20270_v9   ;;  %v4844_v15 = vld [vmem:[#allocation2 + $0x129] sm:$0xff] }
 0x397   :  { %4698 = vst.msk [vmem:[#allocation2 + $0x140] sm:$0xff] %vm4657_vm0, %v4637_v18  ;;  %845 = vperm.xlu0 %17333, %v20079_v29   ;;  %v4881_v3 = vpack.c.bf16 %v4844_v15, %v4843_v49  ;;  %v92_v29 = vld [vmem:[%s22923_s0 + $0x1b8] sm:$0xff] }
 0x398   :  { %v20359_v18 = vld [vmem:[%s22923_s0 + $0x1b2] sm:$0xff] }
 0x399   :  { %15296 = vmatprep.mubr.msk.bf16.mxu0 %vm4657_vm0, %v4881_v3  ;;  %v20306_v46 = vpop.permute.xlu1 %820  ;;  %v4845_v59 = vld [vmem:[#allocation2 + $0x131] sm:$0xff] }
 0x39a   :  { %v20308_v14 = vpop.permute.xlu0 %340  ;;  %370 = vperm.xlu1 %17334, %v91_v45  }
 0x39b   :  { %23090 = vst [vmem:[#allocation25_spill] sm:$0xff] %v20308_v14  ;;  %2770 = vperm.xlu0 %17333, %v20090_v20   ;;  %v20327_v20 = vld [vmem:[%s22923_s0 + $0x1b9] sm:$0xff]  ;;  %v1413_v14 = vmul.f32 %v20113_v37, %v20039_v53  ;;  %v20397_v53 = vld [vmem:[%s22923_s0 + $0x1c8] sm:$0xff] }
 0x39d   :  { %v20319_v57 = vpop.permute.xlu1 %2740 }
 0x39e   :  { %v20321_v52 = vpop.permute.xlu0 %825  ;;  %855 = vperm.xlu1 %17334, %v20314_v38   ;;  %v4846_v36 = vld [vmem:[#allocation2 + $0x139] sm:$0xff] }
 0x39f   :  { %23091 = vst [vmem:[#allocation21_spill] sm:$0xff] %v20321_v52  ;;  %375 = vperm.xlu0 %17333, %v92_v29   ;;  %v4882_v54 = vpack.c.bf16 %v4846_v36, %v4845_v59  ;;  %v928_v59 = vmul.f32 %v20095_v0, %v19979_v47  ;;  %v1898_v47 = vmul.f32 %v20127_v1, %v20081_v34 }
 0x3a0   :  { %v444_v34 = vmul.f32 %v20106_v5, %v19982_v25  ;;  %v445_v25 = vmul.f32 %v20106_v5, %v20008_v8 }
 0x3a1   :  { %15297 = vmatmul.mubr.msk.bf16.gmra.mrb[36].mxu0 %vm4657_vm0, %v4882_v54  ;;  %v20330_v6 = vpop.permute.xlu1 %1295  ;;  %v20378_v54 = vld [vmem:[%s22923_s0 + $0x1c0] sm:$0xff] }
 0x3a2   :  { %v20332_v22 = vpop.permute.xlu0 %2745  ;;  %2775 = vperm.xlu1 %17334, %v20120_v17  }
 0x3a3   :  { %860 = vperm.xlu0 %17333, %v20327_v20  }
 0x3a5   :  { %v3216_v63 = vpop.permute.xlu1 %3215 }
 0x3a6   :  { %v20341_v48 = vpop.permute.xlu0 %1300  ;;  %1330 = vperm.xlu1 %17334, %v20120_v17  }
 0x3a7   :  { %2780 = vperm.xlu0 %17333, %v20339_v50  }
 0x3a9   :  { %v20345_v11 = vpop.permute.xlu1 %1305 }
 0x3aa   :  { %23092 = vst [vmem:[#allocation26_spill] sm:$0xff] %v20345_v11  ;;  %v20347_v4 = vpop.permute.xlu0 %3220  ;;  %3255 = vperm.xlu1 %17334, %v20257_v23  }
 0x3ab   :  { %1335 = vperm.xlu0 %17333, %v20339_v50  }
 0x3ad   :  { %v20361_v17 = vpop.permute.xlu1 %3225 }
 0x3ae   :  { %v20363_v49 = vpop.permute.xlu0 %1310  ;;  %1345 = vperm.xlu1 %17334, %v20354_v62  }
 0x3af   :  { %23093 = vst [vmem:[#allocation24_spill] sm:$0xff] %v20363_v49  ;;  %1340 = vperm.xlu0 %17333, %v20359_v18   ;;  %v443_v49 = vmul.f32 %v20106_v5, %v19970_v12  ;;  %v2383_v12 = vmul.f32 %v20138_v35, %v20173_v10 }
 0x3b1   :  { %v20367_v23 = vpop.permute.xlu1 %1780  ;;  %v988_v11 = vadd.f32 %v928_v59, %v443_v49  ;;  %v1414_v49 = vmul.f32 %v20113_v37, %v20050_v41 }
 0x3b2   :  { %v20369_v15 = vpop.permute.xlu0 %3230  ;;  %3265 = vperm.xlu1 %17334, %v92_v29  }
 0x3b3   :  { %3260 = vperm.xlu0 %17333, %v91_v45  }
 0x3b5   :  { %v3701_v3 = vpop.permute.xlu1 %3700 }
 0x3b6   :  { %v20373_v36 = vpop.permute.xlu0 %1785  ;;  %1820 = vperm.xlu1 %17334, %v92_v29   ;;  %v1473_v29 = vadd.f32 %v1413_v14, %v988_v11  ;;  %v2868_v14 = vmul.f32 %v20151_v21, %v20286_v19  ;;  %v3838_v28 = vmul.f32 %v20180_v56, %v3701_v3  ;;  %v446_v3 = vmul.f32 %v20106_v5, %v20018_v26 }
 0x3b7   :  { %23094 = vst [vmem:[#allocation7_spill] sm:$0xff] %v20373_v36  ;;  %1815 = vperm.xlu0 %17333, %v91_v45   ;;  %v929_v45 = vmul.f32 %v20095_v0, %v19997_v16  ;;  %v930_v16 = vmul.f32 %v20095_v0, %v20016_v31  ;;  %v1415_v31 = vmul.f32 %v20113_v37, %v20059_v7 }
 0x3b8   :  { %v931_v7 = vmul.f32 %v20095_v0, %v20029_v39  ;;  %v3354_v39 = vmul.f32 %v20168_v51, %v20347_v4  ;;  %v3355_v4 = vmul.f32 %v20168_v51, %v20361_v17 }
 0x3b9   :  { %v20384_v52 = vpop.permute.xlu1 %1790  ;;  %v989_v11 = vadd.f32 %v929_v45, %v444_v34  ;;  %v990_v45 = vadd.f32 %v930_v16, %v445_v25  ;;  %v23097_v25 = vld [vmem:[#allocation14_spill] sm:$0xff] }
 0x3ba   :  { %23095 = vst [vmem:[#allocation22_spill] sm:$0xff] %v20384_v52  ;;  %v3706_v36 = vpop.permute.xlu0 %3705  ;;  %1825 = vperm.xlu1 %17334, %v20378_v54   ;;  %v1899_v52 = vmul.f32 %v20127_v1, %v20099_v32  ;;  %v1900_v32 = vmul.f32 %v20127_v1, %v20122_v2  ;;  %v991_v26 = vadd.f32 %v931_v7, %v446_v3 }
 0x3bb   :  { %3740 = vperm.xlu0 %17333, %v20270_v9   ;;  %v1958_v9 = vadd.f32 %v1898_v47, %v1473_v29  ;;  %v3353_v47 = vmul.f32 %v20168_v51, %v3216_v63  ;;  %v1474_v19 = vadd.f32 %v1414_v49, %v989_v11  ;;  %v2384_v29 = vmul.f32 %v20138_v35, %v20205_v42 }
 0x3bc   :  { %v1475_v42 = vadd.f32 %v1415_v31, %v990_v45  ;;  %v2385_v49 = vmul.f32 %v20138_v35, %v20216_v61 }
 0x3bd   :  { %v3711_v59 = vpop.permute.xlu1 %3710  ;;  %v2443_v41 = vadd.f32 %v2383_v12, %v1958_v9  ;;  %v1959_v63 = vadd.f32 %v1899_v52, %v1474_v19  ;;  %v2869_v12 = vmul.f32 %v20151_v21, %v20297_v27  ;;  %v2870_v27 = vmul.f32 %v20151_v21, %v20319_v57  ;;  %v20452_v57 = vld [vmem:[%s22923_s0 + $0x1c9] sm:$0xff] }
 0x3be   :  { %v20407_v10 = vpop.permute.xlu0 %1795  ;;  %3745 = vperm.xlu1 %17334, %v20314_v38   ;;  %v1960_v9 = vadd.f32 %v1900_v32, %v1475_v42  ;;  %v3840_v32 = vmul.f32 %v20180_v56, %v3711_v59  ;;  %v3356_v59 = vmul.f32 %v20168_v51, %v20369_v15 }
 0x3bf   :  { %23096 = vst [vmem:[#allocation20_spill] sm:$0xff] %v20407_v10  ;;  %1830 = vperm.xlu0 %17333, %v20397_v53   ;;  %v2928_v34 = vadd.f32 %v2868_v14, %v2443_v41  ;;  %v2444_v16 = vadd.f32 %v2384_v29, %v1959_v63  ;;  %v3839_v41 = vmul.f32 %v20180_v56, %v3706_v36 }
 0x3c0   :  { %v2386_v36 = vmul.f32 %v20138_v35, %v20242_v30  ;;  %v2871_v63 = vmul.f32 %v20151_v21, %v20332_v22 }
 0x3c1   :  { %v20420_v10 = vpop.permute.xlu1 %2265  ;;  %v3413_v2 = vadd.f32 %v3353_v47, %v2928_v34  ;;  %v2929_v31 = vadd.f32 %v2869_v12, %v2444_v16 }
 0x3c2   :  { %v3716_v8 = vpop.permute.xlu0 %3715  ;;  %2300 = vperm.xlu1 %17334, %v20314_v38   ;;  %v1416_v38 = vmul.f32 %v20113_v37, %v20072_v60  ;;  %v1901_v60 = vmul.f32 %v20127_v1, %v23097_v25 }
 0x3c3   :  { %3750 = vperm.xlu0 %17333, %v20327_v20   ;;  %v3898_v14 = vadd.f32 %v3838_v28, %v3413_v2  ;;  %v2445_v28 = vadd.f32 %v2385_v49, %v1960_v9 }
 0x3c4   :  { %v1476_v19 = vadd.f32 %v1416_v38, %v991_v26 }
 0x3c5   :  { %v4186_v52 = vpop.permute.xlu1 %4185  ;;  %v2930_v45 = vadd.f32 %v2870_v27, %v2445_v28  ;;  %v3841_v27 = vmul.f32 %v20180_v56, %v3716_v8 }
 0x3c6   :  { %v4323_v11 = vmul.f32 %v20202_v44, %v4186_v52  ;;  %v20442_v61 = vpop.permute.xlu0 %2270  ;;  %4225 = vperm.xlu1 %17334, %v20339_v50   ;;  %v20459_v50 = vld [vmem:[%s22923_s0 + $0x1c1] sm:$0xff]  ;;  %v1961_v17 = vadd.f32 %v1901_v60, %v1476_v19 }
 0x3c7   :  { %2305 = vperm.xlu0 %17333, %v20327_v20   ;;  %v3414_v20 = vadd.f32 %v3354_v39, %v2929_v31  ;;  %v3415_v30 = vadd.f32 %v3355_v4, %v2930_v45 }
 0x3c8   :  { %v4383_v47 = vadd.f32 %v4323_v11, %v3898_v14  ;;  %v2446_v2 = vadd.f32 %v2386_v36, %v1961_v17  ;;  %v20497_v36 = vld [vmem:[%s22923_s0 + $0x1c2] sm:$0xff] }
 0x3c9   :  { %v20463_v29 = vpop.permute.xlu1 %2275  ;;  %v3899_v12 = vadd.f32 %v3839_v41, %v3414_v20  ;;  %v3900_v16 = vadd.f32 %v3840_v32, %v3415_v30 }
 0x3ca   :  { %v4450_v34 = vadd.f32 %v20222_v58, %v4383_v47  ;;  %v4191_v7 = vpop.permute.xlu0 %4190  ;;  %2315 = vperm.xlu1 %17334, %v20452_v57   ;;  %v2931_v22 = vadd.f32 %v2871_v63, %v2446_v2  ;;  %v20492_v47 = vld [vmem:[%s22923_s0 + $0x1ca] sm:$0xff]  ;;  %v447_v2 = vmul.f32 %v20106_v5, %v20259_v24  ;;  %v1902_v24 = vmul.f32 %v20127_v1, %v20367_v23 }
 0x3cb   :  { %v4324_v42 = vmul.f32 %v20202_v44, %v4191_v7  ;;  %2310 = vperm.xlu0 %17333, %v20459_v50  }
 0x3cc   :  { %v4510_v49 = vmax.f32 %v4450_v34, 0.0  ;;  %v3416_v26 = vadd.f32 %v3356_v59, %v2931_v22  ;;  %v20530_v59 = vld [vmem:[%s22923_s0 + $0x1d0] sm:$0xff] }
 0x3cd   :  { %v4384_v3 = vadd.f32 %v4324_v42, %v3899_v12  ;;  %v4196_v38 = vpop.permute.xlu1 %4195  ;;  %v932_v12 = vmul.f32 %v20095_v0, %v20276_v33  ;;  %v1417_v33 = vmul.f32 %v20113_v37, %v20330_v6 }
 0x3ce   :  { %v4574_v39 = vmul.f32 %v20238_v43, %v4510_v49  ;;  %v4325_v52 = vmul.f32 %v20202_v44, %v4196_v38  ;;  %v20476_v9 = vpop.permute.xlu0 %2280  ;;  %4235 = vperm.xlu1 %17334, %v20354_v62   ;;  %v3901_v28 = vadd.f32 %v3841_v27, %v3416_v26  ;;  %v20521_v49 = vld [vmem:[%s22923_s0 + $0x1d8] sm:$0xff] }
 0x3cf   :  { %v4451_v14 = vadd.f32 %v20222_v58, %v4384_v3  ;;  %4230 = vperm.xlu0 %17333, %v20359_v18   ;;  %v933_v3 = vmul.f32 %v20095_v0, %v20289_v55  ;;  %v1418_v55 = vmul.f32 %v20113_v37, %v20341_v48  ;;  %v23099_v26 = vld [vmem:[#allocation26_spill] sm:$0xff]  ;;  %v23101_v48 = vld [vmem:[#allocation7_spill] sm:$0xff] }
 0x3d0   :  { %v4638_v15 = vadd.f32 %v20251_v40, %v4574_v39  ;;  %v4385_v11 = vadd.f32 %v4325_v52, %v3900_v16  ;;  %v992_v39 = vadd.f32 %v932_v12, %v447_v2  ;;  %v934_v52 = vmul.f32 %v20095_v0, %v20306_v46  ;;  %v23098_v46 = vld [vmem:[#allocation8_spill] sm:$0xff] }
 0x3d1   :  { %v4511_v25 = vmax.f32 %v4451_v14, 0.0  ;;  %v2751_v60 = vpop.permute.xlu1 %2750  ;;  %v448_v14 = vmul.f32 %v20106_v5, %v20279_v13  ;;  %v23100_v13 = vld [vmem:[#allocation21_spill] sm:$0xff] }
 0x3d2   :  { %4699 = vst.msk [vmem:[#allocation2 + $0x148] sm:$0xff] %vm4657_vm0, %v4638_v15  ;;  %v4452_v31 = vadd.f32 %v20222_v58, %v4385_v11  ;;  %v4201_v41 = vpop.permute.xlu0 %4200  ;;  %2790 = vperm.xlu1 %17334, %v20354_v62   ;;  %v449_v11 = vmul.f32 %v20106_v5, %v23098_v46  ;;  %v1477_v23 = vadd.f32 %v1417_v33, %v992_v39 }
 0x3d3   :  { %v4575_v8 = vmul.f32 %v20238_v43, %v4511_v25  ;;  %v4326_v4 = vmul.f32 %v20202_v44, %v4201_v41  ;;  %2785 = vperm.xlu0 %17333, %v20359_v18   ;;  %v1419_v25 = vmul.f32 %v20113_v37, %v23099_v26  ;;  %v993_v41 = vadd.f32 %v933_v3, %v448_v14 }
 0x3d4   :  { %v4512_v19 = vmax.f32 %v4452_v31, 0.0  ;;  %v2387_v31 = vmul.f32 %v20138_v35, %v20420_v10  ;;  %v23103_v10 = vld [vmem:[#allocation25_spill] sm:$0xff]  ;;  %v2389_v3 = vmul.f32 %v20138_v35, %v20463_v29  ;;  %v20584_v29 = vld [vmem:[%s22926_s3 + $0x20] sm:$0xff]  }
 0x3d5   :  { %v4639_v62 = vadd.f32 %v20251_v40, %v4575_v8  ;;  %v4386_v20 = vadd.f32 %v4326_v4, %v3901_v28  ;;  %v20500_v45 = vpop.permute.xlu1 %2760  ;;  %v935_v28 = vmul.f32 %v20095_v0, %v23100_v13  ;;  %v1903_v8 = vmul.f32 %v20127_v1, %v23101_v48  ;;  %15376 = vmatprep.subr.bf16.mxu0 %v20584_v29 }
 0x3d6   :  { %v4576_v32 = vmul.f32 %v20238_v43, %v4512_v19  ;;  %v20503_v34 = vpop.permute.xlu0 %2755  ;;  %2800 = vperm.xlu1 %17334, %v20492_v47   ;;  %v994_v19 = vadd.f32 %v934_v52, %v449_v11  ;;  %v1478_v12 = vadd.f32 %v1418_v55, %v993_v41  ;;  %v23104_v52 = vld [vmem:[#allocation24_spill] sm:$0xff] }
 0x3d7   :  { %4700 = vst.msk [vmem:[#allocation2 + $0x150] sm:$0xff] %vm4657_vm0, %v4639_v62  ;;  %v4453_v18 = vadd.f32 %v20222_v58, %v4386_v20  ;;  %2795 = vperm.xlu0 %17333, %v20497_v36   ;;  %v1962_v62 = vadd.f32 %v1902_v24, %v1477_v23  ;;  %v23102_v20 = vld [vmem:[#allocation22_spill] sm:$0xff]  ;;  %v1420_v24 = vmul.f32 %v20113_v37, %v23104_v52 }
 0x3d8   :  { %v4640_v7 = vadd.f32 %v20251_v40, %v4576_v32  ;;  %v1904_v32 = vmul.f32 %v20127_v1, %v23102_v20  ;;  %v1479_v2 = vadd.f32 %v1419_v25, %v994_v19  ;;  %v23105_v25 = vld [vmem:[#allocation20_spill] sm:$0xff] }
 0x3d9   :  { %v4513_v17 = vmax.f32 %v4453_v18, 0.0  ;;  %v3236_v63 = vpop.permute.xlu1 %3235  ;;  %v4847_v6 = vld [vmem:[#allocation2 + $0x141] sm:$0xff]  ;;  %v2872_v18 = vmul.f32 %v20151_v21, %v2751_v60  ;;  %v2447_v33 = vadd.f32 %v2387_v31, %v1962_v62  ;;  %v2873_v31 = vmul.f32 %v20151_v21, %v20503_v34 }
 0x3da   :  { %4701 = vst.msk [vmem:[#allocation2 + $0x158] sm:$0xff] %vm4657_vm0, %v4640_v7  ;;  %v20513_v42 = vpop.permute.xlu0 %2765  ;;  %3275 = vperm.xlu1 %17334, %v20397_v53   ;;  %v3357_v60 = vmul.f32 %v20168_v51, %v3236_v63  ;;  %v1964_v63 = vadd.f32 %v1904_v32, %v1479_v2  ;;  %v20616_v2 = vld [vmem:[%s22923_s0 + $0x1d2] sm:$0xff] }
 0x3db   :  { %v4577_v30 = vmul.f32 %v20238_v43, %v4513_v17  ;;  %3270 = vperm.xlu0 %17333, %v20378_v54   ;;  %v450_v17 = vmul.f32 %v20106_v5, %v23103_v10  ;;  %v2932_v55 = vadd.f32 %v2872_v18, %v2447_v33 }
 0x3dc   :  { %v2449_v13 = vadd.f32 %v2389_v3, %v1964_v63 }
 0x3dd   :  { %v4641_v38 = vadd.f32 %v20251_v40, %v4577_v30  ;;  %v3246_v16 = vpop.permute.xlu1 %3245  ;;  %v20567_v30 = vld [vmem:[%s22923_s0 + $0x1d9] sm:$0xff]  ;;  %v995_v39 = vadd.f32 %v935_v28, %v450_v17  ;;  %v2875_v17 = vmul.f32 %v20151_v21, %v20513_v42 }
 0x3de   :  { %v3241_v22 = vpop.permute.xlu0 %3240  ;;  %3285 = vperm.xlu1 %17334, %v20521_v49   ;;  %v4848_v27 = vld [vmem:[#allocation2 + $0x149] sm:$0xff]  ;;  %v3359_v28 = vmul.f32 %v20168_v51, %v3246_v16 }
 0x3df   :  { %4702 = vst.msk [vmem:[#allocation2 + $0x160] sm:$0xff] %vm4657_vm0, %v4641_v38  ;;  %3280 = vperm.xlu0 %17333, %v20530_v59   ;;  %v4883_v15 = vpack.c.bf16 %v4848_v27, %v4847_v6  ;;  %v20575_v38 = vld [vmem:[%s22923_s0 + $0x1d1] sm:$0xff]  ;;  %v1963_v6 = vadd.f32 %v1903_v8, %v1478_v12  ;;  %v2388_v27 = vmul.f32 %v20138_v35, %v20442_v61 }
 0x3e0   :  { %v1905_v61 = vmul.f32 %v20127_v1, %v23105_v25  ;;  %v1480_v48 = vadd.f32 %v1420_v24, %v995_v39  ;;  %v3358_v19 = vmul.f32 %v20168_v51, %v3241_v22 }
 0x3e1   :  { %15300 = vmatprep.mubr.msk.bf16.mxu0 %vm4657_vm0, %v4883_v15  ;;  %v3721_v4 = vpop.permute.xlu1 %3720  ;;  %v2874_v15 = vmul.f32 %v20151_v21, %v20500_v45  ;;  %v4849_v23 = vld [vmem:[#allocation2 + $0x151] sm:$0xff]  ;;  %v3417_v45 = vadd.f32 %v3357_v60, %v2932_v55  ;;  %v2448_v8 = vadd.f32 %v2388_v27, %v1963_v6 }
 0x3e2   :  { %v3251_v7 = vpop.permute.xlu0 %3250  ;;  %3760 = vperm.xlu1 %17334, %v20452_v57   ;;  %v3842_v46 = vmul.f32 %v20180_v56, %v3721_v4  ;;  %v2390_v4 = vmul.f32 %v20138_v35, %v20476_v9  ;;  %v1965_v16 = vadd.f32 %v1905_v61, %v1480_v48  ;;  %v20611_v9 = vld [vmem:[%s22923_s0 + $0x1da] sm:$0xff] }
 0x3e3   :  { %3755 = vperm.xlu0 %17333, %v20459_v50   ;;  %v2934_v34 = vadd.f32 %v2874_v15, %v2449_v13  ;;  %v2933_v10 = vadd.f32 %v2873_v31, %v2448_v8  ;;  %v3360_v21 = vmul.f32 %v20168_v51, %v3251_v7 }
 0x3e4   :  { %v3902_v62 = vadd.f32 %v3842_v46, %v3417_v45  ;;  %v2450_v33 = vadd.f32 %v2390_v4, %v1965_v16 }
 0x3e5   :  { %v3731_v14 = vpop.permute.xlu1 %3730  ;;  %v3419_v22 = vadd.f32 %v3359_v28, %v2934_v34  ;;  %v3418_v3 = vadd.f32 %v3358_v19, %v2933_v10 }
 0x3e6   :  { %v3726_v11 = vpop.permute.xlu0 %3725  ;;  %3770 = vperm.xlu1 %17334, %v20567_v30   ;;  %v4850_v26 = vld [vmem:[#allocation2 + $0x159] sm:$0xff]  ;;  %v3844_v20 = vmul.f32 %v20180_v56, %v3731_v14  ;;  %v2935_v6 = vadd.f32 %v2875_v17, %v2450_v33 }
 0x3e7   :  { %3765 = vperm.xlu0 %17333, %v20575_v38   ;;  %v4884_v41 = vpack.c.bf16 %v4850_v26, %v4849_v23  ;;  %v3843_v35 = vmul.f32 %v20180_v56, %v3726_v11  ;;  %v4719_v33 = vld [vmem:[#allocation2] sm:$0xff] }
 0x3e8   :  { %v3904_v60 = vadd.f32 %v3844_v20, %v3419_v22  ;;  %v3420_v51 = vadd.f32 %v3360_v21, %v2935_v6  ;;  %v3489_v6 = vld [vmem:[%s22923_s0 + $0x1e9] sm:$0xff] }
 0x3e9   :  { %15301 = vmatmul.mubr.msk.bf16.gmra.mrb[40].mxu0 %vm4657_vm0, %v4884_v41  ;;  %v4206_v1 = vpop.permute.xlu1 %4205  ;;  %v3903_v27 = vadd.f32 %v3843_v35, %v3418_v3  ;;  %v4720_v3 = vld [vmem:[#allocation2 + $0x8] sm:$0xff] }
 0x3ea   :  { %v4327_v32 = vmul.f32 %v20202_v44, %v4206_v1  ;;  %v3736_v18 = vpop.permute.xlu0 %3735  ;;  %4245 = vperm.xlu1 %17334, %v20492_v47  }
 0x3eb   :  { %4240 = vperm.xlu0 %17333, %v20497_v36   ;;  %v3845_v14 = vmul.f32 %v20180_v56, %v3736_v18 }
 0x3ec   :  { %v4387_v12 = vadd.f32 %v4327_v32, %v3902_v62 }
 0x3ed   :  { %v4216_v42 = vpop.permute.xlu1 %4215  ;;  %v3905_v25 = vadd.f32 %v3845_v14, %v3420_v51  ;;  %v4722_v14 = vld [vmem:[#allocation2 + $0x18] sm:$0xff]  ;;  %v4721_v51 = vld [vmem:[#allocation2 + $0x10] sm:$0xff] }
 0x3ee   :  { %v4454_v39 = vadd.f32 %v20222_v58, %v4387_v12  ;;  %v4329_v52 = vmul.f32 %v20202_v44, %v4216_v42  ;;  %v4211_v24 = vpop.permute.xlu0 %4210  ;;  %4255 = vperm.xlu1 %17334, %v20611_v9  }
 0x3ef   :  { %v4328_v63 = vmul.f32 %v20202_v44, %v4211_v24  ;;  %4250 = vperm.xlu0 %17333, %v20616_v2  }
 0x3f0   :  { %v4514_v55 = vmax.f32 %v4454_v39, 0.0  ;;  %v4389_v15 = vadd.f32 %v4329_v52, %v3904_v60  ;;  %v3004_v60 = vld [vmem:[%s22923_s0 + $0x1e8] sm:$0xff]  ;;  %v4775_v39 = vpack.c.bf16 %v4720_v3, %v4719_v33  ;;  %v20680_v52 = vld [vmem:[%s22923_s0 + $0x1e0] sm:$0xff] }
 0x3f1   :  { %v4388_v7 = vadd.f32 %v4328_v63, %v3903_v27  ;;  %v20625_v46 = vpop.permute.xlu1 %345  ;;  %v20695_v27 = vld [vmem:[%s22923_s0 + $0x1e1] sm:$0xff] }
 0x3f2   :  { %v4578_v11 = vmul.f32 %v20238_v43, %v4514_v55  ;;  %v4456_v23 = vadd.f32 %v20222_v58, %v4389_v15  ;;  %v4221_v26 = vpop.permute.xlu0 %4220  ;;  %385 = vperm.xlu1 %17334, %v20397_v53   ;;  %v4724_v55 = vld [vmem:[#allocation2 + $0x28] sm:$0xff] }
 0x3f3   :  { %v4455_v56 = vadd.f32 %v20222_v58, %v4388_v7  ;;  %v4330_v61 = vmul.f32 %v20202_v44, %v4221_v26  ;;  %380 = vperm.xlu0 %17333, %v20378_v54   ;;  %v4776_v7 = vpack.c.bf16 %v4722_v14, %v4721_v51  ;;  %v4733_v14 = vld [vmem:[#allocation2 + $0x70] sm:$0xff]  ;;  %v4735_v51 = vld [vmem:[#allocation2 + $0x80] sm:$0xff] }
 0x3f4   :  { %v4642_v31 = vadd.f32 %v20251_v40, %v4578_v11  ;;  %v4516_v41 = vmax.f32 %v4456_v23, 0.0  ;;  %v4723_v11 = vld [vmem:[#allocation2 + $0x20] sm:$0xff]  ;;  %v3974_v23 = vld [vmem:[%s22923_s0 + $0x1ea] sm:$0xff] }
 0x3f5   :  { %v4515_v13 = vmax.f32 %v4455_v56, 0.0  ;;  %v4390_v45 = vadd.f32 %v4330_v61, %v3905_v25  ;;  %v351_v28 = vpop.permute.xlu1 %350  ;;  %v4777_v26 = vpack.c.bf16 %v4724_v55, %v4723_v11  ;;  %v20708_v25 = vld [vmem:[%s22923_s0 + $0x1e2] sm:$0xff] }
 0x3f6   :  { %4703 = vst.msk [vmem:[#allocation2 + $0x168] sm:$0xff] %vm4657_vm0, %v4642_v31  ;;  %v4580_v48 = vmul.f32 %v20238_v43, %v4516_v41  ;;  %v20636_v8 = vpop.permute.xlu0 %830  ;;  %870 = vperm.xlu1 %17334, %v20452_v57   ;;  %v452_v34 = vmul.f32 %v20106_v5, %v351_v28  ;;  %v17340_v56 = vld [vmem:[%s22926_s3 + $0x28] sm:$0xff]   ;;  %v96_v41 = vld [vmem:[%s22923_s0 + $0x1d8] sm:$0x3f] }
 0x3f7   :  { %v4579_v53 = vmul.f32 %v20238_v43, %v4515_v13  ;;  %v4457_v44 = vadd.f32 %v20222_v58, %v4390_v45  ;;  %865 = vperm.xlu0 %17333, %v20459_v50   ;;  %v4726_v13 = vld [vmem:[#allocation2 + $0x38] sm:$0xff]  ;;  %v4728_v28 = vld [vmem:[#allocation2 + $0x48] sm:$0xff] }
 0x3f8   :  { %v4644_v54 = vadd.f32 %v20251_v40, %v4580_v48  ;;  %v20723_v48 = vld [vmem:[%s22924_s1] ss:$0 sm:$0xff] }
 0x3f9   :  { %v4643_v4 = vadd.f32 %v20251_v40, %v4579_v53  ;;  %v4517_v19 = vmax.f32 %v4457_v44, 0.0  ;;  %v836_v1 = vpop.permute.xlu1 %835  ;;  %v20729_v44 = vld [vmem:[%s22924_s1 + $0x1] ss:$0 sm:$0xff] }
 0x3fa   :  { %4705 = vst.msk [vmem:[#allocation2 + $0x178] sm:$0xff] %vm4657_vm0, %v4644_v54  ;;  %v937_v62 = vmul.f32 %v20095_v0, %v836_v1  ;;  %v356_v20 = vpop.permute.xlu0 %355  ;;  %1355 = vperm.xlu1 %17334, %v20492_v47  }
 0x3fb   :  { %4704 = vst.msk [vmem:[#allocation2 + $0x170] sm:$0xff] %vm4657_vm0, %v4643_v4  ;;  %v4581_v58 = vmul.f32 %v20238_v43, %v4517_v19  ;;  %1350 = vperm.xlu0 %17333, %v20497_v36   ;;  %v453_v16 = vmul.f32 %v20106_v5, %v356_v20  ;;  %v581_v20 = vld [vmem:[%s22923_s0 + $0x1d9] sm:$0x3f] }
 0x3fc   :  { %v997_v57 = vadd.f32 %v937_v62, %v452_v34  ;;  %v4727_v62 = vld [vmem:[#allocation2 + $0x40] sm:$0xff] }
 0x3fd   :  { %v4645_v50 = vadd.f32 %v20251_v40, %v4581_v58  ;;  %v20652_v32 = vpop.permute.xlu1 %1315  ;;  %v4851_v40 = vld [vmem:[#allocation2 + $0x161] sm:$0xff] }
 0x3fe   :  { %v841_v18 = vpop.permute.xlu0 %840  ;;  %1840 = vperm.xlu1 %17334, %v20521_v49  }
 0x3ff   :  { %4706 = vst.msk [vmem:[#allocation2 + $0x180] sm:$0xff] %vm4657_vm0, %v4645_v50  ;;  %v938_v47 = vmul.f32 %v20095_v0, %v841_v18  ;;  %1835 = vperm.xlu0 %17333, %v20530_v59  }
 0x401   :  { %v998_v10 = vadd.f32 %v938_v47, %v453_v16  ;;  %v1326_v43 = vpop.permute.xlu1 %1325  ;;  %v4730_v47 = vld [vmem:[#allocation2 + $0x58] sm:$0xff] }
 0x402   :  { %v1423_v36 = vmul.f32 %v20113_v37, %v1326_v43  ;;  %v1321_v17 = vpop.permute.xlu0 %1320  ;;  %2325 = vperm.xlu1 %17334, %v20567_v30   ;;  %v4852_v35 = vld [vmem:[#allocation2 + $0x169] sm:$0xff]  ;;  %v4853_v30 = vld [vmem:[#allocation2 + $0x171] sm:$0xff] }
 0x403   :  { %v1422_v22 = vmul.f32 %v20113_v37, %v1321_v17  ;;  %2320 = vperm.xlu0 %17333, %v20575_v38   ;;  %v4885_v49 = vpack.c.bf16 %v4852_v35, %v4851_v40  ;;  %v4732_v43 = vld [vmem:[#allocation2 + $0x68] sm:$0xff]  ;;  %v4729_v35 = vld [vmem:[#allocation2 + $0x50] sm:$0xff] }
 0x404   :  { %v20663_v12 = vadd.f32 %v1423_v36, %v998_v10 }
 0x405   :  { %v20665_v5 = vadd.f32 %v1422_v22, %v997_v57  ;;  %15304 = vmatprep.mubr.msk.bf16.mxu0 %vm4657_vm0, %v4885_v49  ;;  %v20668_v0 = vpop.permute.xlu1 %1805  ;;  %v4779_v57 = vpack.c.bf16 %v4728_v28, %v4727_v62  ;;  %v4780_v22 = vpack.c.bf16 %v4730_v47, %v4729_v35  ;;  %v4731_v49 = vld [vmem:[#allocation2 + $0x60] sm:$0xff] }
 0x406   :  { %v20670_v21 = vpop.permute.xlu0 %1800  ;;  %2810 = vperm.xlu1 %17334, %v20611_v9   ;;  %v4854_v42 = vld [vmem:[#allocation2 + $0x179] sm:$0xff]  ;;  %v4781_v3 = vpack.c.bf16 %v4732_v43, %v4731_v49  ;;  %v451_v43 = vmul.f32 %v20723_v48, %v20625_v46  ;;  %v20839_v46 = vld [vmem:[%s22924_s1 + $0x3] ss:$0 sm:$0xff] }
 0x407   :  { %2805 = vperm.xlu0 %17333, %v20616_v2   ;;  %v4886_v37 = vpack.c.bf16 %v4854_v42, %v4853_v30  ;;  %v4739_v28 = vld [vmem:[#allocation2 + $0xa0] sm:$0xff]  ;;  %v1906_v49 = vmul.f32 %v20839_v46, %v20670_v21 }
 0x408   :  { %v20855_v21 = vld [vmem:[%s22924_s1 + $0x5] ss:$0 sm:$0xff] }
 0x409   :  { %15305 = vmatmul.mubr.msk.bf16.gmra.mrb[44].mxu0 %vm4657_vm0, %v4886_v37  ;;  %v20683_v24 = vpop.permute.xlu1 %2285  ;;  %v4734_v37 = vld [vmem:[#allocation2 + $0x78] sm:$0xff] }
 0x40a   :  { %15320 = vmatprep.mubr.msk.bf16.mxu0 %vm4657_vm0, %v4775_v39  ;;  %v20686_v9 = vpop.permute.xlu0 %1810  ;;  %3295 = vperm.xlu1 %17334, %v3004_v60   ;;  %v4736_v39 = vld [vmem:[#allocation2 + $0x88] sm:$0xff]  ;;  %v4782_v55 = vpack.c.bf16 %v4734_v37, %v4733_v14  ;;  %v4746_v37 = vld [vmem:[#allocation2 + $0xd8] sm:$0xff] }
 0x40b   :  { %3290 = vperm.xlu0 %17333, %v20680_v52   ;;  %v4748_v14 = vld [vmem:[#allocation2 + $0xe8] sm:$0xff] }
 0x40d   :  { %v20697_v63 = vpop.permute.xlu1 %2295 }
 0x40e   :  { %v20699_v15 = vpop.permute.xlu0 %2290  ;;  %3780 = vperm.xlu1 %17334, %v3489_v6  }
 0x40f   :  { %3775 = vperm.xlu0 %17333, %v20695_v27  }
 0x411   :  { %15321 = vmatmul.mubr.msk.bf16.vlgmr.msra.gmra.mrb[0].mxu0 %vm4657_vm0, %v4776_v7  ;;  %v366_v61 = vpop.permute.xlu1 %365  ;;  %v4783_v7 = vpack.c.bf16 %v4736_v39, %v4735_v51 }
 0x412   :  { %15324 = vmatprep.mubr.msk.bf16.mxu0 %vm4657_vm0, %v4777_v26  ;;  %v361_v31 = vpop.permute.xlu0 %360  ;;  %4265 = vperm.xlu1 %17334, %v3974_v23   ;;  %v455_v53 = vmul.f32 %v20723_v48, %v366_v61  ;;  %v3005_v26 = vld [vmem:[%s22923_s0 + $0x1f0] sm:$0xff] }
 0x413   :  { %4260 = vperm.xlu0 %17333, %v20708_v25   ;;  %15377 = vmatpush3.bf16.msra.mxu0 %v20584_v29  ;;  %v4725_v29 = vld [vmem:[#allocation2 + $0x30] sm:$0xff]  ;;  %v454_v19 = vmul.f32 %v20723_v48, %v361_v31  ;;  %v4740_v31 = vld [vmem:[#allocation2 + $0xa8] sm:$0xff] }
 0x414   :  { %15378 = vmatprep.subr.bf16.mxu0 %v17340_v56  ;;  %v4778_v34 = vpack.c.bf16 %v4726_v13, %v4725_v29  ;;  %v4737_v13 = vld [vmem:[#allocation2 + $0x90] sm:$0xff] }
 0x415   :  { %v851_v45 = vpop.permute.xlu1 %850 }
 0x416   :  { %v940_v54 = vmul.f32 %v20729_v44, %v851_v45  ;;  %v846_v4 = vpop.permute.xlu0 %845  ;;  %395 = vperm.xlu1 %17334, %v96_v41  }
 0x417   :  { %v939_v1 = vmul.f32 %v20729_v44, %v846_v4  ;;  %390 = vperm.xlu0 %17333, %v20530_v59   ;;  %15379 = vmatpush3.bf16.msra.mxu0 %v17340_v56  ;;  %v1066_v59 = vld [vmem:[%s22923_s0 + $0x1da] sm:$0x3f] }
 0x418   :  { %v20738_v58 = vadd.f32 %v940_v54, %v455_v53  ;;  %v4738_v56 = vld [vmem:[#allocation2 + $0x98] sm:$0xff]  ;;  %v4785_v53 = vpack.c.bf16 %v4740_v31, %v4739_v28 }
 0x419   :  { %v20740_v50 = vadd.f32 %v939_v1, %v454_v19  ;;  %15325 = vmatmul.mubr.msk.bf16.gmra.mrb[4].mxu0 %vm4657_vm0, %v4778_v34  ;;  %v371_v18 = vpop.permute.xlu1 %370  ;;  %v4784_v45 = vpack.c.bf16 %v4738_v56, %v4737_v13  ;;  %v3490_v54 = vld [vmem:[%s22923_s0 + $0x1f1] sm:$0xff]  ;;  %v3976_v19 = vld [vmem:[%s22923_s0 + $0x1fa] sm:$0x3f] }
 0x41a   :  { %15328 = vmatprep.mubr.msk.bf16.mxu0 %vm4657_vm0, %v4779_v57  ;;  %v20744_v16 = vpop.permute.xlu0 %2770  ;;  %880 = vperm.xlu1 %17334, %v581_v20   ;;  %v456_v36 = vmul.f32 %v20723_v48, %v371_v18  ;;  %v3975_v1 = vld [vmem:[%s22923_s0 + $0x1f2] sm:$0xff]  ;;  %v4744_v20 = vld [vmem:[#allocation2 + $0xc8] sm:$0xff]  ;;  %v936_v57 = vmul.f32 %v20729_v44, %v20636_v8 }
 0x41b   :  { %875 = vperm.xlu0 %17333, %v20575_v38   ;;  %v1551_v38 = vld [vmem:[%s22923_s0 + $0x1e8] sm:$0x3f]  ;;  %v4742_v34 = vld [vmem:[#allocation2 + $0xb8] sm:$0xff]  ;;  %v2876_v51 = vmul.f32 %v20855_v21, %v20744_v16 }
 0x41d   :  { %v856_v10 = vpop.permute.xlu1 %855 }
 0x41e   :  { %v941_v17 = vmul.f32 %v20729_v44, %v856_v10  ;;  %v20752_v40 = vpop.permute.xlu0 %375  ;;  %1365 = vperm.xlu1 %17334, %v1066_v59   ;;  %v4741_v59 = vld [vmem:[#allocation2 + $0xb0] sm:$0xff]  ;;  %v4743_v10 = vld [vmem:[#allocation2 + $0xc0] sm:$0xff] }
 0x41f   :  { %1360 = vperm.xlu0 %17333, %v20616_v2   ;;  %v2036_v2 = vld [vmem:[%s22923_s0 + $0x1e9] sm:$0x3f]  ;;  %v20819_v47 = vpack.c.bf16 %v4742_v34, %v4741_v59  ;;  %v20830_v8 = vpack.c.bf16 %v4744_v20, %v4743_v10 }
 0x420   :  { %v20758_v33 = vadd.f32 %v941_v17, %v456_v36  ;;  %v20826_v36 = vld [vmem:[%s22924_s1 + $0x2] ss:$0 sm:$0xff] }
 0x421   :  { %15329 = vmatmul.mubr.msk.bf16.gmra.mrb[8].mxu0 %vm4657_vm0, %v4780_v22  ;;  %v20761_v30 = vpop.permute.xlu1 %2775  ;;  %v1421_v17 = vmul.f32 %v20826_v36, %v20652_v32  ;;  %v996_v22 = vadd.f32 %v936_v57, %v451_v43  ;;  %v4752_v57 = vld [vmem:[#allocation2 + $0x108] sm:$0xff] }
 0x422   :  { %15332 = vmatprep.mubr.msk.bf16.mxu0 %vm4657_vm0, %v4781_v3  ;;  %v20764_v42 = vpop.permute.xlu0 %860  ;;  %1850 = vperm.xlu1 %17334, %v1551_v38   ;;  %v20848_v3 = vld [vmem:[%s22924_s1 + $0x4] ss:$0 sm:$0xff] }
 0x423   :  { %1845 = vperm.xlu0 %17333, %v20680_v52   ;;  %v2521_v52 = vld [vmem:[%s22923_s0 + $0x1ea] sm:$0x3f]  ;;  %v1481_v38 = vadd.f32 %v1421_v17, %v996_v22  ;;  %v2392_v34 = vmul.f32 %v20848_v3, %v20699_v15  ;;  %v4749_v22 = vld [vmem:[#allocation2 + $0xf0] sm:$0xff] }
 0x425   :  { %v20770_v60 = vpop.permute.xlu1 %1330 }
 0x426   :  { %v20772_v6 = vpop.permute.xlu0 %2780  ;;  %2335 = vperm.xlu1 %17334, %v2036_v2   ;;  %v2391_v2 = vmul.f32 %v20848_v3, %v20683_v24  ;;  %v20866_v24 = vld [vmem:[%s22924_s1 + $0x6] ss:$0 sm:$0xff] }
 0x427   :  { %2330 = vperm.xlu0 %17333, %v20695_v27   ;;  %v3006_v27 = vld [vmem:[%s22923_s0 + $0x1f8] sm:$0x3f]  ;;  %v2878_v10 = vmul.f32 %v20855_v21, %v20772_v6 }
 0x429   :  { %15333 = vmatmul.mubr.msk.bf16.gmra.mrb[12].mxu0 %vm4657_vm0, %v4782_v55  ;;  %v20779_v11 = vpop.permute.xlu1 %3255  ;;  %v1966_v55 = vadd.f32 %v1906_v49, %v1481_v38  ;;  %v2877_v49 = vmul.f32 %v20855_v21, %v20761_v30 }
 0x42a   :  { %15336 = vmatprep.mubr.msk.bf16.mxu0 %vm4657_vm0, %v4783_v7  ;;  %v20782_v23 = vpop.permute.xlu0 %1335  ;;  %2820 = vperm.xlu1 %17334, %v2521_v52   ;;  %v4745_v7 = vld [vmem:[#allocation2 + $0xd0] sm:$0xff]  ;;  %v3361_v31 = vmul.f32 %v20866_v24, %v20779_v11 }
 0x42b   :  { %2815 = vperm.xlu0 %17333, %v20708_v25   ;;  %v3491_v25 = vld [vmem:[%s22923_s0 + $0x1f9] sm:$0x3f]  ;;  %v2451_v56 = vadd.f32 %v2391_v2, %v1966_v55 }
 0x42d   :  { %v20791_v61 = vpop.permute.xlu1 %1345  ;;  %v2936_v28 = vadd.f32 %v2876_v51, %v2451_v56 }
 0x42e   :  { %v20793_v41 = vpop.permute.xlu0 %1340  ;;  %3305 = vperm.xlu1 %17334, %v3006_v27   ;;  %v20861_v27 = vpack.c.bf16 %v4746_v37, %v4745_v7  ;;  %v20922_v7 = vld [vmem:[%s22925_s2] ss:$0 sm:$0xff] }
 0x42f   :  { %3300 = vperm.xlu0 %17333, %v3005_v26   ;;  %v4747_v26 = vld [vmem:[#allocation2 + $0xe0] sm:$0xff] }
 0x430   :  { %v20870_v13 = vpack.c.bf16 %v4748_v14, %v4747_v26 }
 0x431   :  { %15337 = vmatmul.mubr.msk.bf16.gmra.mrb[16].mxu0 %vm4657_vm0, %v4784_v45  ;;  %v20802_v4 = vpop.permute.xlu1 %3265  ;;  %v1908_v45 = vmul.f32 %v20839_v46, %v20686_v9  ;;  %v4750_v9 = vld [vmem:[#allocation2 + $0xf8] sm:$0xff] }
 0x432   :  { %15340 = vmatprep.mubr.msk.bf16.mxu0 %vm4657_vm0, %v4785_v53  ;;  %v20805_v29 = vpop.permute.xlu0 %3260  ;;  %3790 = vperm.xlu1 %17334, %v3491_v25   ;;  %v20881_v25 = vld [vmem:[%s22924_s1 + $0x7] ss:$0 sm:$0xff]  ;;  %v3363_v38 = vmul.f32 %v20866_v24, %v20802_v4 }
 0x433   :  { %3785 = vperm.xlu0 %17333, %v3490_v54   ;;  %v1907_v54 = vmul.f32 %v20839_v46, %v20668_v0  ;;  %v1968_v59 = vadd.f32 %v1908_v45, %v20663_v12  ;;  %v20898_v0 = vld [vmem:[%s22924_s1 + $0x8] ss:$0 sm:$0xff]  ;;  %v20906_v12 = vpack.c.bf16 %v4750_v9, %v4749_v22  ;;  %v3362_v55 = vmul.f32 %v20866_v24, %v20805_v29  ;;  %v20948_v22 = vld [vmem:[%s22925_s2 + $0x2] ss:$0 sm:$0xff] }
 0x435   :  { %v20813_v62 = vpop.permute.xlu1 %1820  ;;  %v1967_v15 = vadd.f32 %v1907_v54, %v20665_v5  ;;  %v4756_v54 = vld [vmem:[#allocation2 + $0x128] sm:$0xff] }
 0x436   :  { %v20817_v18 = vpop.permute.xlu0 %1815  ;;  %4275 = vperm.xlu1 %17334, %v3976_v19   ;;  %v2393_v19 = vmul.f32 %v20848_v3, %v20697_v63 }
 0x437   :  { %4270 = vperm.xlu0 %17333, %v3975_v1   ;;  %v3421_v1 = vadd.f32 %v3361_v31, %v2936_v28  ;;  %v2452_v14 = vadd.f32 %v2392_v34, %v1967_v15  ;;  %v4754_v28 = vld [vmem:[#allocation2 + $0x118] sm:$0xff] }
 0x438   :  { %v2453_v6 = vadd.f32 %v2393_v19, %v1968_v59 }
 0x439   :  { %15341 = vmatmul.mubr.msk.bf16.gmra.mrb[20].mxu0 %vm4657_vm0, %v20819_v47  ;;  %v20834_v35 = vpop.permute.xlu1 %1825  ;;  %v2937_v29 = vadd.f32 %v2877_v49, %v2452_v14 }
 0x43a   :  { %15344 = vmatprep.mubr.msk.bf16.mxu0 %vm4657_vm0, %v20830_v8  ;;  %v3741_v32 = vpop.permute.xlu0 %3740  ;;  %v2938_v30 = vadd.f32 %v2878_v10, %v2453_v6 }
 0x43b   :  { %v3846_v53 = vmul.f32 %v20881_v25, %v3741_v32  ;;  %v4751_v32 = vld [vmem:[#allocation2 + $0x100] sm:$0xff] }
 0x43c   :  { %v20910_v37 = vpack.c.bf16 %v4752_v57, %v4751_v32  ;;  %v3423_v31 = vadd.f32 %v3363_v38, %v2938_v30  ;;  %v4753_v57 = vld [vmem:[#allocation2 + $0x110] sm:$0xff] }
 0x43d   :  { %v3746_v39 = vpop.permute.xlu1 %3745  ;;  %v3906_v43 = vadd.f32 %v3846_v53, %v3421_v1  ;;  %v3422_v53 = vadd.f32 %v3362_v55, %v2937_v29  ;;  %v20933_v1 = vld [vmem:[%s22925_s2 + $0x1] ss:$0 sm:$0xff] }
 0x43e   :  { %v20859_v52 = vpop.permute.xlu0 %1830  ;;  %v3847_v56 = vmul.f32 %v20881_v25, %v3746_v39  ;;  %v20940_v39 = vld [vmem:[%s22926_s3 + $0x30] sm:$0xff]  }
 0x43f   :  { %15436 = vmatprep.subr.bf16.mxu0 %v20940_v39 }
 0x440   :  { %v3907_v59 = vadd.f32 %v3847_v56, %v3422_v53  ;;  %v4760_v56 = vld [vmem:[#allocation2 + $0x148] sm:$0xff] }
 0x441   :  { %15345 = vmatmul.mubr.msk.bf16.gmra.mrb[24].mxu0 %vm4657_vm0, %v20861_v27  ;;  %v20874_v16 = vpop.permute.xlu1 %2300 }
 0x442   :  { %15348 = vmatprep.mubr.msk.bf16.mxu0 %vm4657_vm0, %v20870_v13  ;;  %v3751_v11 = vpop.permute.xlu0 %3750 }
 0x443   :  { %v3848_v51 = vmul.f32 %v20881_v25, %v3751_v11 }
 0x445   :  { %v4226_v20 = vpop.permute.xlu1 %4225  ;;  %v3908_v19 = vadd.f32 %v3848_v51, %v3423_v31  ;;  %v4758_v51 = vld [vmem:[#allocation2 + $0x138] sm:$0xff] }
 0x446   :  { %v4331_v63 = vmul.f32 %v20898_v0, %v4226_v20  ;;  %v20901_v17 = vpop.permute.xlu0 %2305 }
 0x448   :  { %v4391_v2 = vadd.f32 %v4331_v63, %v3906_v43  ;;  %v20943_v43 = vpack.c.bf16 %v4754_v28, %v4753_v57  ;;  %v4755_v63 = vld [vmem:[#allocation2 + $0x120] sm:$0xff]  ;;  %v4757_v28 = vld [vmem:[#allocation2 + $0x130] sm:$0xff] }
 0x449   :  { %15349 = vmatmul.mubr.msk.bf16.gmra.mrb[28].mxu0 %vm4657_vm0, %v20906_v12  ;;  %v20916_v5 = vpop.permute.xlu1 %2315  ;;  %v20951_v32 = vpack.c.bf16 %v4756_v54, %v4755_v63  ;;  %v4759_v54 = vld [vmem:[#allocation2 + $0x140] sm:$0xff]  ;;  %v4764_v63 = vld [vmem:[#allocation2 + $0x168] sm:$0xff] }
 0x44a   :  { %v4458_v4 = vadd.f32 %v20922_v7, %v4391_v2  ;;  %15352 = vmatprep.mubr.msk.bf16.mxu0 %vm4657_vm0, %v20910_v37  ;;  %v20927_v26 = vpop.permute.xlu0 %2310 }
 0x44c   :  { %v4518_v45 = vmax.f32 %v4458_v4, 0.0 }
 0x44d   :  { %v4236_v11 = vpop.permute.xlu1 %4235 }
 0x44e   :  { %v4582_v9 = vmul.f32 %v20933_v1, %v4518_v45  ;;  %v4333_v34 = vmul.f32 %v20898_v0, %v4236_v11  ;;  %v4231_v20 = vpop.permute.xlu0 %4230  ;;  %v20967_v11 = vpack.c.bf16 %v4758_v51, %v4757_v28  ;;  %v4763_v51 = vld [vmem:[#allocation2 + $0x160] sm:$0xff] }
 0x44f   :  { %v4332_v10 = vmul.f32 %v20898_v0, %v4231_v20  ;;  %v20991_v28 = vpack.c.bf16 %v4764_v63, %v4763_v51  ;;  %v1911_v63 = vmul.f32 %v20839_v46, %v20834_v35 }
 0x450   :  { %v4646_v15 = vadd.f32 %v20948_v22, %v4582_v9  ;;  %v4393_v49 = vadd.f32 %v4333_v34, %v3908_v19  ;;  %v20970_v9 = vpack.c.bf16 %v4760_v56, %v4759_v54  ;;  %v4766_v56 = vld [vmem:[#allocation2 + $0x178] sm:$0xff] }
 0x451   :  { %v4392_v6 = vadd.f32 %v4332_v10, %v3907_v59  ;;  %15353 = vmatmul.mubr.msk.bf16.gmra.mrb[32].mxu0 %vm4657_vm0, %v20943_v43  ;;  %v2791_v38 = vpop.permute.xlu1 %2790  ;;  %v1425_v59 = vmul.f32 %v20826_v36, %v20782_v23  ;;  %v4762_v10 = vld [vmem:[#allocation2 + $0x158] sm:$0xff]  ;;  %v1909_v23 = vmul.f32 %v20839_v46, %v20817_v18  ;;  %v1426_v18 = vmul.f32 %v20826_v36, %v20793_v41 }
 0x452   :  { %4707 = vst.msk [vmem:[#allocation2 + $0x188] sm:$0xff] %vm4657_vm0, %v4646_v15  ;;  %v4460_v2 = vadd.f32 %v20922_v7, %v4393_v49  ;;  %15356 = vmatprep.mubr.msk.bf16.mxu0 %vm4657_vm0, %v20951_v32  ;;  %v2786_v14 = vpop.permute.xlu0 %2785  ;;  %v1424_v15 = vmul.f32 %v20826_v36, %v20770_v60  ;;  %v457_v60 = vmul.f32 %v20723_v48, %v20752_v40 }
 0x453   :  { %v4459_v55 = vadd.f32 %v20922_v7, %v4392_v6  ;;  %v4761_v6 = vld [vmem:[#allocation2 + $0x150] sm:$0xff]  ;;  %v1486_v51 = vadd.f32 %v1426_v18, %v20758_v33 }
 0x454   :  { %v4520_v30 = vmax.f32 %v4460_v2, 0.0  ;;  %v942_v2 = vmul.f32 %v20729_v44, %v20764_v42  ;;  %v1427_v42 = vmul.f32 %v20826_v36, %v20791_v61  ;;  %v1484_v54 = vadd.f32 %v1424_v15, %v20740_v50 }
 0x455   :  { %v4519_v4 = vmax.f32 %v4459_v55, 0.0  ;;  %v20961_v29 = vpop.permute.xlu1 %2800  ;;  %v1910_v55 = vmul.f32 %v20839_v46, %v20813_v62  ;;  %v2395_v62 = vmul.f32 %v20848_v3, %v20901_v17  ;;  %v1912_v61 = vmul.f32 %v20839_v46, %v20859_v52 }
 0x456   :  { %v4584_v31 = vmul.f32 %v20933_v1, %v4520_v30  ;;  %v20964_v45 = vpop.permute.xlu0 %2795  ;;  %v2880_v17 = vmul.f32 %v20855_v21, %v2791_v38  ;;  %v2879_v15 = vmul.f32 %v20855_v21, %v2786_v14  ;;  %v2397_v52 = vmul.f32 %v20848_v3, %v20916_v5 }
 0x457   :  { %v4583_v53 = vmul.f32 %v20933_v1, %v4519_v4  ;;  %v4765_v4 = vld [vmem:[#allocation2 + $0x170] sm:$0xff] }
 0x458   :  { %v4648_v19 = vadd.f32 %v20948_v22, %v4584_v31  ;;  %v20989_v31 = vpack.c.bf16 %v4762_v10, %v4761_v6 }
 0x459   :  { %v4647_v34 = vadd.f32 %v20948_v22, %v4583_v53  ;;  %15357 = vmatmul.mubr.msk.bf16.gmra.mrb[36].mxu0 %vm4657_vm0, %v20967_v11  ;;  %v3276_v20 = vpop.permute.xlu1 %3275  ;;  %v1485_v53 = vadd.f32 %v1425_v59, %v20738_v58  ;;  %v1002_v58 = vadd.f32 %v942_v2, %v457_v60  ;;  %v4855_v41 = vld [vmem:[#allocation2 + $0x181] sm:$0xff] }
 0x45a   :  { %4709 = vst.msk [vmem:[#allocation2 + $0x198] sm:$0xff] %vm4657_vm0, %v4648_v19  ;;  %15360 = vmatprep.mubr.msk.bf16.mxu0 %vm4657_vm0, %v20970_v9  ;;  %v3271_v57 = vpop.permute.xlu0 %3270  ;;  %v2394_v19 = vmul.f32 %v20848_v3, %v20874_v16  ;;  %v1969_v16 = vadd.f32 %v1909_v23, %v1484_v54  ;;  %v3365_v38 = vmul.f32 %v20866_v24, %v3276_v20  ;;  %v4768_v14 = vld [vmem:[#allocation2 + $0x188] sm:$0xff] }
 0x45b   :  { %4708 = vst.msk [vmem:[#allocation2 + $0x190] sm:$0xff] %vm4657_vm0, %v4647_v34  ;;  %v21007_v34 = vpack.c.bf16 %v4766_v56, %v4765_v4  ;;  %v1970_v59 = vadd.f32 %v1910_v55, %v1485_v53  ;;  %v1487_v2 = vadd.f32 %v1427_v42, %v1002_v58  ;;  %v2396_v56 = vmul.f32 %v20848_v3, %v20927_v26 }
 0x45c   :  { %v2454_v4 = vadd.f32 %v2394_v19, %v1969_v16  ;;  %v3364_v23 = vmul.f32 %v20866_v24, %v3271_v57  ;;  %v2882_v42 = vmul.f32 %v20855_v21, %v20961_v29  ;;  %v2881_v54 = vmul.f32 %v20855_v21, %v20964_v45  ;;  %v4767_v57 = vld [vmem:[#allocation2 + $0x180] sm:$0xff] }
 0x45d   :  { %v3286_v49 = vpop.permute.xlu1 %3285  ;;  %v2455_v55 = vadd.f32 %v2395_v62, %v1970_v59  ;;  %v1972_v60 = vadd.f32 %v1912_v61, %v1487_v2  ;;  %v1971_v62 = vadd.f32 %v1911_v63, %v1486_v51  ;;  %v21032_v59 = vpack.c.bf16 %v4768_v14, %v4767_v57 }
 0x45e   :  { %v3281_v30 = vpop.permute.xlu0 %3280  ;;  %v2939_v33 = vadd.f32 %v2879_v15, %v2454_v4  ;;  %v3367_v58 = vmul.f32 %v20866_v24, %v3286_v49 }
 0x45f   :  { %v2940_v53 = vadd.f32 %v2880_v17, %v2455_v55  ;;  %v2457_v18 = vadd.f32 %v2397_v52, %v1972_v60  ;;  %v2456_v61 = vadd.f32 %v2396_v56, %v1971_v62  ;;  %v3366_v29 = vmul.f32 %v20866_v24, %v3281_v30 }
 0x460   :  { %v3424_v17 = vadd.f32 %v3364_v23, %v2939_v33 }
 0x461   :  { %15361 = vmatmul.mubr.msk.bf16.gmra.mrb[40].mxu0 %vm4657_vm0, %v20989_v31  ;;  %v3761_v40 = vpop.permute.xlu1 %3760  ;;  %v3425_v19 = vadd.f32 %v3365_v38, %v2940_v53  ;;  %v2941_v16 = vadd.f32 %v2881_v54, %v2456_v61  ;;  %v4770_v52 = vld [vmem:[#allocation2 + $0x198] sm:$0xff] }
 0x462   :  { %15364 = vmatprep.mubr.msk.bf16.mxu0 %vm4657_vm0, %v20991_v28  ;;  %v3756_v50 = vpop.permute.xlu0 %3755  ;;  %v4856_v10 = vld [vmem:[#allocation2 + $0x189] sm:$0xff]  ;;  %v3850_v5 = vmul.f32 %v20881_v25, %v3761_v40 }
 0x463   :  { %v4887_v6 = vpack.c.bf16 %v4856_v10, %v4855_v41  ;;  %v3849_v26 = vmul.f32 %v20881_v25, %v3756_v50  ;;  %v2942_v41 = vadd.f32 %v2882_v42, %v2457_v18  ;;  %v4769_v55 = vld [vmem:[#allocation2 + $0x190] sm:$0xff]  ;;  %v3426_v38 = vadd.f32 %v3366_v29, %v2941_v16 }
 0x464   :  { %v3910_v10 = vadd.f32 %v3850_v5, %v3425_v19  ;;  %v21047_v5 = vpack.c.bf16 %v4770_v52, %v4769_v55  ;;  %v4857_v52 = vld [vmem:[#allocation2 + $0x191] sm:$0xff] }
 0x465   :  { %15308 = vmatprep.mubr.msk.bf16.mxu1 %vm4657_vm0, %v4887_v6  ;;  %v3771_v35 = vpop.permute.xlu1 %3770  ;;  %v3909_v63 = vadd.f32 %v3849_v26, %v3424_v17  ;;  %v3427_v6 = vadd.f32 %v3367_v58, %v2942_v41 }
 0x466   :  { %v3766_v20 = vpop.permute.xlu0 %3765  ;;  %v3852_v45 = vmul.f32 %v20881_v25, %v3771_v35 }
 0x467   :  { %v3851_v15 = vmul.f32 %v20881_v25, %v3766_v20 }
 0x468   :  { %v3912_v56 = vadd.f32 %v3852_v45, %v3427_v6 }
 0x469   :  { %15365 = vmatmul.mubr.msk.bf16.gmra.mrb[44].mxu0 %vm4657_vm0, %v21007_v34  ;;  %v4246_v40 = vpop.permute.xlu1 %4245  ;;  %v3911_v60 = vadd.f32 %v3851_v15, %v3426_v38 }
 0x46a   :  { %v4335_v50 = vmul.f32 %v20898_v0, %v4246_v40  ;;  %15368 = vmatprep.mubr.msk.bf16.mxu0 %vm4657_vm0, %v21032_v59  ;;  %v4241_v49 = vpop.permute.xlu0 %4240 }
 0x46b   :  { %v4334_v30 = vmul.f32 %v20898_v0, %v4241_v49 }
 0x46c   :  { %v4395_v2 = vadd.f32 %v4335_v50, %v3910_v10 }
 0x46d   :  { %v4394_v51 = vadd.f32 %v4334_v30, %v3909_v63  ;;  %v4256_v4 = vpop.permute.xlu1 %4255 }
 0x46e   :  { %v4462_v23 = vadd.f32 %v20922_v7, %v4395_v2  ;;  %v4337_v35 = vmul.f32 %v20898_v0, %v4256_v4  ;;  %v4251_v14 = vpop.permute.xlu0 %4250 }
 0x46f   :  { %v4461_v53 = vadd.f32 %v20922_v7, %v4394_v51  ;;  %v4336_v42 = vmul.f32 %v20898_v0, %v4251_v14  ;;  %v5602_v14 = vld [vmem:[#allocation2 + $0xa] sm:$0xff] }
 0x470   :  { %v4522_v20 = vmax.f32 %v4462_v23, 0.0  ;;  %v4397_v62 = vadd.f32 %v4337_v35, %v3912_v56 }
 0x471   :  { %v4521_v33 = vmax.f32 %v4461_v53, 0.0  ;;  %v4396_v54 = vadd.f32 %v4336_v42, %v3911_v60  ;;  %15369 = vmatmul.mubr.msk.bf16.gmra.mrb[48].mxu0 %vm4657_vm0, %v21047_v5  ;;  %v386_v26 = vpop.permute.xlu1 %385 }
 0x472   :  { %v4586_v57 = vmul.f32 %v20933_v1, %v4522_v20  ;;  %v4464_v18 = vadd.f32 %v20922_v7, %v4397_v62  ;;  %v381_v19 = vpop.permute.xlu0 %380 }
 0x473   :  { %v4585_v58 = vmul.f32 %v20933_v1, %v4521_v33  ;;  %v4463_v61 = vadd.f32 %v20922_v7, %v4396_v54 }
 0x474   :  { %v4650_v17 = vadd.f32 %v20948_v22, %v4586_v57  ;;  %v4524_v29 = vmax.f32 %v4464_v18, 0.0  ;;  %v5601_v18 = vld [vmem:[#allocation2 + $0x2] sm:$0xff] }
 0x475   :  { %v4649_v40 = vadd.f32 %v20948_v22, %v4585_v58  ;;  %v4523_v41 = vmax.f32 %v4463_v61, 0.0  ;;  %v871_v10 = vpop.permute.xlu1 %870  ;;  %v459_v58 = vmul.f32 %v20723_v48, %v386_v26 }
 0x476   :  { %4711 = vst.msk [vmem:[#allocation2 + $0x1a8] sm:$0xff] %vm4657_vm0, %v4650_v17  ;;  %v4588_v45 = vmul.f32 %v20933_v1, %v4524_v29  ;;  %v866_v50 = vpop.permute.xlu0 %865  ;;  %v944_v60 = vmul.f32 %v20729_v44, %v871_v10  ;;  %v5657_v17 = vpack.c.bf16 %v5602_v14, %v5601_v18 }
 0x477   :  { %4710 = vst.msk [vmem:[#allocation2 + $0x1a0] sm:$0xff] %vm4657_vm0, %v4649_v40  ;;  %v4587_v49 = vmul.f32 %v20933_v1, %v4523_v41  ;;  %v943_v33 = vmul.f32 %v20729_v44, %v866_v50  ;;  %v458_v41 = vmul.f32 %v20723_v48, %v381_v19 }
 0x478   :  { %v4652_v16 = vadd.f32 %v20948_v22, %v4588_v45  ;;  %v1004_v50 = vadd.f32 %v944_v60, %v459_v58 }
 0x479   :  { %v4651_v63 = vadd.f32 %v20948_v22, %v4587_v49  ;;  %v1356_v15 = vpop.permute.xlu1 %1355 }
 0x47a   :  { %4713 = vst.msk [vmem:[#allocation2 + $0x1b8] sm:$0xff] %vm4657_vm0, %v4652_v16  ;;  %v1351_v30 = vpop.permute.xlu0 %1350  ;;  %v1429_v61 = vmul.f32 %v20826_v36, %v1356_v15  ;;  %v1003_v16 = vadd.f32 %v943_v33, %v458_v41 }
 0x47b   :  { %4712 = vst.msk [vmem:[#allocation2 + $0x1b0] sm:$0xff] %vm4657_vm0, %v4651_v63  ;;  %v1428_v10 = vmul.f32 %v20826_v36, %v1351_v30 }
 0x47c   :  { %v1489_v19 = vadd.f32 %v1429_v61, %v1004_v50 }
 0x47d   :  { %v1841_v6 = vpop.permute.xlu1 %1840  ;;  %v4772_v2 = vld [vmem:[#allocation2 + $0x1a8] sm:$0xff] }
 0x47e   :  { %v1836_v55 = vpop.permute.xlu0 %1835  ;;  %v4858_v38 = vld [vmem:[#allocation2 + $0x199] sm:$0xff]  ;;  %v4859_v42 = vld [vmem:[#allocation2 + $0x1a1] sm:$0xff]  ;;  %v1914_v49 = vmul.f32 %v20839_v46, %v1841_v6 }
 0x47f   :  { %v4771_v51 = vld [vmem:[#allocation2 + $0x1a0] sm:$0xff]  ;;  %v21065_v4 = vpack.c.bf16 %v4858_v38, %v4857_v52  ;;  %v1913_v63 = vmul.f32 %v20839_v46, %v1836_v55  ;;  %v1488_v52 = vadd.f32 %v1428_v10, %v1003_v16 }
 0x480   :  { %v21067_v56 = vpack.c.bf16 %v4772_v2, %v4771_v51  ;;  %v5604_v2 = vld [vmem:[#allocation2 + $0x1a] sm:$0xff]  ;;  %v1974_v6 = vadd.f32 %v1914_v49, %v1489_v19  ;;  %v5610_v19 = vld [vmem:[#allocation2 + $0x4a] sm:$0xff] }
 0x481   :  { %15309 = vmatmul.mubr.msk.bf16.vlgmr.msra.gmra.mrb[0].mxu1 %vm4657_vm0, %v21065_v4  ;;  %v2326_v23 = vpop.permute.xlu1 %2325  ;;  %v4774_v35 = vld [vmem:[#allocation2 + $0x1b8] sm:$0xf] }
 0x482   :  { %15372 = vmatprep.mubr.msk.bf16.mxu0 %vm4657_vm0, %v21067_v56  ;;  %v2321_v53 = vpop.permute.xlu0 %2320  ;;  %v4860_v20 = vld [vmem:[#allocation2 + $0x1a9] sm:$0xff]  ;;  %v21082_v29 = vld [vmem:[#allocation2 + $0x1b1] sm:$0xff]  ;;  %v4862_v40 = vld [vmem:[#allocation2 + $0x1b9] sm:$0xf]  ;;  %v2399_v30 = vmul.f32 %v20848_v3, %v2326_v23 }
 0x483   :  { %v21074_v62 = vld [vmem:[#allocation2 + $0x1b0] sm:$0xff]  ;;  %v21077_v54 = vpack.c.bf16 %v4860_v20, %v4859_v42  ;;  %v4890_v15 = vpack.c.bf16 %v4862_v40, %v21082_v29  ;;  %v2398_v38 = vmul.f32 %v20848_v3, %v2321_v53  ;;  %v1973_v20 = vadd.f32 %v1913_v63, %v1488_v52  ;;  %v17342_v23 = vld [vmem:[%s22926_s3 + $0x38] sm:$0xff]  }
 0x484   :  { %v4802_v57 = vpack.c.bf16 %v4774_v35, %v21074_v62  ;;  %v5606_v35 = vld [vmem:[#allocation2 + $0x2a] sm:$0xff]  ;;  %v5603_v42 = vld [vmem:[#allocation2 + $0x12] sm:$0xff]  ;;  %v2459_v53 = vadd.f32 %v2399_v30, %v1974_v6  ;;  %v5608_v16 = vld [vmem:[#allocation2 + $0x3a] sm:$0xff] }
 0x485   :  { %15312 = vmatprep.mubr.msk.bf16.mxu1 %vm4657_vm0, %v21077_v54  ;;  %v2811_v45 = vpop.permute.xlu1 %2810  ;;  %v21098_v33 = vpack.c.bf16 %v5604_v2, %v5603_v42  ;;  %v2458_v61 = vadd.f32 %v2398_v38, %v1973_v20  ;;  %v5607_v38 = vld [vmem:[#allocation2 + $0x32] sm:$0xff] }
 0x486   :  { %15373 = vmatmul.mubr.msk.bf16.gmra.mrb[52].mxu0 %vm4657_vm0, %v4802_v57  ;;  %v2806_v26 = vpop.permute.xlu0 %2805  ;;  %v2884_v14 = vmul.f32 %v20855_v21, %v2811_v45  ;;  %v5605_v57 = vld [vmem:[#allocation2 + $0x22] sm:$0xff]  ;;  %v21116_v6 = vpack.c.bf16 %v5608_v16, %v5607_v38  ;;  %v5618_v38 = vld [vmem:[#allocation2 + $0x8a] sm:$0xff] }
 0x487   :  { %15380 = vmatprep.mubr.msk.bf16.mxu0 %vm4657_vm0, %v5657_v17  ;;  %v2883_v55 = vmul.f32 %v20855_v21, %v2806_v26  ;;  %v21104_v58 = vpack.c.bf16 %v5606_v35, %v5605_v57 }
 0x488   :  { %v2944_v41 = vadd.f32 %v2884_v14, %v2459_v53 }
 0x489   :  { %15313 = vmatmul.mubr.msk.bf16.gmra.mrb[4].mxu1 %vm4657_vm0, %v4890_v15  ;;  %v3296_v51 = vpop.permute.xlu1 %3295  ;;  %v2943_v50 = vadd.f32 %v2883_v55, %v2458_v61 }
 0x48a   :  { %v3291_v60 = vpop.permute.xlu0 %3290  ;;  %v3369_v18 = vmul.f32 %v20866_v24, %v3296_v51 }
 0x48b   :  { %v3368_v17 = vmul.f32 %v20866_v24, %v3291_v60 }
 0x48c   :  { %v3429_v26 = vadd.f32 %v3369_v18, %v2944_v41  ;;  %v5612_v18 = vld [vmem:[#allocation2 + $0x5a] sm:$0xff] }
 0x48d   :  { %v3781_v40 = vpop.permute.xlu1 %3780  ;;  %v3428_v63 = vadd.f32 %v3368_v17, %v2943_v50 }
 0x48e   :  { %15381 = vmatmul.mubr.msk.bf16.vlgmr.msra.gmra.mrb[0].mxu0 %vm4657_vm0, %v21098_v33  ;;  %v3854_v10 = vmul.f32 %v20881_v25, %v3781_v40  ;;  %v3776_v45 = vpop.permute.xlu0 %3775  ;;  %v5614_v40 = vld [vmem:[#allocation2 + $0x6a] sm:$0xff] }
 0x48f   :  { %15384 = vmatprep.mubr.msk.bf16.mxu0 %vm4657_vm0, %v21104_v58  ;;  %15437 = vmatpush3.bf16.msra.mxu0 %v20940_v39  ;;  %v3853_v49 = vmul.f32 %v20881_v25, %v3776_v45  ;;  %v5609_v39 = vld [vmem:[#allocation2 + $0x42] sm:$0xff]  ;;  %v5611_v45 = vld [vmem:[#allocation2 + $0x52] sm:$0xff] }
 0x490   :  { %15438 = vmatprep.subr.bf16.mxu0 %v17342_v23  ;;  %v3914_v30 = vadd.f32 %v3854_v10, %v3429_v26  ;;  %v21118_v60 = vpack.c.bf16 %v5610_v19, %v5609_v39  ;;  %v5613_v26 = vld [vmem:[#allocation2 + $0x62] sm:$0xff] }
 0x491   :  { %v4266_v15 = vpop.permute.xlu1 %4265  ;;  %v3913_v51 = vadd.f32 %v3853_v49, %v3428_v63  ;;  %v21128_v49 = vpack.c.bf16 %v5612_v18, %v5611_v45  ;;  %v21131_v63 = vpack.c.bf16 %v5614_v40, %v5613_v26 }
 0x492   :  { %v4339_v2 = vmul.f32 %v20898_v0, %v4266_v15  ;;  %v4261_v52 = vpop.permute.xlu0 %4260 }
 0x493   :  { %15439 = vmatpush3.bf16.msra.mxu0 %v17342_v23  ;;  %v4338_v35 = vmul.f32 %v20898_v0, %v4261_v52 }
 0x494   :  { %v4399_v14 = vadd.f32 %v4339_v2, %v3914_v30  ;;  %v5616_v2 = vld [vmem:[#allocation2 + $0x7a] sm:$0xff] }
 0x495   :  { %v4398_v42 = vadd.f32 %v4338_v35, %v3913_v51  ;;  %v396_v20 = vpop.permute.xlu1 %395  ;;  %v5615_v35 = vld [vmem:[#allocation2 + $0x72] sm:$0xff] }
 0x496   :  { %15385 = vmatmul.mubr.msk.bf16.gmra.mrb[4].mxu0 %vm4657_vm0, %v21116_v6  ;;  %v4466_v55 = vadd.f32 %v20922_v7, %v4399_v14  ;;  %v391_v57 = vpop.permute.xlu0 %390  ;;  %v21140_v39 = vpack.c.bf16 %v5616_v2, %v5615_v35  ;;  %v5617_v14 = vld [vmem:[#allocation2 + $0x82] sm:$0xff] }
 0x497   :  { %15388 = vmatprep.mubr.msk.bf16.mxu0 %vm4657_vm0, %v21118_v60  ;;  %v4465_v23 = vadd.f32 %v20922_v7, %v4398_v42  ;;  %v21142_v42 = vpack.c.bf16 %v5618_v38, %v5617_v14  ;;  %v460_v45 = vmul.f32 %v20723_v48, %v391_v57  ;;  %v5619_v38 = vld [vmem:[#allocation2 + $0x92] sm:$0xff] }
 0x498   :  { %v4526_v53 = vmax.f32 %v4466_v55, 0.0 }
 0x499   :  { %v4525_v61 = vmax.f32 %v4465_v23, 0.0  ;;  %v881_v17 = vpop.permute.xlu1 %880  ;;  %23106 = vst [vmem:[#allocation19_spill] sm:$0xff] %v21142_v42 }
 0x49a   :  { %v4590_v41 = vmul.f32 %v20933_v1, %v4526_v53  ;;  %v876_v10 = vpop.permute.xlu0 %875  ;;  %v946_v23 = vmul.f32 %v20729_v44, %v881_v17 }
 0x49b   :  { %v4589_v50 = vmul.f32 %v20933_v1, %v4525_v61  ;;  %v945_v18 = vmul.f32 %v20729_v44, %v876_v10  ;;  %v461_v61 = vmul.f32 %v20723_v48, %v396_v20  ;;  %v5621_v20 = vld [vmem:[#allocation2 + $0xa2] sm:$0xff] }
 0x49c   :  { %v4654_v16 = vadd.f32 %v20948_v22, %v4590_v41  ;;  %v5620_v41 = vld [vmem:[#allocation2 + $0x9a] sm:$0xff] }
 0x49d   :  { %v4653_v15 = vadd.f32 %v20948_v22, %v4589_v50  ;;  %v1366_v19 = vpop.permute.xlu1 %1365  ;;  %v1005_v35 = vadd.f32 %v945_v18, %v460_v45  ;;  %v21156_v44 = vpack.c.bf16 %v5620_v41, %v5619_v38  ;;  %v5626_v41 = vld [vmem:[#allocation2 + $0xca] sm:$0xff] }
 0x49e   :  { %15389 = vmatmul.mubr.msk.bf16.gmra.mrb[8].mxu0 %vm4657_vm0, %v21128_v49  ;;  %4715 = vst.msk [vmem:[#allocation2 + $0x1c8] sm:$0xff] %vm4657_vm0, %v4654_v16  ;;  %v1361_v30 = vpop.permute.xlu0 %1360  ;;  %v1431_v40 = vmul.f32 %v20826_v36, %v1366_v19  ;;  %v5622_v16 = vld [vmem:[#allocation2 + $0xaa] sm:$0xff] }
 0x49f   :  { %15392 = vmatprep.mubr.msk.bf16.mxu0 %vm4657_vm0, %v21131_v63  ;;  %4714 = vst.msk [vmem:[#allocation2 + $0x1c0] sm:$0xff] %vm4657_vm0, %v4653_v15  ;;  %v1430_v50 = vmul.f32 %v20826_v36, %v1361_v30  ;;  %v1006_v15 = vadd.f32 %v946_v23, %v461_v61  ;;  %v5624_v61 = vld [vmem:[#allocation2 + $0xba] sm:$0xff] }
 0x4a1   :  { %v1851_v52 = vpop.permute.xlu1 %1850  ;;  %v1491_v10 = vadd.f32 %v1431_v40, %v1006_v15  ;;  %v1490_v48 = vadd.f32 %v1430_v50, %v1005_v35 }
 0x4a2   :  { %v1846_v51 = vpop.permute.xlu0 %1845  ;;  %v1916_v17 = vmul.f32 %v20839_v46, %v1851_v52 }
 0x4a3   :  { %v1915_v14 = vmul.f32 %v20839_v46, %v1846_v51 }
 0x4a4   :  { %v1976_v30 = vadd.f32 %v1916_v17, %v1491_v10 }
 0x4a5   :  { %v2336_v55 = vpop.permute.xlu1 %2335  ;;  %v1975_v51 = vadd.f32 %v1915_v14, %v1490_v48 }
 0x4a6   :  { %15393 = vmatmul.mubr.msk.bf16.gmra.mrb[12].mxu0 %vm4657_vm0, %v21140_v39  ;;  %v2331_v53 = vpop.permute.xlu0 %2330  ;;  %v2401_v19 = vmul.f32 %v20848_v3, %v2336_v55 }
 0x4a7   :  { %15396 = vmatprep.mubr.msk.bf16.mxu0 %vm4657_vm0, %v21142_v42  ;;  %v21159_v42 = vpack.c.bf16 %v5622_v16, %v5621_v20  ;;  %v2400_v36 = vmul.f32 %v20848_v3, %v2331_v53  ;;  %v5623_v16 = vld [vmem:[#allocation2 + $0xb2] sm:$0xff] }
 0x4a8   :  { %v2461_v55 = vadd.f32 %v2401_v19, %v1976_v30  ;;  %v21172_v38 = vpack.c.bf16 %v5624_v61, %v5623_v16  ;;  %v5631_v16 = vld [vmem:[#allocation2 + $0xf2] sm:$0xff] }
 0x4a9   :  { %v2821_v26 = vpop.permute.xlu1 %2820  ;;  %v2460_v40 = vadd.f32 %v2400_v36, %v1975_v51  ;;  %v5627_v51 = vld [vmem:[#allocation2 + $0xd2] sm:$0xff] }
 0x4aa   :  { %v2816_v2 = vpop.permute.xlu0 %2815  ;;  %v2886_v52 = vmul.f32 %v20855_v21, %v2821_v26 }
 0x4ab   :  { %v2885_v23 = vmul.f32 %v20855_v21, %v2816_v2  ;;  %v5625_v21 = vld [vmem:[#allocation2 + $0xc2] sm:$0xff] }
 0x4ac   :  { %v2946_v45 = vadd.f32 %v2886_v52, %v2461_v55  ;;  %v21174_v35 = vpack.c.bf16 %v5626_v41, %v5625_v21  ;;  %v5630_v52 = vld [vmem:[#allocation2 + $0xea] sm:$0xff] }
 0x4ad   :  { %v3306_v57 = vpop.permute.xlu1 %3305  ;;  %v2945_v15 = vadd.f32 %v2885_v23, %v2460_v40 }
 0x4ae   :  { %15397 = vmatmul.mubr.msk.bf16.gmra.mrb[16].mxu0 %vm4657_vm0, %v21156_v44  ;;  %v3301_v46 = vpop.permute.xlu0 %3300  ;;  %v3371_v18 = vmul.f32 %v20866_v24, %v3306_v57  ;;  %v5628_v57 = vld [vmem:[#allocation2 + $0xda] sm:$0xff] }
 0x4af   :  { %15400 = vmatprep.mubr.msk.bf16.mxu0 %vm4657_vm0, %v21159_v42  ;;  %v3370_v3 = vmul.f32 %v20866_v24, %v3301_v46  ;;  %v21184_v55 = vpack.c.bf16 %v5628_v57, %v5627_v51 }
 0x4b0   :  { %v3431_v2 = vadd.f32 %v3371_v18, %v2946_v45  ;;  %v5629_v18 = vld [vmem:[#allocation2 + $0xe2] sm:$0xff]  ;;  %v5632_v45 = vld [vmem:[#allocation2 + $0xfa] sm:$0xff] }
 0x4b1   :  { %v3791_v53 = vpop.permute.xlu1 %3790  ;;  %v3430_v14 = vadd.f32 %v3370_v3, %v2945_v15  ;;  %v21186_v40 = vpack.c.bf16 %v5630_v52, %v5629_v18  ;;  %v21203_v15 = vpack.c.bf16 %v5632_v45, %v5631_v16  ;;  %v5646_v52 = vld [vmem:[#allocation2 + $0x16a] sm:$0xff]  ;;  %v5651_v16 = vld [vmem:[#allocation2 + $0x192] sm:$0xff] }
 0x4b2   :  { %v3856_v50 = vmul.f32 %v20881_v25, %v3791_v53  ;;  %v3786_v26 = vpop.permute.xlu0 %3785  ;;  %v21196_v53 = vld [vmem:[%s22926_s3 + $0x40] sm:$0xff]  }
 0x4b3   :  { %v3855_v17 = vmul.f32 %v20881_v25, %v3786_v26  ;;  %15496 = vmatprep.subr.bf16.mxu0 %v21196_v53  ;;  %v5634_v26 = vld [vmem:[#allocation2 + $0x10a] sm:$0xff] }
 0x4b4   :  { %v3916_v20 = vadd.f32 %v3856_v50, %v3431_v2  ;;  %v5638_v2 = vld [vmem:[#allocation2 + $0x12a] sm:$0xff] }
 0x4b5   :  { %v4276_v24 = vpop.permute.xlu1 %4275  ;;  %v3915_v48 = vadd.f32 %v3855_v17, %v3430_v14  ;;  %v5633_v17 = vld [vmem:[#allocation2 + $0x102] sm:$0xff]  ;;  %v5635_v14 = vld [vmem:[#allocation2 + $0x112] sm:$0xff] }
 0x4b6   :  { %15401 = vmatmul.mubr.msk.bf16.gmra.mrb[20].mxu0 %vm4657_vm0, %v21172_v38  ;;  %v4341_v10 = vmul.f32 %v20898_v0, %v4276_v24  ;;  %v4271_v19 = vpop.permute.xlu0 %4270  ;;  %v21205_v21 = vpack.c.bf16 %v5634_v26, %v5633_v17  ;;  %v5637_v24 = vld [vmem:[#allocation2 + $0x122] sm:$0xff]  ;;  %v5654_v26 = vld [vmem:[#allocation2 + $0x1aa] sm:$0xff] }
 0x4b7   :  { %15404 = vmatprep.mubr.msk.bf16.mxu0 %vm4657_vm0, %v21174_v35  ;;  %v4340_v25 = vmul.f32 %v20898_v0, %v4271_v19  ;;  %v5642_v19 = vld [vmem:[#allocation2 + $0x14a] sm:$0xff] }
 0x4b8   :  { %v4401_v36 = vadd.f32 %v4341_v10, %v3916_v20  ;;  %v21213_v20 = vpack.c.bf16 %v5638_v2, %v5637_v24  ;;  %v5640_v10 = vld [vmem:[#allocation2 + $0x13a] sm:$0xff] }
 0x4b9   :  { %v4400_v30 = vadd.f32 %v4340_v25, %v3915_v48  ;;  %v5639_v48 = vld [vmem:[#allocation2 + $0x132] sm:$0xff]  ;;  %v5656_v24 = vld [vmem:[#allocation2 + $0x1ba] sm:$0xf] }
 0x4ba   :  { %v4468_v46 = vadd.f32 %v20922_v7, %v4401_v36  ;;  %v21219_v25 = vpack.c.bf16 %v5640_v10, %v5639_v48  ;;  %v5641_v36 = vld [vmem:[#allocation2 + $0x142] sm:$0xff]  ;;  %v6099_v10 = vld [vmem:[#allocation2 + $0x18] sm:$0xff]  ;;  %v6098_v48 = vld [vmem:[#allocation2 + $0x10] sm:$0xff] }
 0x4bb   :  { %v4467_v23 = vadd.f32 %v20922_v7, %v4400_v30  ;;  %v21221_v57 = vpack.c.bf16 %v5642_v19, %v5641_v36  ;;  %v5644_v30 = vld [vmem:[#allocation2 + $0x15a] sm:$0xff]  ;;  %v6154_v36 = vpack.c.bf16 %v6099_v10, %v6098_v48  ;;  %v6109_v10 = vld [vmem:[#allocation2 + $0x68] sm:$0xff] }
 0x4bc   :  { %v4528_v61 = vmax.f32 %v4468_v46, 0.0  ;;  %v5643_v46 = vld [vmem:[#allocation2 + $0x152] sm:$0xff]  ;;  %v6108_v48 = vld [vmem:[#allocation2 + $0x60] sm:$0xff] }
 0x4bd   :  { %v4527_v3 = vmax.f32 %v4467_v23, 0.0  ;;  %v21227_v51 = vpack.c.bf16 %v5644_v30, %v5643_v46  ;;  %v5645_v23 = vld [vmem:[#allocation2 + $0x162] sm:$0xff] }
 0x4be   :  { %15405 = vmatmul.mubr.msk.bf16.gmra.mrb[24].mxu0 %vm4657_vm0, %v21184_v55  ;;  %v4592_v0 = vmul.f32 %v20933_v1, %v4528_v61  ;;  %v21229_v18 = vpack.c.bf16 %v5646_v52, %v5645_v23  ;;  %v5648_v61 = vld [vmem:[#allocation2 + $0x17a] sm:$0xff]  ;;  %v6101_v30 = vld [vmem:[#allocation2 + $0x28] sm:$0xff] }
 0x4bf   :  { %15408 = vmatprep.mubr.msk.bf16.mxu0 %vm4657_vm0, %v21186_v40  ;;  %v4591_v7 = vmul.f32 %v20933_v1, %v4527_v3  ;;  %v5636_v1 = vld [vmem:[#allocation2 + $0x11a] sm:$0xff]  ;;  %v5650_v3 = vld [vmem:[#allocation2 + $0x18a] sm:$0xff] }
 0x4c0   :  { %v4656_v41 = vadd.f32 %v20948_v22, %v4592_v0  ;;  %v5647_v0 = vld [vmem:[#allocation2 + $0x172] sm:$0xff]  ;;  %v6100_v46 = vld [vmem:[#allocation2 + $0x20] sm:$0xff] }
 0x4c1   :  { %v4655_v50 = vadd.f32 %v20948_v22, %v4591_v7  ;;  %v21211_v22 = vpack.c.bf16 %v5636_v1, %v5635_v14  ;;  %v21235_v7 = vpack.c.bf16 %v5648_v61, %v5647_v0  ;;  %v5653_v1 = vld [vmem:[#allocation2 + $0x1a2] sm:$0xff]  ;;  %v21251_v14 = vld [vmem:[#allocation2 + $0x1b2] sm:$0xff]  ;;  %v21256_v23 = vpack.c.bf16 %v6101_v30, %v6100_v46 }
 0x4c2   :  { %4718 = vst.msk [vmem:[#allocation2 + $0x1d8] sm:$0x3f] %vm4717_vm1, %v4656_v41  ;;  %v5649_v41 = vld [vmem:[#allocation2 + $0x182] sm:$0xff]  ;;  %v21245_v2 = vpack.c.bf16 %v5654_v26, %v5653_v1  ;;  %v5684_v19 = vpack.c.bf16 %v5656_v24, %v21251_v14  ;;  %v6103_v52 = vld [vmem:[#allocation2 + $0x38] sm:$0xff]  ;;  %v6102_v61 = vld [vmem:[#allocation2 + $0x30] sm:$0xff] }
 0x4c3   :  { %4716 = vst.msk [vmem:[#allocation2 + $0x1d0] sm:$0xff] %vm4657_vm0, %v4655_v50  ;;  %v21237_v45 = vpack.c.bf16 %v5650_v3, %v5649_v41  ;;  %v5652_v50 = vld [vmem:[#allocation2 + $0x19a] sm:$0xff]  ;;  %v17344_v3 = vld [vmem:[%s22926_s3 + $0x48] sm:$0xff]   ;;  %v21261_v0 = vpack.c.bf16 %v6103_v52, %v6102_v61  ;;  %v6106_v1 = vld [vmem:[#allocation2 + $0x50] sm:$0xff] }
 0x4c4   :  { %v21243_v17 = vpack.c.bf16 %v5652_v50, %v5651_v16  ;;  %v6105_v41 = vld [vmem:[#allocation2 + $0x48] sm:$0xff]  ;;  %v6107_v50 = vld [vmem:[#allocation2 + $0x58] sm:$0xff]  ;;  %v6104_v26 = vld [vmem:[#allocation2 + $0x40] sm:$0xff] }
 0x4c5   :  { %v21268_v16 = vpack.c.bf16 %v6105_v41, %v6104_v26  ;;  %v21270_v24 = vpack.c.bf16 %v6107_v50, %v6106_v1  ;;  %v6113_v52 = vld [vmem:[#allocation2 + $0x88] sm:$0xff]  ;;  %v6115_v46 = vld [vmem:[#allocation2 + $0x98] sm:$0xff]  ;;  %v6112_v61 = vld [vmem:[#allocation2 + $0x80] sm:$0xff] }
 0x4c6   :  { %15409 = vmatmul.mubr.msk.bf16.gmra.mrb[28].mxu0 %vm4657_vm0, %v21203_v15  ;;  %v6114_v41 = vld [vmem:[#allocation2 + $0x90] sm:$0xff]  ;;  %v6117_v26 = vld [vmem:[#allocation2 + $0xa8] sm:$0xff]  ;;  %v6116_v1 = vld [vmem:[#allocation2 + $0xa0] sm:$0xff] }
 0x4c7   :  { %15412 = vmatprep.mubr.msk.bf16.mxu0 %vm4657_vm0, %v21205_v21  ;;  %v21286_v50 = vpack.c.bf16 %v6115_v46, %v6114_v41  ;;  %v6599_v46 = vld [vmem:[#allocation2 + $0x31] sm:$0xff] }
 0x4ce   :  { %15413 = vmatmul.mubr.msk.bf16.gmra.mrb[32].mxu0 %vm4657_vm0, %v21211_v22 }
 0x4cf   :  { %15416 = vmatprep.mubr.msk.bf16.mxu0 %vm4657_vm0, %v21213_v20 }
 0x4d6   :  { %15417 = vmatmul.mubr.msk.bf16.gmra.mrb[36].mxu0 %vm4657_vm0, %v21219_v25 }
 0x4d7   :  { %15420 = vmatprep.mubr.msk.bf16.mxu0 %vm4657_vm0, %v21221_v57 }
 0x4de   :  { %15421 = vmatmul.mubr.msk.bf16.gmra.mrb[40].mxu0 %vm4657_vm0, %v21227_v51 }
 0x4df   :  { %15424 = vmatprep.mubr.msk.bf16.mxu0 %vm4657_vm0, %v21229_v18 }
 0x4e6   :  { %15425 = vmatmul.mubr.msk.bf16.gmra.mrb[44].mxu0 %vm4657_vm0, %v21235_v7 }
 0x4e7   :  { %15428 = vmatprep.mubr.msk.bf16.mxu0 %vm4657_vm0, %v21237_v45 }
 0x4ee   :  { %15429 = vmatmul.mubr.msk.bf16.gmra.mrb[48].mxu0 %vm4657_vm0, %v21243_v17 }
 0x4ef   :  { %15432 = vmatprep.mubr.msk.bf16.mxu0 %vm4657_vm0, %v21245_v2 }
 0x4f6   :  { %15433 = vmatmul.mubr.msk.bf16.gmra.mrb[52].mxu0 %vm4657_vm0, %v5684_v19  ;;  %v6111_v19 = vld [vmem:[#allocation2 + $0x78] sm:$0xff] }
 0x4f7   :  { %15440 = vmatprep.mubr.msk.bf16.mxu0 %vm4657_vm0, %v6154_v36  ;;  %v6110_v36 = vld [vmem:[#allocation2 + $0x70] sm:$0xff] }
 0x4f8   :  { %v21278_v30 = vpack.c.bf16 %v6111_v19, %v6110_v36  ;;  %v17345_v19 = vld [vmem:[%s22926_s3 + $0x50] sm:$0xff]   ;;  %v6597_v36 = vld [vmem:[#allocation2 + $0x21] sm:$0xff] }
 0x4fe   :  { %15441 = vmatmul.mubr.msk.bf16.vlgmr.msra.gmra.mrb[0].mxu0 %vm4657_vm0, %v21256_v23 }
 0x4ff   :  { %15444 = vmatprep.mubr.msk.bf16.mxu0 %vm4657_vm0, %v21261_v0  ;;  %15497 = vmatpush3.bf16.msra.mxu0 %v21196_v53  ;;  %v21276_v53 = vpack.c.bf16 %v6109_v10, %v6108_v48  ;;  %v21292_v10 = vpack.c.bf16 %v6117_v26, %v6116_v1  ;;  %v6602_v26 = vld [vmem:[#allocation2 + $0x49] sm:$0xff]  ;;  %v6604_v1 = vld [vmem:[#allocation2 + $0x59] sm:$0xff] }
 0x500   :  { %15498 = vmatprep.subr.bf16.mxu0 %v17344_v3 }
 0x503   :  { %15499 = vmatpush3.bf16.msra.mxu0 %v17344_v3  ;;  %v21284_v3 = vpack.c.bf16 %v6113_v52, %v6112_v61  ;;  %v17346_v61 = vld [vmem:[%s22926_s3 + $0x58] sm:$0xff]  }
 0x504   :  { %15556 = vmatprep.subr.bf16.mxu0 %v17345_v19 }
 0x506   :  { %15445 = vmatmul.mubr.msk.bf16.gmra.mrb[4].mxu0 %vm4657_vm0, %v21268_v16 }
 0x507   :  { %15448 = vmatprep.mubr.msk.bf16.mxu0 %vm4657_vm0, %v21270_v24 }
 0x50e   :  { %15449 = vmatmul.mubr.msk.bf16.gmra.mrb[8].mxu0 %vm4657_vm0, %v21276_v53 }
 0x50f   :  { %15452 = vmatprep.mubr.msk.bf16.mxu0 %vm4657_vm0, %v21278_v30 }
 0x516   :  { %15453 = vmatmul.mubr.msk.bf16.gmra.mrb[12].mxu0 %vm4657_vm0, %v21284_v3 }
 0x517   :  { %15456 = vmatprep.mubr.msk.bf16.mxu0 %vm4657_vm0, %v21286_v50 }
 0x51e   :  { %15457 = vmatmul.mubr.msk.bf16.gmra.mrb[16].mxu0 %vm4657_vm0, %v21292_v10 }
 0x51f   :  { %15460 = vmatprep.mubr.msk.bf16.mxu0 %vm4657_vm0, %v20819_v47 }
 0x526   :  { %15461 = vmatmul.mubr.msk.bf16.gmra.mrb[20].mxu0 %vm4657_vm0, %v20830_v8 }
 0x527   :  { %15464 = vmatprep.mubr.msk.bf16.mxu0 %vm4657_vm0, %v20861_v27 }
 0x52e   :  { %15465 = vmatmul.mubr.msk.bf16.gmra.mrb[24].mxu0 %vm4657_vm0, %v20870_v13 }
 0x52f   :  { %15468 = vmatprep.mubr.msk.bf16.mxu0 %vm4657_vm0, %v20906_v12  ;;  %v21337_v12 = vld [vmem:[#allocation2 + $0x1b8] sm:$0xff] }
 0x536   :  { %15469 = vmatmul.mubr.msk.bf16.gmra.mrb[28].mxu0 %vm4657_vm0, %v20910_v37 }
 0x537   :  { %15472 = vmatprep.mubr.msk.bf16.mxu0 %vm4657_vm0, %v20943_v43  ;;  %v6180_v43 = vpack.c.bf16 %v21337_v12, %v21074_v62  ;;  %v6598_v62 = vld [vmem:[#allocation2 + $0x29] sm:$0xff] }
 0x538   :  { %v21357_v52 = vpack.c.bf16 %v6598_v62, %v6597_v36  ;;  %v6605_v62 = vld [vmem:[#allocation2 + $0x61] sm:$0xff] }
 0x53e   :  { %15473 = vmatmul.mubr.msk.bf16.gmra.mrb[32].mxu0 %vm4657_vm0, %v20951_v32 }
 0x53f   :  { %15476 = vmatprep.mubr.msk.bf16.mxu0 %vm4657_vm0, %v20967_v11 }
 0x546   :  { %15477 = vmatmul.mubr.msk.bf16.gmra.mrb[36].mxu0 %vm4657_vm0, %v20970_v9 }
 0x547   :  { %15480 = vmatprep.mubr.msk.bf16.mxu0 %vm4657_vm0, %v20989_v31  ;;  %v21352_v31 = vld [vmem:[#allocation2 + $0x1c0] sm:$0xff] }
 0x54e   :  { %15481 = vmatmul.mubr.msk.bf16.gmra.mrb[40].mxu0 %vm4657_vm0, %v20991_v28  ;;  %v6153_v28 = vld [vmem:[#allocation2 + $0x1c8] sm:$0xf] }
 0x54f   :  { %15484 = vmatprep.mubr.msk.bf16.mxu0 %vm4657_vm0, %v21007_v34  ;;  %v6596_v34 = vld [vmem:[#allocation2 + $0x19] sm:$0xff] }
 0x554   :  { %v21325_v47 = vpop.f32.mrb[0].mxu1 }
 0x555   :  { %23107 = vst [vmem:[#allocation17_spill] sm:$0xff] %v21325_v47  ;;  %v21327_v8 = vpop.f32.mrb[1].mxu1  ;;  %v6629_v47 = vld [vmem:[#allocation2 + $0x121] sm:$0xff] }
 0x556   :  { %23108 = vst [vmem:[#allocation15_spill] sm:$0xff] %v21327_v8  ;;  %15485 = vmatmul.mubr.msk.bf16.gmra.mrb[44].mxu0 %vm4657_vm0, %v21032_v59  ;;  %v21331_v27 = vpop.f32.mrb[2].mxu1  ;;  %v6181_v59 = vpack.c.bf16 %v6153_v28, %v21352_v31 }
 0x557   :  { %23109 = vst [vmem:[#allocation13_spill] sm:$0xff] %v21331_v27  ;;  %15488 = vmatprep.mubr.msk.bf16.mxu0 %vm4657_vm0, %v21047_v5  ;;  %v21335_v13 = vpop.f32.mrb[3].mxu1  ;;  %v6595_v5 = vld [vmem:[#allocation2 + $0x11] sm:$0xff] }
 0x558   :  { %23110 = vst [vmem:[#allocation10_spill] sm:$0xff] %v21335_v13  ;;  %v6651_v48 = vpack.c.bf16 %v6596_v34, %v6595_v5  ;;  %v6603_v34 = vld [vmem:[#allocation2 + $0x51] sm:$0xff]  ;;  %v6606_v5 = vld [vmem:[#allocation2 + $0x69] sm:$0xff] }
 0x559   :  { %v6623_v13 = vld [vmem:[#allocation2 + $0xf1] sm:$0xff] }
 0x55c   :  { %v21339_v37 = vpop.f32.mrb[4].mxu1 }
 0x55d   :  { %23111 = vst [vmem:[#allocation11_spill] sm:$0xff] %v21339_v37  ;;  %v21343_v32 = vpop.f32.mrb[5].mxu1 }
 0x55e   :  { %23112 = vst [vmem:[#allocation16_spill] sm:$0xff] %v21343_v32  ;;  %15489 = vmatmul.mubr.msk.bf16.gmra.mrb[48].mxu0 %vm4657_vm0, %v21067_v56  ;;  %v21347_v11 = vpop.f32.mrb[6].mxu1  ;;  %v6600_v56 = vld [vmem:[#allocation2 + $0x39] sm:$0xff]  ;;  %v6619_v32 = vld [vmem:[#allocation2 + $0xd1] sm:$0xff] }
 0x55f   :  { %23113 = vst [vmem:[#allocation9_spill] sm:$0xff] %v21347_v11  ;;  %15492 = vmatprep.mubr.msk.bf16.mxu0 %vm4657_vm0, %v6180_v43  ;;  %v21350_v9 = vpop.f32.mrb[7].mxu1  ;;  %v21362_v41 = vpack.c.bf16 %v6600_v56, %v6599_v46  ;;  %v6601_v43 = vld [vmem:[#allocation2 + $0x41] sm:$0xff]  ;;  %v6607_v56 = vld [vmem:[#allocation2 + $0x71] sm:$0xff]  ;;  %v6610_v46 = vld [vmem:[#allocation2 + $0x89] sm:$0xff] }
 0x560   :  { %23114 = vst [vmem:[#allocation12_spill] sm:$0xff] %v21350_v9  ;;  %v21368_v28 = vpack.c.bf16 %v6602_v26, %v6601_v43  ;;  %v6609_v26 = vld [vmem:[#allocation2 + $0x81] sm:$0xff]  ;;  %v6611_v43 = vld [vmem:[#allocation2 + $0x91] sm:$0xff] }
 0x561   :  { %v6615_v9 = vld [vmem:[#allocation2 + $0xb1] sm:$0xff] }
 0x566   :  { %15493 = vmatmul.mubr.msk.bf16.gmra.mrb[52].mxu0 %vm4657_vm0, %v6181_v59  ;;  %v21370_v59 = vpack.c.bf16 %v6604_v1, %v6603_v34  ;;  %v21384_v1 = vpack.c.bf16 %v6610_v46, %v6609_v26  ;;  %v6618_v46 = vld [vmem:[#allocation2 + $0xc9] sm:$0xff]  ;;  %v6617_v26 = vld [vmem:[#allocation2 + $0xc1] sm:$0xff] }
 0x567   :  { %15500 = vmatprep.mubr.msk.bf16.mxu0 %vm4657_vm0, %v6651_v48  ;;  %v6608_v48 = vld [vmem:[#allocation2 + $0x79] sm:$0xff] }
 0x568   :  { %v21378_v36 = vpack.c.bf16 %v6608_v48, %v6607_v56  ;;  %v6616_v48 = vld [vmem:[#allocation2 + $0xb9] sm:$0xff] }
 0x569   :  { %v21394_v11 = vpack.c.bf16 %v6616_v48, %v6615_v9  ;;  %v6622_v9 = vld [vmem:[#allocation2 + $0xe9] sm:$0xff]  ;;  %v6621_v48 = vld [vmem:[#allocation2 + $0xe1] sm:$0xff] }
 0x56e   :  { %15501 = vmatmul.mubr.msk.bf16.vlgmr.msra.gmra.mrb[0].mxu0 %vm4657_vm0, %v21357_v52 }
 0x56f   :  { %15504 = vmatprep.mubr.msk.bf16.mxu0 %vm4657_vm0, %v21362_v41  ;;  %15557 = vmatpush3.bf16.msra.mxu0 %v17345_v19  ;;  %v21376_v19 = vpack.c.bf16 %v6606_v5, %v6605_v62  ;;  %v6614_v5 = vld [vmem:[#allocation2 + $0xa9] sm:$0xff]  ;;  %v6613_v62 = vld [vmem:[#allocation2 + $0xa1] sm:$0xff] }
 0x570   :  { %15558 = vmatprep.subr.bf16.mxu0 %v17346_v61  ;;  %v21392_v56 = vpack.c.bf16 %v6614_v5, %v6613_v62  ;;  %v6624_v5 = vld [vmem:[#allocation2 + $0xf9] sm:$0xff]  ;;  %v21408_v62 = vpack.c.bf16 %v6622_v9, %v6621_v48  ;;  %v6627_v9 = vld [vmem:[#allocation2 + $0x111] sm:$0xff] }
 0x571   :  { %v21410_v27 = vpack.c.bf16 %v6624_v5, %v6623_v13  ;;  %v6630_v13 = vld [vmem:[#allocation2 + $0x129] sm:$0xff]  ;;  %v6632_v5 = vld [vmem:[#allocation2 + $0x139] sm:$0xff] }
 0x572   :  { %23116 = vst [vmem:[#allocation23_spill] sm:$0xff] %v21408_v62 }
 0x573   :  { %15559 = vmatpush3.bf16.msra.mxu0 %v17346_v61  ;;  %v6612_v61 = vld [vmem:[#allocation2 + $0x99] sm:$0xff]  ;;  %23117 = vst [vmem:[#allocation14_spill] sm:$0xff] %v21410_v27 }
 0x574   :  { %v21386_v34 = vpack.c.bf16 %v6612_v61, %v6611_v43  ;;  %v6620_v61 = vld [vmem:[#allocation2 + $0xd9] sm:$0xff]  ;;  %v21400_v43 = vpack.c.bf16 %v6618_v46, %v6617_v26  ;;  %v6626_v46 = vld [vmem:[#allocation2 + $0x109] sm:$0xff]  ;;  %v6625_v26 = vld [vmem:[#allocation2 + $0x101] sm:$0xff] }
 0x575   :  { %v21402_v37 = vpack.c.bf16 %v6620_v61, %v6619_v32  ;;  %v17347_v32 = vld [vmem:[%s22926_s3 + $0x60] sm:$0xff]   ;;  %v21419_v8 = vpack.c.bf16 %v6626_v46, %v6625_v26  ;;  %v6634_v46 = vld [vmem:[#allocation2 + $0x149] sm:$0xff] }
 0x576   :  { %15505 = vmatmul.mubr.msk.bf16.gmra.mrb[4].mxu0 %vm4657_vm0, %v21368_v28  ;;  %15616 = vmatprep.subr.bf16.mxu0 %v17347_v32  ;;  %v6628_v61 = vld [vmem:[#allocation2 + $0x119] sm:$0xff]  ;;  %v6633_v26 = vld [vmem:[#allocation2 + $0x141] sm:$0xff] }
 0x577   :  { %15508 = vmatprep.mubr.msk.bf16.mxu0 %vm4657_vm0, %v21370_v59  ;;  %23115 = vst [vmem:[#allocation18_spill] sm:$0xff] %v21402_v37  ;;  %23118 = vst [vmem:[#allocation8_spill] sm:$0xff] %v21419_v8  ;;  %v21421_v48 = vpack.c.bf16 %v6628_v61, %v6627_v9  ;;  %v6636_v61 = vld [vmem:[#allocation2 + $0x159] sm:$0xff]  ;;  %v21435_v9 = vpack.c.bf16 %v6634_v46, %v6633_v26  ;;  %v6641_v46 = vld [vmem:[#allocation2 + $0x181] sm:$0xff] }
 0x578   :  { %v21457_v26 = vld [vmem:[#allocation2 + $0x1b9] sm:$0xff] }
 0x579   :  { %23119 = vst [vmem:[#allocation26_spill] sm:$0xff] %v21421_v48 }
 0x57e   :  { %15509 = vmatmul.mubr.msk.bf16.gmra.mrb[8].mxu0 %vm4657_vm0, %v21376_v19 }
 0x57f   :  { %15512 = vmatprep.mubr.msk.bf16.mxu0 %vm4657_vm0, %v21378_v36 }
 0x586   :  { %15513 = vmatmul.mubr.msk.bf16.gmra.mrb[12].mxu0 %vm4657_vm0, %v21384_v1 }
 0x587   :  { %15516 = vmatprep.mubr.msk.bf16.mxu0 %vm4657_vm0, %v21386_v34 }
 0x58e   :  { %15517 = vmatmul.mubr.msk.bf16.gmra.mrb[16].mxu0 %vm4657_vm0, %v21392_v56 }
 0x58f   :  { %15520 = vmatprep.mubr.msk.bf16.mxu0 %vm4657_vm0, %v21394_v11 }
 0x596   :  { %15521 = vmatmul.mubr.msk.bf16.gmra.mrb[20].mxu0 %vm4657_vm0, %v21400_v43 }
 0x597   :  { %15524 = vmatprep.mubr.msk.bf16.mxu0 %vm4657_vm0, %v21402_v37 }
 0x59e   :  { %15525 = vmatmul.mubr.msk.bf16.gmra.mrb[24].mxu0 %vm4657_vm0, %v21408_v62  ;;  %v6631_v62 = vld [vmem:[#allocation2 + $0x131] sm:$0xff] }
 0x59f   :  { %15528 = vmatprep.mubr.msk.bf16.mxu0 %vm4657_vm0, %v21410_v27  ;;  %v21427_v27 = vpack.c.bf16 %v6630_v13, %v6629_v47  ;;  %v21429_v37 = vpack.c.bf16 %v6632_v5, %v6631_v62  ;;  %v6638_v47 = vld [vmem:[#allocation2 + $0x169] sm:$0xff]  ;;  %v6640_v62 = vld [vmem:[#allocation2 + $0x179] sm:$0xff]  ;;  %v6637_v13 = vld [vmem:[#allocation2 + $0x161] sm:$0xff] }
 0x5a0   :  { %v21443_v5 = vpack.c.bf16 %v6638_v47, %v6637_v13  ;;  %v21464_v47 = vld [vmem:[#allocation2 + $0x1c1] sm:$0xff] }
 0x5a1   :  { %23120 = vst [vmem:[#allocation21_spill] sm:$0xff] %v21427_v27  ;;  %23121 = vst [vmem:[#allocation7_spill] sm:$0xff] %v21429_v37 }
 0x5a6   :  { %15529 = vmatmul.mubr.msk.bf16.gmra.mrb[28].mxu0 %vm4657_vm0, %v21419_v8 }
 0x5a7   :  { %15532 = vmatprep.mubr.msk.bf16.mxu0 %vm4657_vm0, %v21421_v48  ;;  %v6635_v48 = vld [vmem:[#allocation2 + $0x151] sm:$0xff] }
 0x5a8   :  { %v21437_v8 = vpack.c.bf16 %v6636_v61, %v6635_v48  ;;  %v6642_v48 = vld [vmem:[#allocation2 + $0x189] sm:$0xff] }
 0x5a9   :  { %v21451_v61 = vpack.c.bf16 %v6642_v48, %v6641_v46  ;;  %v7628_v46 = vld [vmem:[#allocation2 + $0x158] sm:$0xff] }
 0x5ae   :  { %15533 = vmatmul.mubr.msk.bf16.gmra.mrb[32].mxu0 %vm4657_vm0, %v21427_v27 }
 0x5af   :  { %15536 = vmatprep.mubr.msk.bf16.mxu0 %vm4657_vm0, %v21429_v37  ;;  %v6639_v37 = vld [vmem:[#allocation2 + $0x171] sm:$0xff] }
 0x5b0   :  { %v21445_v27 = vpack.c.bf16 %v6640_v62, %v6639_v37  ;;  %v6677_v37 = vpack.c.bf16 %v21457_v26, %v21082_v29  ;;  %v6650_v62 = vld [vmem:[#allocation2 + $0x1c9] sm:$0xf]  ;;  %v17349_v29 = vld [vmem:[%s22926_s3 + $0x70] sm:$0xff]  }
 0x5b1   :  { %v6678_v13 = vpack.c.bf16 %v6650_v62, %v21464_v47  ;;  %v7627_v62 = vld [vmem:[#allocation2 + $0x150] sm:$0xff] }
 0x5b6   :  { %15537 = vmatmul.mubr.msk.bf16.gmra.mrb[36].mxu0 %vm4657_vm0, %v21435_v9 }
 0x5b7   :  { %15540 = vmatprep.mubr.msk.bf16.mxu0 %vm4657_vm0, %v21437_v8 }
 0x5be   :  { %15541 = vmatmul.mubr.msk.bf16.gmra.mrb[40].mxu0 %vm4657_vm0, %v21443_v5 }
 0x5bf   :  { %15544 = vmatprep.mubr.msk.bf16.mxu0 %vm4657_vm0, %v21445_v27 }
 0x5c6   :  { %15545 = vmatmul.mubr.msk.bf16.gmra.mrb[44].mxu0 %vm4657_vm0, %v21451_v61 }
 0x5c7   :  { %15548 = vmatprep.mubr.msk.bf16.mxu0 %vm4657_vm0, %v21065_v4  ;;  %v17348_v4 = vld [vmem:[%s22926_s3 + $0x68] sm:$0xff]  }
 0x5ce   :  { %15549 = vmatmul.mubr.msk.bf16.gmra.mrb[48].mxu0 %vm4657_vm0, %v21077_v54  ;;  %v23122_v54 = vld [vmem:[#allocation19_spill] sm:$0xff] }
 0x5cf   :  { %15552 = vmatprep.mubr.msk.bf16.mxu0 %vm4657_vm0, %v6677_v37  ;;  %v7630_v37 = vld [vmem:[#allocation2 + $0x168] sm:$0xff] }
 0x5d6   :  { %15553 = vmatmul.mubr.msk.bf16.gmra.mrb[52].mxu0 %vm4657_vm0, %v6678_v13  ;;  %v7664_v13 = vpack.c.bf16 %v7628_v46, %v7627_v62  ;;  %v8596_v46 = vld [vmem:[#allocation2 + $0x8a] sm:$0xff] }
 0x5d7   :  { %15560 = vmatprep.mubr.msk.bf16.mxu0 %vm4657_vm0, %v21098_v33  ;;  %v21524_v33 = vld [vmem:[#allocation2 + $0x1ba] sm:$0xff] }
 0x5de   :  { %15561 = vmatmul.mubr.msk.bf16.vlgmr.msra.gmra.mrb[0].mxu0 %vm4657_vm0, %v21104_v58  ;;  %v7174_v58 = vpack.c.bf16 %v21524_v33, %v21251_v14  ;;  %v7620_v14 = vld [vmem:[#allocation2 + $0x118] sm:$0xff] }
 0x5df   :  { %15564 = vmatprep.mubr.msk.bf16.mxu0 %vm4657_vm0, %v21116_v6  ;;  %15617 = vmatpush3.bf16.msra.mxu0 %v17347_v32  ;;  %v21531_v6 = vld [vmem:[#allocation2 + $0x1c2] sm:$0xff] }
 0x5e0   :  { %15618 = vmatprep.subr.bf16.mxu0 %v17348_v4  ;;  %v7625_v32 = vld [vmem:[#allocation2 + $0x140] sm:$0xff] }
 0x5e3   :  { %15619 = vmatpush3.bf16.msra.mxu0 %v17348_v4  ;;  %v7629_v4 = vld [vmem:[#allocation2 + $0x160] sm:$0xff] }
 0x5e4   :  { %15676 = vmatprep.subr.bf16.mxu0 %v17349_v29 }
 0x5e6   :  { %15565 = vmatmul.mubr.msk.bf16.gmra.mrb[4].mxu0 %vm4657_vm0, %v21118_v60  ;;  %v7147_v60 = vld [vmem:[#allocation2 + $0x1ca] sm:$0xf] }
 0x5e7   :  { %15568 = vmatprep.mubr.msk.bf16.mxu0 %vm4657_vm0, %v21128_v49  ;;  %v7175_v49 = vpack.c.bf16 %v7147_v60, %v21531_v6  ;;  %v7634_v60 = vld [vmem:[#allocation2 + $0x188] sm:$0xff] }
 0x5ee   :  { %15569 = vmatmul.mubr.msk.bf16.gmra.mrb[8].mxu0 %vm4657_vm0, %v21131_v63  ;;  %v17350_v63 = vld [vmem:[%s22926_s3 + $0x78] sm:$0xff]  }
 0x5ef   :  { %15572 = vmatprep.mubr.msk.bf16.mxu0 %vm4657_vm0, %v21140_v39  ;;  %v7608_v39 = vld [vmem:[#allocation2 + $0xb8] sm:$0xff] }
 0x5f6   :  { %15573 = vmatmul.mubr.msk.bf16.gmra.mrb[12].mxu0 %vm4657_vm0, %v23122_v54  ;;  %v7665_v54 = vpack.c.bf16 %v7630_v37, %v7629_v4  ;;  %v8593_v37 = vld [vmem:[#allocation2 + $0x72] sm:$0xff] }
 0x5f7   :  { %15576 = vmatprep.mubr.msk.bf16.mxu0 %vm4657_vm0, %v21156_v44  ;;  %v7607_v44 = vld [vmem:[#allocation2 + $0xb0] sm:$0xff] }
 0x5fe   :  { %15577 = vmatmul.mubr.msk.bf16.gmra.mrb[16].mxu0 %vm4657_vm0, %v21159_v42  ;;  %v7610_v42 = vld [vmem:[#allocation2 + $0xc8] sm:$0xff] }
 0x5ff   :  { %15580 = vmatprep.mubr.msk.bf16.mxu0 %vm4657_vm0, %v21172_v38  ;;  %v7654_v38 = vpack.c.bf16 %v7608_v39, %v7607_v44  ;;  %v7636_v44 = vld [vmem:[#allocation2 + $0x198] sm:$0xff] }
 0x606   :  { %15581 = vmatmul.mubr.msk.bf16.gmra.mrb[20].mxu0 %vm4657_vm0, %v21174_v35  ;;  %v7609_v35 = vld [vmem:[#allocation2 + $0xc0] sm:$0xff] }
 0x607   :  { %15584 = vmatprep.mubr.msk.bf16.mxu0 %vm4657_vm0, %v21184_v55  ;;  %v7655_v55 = vpack.c.bf16 %v7610_v42, %v7609_v35  ;;  %v7635_v42 = vld [vmem:[#allocation2 + $0x190] sm:$0xff]  ;;  %v7638_v35 = vld [vmem:[#allocation2 + $0x1a8] sm:$0xff] }
 0x60e   :  { %15585 = vmatmul.mubr.msk.bf16.gmra.mrb[24].mxu0 %vm4657_vm0, %v21186_v40  ;;  %v7612_v40 = vld [vmem:[#allocation2 + $0xd8] sm:$0xff] }
 0x60f   :  { %15588 = vmatprep.mubr.msk.bf16.mxu0 %vm4657_vm0, %v21203_v15  ;;  %v7614_v15 = vld [vmem:[#allocation2 + $0xe8] sm:$0xff] }
 0x616   :  { %15589 = vmatmul.mubr.msk.bf16.gmra.mrb[28].mxu0 %vm4657_vm0, %v21205_v21  ;;  %v7611_v21 = vld [vmem:[#allocation2 + $0xd0] sm:$0xff] }
 0x617   :  { %15592 = vmatprep.mubr.msk.bf16.mxu0 %vm4657_vm0, %v21211_v22  ;;  %v7656_v22 = vpack.c.bf16 %v7612_v40, %v7611_v21  ;;  %v7642_v21 = vld [vmem:[#allocation2 + $0x1c8] sm:$0xff] }
 0x61e   :  { %15593 = vmatmul.mubr.msk.bf16.gmra.mrb[32].mxu0 %vm4657_vm0, %v21213_v20  ;;  %v7613_v20 = vld [vmem:[#allocation2 + $0xe0] sm:$0xff] }
 0x61f   :  { %15596 = vmatprep.mubr.msk.bf16.mxu0 %vm4657_vm0, %v21219_v25  ;;  %v7657_v25 = vpack.c.bf16 %v7614_v15, %v7613_v20  ;;  %v7639_v15 = vld [vmem:[#allocation2 + $0x1b0] sm:$0xff]  ;;  %v7671_v20 = vpack.c.bf16 %v7642_v21, %v21352_v31  ;;  %v23124_v31 = vld [vmem:[#allocation23_spill] sm:$0xff] }
 0x620   :  { %v8605_v21 = vld [vmem:[#allocation2 + $0xd2] sm:$0xff] }
 0x626   :  { %15597 = vmatmul.mubr.msk.bf16.gmra.mrb[36].mxu0 %vm4657_vm0, %v21221_v57  ;;  %v7616_v57 = vld [vmem:[#allocation2 + $0xf8] sm:$0xff] }
 0x627   :  { %15600 = vmatprep.mubr.msk.bf16.mxu0 %vm4657_vm0, %v21227_v51  ;;  %v7618_v51 = vld [vmem:[#allocation2 + $0x108] sm:$0xff] }
 0x62e   :  { %15601 = vmatmul.mubr.msk.bf16.gmra.mrb[40].mxu0 %vm4657_vm0, %v21229_v18  ;;  %v7615_v18 = vld [vmem:[#allocation2 + $0xf0] sm:$0xff] }
 0x62f   :  { %15604 = vmatprep.mubr.msk.bf16.mxu0 %vm4657_vm0, %v21235_v7  ;;  %v7658_v7 = vpack.c.bf16 %v7616_v57, %v7615_v18  ;;  %v7644_v57 = vld [vmem:[#allocation2 + $0x1d8] sm:$0xf]  ;;  %v17352_v18 = vld [vmem:[%s22926_s3 + $0x88] sm:$0xff]  }
 0x636   :  { %15605 = vmatmul.mubr.msk.bf16.gmra.mrb[44].mxu0 %vm4657_vm0, %v21237_v45  ;;  %v7617_v45 = vld [vmem:[#allocation2 + $0x100] sm:$0xff] }
 0x637   :  { %15608 = vmatprep.mubr.msk.bf16.mxu0 %vm4657_vm0, %v21243_v17  ;;  %v7659_v17 = vpack.c.bf16 %v7618_v51, %v7617_v45  ;;  %v8584_v45 = vld [vmem:[#allocation2 + $0x2a] sm:$0xff] }
 0x63e   :  { %15609 = vmatmul.mubr.msk.bf16.gmra.mrb[48].mxu0 %vm4657_vm0, %v21245_v2  ;;  %v17351_v2 = vld [vmem:[%s22926_s3 + $0x80] sm:$0xff]  }
 0x63f   :  { %15612 = vmatprep.mubr.msk.bf16.mxu0 %vm4657_vm0, %v7174_v58  ;;  %v7632_v58 = vld [vmem:[#allocation2 + $0x178] sm:$0xff] }
 0x646   :  { %15613 = vmatmul.mubr.msk.bf16.gmra.mrb[52].mxu0 %vm4657_vm0, %v7175_v49 }
 0x647   :  { %15620 = vmatprep.mubr.msk.bf16.mxu0 %vm4657_vm0, %v21256_v23  ;;  %v7622_v23 = vld [vmem:[#allocation2 + $0x128] sm:$0xff] }
 0x64e   :  { %15621 = vmatmul.mubr.msk.bf16.vlgmr.msra.gmra.mrb[0].mxu0 %vm4657_vm0, %v21261_v0  ;;  %v7619_v0 = vld [vmem:[#allocation2 + $0x110] sm:$0xff] }
 0x64f   :  { %15624 = vmatprep.mubr.msk.bf16.mxu0 %vm4657_vm0, %v21268_v16  ;;  %15677 = vmatpush3.bf16.msra.mxu0 %v17349_v29  ;;  %v7660_v16 = vpack.c.bf16 %v7620_v14, %v7619_v0  ;;  %v7631_v29 = vld [vmem:[#allocation2 + $0x170] sm:$0xff] }
 0x650   :  { %15678 = vmatprep.subr.bf16.mxu0 %v17350_v63  ;;  %v7666_v49 = vpack.c.bf16 %v7632_v58, %v7631_v29  ;;  %v8588_v0 = vld [vmem:[#allocation2 + $0x4a] sm:$0xff]  ;;  %v8597_v58 = vld [vmem:[#allocation2 + $0x92] sm:$0xff] }
 0x651   :  { %v8600_v29 = vld [vmem:[#allocation2 + $0xaa] sm:$0xff] }
 0x653   :  { %15679 = vmatpush3.bf16.msra.mxu0 %v17350_v63  ;;  %v7633_v63 = vld [vmem:[#allocation2 + $0x180] sm:$0xff] }
 0x654   :  { %15736 = vmatprep.subr.bf16.mxu0 %v17351_v2  ;;  %v7667_v39 = vpack.c.bf16 %v7634_v60, %v7633_v63 }
 0x656   :  { %15625 = vmatmul.mubr.msk.bf16.gmra.mrb[4].mxu0 %vm4657_vm0, %v21270_v24  ;;  %v7621_v24 = vld [vmem:[#allocation2 + $0x120] sm:$0xff] }
 0x657   :  { %15628 = vmatprep.mubr.msk.bf16.mxu0 %vm4657_vm0, %v21276_v53  ;;  %v7661_v53 = vpack.c.bf16 %v7622_v23, %v7621_v24  ;;  %v8586_v23 = vld [vmem:[#allocation2 + $0x3a] sm:$0xff]  ;;  %v8587_v24 = vld [vmem:[#allocation2 + $0x42] sm:$0xff] }
 0x65e   :  { %15629 = vmatmul.mubr.msk.bf16.gmra.mrb[8].mxu0 %vm4657_vm0, %v21278_v30  ;;  %v7624_v30 = vld [vmem:[#allocation2 + $0x138] sm:$0xff] }
 0x65f   :  { %15632 = vmatprep.mubr.msk.bf16.mxu0 %vm4657_vm0, %v21284_v3  ;;  %v7626_v3 = vld [vmem:[#allocation2 + $0x148] sm:$0xff] }
 0x660   :  { %v7663_v48 = vpack.c.bf16 %v7626_v3, %v7625_v32  ;;  %v8589_v3 = vld [vmem:[#allocation2 + $0x52] sm:$0xff] }
 0x666   :  { %15633 = vmatmul.mubr.msk.bf16.gmra.mrb[12].mxu0 %vm4657_vm0, %v21286_v50  ;;  %v7623_v50 = vld [vmem:[#allocation2 + $0x130] sm:$0xff] }
 0x667   :  { %15636 = vmatprep.mubr.msk.bf16.mxu0 %vm4657_vm0, %v21292_v10  ;;  %v7662_v10 = vpack.c.bf16 %v7624_v30, %v7623_v50  ;;  %v8592_v30 = vld [vmem:[#allocation2 + $0x6a] sm:$0xff] }
 0x66e   :  { %15637 = vmatmul.mubr.msk.bf16.gmra.mrb[16].mxu0 %vm4657_vm0, %v7654_v38  ;;  %v7637_v38 = vld [vmem:[#allocation2 + $0x1a0] sm:$0xff] }
 0x66f   :  { %15640 = vmatprep.mubr.msk.bf16.mxu0 %vm4657_vm0, %v7655_v55  ;;  %v7668_v55 = vpack.c.bf16 %v7636_v44, %v7635_v42  ;;  %v7669_v40 = vpack.c.bf16 %v7638_v35, %v7637_v38  ;;  %v8604_v42 = vld [vmem:[#allocation2 + $0xca] sm:$0xff]  ;;  %v8601_v44 = vld [vmem:[#allocation2 + $0xb2] sm:$0xff]  ;;  %v8603_v35 = vld [vmem:[#allocation2 + $0xc2] sm:$0xff] }
 0x676   :  { %15641 = vmatmul.mubr.msk.bf16.gmra.mrb[20].mxu0 %vm4657_vm0, %v7656_v22  ;;  %v7670_v22 = vpack.c.bf16 %v21337_v12, %v7639_v15  ;;  %v23123_v12 = vld [vmem:[#allocation18_spill] sm:$0xff]  ;;  %v8608_v15 = vld [vmem:[#allocation2 + $0xea] sm:$0xff] }
 0x677   :  { %15644 = vmatprep.mubr.msk.bf16.mxu0 %vm4657_vm0, %v7657_v25  ;;  %v7643_v25 = vld [vmem:[#allocation2 + $0x1d0] sm:$0xff] }
 0x678   :  { %v7672_v51 = vpack.c.bf16 %v7644_v57, %v7643_v25  ;;  %v8610_v57 = vld [vmem:[#allocation2 + $0xfa] sm:$0xff] }
 0x67e   :  { %15645 = vmatmul.mubr.msk.bf16.gmra.mrb[24].mxu0 %vm4657_vm0, %v7658_v7 }
 0x67f   :  { %15648 = vmatprep.mubr.msk.bf16.mxu0 %vm4657_vm0, %v7659_v17 }
 0x686   :  { %15649 = vmatmul.mubr.msk.bf16.gmra.mrb[28].mxu0 %vm4657_vm0, %v7660_v16  ;;  %v8585_v16 = vld [vmem:[#allocation2 + $0x32] sm:$0xff] }
 0x687   :  { %15652 = vmatprep.mubr.msk.bf16.mxu0 %vm4657_vm0, %v7661_v53  ;;  %v8590_v53 = vld [vmem:[#allocation2 + $0x5a] sm:$0xff] }
 0x688   :  { %v8642_v50 = vpack.c.bf16 %v8590_v53, %v8589_v3  ;;  %v8629_v53 = vld [vmem:[#allocation2 + $0x192] sm:$0xff]  ;;  %v8631_v3 = vld [vmem:[#allocation2 + $0x1a2] sm:$0xff] }
 0x68e   :  { %15653 = vmatmul.mubr.msk.bf16.gmra.mrb[32].mxu0 %vm4657_vm0, %v7662_v10  ;;  %v8591_v10 = vld [vmem:[#allocation2 + $0x62] sm:$0xff] }
 0x68f   :  { %15656 = vmatprep.mubr.msk.bf16.mxu0 %vm4657_vm0, %v7663_v48  ;;  %v8643_v32 = vpack.c.bf16 %v8592_v30, %v8591_v10  ;;  %v8594_v48 = vld [vmem:[#allocation2 + $0x7a] sm:$0xff]  ;;  %v8636_v10 = vld [vmem:[#allocation2 + $0x1ca] sm:$0xff] }
 0x690   :  { %v8644_v62 = vpack.c.bf16 %v8594_v48, %v8593_v37  ;;  %v8637_v37 = vld [vmem:[#allocation2 + $0x1d2] sm:$0xff] }
 0x696   :  { %15657 = vmatmul.mubr.msk.bf16.gmra.mrb[36].mxu0 %vm4657_vm0, %v7664_v13  ;;  %v8595_v13 = vld [vmem:[#allocation2 + $0x82] sm:$0xff] }
 0x697   :  { %15660 = vmatprep.mubr.msk.bf16.mxu0 %vm4657_vm0, %v7665_v54  ;;  %v8645_v4 = vpack.c.bf16 %v8596_v46, %v8595_v13  ;;  %v8598_v54 = vld [vmem:[#allocation2 + $0x9a] sm:$0xff]  ;;  %v8665_v46 = vpack.c.bf16 %v8636_v10, %v21531_v6  ;;  %v17355_v6 = vld [vmem:[%s22928_s5 + $0x30] sm:$0xff]  }
 0x698   :  { %v8646_v60 = vpack.c.bf16 %v8598_v54, %v8597_v58  ;;  %v17353_v13 = vld [vmem:[%s22928_s5 + $0x20] sm:$0xff]   ;;  %v17356_v54 = vld [vmem:[%s22928_s5 + $0x38] sm:$0xff]  }
 0x699   :  { %15796 = vmatprep.subr.bf16.mxu1 %v17353_v13  ;;  %v21687_v58 = vld [vmem:[%s22927_s4] ss:$0 sm:$0xff] }
 0x69a   :  { %15797 = vmatpush3.bf16.msra.mxu1 %v17353_v13 }
 0x69e   :  { %15661 = vmatmul.mubr.msk.bf16.gmra.mrb[40].mxu0 %vm4657_vm0, %v7666_v49  ;;  %v8599_v49 = vld [vmem:[#allocation2 + $0xa2] sm:$0xff] }
 0x69f   :  { %15664 = vmatprep.mubr.msk.bf16.mxu0 %vm4657_vm0, %v7667_v39  ;;  %v8647_v63 = vpack.c.bf16 %v8600_v29, %v8599_v49  ;;  %v8602_v39 = vld [vmem:[#allocation2 + $0xba] sm:$0xff] }
 0x6a0   :  { %v8648_v38 = vpack.c.bf16 %v8602_v39, %v8601_v44  ;;  %v21681_v29 = vld [vmem:[%s22928_s5] sm:$0xff]  }
 0x6a1   :  { %v21693_v39 = vld [vmem:[%s22927_s4 + $0x1] ss:$0 sm:$0xff] }
 0x6a6   :  { %15665 = vmatmul.mubr.msk.bf16.gmra.mrb[44].mxu0 %vm4657_vm0, %v7668_v55  ;;  %v8649_v55 = vpack.c.bf16 %v8604_v42, %v8603_v35 }
 0x6a7   :  { %15668 = vmatprep.mubr.msk.bf16.mxu0 %vm4657_vm0, %v7669_v40  ;;  %v8606_v40 = vld [vmem:[#allocation2 + $0xda] sm:$0xff] }
 0x6ae   :  { %15669 = vmatmul.mubr.msk.bf16.gmra.mrb[48].mxu0 %vm4657_vm0, %v7670_v22  ;;  %v8650_v22 = vpack.c.bf16 %v8606_v40, %v8605_v21  ;;  %v21700_v40 = vld [vmem:[%s22927_s4 + $0x2] ss:$0 sm:$0xff]  ;;  %s14095_s4 = sshll.u32 %s17468_s12, 4  ;;  %s14096_s4 = int_to_ptr.vmem [resolvable:$true] %s14095_s4 }
 0x6af   :  { %15672 = vmatprep.mubr.msk.bf16.mxu0 %vm4657_vm0, %v7671_v20  ;;  %v8607_v20 = vld [vmem:[#allocation2 + $0xe2] sm:$0xff]  ;;  %p17443_p1 = scmp.lt.s32.totalorder %s14096_s4, %s14096_s4 }
 0x6b0   :  { %v8651_v25 = vpack.c.bf16 %v8608_v15, %v8607_v20 }
 0x6b6   :  { %15673 = vmatmul.mubr.msk.bf16.gmra.mrb[52].mxu0 %vm4657_vm0, %v7672_v51  ;;  %v8612_v51 = vld [vmem:[#allocation2 + $0x10a] sm:$0xff] }
 0x6b7   :  { %15680 = vmatprep.mubr.msk.bf16.mxu0 %vm4657_vm0, %v21357_v52  ;;  %v23125_v52 = vld [vmem:[#allocation14_spill] sm:$0xff] }
 0x6be   :  { %15681 = vmatmul.mubr.msk.bf16.vlgmr.msra.gmra.mrb[0].mxu0 %vm4657_vm0, %v21362_v41  ;;  %v23126_v41 = vld [vmem:[#allocation8_spill] sm:$0xff] }
 0x6bf   :  { %15684 = vmatprep.mubr.msk.bf16.mxu0 %vm4657_vm0, %v21368_v28  ;;  %15737 = vmatpush3.bf16.msra.mxu0 %v17351_v2  ;;  %v23127_v28 = vld [vmem:[#allocation26_spill] sm:$0xff]  ;;  %v8583_v2 = vld [vmem:[#allocation2 + $0x22] sm:$0xff] }
 0x6c0   :  { %15738 = vmatprep.subr.bf16.mxu0 %v17352_v18  ;;  %v8639_v14 = vpack.c.bf16 %v8584_v45, %v8583_v2  ;;  %v8623_v45 = vld [vmem:[#allocation2 + $0x162] sm:$0xff]  ;;  %v8626_v2 = vld [vmem:[#allocation2 + $0x17a] sm:$0xff] }
 0x6c3   :  { %15739 = vmatpush3.bf16.msra.mxu0 %v17352_v18  ;;  %v8609_v18 = vld [vmem:[#allocation2 + $0xf2] sm:$0xff] }
 0x6c6   :  { %15685 = vmatmul.mubr.msk.bf16.gmra.mrb[4].mxu0 %vm4657_vm0, %v21370_v59  ;;  %v23128_v59 = vld [vmem:[#allocation21_spill] sm:$0xff] }
 0x6c7   :  { %15688 = vmatprep.mubr.msk.bf16.mxu0 %vm4657_vm0, %v21376_v19  ;;  %v8133_v19 = vld [vmem:[#allocation2 + $0x199] sm:$0xff] }
 0x6ce   :  { %15689 = vmatmul.mubr.msk.bf16.gmra.mrb[8].mxu0 %vm4657_vm0, %v21378_v36  ;;  %v8135_v36 = vld [vmem:[#allocation2 + $0x1a9] sm:$0xff] }
 0x6cf   :  { %15692 = vmatprep.mubr.msk.bf16.mxu0 %vm4657_vm0, %v21384_v1  ;;  %v8132_v1 = vld [vmem:[#allocation2 + $0x191] sm:$0xff] }
 0x6d6   :  { %15693 = vmatmul.mubr.msk.bf16.gmra.mrb[12].mxu0 %vm4657_vm0, %v21386_v34  ;;  %v8165_v34 = vpack.c.bf16 %v8133_v19, %v8132_v1  ;;  %v8615_v19 = vld [vmem:[#allocation2 + $0x122] sm:$0xff]  ;;  %v8618_v1 = vld [vmem:[#allocation2 + $0x13a] sm:$0xff] }
 0x6d7   :  { %15696 = vmatprep.mubr.msk.bf16.mxu0 %vm4657_vm0, %v21392_v56  ;;  %v8134_v56 = vld [vmem:[#allocation2 + $0x1a1] sm:$0xff] }
 0x6de   :  { %15697 = vmatmul.mubr.msk.bf16.gmra.mrb[16].mxu0 %vm4657_vm0, %v21394_v11  ;;  %v23129_v11 = vld [vmem:[#allocation7_spill] sm:$0xff] }
 0x6df   :  { %15700 = vmatprep.mubr.msk.bf16.mxu0 %vm4657_vm0, %v21400_v43  ;;  %v8166_v43 = vpack.c.bf16 %v8135_v36, %v8134_v56  ;;  %v8617_v56 = vld [vmem:[#allocation2 + $0x132] sm:$0xff] }
 0x6e6   :  { %15701 = vmatmul.mubr.msk.bf16.gmra.mrb[20].mxu0 %vm4657_vm0, %v23123_v12  ;;  %v8652_v12 = vpack.c.bf16 %v8610_v57, %v8609_v18 }
 0x6e7   :  { %15704 = vmatprep.mubr.msk.bf16.mxu0 %vm4657_vm0, %v23124_v31  ;;  %v8611_v31 = vld [vmem:[#allocation2 + $0x102] sm:$0xff] }
 0x6ee   :  { %15705 = vmatmul.mubr.msk.bf16.gmra.mrb[24].mxu0 %vm4657_vm0, %v23125_v52  ;;  %v8653_v52 = vpack.c.bf16 %v8612_v51, %v8611_v31 }
 0x6ef   :  { %15708 = vmatprep.mubr.msk.bf16.mxu0 %vm4657_vm0, %v23126_v41  ;;  %v8614_v41 = vld [vmem:[#allocation2 + $0x11a] sm:$0xff] }
 0x6f6   :  { %15709 = vmatmul.mubr.msk.bf16.gmra.mrb[28].mxu0 %vm4657_vm0, %v23127_v28  ;;  %v8616_v28 = vld [vmem:[#allocation2 + $0x12a] sm:$0xff] }
 0x6f7   :  { %15712 = vmatprep.mubr.msk.bf16.mxu0 %vm4657_vm0, %v23128_v59  ;;  %v8613_v59 = vld [vmem:[#allocation2 + $0x112] sm:$0xff]  ;;  %v8655_v36 = vpack.c.bf16 %v8616_v28, %v8615_v19 }
 0x6fe   :  { %15713 = vmatmul.mubr.msk.bf16.gmra.mrb[32].mxu0 %vm4657_vm0, %v23129_v11  ;;  %v8654_v11 = vpack.c.bf16 %v8614_v41, %v8613_v59 }
 0x6ff   :  { %15716 = vmatprep.mubr.msk.bf16.mxu0 %vm4657_vm0, %v21435_v9  ;;  %v8136_v9 = vld [vmem:[#allocation2 + $0x1b1] sm:$0xff] }
 0x706   :  { %15717 = vmatmul.mubr.msk.bf16.gmra.mrb[36].mxu0 %vm4657_vm0, %v21437_v8  ;;  %v8139_v8 = vld [vmem:[#allocation2 + $0x1c9] sm:$0xff] }
 0x707   :  { %15720 = vmatprep.mubr.msk.bf16.mxu0 %vm4657_vm0, %v21443_v5  ;;  %v8167_v5 = vpack.c.bf16 %v21457_v26, %v8136_v9  ;;  %v8168_v7 = vpack.c.bf16 %v8139_v8, %v21464_v47  ;;  %v8640_v26 = vpack.c.bf16 %v8586_v23, %v8585_v16  ;;  %v8641_v47 = vpack.c.bf16 %v8588_v0, %v8587_v24  ;;  %v8619_v8 = vld [vmem:[#allocation2 + $0x142] sm:$0xff]  ;;  %v8625_v23 = vld [vmem:[#allocation2 + $0x172] sm:$0xff]  ;;  %v8630_v24 = vld [vmem:[#allocation2 + $0x19a] sm:$0xff] }
 0x708   :  { %v8660_v0 = vpack.c.bf16 %v8626_v2, %v8625_v23  ;;  %v8627_v16 = vld [vmem:[#allocation2 + $0x182] sm:$0xff]  ;;  %v8662_v30 = vpack.c.bf16 %v8630_v24, %v8629_v53 }
 0x70e   :  { %15721 = vmatmul.mubr.msk.bf16.gmra.mrb[40].mxu0 %vm4657_vm0, %v21445_v27  ;;  %v8140_v27 = vld [vmem:[#allocation2 + $0x1d1] sm:$0xff] }
 0x70f   :  { %15724 = vmatprep.mubr.msk.bf16.mxu0 %vm4657_vm0, %v21451_v61  ;;  %v8141_v61 = vld [vmem:[#allocation2 + $0x1d9] sm:$0xf] }
 0x710   :  { %v8169_v17 = vpack.c.bf16 %v8141_v61, %v8140_v27  ;;  %v8621_v27 = vld [vmem:[#allocation2 + $0x152] sm:$0xff] }
 0x716   :  { %15725 = vmatmul.mubr.msk.bf16.gmra.mrb[44].mxu0 %vm4657_vm0, %v8165_v34  ;;  %v8620_v34 = vld [vmem:[#allocation2 + $0x14a] sm:$0xff] }
 0x717   :  { %15728 = vmatprep.mubr.msk.bf16.mxu0 %vm4657_vm0, %v8166_v43  ;;  %v8656_v43 = vpack.c.bf16 %v8618_v1, %v8617_v56  ;;  %v8657_v9 = vpack.c.bf16 %v8620_v34, %v8619_v8 }
 0x71e   :  { %15729 = vmatmul.mubr.msk.bf16.gmra.mrb[48].mxu0 %vm4657_vm0, %v8167_v5  ;;  %v8622_v5 = vld [vmem:[#allocation2 + $0x15a] sm:$0xff] }
 0x71f   :  { %15732 = vmatprep.mubr.msk.bf16.mxu0 %vm4657_vm0, %v8168_v7  ;;  %v8624_v7 = vld [vmem:[#allocation2 + $0x16a] sm:$0xff]  ;;  %v8658_v61 = vpack.c.bf16 %v8622_v5, %v8621_v27 }
 0x726   :  { %15733 = vmatmul.mubr.msk.bf16.gmra.mrb[52].mxu0 %vm4657_vm0, %v8169_v17  ;;  %v8659_v17 = vpack.c.bf16 %v8624_v7, %v8623_v45 }
 0x727   :  { %15740 = vmatprep.mubr.msk.bf16.mxu0 %vm4657_vm0, %v8639_v14  ;;  %v8628_v14 = vld [vmem:[#allocation2 + $0x18a] sm:$0xff] }
 0x72e   :  { %15741 = vmatmul.mubr.msk.bf16.vlgmr.msra.gmra.mrb[0].mxu0 %vm4657_vm0, %v8640_v26  ;;  %v8661_v26 = vpack.c.bf16 %v8628_v14, %v8627_v16 }
 0x72f   :  { %15744 = vmatprep.mubr.msk.bf16.mxu0 %vm4657_vm0, %v8641_v47  ;;  %v8632_v47 = vld [vmem:[#allocation2 + $0x1aa] sm:$0xff] }
 0x736   :  { %15745 = vmatmul.mubr.msk.bf16.gmra.mrb[4].mxu0 %vm4657_vm0, %v8642_v50  ;;  %v8663_v50 = vpack.c.bf16 %v8632_v47, %v8631_v3 }
 0x737   :  { %15748 = vmatprep.mubr.msk.bf16.mxu0 %vm4657_vm0, %v8643_v32  ;;  %v8633_v32 = vld [vmem:[#allocation2 + $0x1b2] sm:$0xff] }
 0x738   :  { %v8664_v48 = vpack.c.bf16 %v21524_v33, %v8633_v32  ;;  %v17354_v33 = vld [vmem:[%s22928_s5 + $0x28] sm:$0xff]  }
 0x739   :  { %15798 = vmatprep.subr.bf16.mxu1 %v17354_v33 }
 0x73a   :  { %15799 = vmatpush3.bf16.msra.mxu1 %v17354_v33 }
 0x73b   :  { %15800 = vmatprep.subr.bf16.mxu1 %v17355_v6 }
 0x73e   :  { %15749 = vmatmul.mubr.msk.bf16.gmra.mrb[8].mxu0 %vm4657_vm0, %v8644_v62  ;;  %v8638_v62 = vld [vmem:[#allocation2 + $0x1da] sm:$0xf]  ;;  %15801 = vmatpush3.bf16.msra.mxu1 %v17355_v6 }
 0x73f   :  { %15752 = vmatprep.mubr.msk.bf16.mxu0 %vm4657_vm0, %v8645_v4  ;;  %v8666_v4 = vpack.c.bf16 %v8638_v62, %v8637_v37  ;;  %15802 = vmatprep.subr.bf16.mxu1 %v17356_v54 }
 0x742   :  { %15803 = vmatpush3.bf16.msra.mxu1 %v17356_v54 }
 0x743   :  { %15856 = vmatprep.subr.bf16.mxu1 %v21681_v29 }
 0x746   :  { %15753 = vmatmul.mubr.msk.bf16.gmra.mrb[12].mxu0 %vm4657_vm0, %v8646_v60 }
 0x747   :  { %15756 = vmatprep.mubr.msk.bf16.mxu0 %vm4657_vm0, %v8647_v63 }
 0x74e   :  { %15757 = vmatmul.mubr.msk.bf16.gmra.mrb[16].mxu0 %vm4657_vm0, %v8648_v38 }
 0x74f   :  { %15760 = vmatprep.mubr.msk.bf16.mxu0 %vm4657_vm0, %v8649_v55 }
 0x756   :  { %15761 = vmatmul.mubr.msk.bf16.gmra.mrb[20].mxu0 %vm4657_vm0, %v8650_v22 }
 0x757   :  { %15764 = vmatprep.mubr.msk.bf16.mxu0 %vm4657_vm0, %v8651_v25 }
 0x75e   :  { %15765 = vmatmul.mubr.msk.bf16.gmra.mrb[24].mxu0 %vm4657_vm0, %v8652_v12 }
 0x75f   :  { %15768 = vmatprep.mubr.msk.bf16.mxu0 %vm4657_vm0, %v8653_v52 }
 0x766   :  { %15769 = vmatmul.mubr.msk.bf16.gmra.mrb[28].mxu0 %vm4657_vm0, %v8654_v11 }
 0x767   :  { %15772 = vmatprep.mubr.msk.bf16.mxu0 %vm4657_vm0, %v8655_v36 }
 0x76e   :  { %15773 = vmatmul.mubr.msk.bf16.gmra.mrb[32].mxu0 %vm4657_vm0, %v8656_v43 }
 0x76f   :  { %15776 = vmatprep.mubr.msk.bf16.mxu0 %vm4657_vm0, %v8657_v9 }
 0x776   :  { %15777 = vmatmul.mubr.msk.bf16.gmra.mrb[36].mxu0 %vm4657_vm0, %v8658_v61 }
 0x777   :  { %15780 = vmatprep.mubr.msk.bf16.mxu0 %vm4657_vm0, %v8659_v17 }
 0x77e   :  { %15781 = vmatmul.mubr.msk.bf16.gmra.mrb[40].mxu0 %vm4657_vm0, %v8660_v0 }
 0x77f   :  { %15784 = vmatprep.mubr.msk.bf16.mxu0 %vm4657_vm0, %v8661_v26 }
 0x786   :  { %15785 = vmatmul.mubr.msk.bf16.gmra.mrb[44].mxu0 %vm4657_vm0, %v8662_v30 }
 0x787   :  { %15788 = vmatprep.mubr.msk.bf16.mxu0 %vm4657_vm0, %v8663_v50 }
 0x78e   :  { %15789 = vmatmul.mubr.msk.bf16.gmra.mrb[48].mxu0 %vm4657_vm0, %v8664_v48 }
 0x78f   :  { %15792 = vmatprep.mubr.msk.bf16.mxu0 %vm4657_vm0, %v8665_v46 }
 0x796   :  { %15793 = vmatmul.mubr.msk.bf16.gmra.mrb[52].mxu0 %vm4657_vm0, %v8666_v4 }
 0x801   :  { %v15742_v60 = vpop.f32.mrb[0].mxu0 }
 0x802   :  { %v9089_v49 = vadd.f32 %v15742_v60, %v21687_v58  ;;  %v8801_v63 = vpop.f32.mrb[1].mxu0 }
 0x803   :  { %v9087_v42 = vadd.f32 %v21687_v58, %v8801_v63  ;;  %v15743_v44 = vpop.f32.mrb[2].mxu0 }
 0x804   :  { %v9145_v38 = vmax.f32 %v9089_v49, 0.0  ;;  %v9090_v35 = vadd.f32 %v15743_v44, %v21687_v58  ;;  %v8804_v55 = vpop.f32.mrb[3].mxu0 }
 0x805   :  { %v9143_v15 = vmax.f32 %v9087_v42, 0.0  ;;  %v9088_v21 = vadd.f32 %v21687_v58, %v8804_v55 }
 0x806   :  { %v9205_v22 = vmul.f32 %v21693_v39, %v9145_v38  ;;  %v9146_v20 = vmax.f32 %v9090_v35, 0.0 }
 0x807   :  { %v9203_v25 = vmul.f32 %v21693_v39, %v9143_v15  ;;  %v9144_v57 = vmax.f32 %v9088_v21, 0.0 }
 0x808   :  { %v9265_v51 = vadd.f32 %v21700_v40, %v9205_v22  ;;  %v9206_v18 = vmul.f32 %v21693_v39, %v9146_v20  ;;  %v17358_v20 = vld [vmem:[%s22928_s5 + $0x8] sm:$0xff]  }
 0x809   :  { %v9263_v12 = vadd.f32 %v21700_v40, %v9203_v25  ;;  %v9204_v31 = vmul.f32 %v21693_v39, %v9144_v57  ;;  %v15746_v52 = vpop.f32.mrb[4].mxu0 }
 0x80a   :  { %9322 = vst.msk [vmem:[#allocation3 + $0x10] sm:$0xff] %vm9319_vm2, %v9265_v51  ;;  %v9266_v41 = vadd.f32 %v21700_v40, %v9206_v18  ;;  %v9093_v28 = vadd.f32 %v15746_v52, %v21687_v58  ;;  %v8817_v59 = vpop.f32.mrb[5].mxu0 }
 0x80b   :  { %9320 = vst.msk [vmem:[#allocation3] sm:$0xff] %vm9319_vm2, %v9263_v12  ;;  %v9264_v11 = vadd.f32 %v21700_v40, %v9204_v31  ;;  %v9091_v19 = vadd.f32 %v21687_v58, %v8817_v59  ;;  %v15747_v36 = vpop.f32.mrb[6].mxu0 }
 0x80c   :  { %9323 = vst.msk [vmem:[#allocation3 + $0x18] sm:$0xff] %vm9319_vm2, %v9266_v41  ;;  %v9149_v1 = vmax.f32 %v9093_v28, 0.0  ;;  %v9094_v34 = vadd.f32 %v15747_v36, %v21687_v58  ;;  %v8820_v56 = vpop.f32.mrb[7].mxu0  ;;  %v17359_v36 = vld [vmem:[%s22928_s5 + $0x10] sm:$0xff]  }
 0x80d   :  { %9321 = vst.msk [vmem:[#allocation3 + $0x8] sm:$0xff] %vm9319_vm2, %v9264_v11  ;;  %v9147_v43 = vmax.f32 %v9091_v19, 0.0  ;;  %v9092_v8 = vadd.f32 %v21687_v58, %v8820_v56 }
 0x80e   :  { %v9209_v9 = vmul.f32 %v21693_v39, %v9149_v1  ;;  %v9150_v5 = vmax.f32 %v9094_v34, 0.0 }
 0x80f   :  { %v9207_v7 = vmul.f32 %v21693_v39, %v9147_v43  ;;  %v9148_v27 = vmax.f32 %v9092_v8, 0.0 }
 0x810   :  { %v9269_v61 = vadd.f32 %v21700_v40, %v9209_v9  ;;  %v9210_v45 = vmul.f32 %v21693_v39, %v9150_v5 }
 0x811   :  { %v9267_v17 = vadd.f32 %v21700_v40, %v9207_v7  ;;  %v9208_v2 = vmul.f32 %v21693_v39, %v9148_v27  ;;  %v15750_v14 = vpop.f32.mrb[8].mxu0 }
 0x812   :  { %9326 = vst.msk [vmem:[#allocation3 + $0x30] sm:$0xff] %vm9319_vm2, %v9269_v61  ;;  %v9270_v23 = vadd.f32 %v21700_v40, %v9210_v45  ;;  %v9097_v0 = vadd.f32 %v15750_v14, %v21687_v58  ;;  %v8833_v16 = vpop.f32.mrb[9].mxu0  ;;  %v17360_v14 = vld [vmem:[%s22928_s5 + $0x18] sm:$0xff]  }
 0x813   :  { %9324 = vst.msk [vmem:[#allocation3 + $0x20] sm:$0xff] %vm9319_vm2, %v9267_v17  ;;  %v9268_v26 = vadd.f32 %v21700_v40, %v9208_v2  ;;  %v9095_v24 = vadd.f32 %v21687_v58, %v8833_v16  ;;  %v15751_v47 = vpop.f32.mrb[10].mxu0  ;;  %v9465_v38 = vld [vmem:[#allocation3 + $0x11] sm:$0xff] }
 0x814   :  { %9327 = vst.msk [vmem:[#allocation3 + $0x38] sm:$0xff] %vm9319_vm2, %v9270_v23  ;;  %v9153_v53 = vmax.f32 %v9097_v0, 0.0  ;;  %v9098_v30 = vadd.f32 %v15751_v47, %v21687_v58  ;;  %v8836_v3 = vpop.f32.mrb[11].mxu0  ;;  %v9463_v50 = vld [vmem:[#allocation3 + $0x1] sm:$0xff]  ;;  %v9464_v10 = vld [vmem:[#allocation3 + $0x9] sm:$0xff] }
 0x815   :  { %9325 = vst.msk [vmem:[#allocation3 + $0x28] sm:$0xff] %vm9319_vm2, %v9268_v26  ;;  %v9151_v32 = vmax.f32 %v9095_v24, 0.0  ;;  %v9096_v48 = vadd.f32 %v21687_v58, %v8836_v3  ;;  %v9515_v46 = vpack.c.bf16 %v9464_v10, %v9463_v50 }
 0x816   :  { %v9213_v37 = vmul.f32 %v21693_v39, %v9153_v53  ;;  %v9154_v62 = vmax.f32 %v9098_v30, 0.0 }
 0x817   :  { %v9211_v13 = vmul.f32 %v21693_v39, %v9151_v32  ;;  %v9152_v4 = vmax.f32 %v9096_v48, 0.0  ;;  %15804 = vmatprep.mubr.msk.bf16.mxu1 %vm9319_vm2, %v9515_v46 }
 0x818   :  { %v9273_v33 = vadd.f32 %v21700_v40, %v9213_v37  ;;  %v9214_v6 = vmul.f32 %v21693_v39, %v9154_v62 }
 0x819   :  { %v9271_v54 = vadd.f32 %v21700_v40, %v9211_v13  ;;  %v9212_v60 = vmul.f32 %v21693_v39, %v9152_v4  ;;  %v15754_v49 = vpop.f32.mrb[12].mxu0 }
 0x81a   :  { %9330 = vst.msk [vmem:[#allocation3 + $0x50] sm:$0xff] %vm9319_vm2, %v9273_v33  ;;  %v9274_v63 = vadd.f32 %v21700_v40, %v9214_v6  ;;  %v9101_v42 = vadd.f32 %v15754_v49, %v21687_v58  ;;  %v8849_v44 = vpop.f32.mrb[13].mxu0  ;;  %v9466_v35 = vld [vmem:[#allocation3 + $0x19] sm:$0xff] }
 0x81b   :  { %9328 = vst.msk [vmem:[#allocation3 + $0x40] sm:$0xff] %vm9319_vm2, %v9271_v54  ;;  %v9272_v55 = vadd.f32 %v21700_v40, %v9212_v60  ;;  %v9099_v15 = vadd.f32 %v21687_v58, %v8849_v44  ;;  %v15755_v21 = vpop.f32.mrb[14].mxu0  ;;  %v9516_v22 = vpack.c.bf16 %v9466_v35, %v9465_v38  ;;  %v9469_v7 = vld [vmem:[#allocation3 + $0x31] sm:$0xff] }
 0x81c   :  { %9331 = vst.msk [vmem:[#allocation3 + $0x58] sm:$0xff] %vm9319_vm2, %v9274_v63  ;;  %v9157_v25 = vmax.f32 %v9101_v42, 0.0  ;;  %v9102_v57 = vadd.f32 %v15755_v21, %v21687_v58  ;;  %v8852_v51 = vpop.f32.mrb[15].mxu0  ;;  %v9467_v18 = vld [vmem:[#allocation3 + $0x21] sm:$0xff]  ;;  %v9468_v12 = vld [vmem:[#allocation3 + $0x29] sm:$0xff] }
 0x81d   :  { %9329 = vst.msk [vmem:[#allocation3 + $0x48] sm:$0xff] %vm9319_vm2, %v9272_v55  ;;  %v9155_v31 = vmax.f32 %v9099_v15, 0.0  ;;  %v9100_v52 = vadd.f32 %v21687_v58, %v8852_v51  ;;  %15805 = vmatmul.mubr.msk.bf16.vlgmr.msra.gmra.mrb[8].mxu1 %vm9319_vm2, %v9516_v22  ;;  %v9517_v41 = vpack.c.bf16 %v9468_v12, %v9467_v18 }
 0x81e   :  { %v9217_v28 = vmul.f32 %v21693_v39, %v9157_v25  ;;  %v9158_v59 = vmax.f32 %v9102_v57, 0.0  ;;  %15857 = vmatpush3.bf16.msra.mxu1 %v21681_v29 }
 0x81f   :  { %v9215_v11 = vmul.f32 %v21693_v39, %v9155_v31  ;;  %v9156_v19 = vmax.f32 %v9100_v52, 0.0  ;;  %15808 = vmatprep.mubr.msk.bf16.mxu1 %vm9319_vm2, %v9517_v41  ;;  %15858 = vmatprep.subr.bf16.mxu1 %v17358_v20 }
 0x820   :  { %v9277_v1 = vadd.f32 %v21700_v40, %v9217_v28  ;;  %v9218_v34 = vmul.f32 %v21693_v39, %v9158_v59 }
 0x821   :  { %v9275_v56 = vadd.f32 %v21700_v40, %v9215_v11  ;;  %v9216_v43 = vmul.f32 %v21693_v39, %v9156_v19  ;;  %v15758_v8 = vpop.f32.mrb[16].mxu0 }
 0x822   :  { %9334 = vst.msk [vmem:[#allocation3 + $0x70] sm:$0xff] %vm9319_vm2, %v9277_v1  ;;  %v9278_v29 = vadd.f32 %v21700_v40, %v9218_v34  ;;  %v9105_v9 = vadd.f32 %v15758_v8, %v21687_v58  ;;  %v8865_v5 = vpop.f32.mrb[17].mxu0  ;;  %v9470_v27 = vld [vmem:[#allocation3 + $0x39] sm:$0xff]  ;;  %15859 = vmatpush3.bf16.msra.mxu1 %v17358_v20 }
 0x823   :  { %9332 = vst.msk [vmem:[#allocation3 + $0x60] sm:$0xff] %vm9319_vm2, %v9275_v56  ;;  %v9276_v61 = vadd.f32 %v21700_v40, %v9216_v43  ;;  %v9103_v45 = vadd.f32 %v21687_v58, %v8865_v5  ;;  %v15759_v17 = vpop.f32.mrb[18].mxu0  ;;  %v9518_v2 = vpack.c.bf16 %v9470_v27, %v9469_v7  ;;  %15860 = vmatprep.subr.bf16.mxu1 %v17359_v36  ;;  %v9473_v54 = vld [vmem:[#allocation3 + $0x51] sm:$0xff] }
 0x824   :  { %9335 = vst.msk [vmem:[#allocation3 + $0x78] sm:$0xff] %vm9319_vm2, %v9278_v29  ;;  %v9161_v23 = vmax.f32 %v9105_v9, 0.0  ;;  %v9106_v0 = vadd.f32 %v15759_v17, %v21687_v58  ;;  %v8868_v16 = vpop.f32.mrb[19].mxu0  ;;  %v9471_v26 = vld [vmem:[#allocation3 + $0x41] sm:$0xff]  ;;  %v9472_v24 = vld [vmem:[#allocation3 + $0x49] sm:$0xff] }
 0x825   :  { %9333 = vst.msk [vmem:[#allocation3 + $0x68] sm:$0xff] %vm9319_vm2, %v9276_v61  ;;  %v9159_v47 = vmax.f32 %v9103_v45, 0.0  ;;  %v9104_v53 = vadd.f32 %v21687_v58, %v8868_v16  ;;  %15809 = vmatmul.mubr.msk.bf16.gmra.mrb[12].mxu1 %vm9319_vm2, %v9518_v2  ;;  %v9519_v30 = vpack.c.bf16 %v9472_v24, %v9471_v26 }
 0x826   :  { %v9221_v3 = vmul.f32 %v21693_v39, %v9161_v23  ;;  %v9162_v50 = vmax.f32 %v9106_v0, 0.0  ;;  %15861 = vmatpush3.bf16.msra.mxu1 %v17359_v36 }
 0x827   :  { %v9219_v10 = vmul.f32 %v21693_v39, %v9159_v47  ;;  %v9160_v32 = vmax.f32 %v9104_v53, 0.0  ;;  %15812 = vmatprep.mubr.msk.bf16.mxu1 %vm9319_vm2, %v9519_v30  ;;  %15862 = vmatprep.subr.bf16.mxu1 %v17360_v14 }
 0x828   :  { %v9281_v48 = vadd.f32 %v21700_v40, %v9221_v3  ;;  %v9222_v46 = vmul.f32 %v21693_v39, %v9162_v50 }
 0x829   :  { %v9279_v37 = vadd.f32 %v21700_v40, %v9219_v10  ;;  %v9220_v62 = vmul.f32 %v21693_v39, %v9160_v32  ;;  %v15762_v13 = vpop.f32.mrb[20].mxu0 }
 0x82a   :  { %9338 = vst.msk [vmem:[#allocation3 + $0x90] sm:$0xff] %vm9319_vm2, %v9281_v48  ;;  %v9282_v4 = vadd.f32 %v21700_v40, %v9222_v46  ;;  %v9109_v33 = vadd.f32 %v15762_v13, %v21687_v58  ;;  %v8881_v6 = vpop.f32.mrb[21].mxu0  ;;  %v9474_v60 = vld [vmem:[#allocation3 + $0x59] sm:$0xff]  ;;  %15863 = vmatpush3.bf16.msra.mxu1 %v17360_v14 }
 0x82b   :  { %9336 = vst.msk [vmem:[#allocation3 + $0x80] sm:$0xff] %vm9319_vm2, %v9279_v37  ;;  %v9280_v49 = vadd.f32 %v21700_v40, %v9220_v62  ;;  %v9107_v63 = vadd.f32 %v21687_v58, %v8881_v6  ;;  %v15763_v42 = vpop.f32.mrb[22].mxu0  ;;  %v9520_v44 = vpack.c.bf16 %v9474_v60, %v9473_v54  ;;  %v9477_v1 = vld [vmem:[#allocation3 + $0x71] sm:$0xff] }
 0x82c   :  { %9339 = vst.msk [vmem:[#allocation3 + $0x98] sm:$0xff] %vm9319_vm2, %v9282_v4  ;;  %v9165_v38 = vmax.f32 %v9109_v33, 0.0  ;;  %v9110_v35 = vadd.f32 %v15763_v42, %v21687_v58  ;;  %v8884_v55 = vpop.f32.mrb[23].mxu0  ;;  %v9475_v15 = vld [vmem:[#allocation3 + $0x61] sm:$0xff]  ;;  %v9476_v21 = vld [vmem:[#allocation3 + $0x69] sm:$0xff] }
 0x82d   :  { %9337 = vst.msk [vmem:[#allocation3 + $0x88] sm:$0xff] %vm9319_vm2, %v9280_v49  ;;  %v9163_v22 = vmax.f32 %v9107_v63, 0.0  ;;  %v9108_v20 = vadd.f32 %v21687_v58, %v8884_v55  ;;  %15813 = vmatmul.mubr.msk.bf16.gmra.mrb[16].mxu1 %vm9319_vm2, %v9520_v44  ;;  %v9521_v25 = vpack.c.bf16 %v9476_v21, %v9475_v15 }
 0x82e   :  { %v9225_v57 = vmul.f32 %v21693_v39, %v9165_v38  ;;  %v9166_v51 = vmax.f32 %v9110_v35, 0.0 }
 0x82f   :  { %v9223_v18 = vmul.f32 %v21693_v39, %v9163_v22  ;;  %v9164_v12 = vmax.f32 %v9108_v20, 0.0  ;;  %15816 = vmatprep.mubr.msk.bf16.mxu1 %vm9319_vm2, %v9521_v25 }
 0x830   :  { %v9285_v31 = vadd.f32 %v21700_v40, %v9225_v57  ;;  %v9226_v52 = vmul.f32 %v21693_v39, %v9166_v51 }
 0x831   :  { %v9283_v41 = vadd.f32 %v21700_v40, %v9223_v18  ;;  %v9224_v28 = vmul.f32 %v21693_v39, %v9164_v12  ;;  %v15766_v59 = vpop.f32.mrb[24].mxu0 }
 0x832   :  { %9342 = vst.msk [vmem:[#allocation3 + $0xb0] sm:$0xff] %vm9319_vm2, %v9285_v31  ;;  %v9286_v11 = vadd.f32 %v21700_v40, %v9226_v52  ;;  %v9113_v19 = vadd.f32 %v15766_v59, %v21687_v58  ;;  %v8897_v36 = vpop.f32.mrb[25].mxu0  ;;  %v9478_v34 = vld [vmem:[#allocation3 + $0x79] sm:$0xff] }
 0x833   :  { %9340 = vst.msk [vmem:[#allocation3 + $0xa0] sm:$0xff] %vm9319_vm2, %v9283_v41  ;;  %v9284_v56 = vadd.f32 %v21700_v40, %v9224_v28  ;;  %v9111_v43 = vadd.f32 %v21687_v58, %v8897_v36  ;;  %v15767_v8 = vpop.f32.mrb[26].mxu0  ;;  %v9522_v29 = vpack.c.bf16 %v9478_v34, %v9477_v1  ;;  %v9481_v32 = vld [vmem:[#allocation3 + $0x91] sm:$0xff] }
 0x834   :  { %9343 = vst.msk [vmem:[#allocation3 + $0xb8] sm:$0xff] %vm9319_vm2, %v9286_v11  ;;  %v9169_v9 = vmax.f32 %v9113_v19, 0.0  ;;  %v9114_v5 = vadd.f32 %v15767_v8, %v21687_v58  ;;  %v8900_v7 = vpop.f32.mrb[27].mxu0  ;;  %v9479_v27 = vld [vmem:[#allocation3 + $0x81] sm:$0xff]  ;;  %v9480_v61 = vld [vmem:[#allocation3 + $0x89] sm:$0xff] }
 0x835   :  { %9341 = vst.msk [vmem:[#allocation3 + $0xa8] sm:$0xff] %vm9319_vm2, %v9284_v56  ;;  %v9167_v45 = vmax.f32 %v9111_v43, 0.0  ;;  %v9112_v17 = vadd.f32 %v21687_v58, %v8900_v7  ;;  %15817 = vmatmul.mubr.msk.bf16.gmra.mrb[20].mxu1 %vm9319_vm2, %v9522_v29  ;;  %v9523_v2 = vpack.c.bf16 %v9480_v61, %v9479_v27 }
 0x836   :  { %v9229_v14 = vmul.f32 %v21693_v39, %v9169_v9  ;;  %v9170_v23 = vmax.f32 %v9114_v5, 0.0 }
 0x837   :  { %v9227_v0 = vmul.f32 %v21693_v39, %v9167_v45  ;;  %v9168_v16 = vmax.f32 %v9112_v17, 0.0  ;;  %15820 = vmatprep.mubr.msk.bf16.mxu1 %vm9319_vm2, %v9523_v2  ;;  %v21861_v45 = vld [vmem:[%s22928_s5 + $0x40] sm:$0xff]  }
 0x838   :  { %v9289_v26 = vadd.f32 %v21700_v40, %v9229_v14  ;;  %v9230_v24 = vmul.f32 %v21693_v39, %v9170_v23  ;;  %15916 = vmatprep.subr.bf16.mxu1 %v21861_v45 }
 0x839   :  { %v9287_v47 = vadd.f32 %v21700_v40, %v9227_v0  ;;  %v9228_v53 = vmul.f32 %v21693_v39, %v9168_v16  ;;  %v15770_v30 = vpop.f32.mrb[28].mxu0 }
 0x83a   :  { %9346 = vst.msk [vmem:[#allocation3 + $0xd0] sm:$0xff] %vm9319_vm2, %v9289_v26  ;;  %v9290_v3 = vadd.f32 %v21700_v40, %v9230_v24  ;;  %v9117_v50 = vadd.f32 %v15770_v30, %v21687_v58  ;;  %v8913_v10 = vpop.f32.mrb[29].mxu0  ;;  %v9482_v48 = vld [vmem:[#allocation3 + $0x99] sm:$0xff] }
 0x83b   :  { %9344 = vst.msk [vmem:[#allocation3 + $0xc0] sm:$0xff] %vm9319_vm2, %v9287_v47  ;;  %v9288_v46 = vadd.f32 %v21700_v40, %v9228_v53  ;;  %v9115_v37 = vadd.f32 %v21687_v58, %v8913_v10  ;;  %v15771_v62 = vpop.f32.mrb[30].mxu0  ;;  %v9524_v13 = vpack.c.bf16 %v9482_v48, %v9481_v32  ;;  %v9485_v12 = vld [vmem:[#allocation3 + $0xb1] sm:$0xff] }
 0x83c   :  { %9347 = vst.msk [vmem:[#allocation3 + $0xd8] sm:$0xff] %vm9319_vm2, %v9290_v3  ;;  %v9173_v4 = vmax.f32 %v9117_v50, 0.0  ;;  %v9118_v33 = vadd.f32 %v15771_v62, %v21687_v58  ;;  %v8916_v6 = vpop.f32.mrb[31].mxu0  ;;  %v9483_v54 = vld [vmem:[#allocation3 + $0xa1] sm:$0xff]  ;;  %v9484_v60 = vld [vmem:[#allocation3 + $0xa9] sm:$0xff] }
 0x83d   :  { %9345 = vst.msk [vmem:[#allocation3 + $0xc8] sm:$0xff] %vm9319_vm2, %v9288_v46  ;;  %v9171_v49 = vmax.f32 %v9115_v37, 0.0  ;;  %v9116_v63 = vadd.f32 %v21687_v58, %v8916_v6  ;;  %15821 = vmatmul.mubr.msk.bf16.gmra.mrb[24].mxu1 %vm9319_vm2, %v9524_v13  ;;  %v9525_v42 = vpack.c.bf16 %v9484_v60, %v9483_v54 }
 0x83e   :  { %v9233_v44 = vmul.f32 %v21693_v39, %v9173_v4  ;;  %v9174_v38 = vmax.f32 %v9118_v33, 0.0 }
 0x83f   :  { %v9231_v35 = vmul.f32 %v21693_v39, %v9171_v49  ;;  %v9172_v55 = vmax.f32 %v9116_v63, 0.0  ;;  %15824 = vmatprep.mubr.msk.bf16.mxu1 %vm9319_vm2, %v9525_v42 }
 0x840   :  { %v9293_v15 = vadd.f32 %v21700_v40, %v9233_v44  ;;  %v9234_v21 = vmul.f32 %v21693_v39, %v9174_v38 }
 0x841   :  { %v9291_v22 = vadd.f32 %v21700_v40, %v9231_v35  ;;  %v9232_v20 = vmul.f32 %v21693_v39, %v9172_v55  ;;  %v15774_v25 = vpop.f32.mrb[32].mxu0 }
 0x842   :  { %9350 = vst.msk [vmem:[#allocation3 + $0xf0] sm:$0xff] %vm9319_vm2, %v9293_v15  ;;  %v9294_v57 = vadd.f32 %v21700_v40, %v9234_v21  ;;  %v9121_v51 = vadd.f32 %v15774_v25, %v21687_v58  ;;  %v8929_v18 = vpop.f32.mrb[33].mxu0  ;;  %v9486_v31 = vld [vmem:[#allocation3 + $0xb9] sm:$0xff] }
 0x843   :  { %9348 = vst.msk [vmem:[#allocation3 + $0xe0] sm:$0xff] %vm9319_vm2, %v9291_v22  ;;  %v9292_v52 = vadd.f32 %v21700_v40, %v9232_v20  ;;  %v9119_v41 = vadd.f32 %v21687_v58, %v8929_v18  ;;  %v15775_v28 = vpop.f32.mrb[34].mxu0  ;;  %v9526_v59 = vpack.c.bf16 %v9486_v31, %v9485_v12  ;;  %v9489_v26 = vld [vmem:[#allocation3 + $0xd1] sm:$0xff] }
 0x844   :  { %9351 = vst.msk [vmem:[#allocation3 + $0xf8] sm:$0xff] %vm9319_vm2, %v9294_v57  ;;  %v9177_v11 = vmax.f32 %v9121_v51, 0.0  ;;  %v9122_v19 = vadd.f32 %v15775_v28, %v21687_v58  ;;  %v8932_v36 = vpop.f32.mrb[35].mxu0  ;;  %v9487_v1 = vld [vmem:[#allocation3 + $0xc1] sm:$0xff]  ;;  %v9488_v34 = vld [vmem:[#allocation3 + $0xc9] sm:$0xff] }
 0x845   :  { %9349 = vst.msk [vmem:[#allocation3 + $0xe8] sm:$0xff] %vm9319_vm2, %v9292_v52  ;;  %v9175_v56 = vmax.f32 %v9119_v41, 0.0  ;;  %v9120_v43 = vadd.f32 %v21687_v58, %v8932_v36  ;;  %15825 = vmatmul.mubr.msk.bf16.gmra.mrb[28].mxu1 %vm9319_vm2, %v9526_v59  ;;  %v9527_v8 = vpack.c.bf16 %v9488_v34, %v9487_v1 }
 0x846   :  { %v9237_v29 = vmul.f32 %v21693_v39, %v9177_v11  ;;  %v9178_v9 = vmax.f32 %v9122_v19, 0.0 }
 0x847   :  { %v9235_v5 = vmul.f32 %v21693_v39, %v9175_v56  ;;  %v9176_v7 = vmax.f32 %v9120_v43, 0.0  ;;  %15828 = vmatprep.mubr.msk.bf16.mxu1 %vm9319_vm2, %v9527_v8 }
 0x848   :  { %v9297_v27 = vadd.f32 %v21700_v40, %v9237_v29  ;;  %v9238_v61 = vmul.f32 %v21693_v39, %v9178_v9 }
 0x849   :  { %v9295_v17 = vadd.f32 %v21700_v40, %v9235_v5  ;;  %v9236_v2 = vmul.f32 %v21693_v39, %v9176_v7  ;;  %v15778_v14 = vpop.f32.mrb[36].mxu0 }
 0x84a   :  { %9354 = vst.msk [vmem:[#allocation3 + $0x110] sm:$0xff] %vm9319_vm2, %v9297_v27  ;;  %v9298_v23 = vadd.f32 %v21700_v40, %v9238_v61  ;;  %v9125_v0 = vadd.f32 %v15778_v14, %v21687_v58  ;;  %v8945_v16 = vpop.f32.mrb[37].mxu0  ;;  %v9490_v24 = vld [vmem:[#allocation3 + $0xd9] sm:$0xff] }
 0x84b   :  { %9352 = vst.msk [vmem:[#allocation3 + $0x100] sm:$0xff] %vm9319_vm2, %v9295_v17  ;;  %v9296_v47 = vadd.f32 %v21700_v40, %v9236_v2  ;;  %v9123_v53 = vadd.f32 %v21687_v58, %v8945_v16  ;;  %v15779_v30 = vpop.f32.mrb[38].mxu0  ;;  %v9528_v3 = vpack.c.bf16 %v9490_v24, %v9489_v26  ;;  %v9493_v15 = vld [vmem:[#allocation3 + $0xf1] sm:$0xff] }
 0x84c   :  { %9355 = vst.msk [vmem:[#allocation3 + $0x118] sm:$0xff] %vm9319_vm2, %v9298_v23  ;;  %v9181_v50 = vmax.f32 %v9125_v0, 0.0  ;;  %v9126_v10 = vadd.f32 %v15779_v30, %v21687_v58  ;;  %v8948_v32 = vpop.f32.mrb[39].mxu0  ;;  %v9491_v48 = vld [vmem:[#allocation3 + $0xe1] sm:$0xff]  ;;  %v9492_v46 = vld [vmem:[#allocation3 + $0xe9] sm:$0xff] }
 0x84d   :  { %9353 = vst.msk [vmem:[#allocation3 + $0x108] sm:$0xff] %vm9319_vm2, %v9296_v47  ;;  %v9179_v37 = vmax.f32 %v9123_v53, 0.0  ;;  %v9124_v62 = vadd.f32 %v21687_v58, %v8948_v32  ;;  %15829 = vmatmul.mubr.msk.bf16.gmra.mrb[32].mxu1 %vm9319_vm2, %v9528_v3  ;;  %v9529_v13 = vpack.c.bf16 %v9492_v46, %v9491_v48 }
 0x84e   :  { %v9241_v4 = vmul.f32 %v21693_v39, %v9181_v50  ;;  %v9182_v33 = vmax.f32 %v9126_v10, 0.0 }
 0x84f   :  { %v9239_v6 = vmul.f32 %v21693_v39, %v9179_v37  ;;  %v9180_v54 = vmax.f32 %v9124_v62, 0.0  ;;  %15832 = vmatprep.mubr.msk.bf16.mxu1 %vm9319_vm2, %v9529_v13 }
 0x850   :  { %v9301_v60 = vadd.f32 %v21700_v40, %v9241_v4  ;;  %v9242_v49 = vmul.f32 %v21693_v39, %v9182_v33 }
 0x851   :  { %v9299_v63 = vadd.f32 %v21700_v40, %v9239_v6  ;;  %v9240_v42 = vmul.f32 %v21693_v39, %v9180_v54  ;;  %v15782_v44 = vpop.f32.mrb[40].mxu0  ;;  %v23130_v6 = vld [vmem:[#allocation17_spill] sm:$0xff] }
 0x852   :  { %9358 = vst.msk [vmem:[#allocation3 + $0x130] sm:$0xff] %vm9319_vm2, %v9301_v60  ;;  %v9302_v38 = vadd.f32 %v21700_v40, %v9242_v49  ;;  %v9129_v35 = vadd.f32 %v15782_v44, %v21687_v58  ;;  %v8961_v55 = vpop.f32.mrb[41].mxu0  ;;  %v9494_v21 = vld [vmem:[#allocation3 + $0xf9] sm:$0xff]  ;;  %v23131_v44 = vld [vmem:[#allocation15_spill] sm:$0xff] }
 0x853   :  { %9356 = vst.msk [vmem:[#allocation3 + $0x120] sm:$0xff] %vm9319_vm2, %v9299_v63  ;;  %v9300_v22 = vadd.f32 %v21700_v40, %v9240_v42  ;;  %v9127_v20 = vadd.f32 %v21687_v58, %v8961_v55  ;;  %v15783_v25 = vpop.f32.mrb[42].mxu0  ;;  %v9530_v57 = vpack.c.bf16 %v9494_v21, %v9493_v15  ;;  %v9497_v27 = vld [vmem:[#allocation3 + $0x111] sm:$0xff] }
 0x854   :  { %9359 = vst.msk [vmem:[#allocation3 + $0x138] sm:$0xff] %vm9319_vm2, %v9302_v38  ;;  %v9185_v51 = vmax.f32 %v9129_v35, 0.0  ;;  %v9130_v18 = vadd.f32 %v15783_v25, %v21687_v58  ;;  %v8964_v12 = vpop.f32.mrb[43].mxu0  ;;  %v9495_v31 = vld [vmem:[#allocation3 + $0x101] sm:$0xff]  ;;  %v9496_v52 = vld [vmem:[#allocation3 + $0x109] sm:$0xff]  ;;  %v23132_v21 = vld [vmem:[#allocation13_spill] sm:$0xff] }
 0x855   :  { %9357 = vst.msk [vmem:[#allocation3 + $0x128] sm:$0xff] %vm9319_vm2, %v9300_v22  ;;  %v9183_v41 = vmax.f32 %v9127_v20, 0.0  ;;  %v9128_v28 = vadd.f32 %v21687_v58, %v8964_v12  ;;  %15833 = vmatmul.mubr.msk.bf16.gmra.mrb[36].mxu1 %vm9319_vm2, %v9530_v57  ;;  %v9531_v59 = vpack.c.bf16 %v9496_v52, %v9495_v31 }
 0x856   :  { %v9245_v11 = vmul.f32 %v21693_v39, %v9185_v51  ;;  %v9186_v19 = vmax.f32 %v9130_v18, 0.0  ;;  %v23133_v18 = vld [vmem:[#allocation10_spill] sm:$0xff] }
 0x857   :  { %v9243_v36 = vmul.f32 %v21693_v39, %v9183_v41  ;;  %v9184_v1 = vmax.f32 %v9128_v28, 0.0  ;;  %15836 = vmatprep.mubr.msk.bf16.mxu1 %vm9319_vm2, %v9531_v59 }
 0x858   :  { %v9305_v34 = vadd.f32 %v21700_v40, %v9245_v11  ;;  %v9246_v56 = vmul.f32 %v21693_v39, %v9186_v19 }
 0x859   :  { %v9303_v43 = vadd.f32 %v21700_v40, %v9243_v36  ;;  %v9244_v8 = vmul.f32 %v21693_v39, %v9184_v1  ;;  %v15786_v29 = vpop.f32.mrb[44].mxu0 }
 0x85a   :  { %9362 = vst.msk [vmem:[#allocation3 + $0x150] sm:$0xff] %vm9319_vm2, %v9305_v34  ;;  %v9306_v9 = vadd.f32 %v21700_v40, %v9246_v56  ;;  %v9133_v5 = vadd.f32 %v15786_v29, %v21687_v58  ;;  %v8977_v7 = vpop.f32.mrb[45].mxu0  ;;  %v9498_v61 = vld [vmem:[#allocation3 + $0x119] sm:$0xff] }
 0x85b   :  { %9360 = vst.msk [vmem:[#allocation3 + $0x140] sm:$0xff] %vm9319_vm2, %v9303_v43  ;;  %v9304_v17 = vadd.f32 %v21700_v40, %v9244_v8  ;;  %v9131_v2 = vadd.f32 %v21687_v58, %v8977_v7  ;;  %v15787_v14 = vpop.f32.mrb[46].mxu0  ;;  %v9532_v23 = vpack.c.bf16 %v9498_v61, %v9497_v27  ;;  %v9501_v49 = vld [vmem:[#allocation3 + $0x131] sm:$0xff]  ;;  %v23134_v8 = vld [vmem:[#allocation11_spill] sm:$0xff] }
 0x85c   :  { %9363 = vst.msk [vmem:[#allocation3 + $0x158] sm:$0xff] %vm9319_vm2, %v9306_v9  ;;  %v9189_v0 = vmax.f32 %v9133_v5, 0.0  ;;  %v9134_v16 = vadd.f32 %v15787_v14, %v21687_v58  ;;  %v8980_v26 = vpop.f32.mrb[47].mxu0  ;;  %v9499_v24 = vld [vmem:[#allocation3 + $0x121] sm:$0xff]  ;;  %v9500_v47 = vld [vmem:[#allocation3 + $0x129] sm:$0xff] }
 0x85d   :  { %9361 = vst.msk [vmem:[#allocation3 + $0x148] sm:$0xff] %vm9319_vm2, %v9304_v17  ;;  %v9187_v53 = vmax.f32 %v9131_v2, 0.0  ;;  %v9132_v30 = vadd.f32 %v21687_v58, %v8980_v26  ;;  %15837 = vmatmul.mubr.msk.bf16.gmra.mrb[40].mxu1 %vm9319_vm2, %v9532_v23  ;;  %v9533_v3 = vpack.c.bf16 %v9500_v47, %v9499_v24  ;;  %v23135_v17 = vld [vmem:[#allocation16_spill] sm:$0xff]  ;;  %v23136_v26 = vld [vmem:[#allocation9_spill] sm:$0xff] }
 0x85e   :  { %v9249_v50 = vmul.f32 %v21693_v39, %v9189_v0  ;;  %v9190_v10 = vmax.f32 %v9134_v16, 0.0 }
 0x85f   :  { %v9247_v32 = vmul.f32 %v21693_v39, %v9187_v53  ;;  %v9188_v48 = vmax.f32 %v9132_v30, 0.0  ;;  %15840 = vmatprep.mubr.msk.bf16.mxu1 %vm9319_vm2, %v9533_v3 }
 0x860   :  { %v9309_v46 = vadd.f32 %v21700_v40, %v9249_v50  ;;  %v9250_v37 = vmul.f32 %v21693_v39, %v9190_v10  ;;  %v23137_v10 = vld [vmem:[#allocation12_spill] sm:$0xff] }
 0x861   :  { %v9307_v62 = vadd.f32 %v21700_v40, %v9247_v32  ;;  %v9248_v13 = vmul.f32 %v21693_v39, %v9188_v48  ;;  %v15790_v4 = vpop.f32.mrb[48].mxu0 }
 0x862   :  { %9366 = vst.msk [vmem:[#allocation3 + $0x170] sm:$0xff] %vm9319_vm2, %v9309_v46  ;;  %v9310_v33 = vadd.f32 %v21700_v40, %v9250_v37  ;;  %v16462_v54 = vadd.f32 %v15790_v4, %v23130_v6  ;;  %v8993_v60 = vpop.f32.mrb[49].mxu0  ;;  %v9502_v63 = vld [vmem:[#allocation3 + $0x139] sm:$0xff] }
 0x863   :  { %9364 = vst.msk [vmem:[#allocation3 + $0x160] sm:$0xff] %vm9319_vm2, %v9307_v62  ;;  %v9308_v42 = vadd.f32 %v21700_v40, %v9248_v13  ;;  %v16463_v38 = vadd.f32 %v8993_v60, %v23131_v44  ;;  %v15791_v35 = vpop.f32.mrb[50].mxu0  ;;  %v9534_v55 = vpack.c.bf16 %v9502_v63, %v9501_v49  ;;  %v9505_v5 = vld [vmem:[#allocation3 + $0x151] sm:$0xff] }
 0x864   :  { %9367 = vst.msk [vmem:[#allocation3 + $0x178] sm:$0xff] %vm9319_vm2, %v9310_v33  ;;  %v9137_v15 = vadd.f32 %v16462_v54, %v21687_v58  ;;  %v16464_v22 = vadd.f32 %v15791_v35, %v23132_v21  ;;  %v8996_v20 = vpop.f32.mrb[51].mxu0  ;;  %v9503_v25 = vld [vmem:[#allocation3 + $0x141] sm:$0xff]  ;;  %v9504_v57 = vld [vmem:[#allocation3 + $0x149] sm:$0xff] }
 0x865   :  { %9365 = vst.msk [vmem:[#allocation3 + $0x168] sm:$0xff] %vm9319_vm2, %v9308_v42  ;;  %v9135_v51 = vadd.f32 %v16463_v38, %v21687_v58  ;;  %v16465_v12 = vadd.f32 %v8996_v20, %v23133_v18  ;;  %15841 = vmatmul.mubr.msk.bf16.gmra.mrb[44].mxu1 %vm9319_vm2, %v9534_v55  ;;  %v9535_v31 = vpack.c.bf16 %v9504_v57, %v9503_v25  ;;  %v9378_v25 = vld [vmem:[#allocation3 + $0x8] sm:$0xff]  ;;  %v9377_v57 = vld [vmem:[#allocation3] sm:$0xff]  ;;  %v9380_v18 = vld [vmem:[#allocation3 + $0x18] sm:$0xff] }
 0x866   :  { %v9193_v52 = vmax.f32 %v9137_v15, 0.0  ;;  %v9138_v41 = vadd.f32 %v16464_v22, %v21687_v58 }
 0x867   :  { %v9191_v28 = vmax.f32 %v9135_v51, 0.0  ;;  %v9136_v59 = vadd.f32 %v16465_v12, %v21687_v58  ;;  %15844 = vmatprep.mubr.msk.bf16.mxu1 %vm9319_vm2, %v9535_v31  ;;  %v9429_v51 = vpack.c.bf16 %v9378_v25, %v9377_v57  ;;  %v9382_v12 = vld [vmem:[#allocation3 + $0x28] sm:$0xff]  ;;  %v9379_v31 = vld [vmem:[#allocation3 + $0x10] sm:$0xff] }
 0x868   :  { %v9253_v11 = vmul.f32 %v21693_v39, %v9193_v52  ;;  %v9194_v19 = vmax.f32 %v9138_v41, 0.0  ;;  %v21988_v52 = vpack.c.bf16 %v9380_v18, %v9379_v31  ;;  %v9381_v41 = vld [vmem:[#allocation3 + $0x20] sm:$0xff]  ;;  %v9418_v18 = vld [vmem:[#allocation3 + $0x148] sm:$0xff] }
 0x869   :  { %v9251_v36 = vmul.f32 %v21693_v39, %v9191_v28  ;;  %v9192_v1 = vmax.f32 %v9136_v59, 0.0  ;;  %v15794_v34 = vpop.f32.mrb[52].mxu0  ;;  %v17362_v28 = vld [vmem:[%s22928_s5 + $0x48] sm:$0xff]   ;;  %v21993_v59 = vpack.c.bf16 %v9382_v12, %v9381_v41  ;;  %v9415_v12 = vld [vmem:[#allocation3 + $0x130] sm:$0xff]  ;;  %v9417_v41 = vld [vmem:[#allocation3 + $0x140] sm:$0xff] }
 0x86a   :  { %v9313_v56 = vadd.f32 %v21700_v40, %v9253_v11  ;;  %v9254_v43 = vmul.f32 %v21693_v39, %v9194_v19  ;;  %v16466_v29 = vadd.f32 %v15794_v34, %v23134_v8  ;;  %v9009_v9 = vpop.f32.mrb[53].mxu0  ;;  %v9506_v7 = vld [vmem:[#allocation3 + $0x159] sm:$0xff]  ;;  %v17363_v11 = vld [vmem:[%s22928_s5 + $0x50] sm:$0xff]  }
 0x86b   :  { %v9311_v27 = vadd.f32 %v21700_v40, %v9251_v36  ;;  %v9252_v61 = vmul.f32 %v21693_v39, %v9192_v1  ;;  %v16467_v2 = vadd.f32 %v9009_v9, %v23135_v17  ;;  %v15795_v14 = vpop.f32.mrb[54].mxu0  ;;  %v21944_v23 = vpack.c.bf16 %v9506_v7, %v9505_v5  ;;  %v9509_v44 = vld [vmem:[#allocation3 + $0x171] sm:$0xff]  ;;  %v9386_v36 = vld [vmem:[#allocation3 + $0x48] sm:$0xff]  ;;  %v9389_v7 = vld [vmem:[#allocation3 + $0x60] sm:$0xff] }
 0x86c   :  { %9370 = vst.msk [vmem:[#allocation3 + $0x190] sm:$0xff] %vm9319_vm2, %v9313_v56  ;;  %v9314_v0 = vadd.f32 %v21700_v40, %v9254_v43  ;;  %v9141_v16 = vadd.f32 %v16466_v29, %v21687_v58  ;;  %v16468_v24 = vadd.f32 %v15795_v14, %v23136_v26  ;;  %v9012_v47 = vpop.f32.mrb[55].mxu0  ;;  %v9507_v53 = vld [vmem:[#allocation3 + $0x161] sm:$0xff]  ;;  %v9508_v30 = vld [vmem:[#allocation3 + $0x169] sm:$0xff]  ;;  %v9384_v19 = vld [vmem:[#allocation3 + $0x38] sm:$0xff] }
 0x86d   :  { %9368 = vst.msk [vmem:[#allocation3 + $0x180] sm:$0xff] %vm9319_vm2, %v9311_v27  ;;  %v9312_v3 = vadd.f32 %v21700_v40, %v9252_v61  ;;  %v9139_v50 = vadd.f32 %v16467_v2, %v21687_v58  ;;  %v16469_v32 = vadd.f32 %v9012_v47, %v23137_v10  ;;  %15845 = vmatmul.mubr.msk.bf16.gmra.mrb[48].mxu1 %vm9319_vm2, %v21944_v23  ;;  %v9383_v1 = vld [vmem:[#allocation3 + $0x30] sm:$0xff]  ;;  %v9385_v56 = vld [vmem:[#allocation3 + $0x40] sm:$0xff]  ;;  %v17364_v43 = vld [vmem:[%s22928_s5 + $0x58] sm:$0xff]  }
 0x86e   :  { %v21956_v48 = vpack.c.bf16 %v9508_v30, %v9507_v53  ;;  %9371 = vst.msk [vmem:[#allocation3 + $0x198] sm:$0xff] %vm9319_vm2, %v9314_v0  ;;  %v9197_v46 = vmax.f32 %v9141_v16, 0.0  ;;  %v9142_v37 = vadd.f32 %v16468_v24, %v21687_v58  ;;  %v22003_v34 = vpack.c.bf16 %v9384_v19, %v9383_v1  ;;  %v9390_v29 = vld [vmem:[#allocation3 + $0x68] sm:$0xff]  ;;  %v9387_v9 = vld [vmem:[#allocation3 + $0x50] sm:$0xff]  ;;  %v9392_v61 = vld [vmem:[#allocation3 + $0x78] sm:$0xff] }
 0x86f   :  { %9369 = vst.msk [vmem:[#allocation3 + $0x188] sm:$0xff] %vm9319_vm2, %v9312_v3  ;;  %v9195_v62 = vmax.f32 %v9139_v50, 0.0  ;;  %v9140_v13 = vadd.f32 %v16469_v32, %v21687_v58  ;;  %v22008_v8 = vpack.c.bf16 %v9386_v36, %v9385_v56  ;;  %v22016_v27 = vpack.c.bf16 %v9390_v29, %v9389_v7  ;;  %v9394_v17 = vld [vmem:[#allocation3 + $0x88] sm:$0xff]  ;;  %v9391_v2 = vld [vmem:[#allocation3 + $0x70] sm:$0xff]  ;;  %v9393_v0 = vld [vmem:[#allocation3 + $0x80] sm:$0xff] }
 0x870   :  { %15848 = vmatprep.mubr.msk.bf16.mxu1 %vm9319_vm2, %v21956_v48  ;;  %v9257_v4 = vmul.f32 %v21693_v39, %v9197_v46  ;;  %v9198_v33 = vmax.f32 %v9142_v37, 0.0  ;;  %v22022_v14 = vpack.c.bf16 %v9392_v61, %v9391_v2  ;;  %v22024_v16 = vpack.c.bf16 %v9394_v17, %v9393_v0  ;;  %v9396_v26 = vld [vmem:[#allocation3 + $0x98] sm:$0xff]  ;;  %v9398_v24 = vld [vmem:[#allocation3 + $0xa8] sm:$0xff]  ;;  %v9395_v47 = vld [vmem:[#allocation3 + $0x90] sm:$0xff] }
 0x871   :  { %v9255_v6 = vmul.f32 %v21693_v39, %v9195_v62  ;;  %v9196_v54 = vmax.f32 %v9140_v13, 0.0  ;;  %v22030_v53 = vpack.c.bf16 %v9396_v26, %v9395_v47  ;;  %v9397_v30 = vld [vmem:[#allocation3 + $0xa0] sm:$0xff]  ;;  %v9400_v50 = vld [vmem:[#allocation3 + $0xb8] sm:$0xff]  ;;  %v9402_v10 = vld [vmem:[#allocation3 + $0xc8] sm:$0xff] }
 0x872   :  { %v9317_v60 = vadd.f32 %v21700_v40, %v9257_v4  ;;  %v9258_v49 = vmul.f32 %v21693_v39, %v9198_v33  ;;  %v22032_v3 = vpack.c.bf16 %v9398_v24, %v9397_v30  ;;  %v9399_v32 = vld [vmem:[#allocation3 + $0xb0] sm:$0xff]  ;;  %v9401_v37 = vld [vmem:[#allocation3 + $0xc0] sm:$0xff]  ;;  %v9404_v4 = vld [vmem:[#allocation3 + $0xd8] sm:$0xff] }
 0x873   :  { %v9315_v63 = vadd.f32 %v21700_v40, %v9255_v6  ;;  %v9256_v42 = vmul.f32 %v21693_v39, %v9196_v54  ;;  %v22038_v46 = vpack.c.bf16 %v9400_v50, %v9399_v32  ;;  %v22040_v62 = vpack.c.bf16 %v9402_v10, %v9401_v37  ;;  %v22049_v13 = vld [vmem:[%s22928_s5 + $0x60] sm:$0xff]   ;;  %v9406_v33 = vld [vmem:[#allocation3 + $0xe8] sm:$0xff]  ;;  %v9403_v6 = vld [vmem:[#allocation3 + $0xd0] sm:$0xff] }
 0x874   :  { %9374 = vst.msk [vmem:[#allocation3 + $0x1b0] sm:$0xff] %vm9319_vm2, %v9317_v60  ;;  %v9318_v58 = vadd.f32 %v21700_v40, %v9258_v49  ;;  %v9510_v38 = vld [vmem:[#allocation3 + $0x179] sm:$0xff]  ;;  %v22052_v54 = vpack.c.bf16 %v9404_v4, %v9403_v6  ;;  %v9422_v19 = vld [vmem:[#allocation3 + $0x168] sm:$0xff]  ;;  %v9419_v36 = vld [vmem:[#allocation3 + $0x150] sm:$0xff] }
 0x875   :  { %9372 = vst.msk [vmem:[#allocation3 + $0x1a0] sm:$0xff] %vm9319_vm2, %v9315_v63  ;;  %v9316_v35 = vadd.f32 %v21700_v40, %v9256_v42  ;;  %v21974_v55 = vpack.c.bf16 %v9510_v38, %v9509_v44  ;;  %v21983_v22 = vld [vmem:[#allocation3 + $0x191] sm:$0xff]  ;;  %v9514_v20 = vld [vmem:[#allocation3 + $0x199] sm:$0x3]  ;;  %v9405_v60 = vld [vmem:[#allocation3 + $0xe0] sm:$0xff] }
 0x876   :  { %9376 = vst.msk [vmem:[#allocation3 + $0x1b8] sm:$0xf] %vm9375_vm3, %v9318_v58  ;;  %v9511_v15 = vld [vmem:[#allocation3 + $0x181] sm:$0xff]  ;;  %v9512_v21 = vld [vmem:[#allocation3 + $0x189] sm:$0xff]  ;;  %v9540_v40 = vpack.c.bf16 %v9514_v20, %v21983_v22  ;;  %v22054_v49 = vpack.c.bf16 %v9406_v33, %v9405_v60  ;;  %v9408_v63 = vld [vmem:[#allocation3 + $0xf8] sm:$0xff] }
 0x877   :  { %9373 = vst.msk [vmem:[#allocation3 + $0x1a8] sm:$0xff] %vm9319_vm2, %v9316_v35  ;;  %15849 = vmatmul.mubr.msk.bf16.gmra.mrb[52].mxu1 %vm9319_vm2, %v21974_v55  ;;  %v21979_v39 = vpack.c.bf16 %v9512_v21, %v9511_v15  ;;  %v9410_v42 = vld [vmem:[#allocation3 + $0x108] sm:$0xff]  ;;  %v9407_v58 = vld [vmem:[#allocation3 + $0xf0] sm:$0xff]  ;;  %v9409_v38 = vld [vmem:[#allocation3 + $0x100] sm:$0xff] }
 0x878   :  { %v22060_v44 = vpack.c.bf16 %v9408_v63, %v9407_v58  ;;  %v22062_v35 = vpack.c.bf16 %v9410_v42, %v9409_v38  ;;  %v9412_v15 = vld [vmem:[#allocation3 + $0x118] sm:$0xff]  ;;  %v9414_v21 = vld [vmem:[#allocation3 + $0x128] sm:$0xff]  ;;  %v9411_v20 = vld [vmem:[#allocation3 + $0x110] sm:$0xff] }
 0x879   :  { %15852 = vmatprep.mubr.msk.bf16.mxu1 %vm9319_vm2, %v21979_v39  ;;  %v22068_v25 = vpack.c.bf16 %v9412_v15, %v9411_v20  ;;  %v9421_v56 = vld [vmem:[#allocation3 + $0x160] sm:$0xff]  ;;  %v9426_v29 = vld [vmem:[#allocation3 + $0x188] sm:$0xff]  ;;  %v9428_v2 = vld [vmem:[#allocation3 + $0x198] sm:$0x3] }
 0x87a   :  { %v9425_v61 = vld [vmem:[#allocation3 + $0x180] sm:$0xff]  ;;  %v10236_v26 = vld [vmem:[#allocation3 + $0xa] sm:$0xff]  ;;  %v10237_v37 = vld [vmem:[#allocation3 + $0x12] sm:$0xff] }
 0x87b   :  { %v22094_v17 = vpack.c.bf16 %v9426_v29, %v9425_v61  ;;  %v10235_v0 = vld [vmem:[#allocation3 + $0x2] sm:$0xff]  ;;  %v22100_v24 = vld [vmem:[#allocation3 + $0x190] sm:$0xff]  ;;  %v10238_v50 = vld [vmem:[#allocation3 + $0x1a] sm:$0xff] }
 0x87c   :  { %v9454_v47 = vpack.c.bf16 %v9428_v2, %v22100_v24  ;;  %v10287_v30 = vpack.c.bf16 %v10236_v26, %v10235_v0  ;;  %v10239_v10 = vld [vmem:[#allocation3 + $0x22] sm:$0xff]  ;;  %v10240_v32 = vld [vmem:[#allocation3 + $0x2a] sm:$0xff]  ;;  %v22105_v4 = vpack.c.bf16 %v10238_v50, %v10237_v37  ;;  %v10242_v63 = vld [vmem:[#allocation3 + $0x3a] sm:$0xff] }
 0x87d   :  { %v17366_v33 = vld [vmem:[%s22928_s5 + $0x68] sm:$0xff]   ;;  %v22110_v6 = vpack.c.bf16 %v10240_v32, %v10239_v10  ;;  %v17367_v60 = vld [vmem:[%s22928_s5 + $0x70] sm:$0xff]  }
 0x87e   :  { %v10243_v42 = vld [vmem:[#allocation3 + $0x42] sm:$0xff]  ;;  %v10244_v58 = vld [vmem:[#allocation3 + $0x4a] sm:$0xff]  ;;  %v10241_v38 = vld [vmem:[#allocation3 + $0x32] sm:$0xff] }
 0x87f   :  { %15853 = vmatmul.mubr.msk.bf16.gmra.mrb[56].mxu1 %vm9319_vm2, %v9540_v40  ;;  %v9413_v40 = vld [vmem:[#allocation3 + $0x120] sm:$0xff]  ;;  %v22120_v15 = vpack.c.bf16 %v10242_v63, %v10241_v38  ;;  %v22125_v20 = vpack.c.bf16 %v10244_v58, %v10243_v42  ;;  %v10256_v2 = vld [vmem:[#allocation3 + $0xaa] sm:$0xff]  ;;  %v10253_v0 = vld [vmem:[#allocation3 + $0x92] sm:$0xff] }
 0x880   :  { %15864 = vmatprep.mubr.msk.bf16.mxu1 %vm9319_vm2, %v9429_v51  ;;  %v22070_v57 = vpack.c.bf16 %v9414_v21, %v9413_v40  ;;  %v9416_v51 = vld [vmem:[#allocation3 + $0x138] sm:$0xff]  ;;  %v10247_v40 = vld [vmem:[#allocation3 + $0x62] sm:$0xff]  ;;  %v10260_v10 = vld [vmem:[#allocation3 + $0xca] sm:$0xff] }
 0x881   :  { %v22076_v31 = vpack.c.bf16 %v9416_v51, %v9415_v12  ;;  %v17368_v21 = vld [vmem:[%s22928_s5 + $0x78] sm:$0xff]   ;;  %v10248_v51 = vld [vmem:[#allocation3 + $0x6a] sm:$0xff]  ;;  %v10255_v61 = vld [vmem:[#allocation3 + $0xa2] sm:$0xff] }
 0x882   :  { %v10259_v50 = vld [vmem:[#allocation3 + $0xc2] sm:$0xff]  ;;  %v10257_v32 = vld [vmem:[#allocation3 + $0xb2] sm:$0xff]  ;;  %v10262_v63 = vld [vmem:[#allocation3 + $0xda] sm:$0xff] }
 0x883   :  { %v10263_v42 = vld [vmem:[#allocation3 + $0xe2] sm:$0xff]  ;;  %v10264_v58 = vld [vmem:[#allocation3 + $0xea] sm:$0xff]  ;;  %v10261_v38 = vld [vmem:[#allocation3 + $0xd2] sm:$0xff] }
 0x887   :  { %15865 = vmatmul.mubr.msk.bf16.vlgmr.msra.gmra.mrb[8].mxu1 %vm9319_vm2, %v21988_v52 }
 0x888   :  { %15868 = vmatprep.mubr.msk.bf16.mxu1 %vm9319_vm2, %v21993_v59  ;;  %15917 = vmatpush3.bf16.msra.mxu1 %v21861_v45  ;;  %v9388_v45 = vld [vmem:[#allocation3 + $0x58] sm:$0xff] }
 0x889   :  { %15918 = vmatprep.subr.bf16.mxu1 %v17362_v28  ;;  %v22014_v5 = vpack.c.bf16 %v9388_v45, %v9387_v9  ;;  %v9424_v45 = vld [vmem:[#allocation3 + $0x178] sm:$0xff]  ;;  %v9423_v9 = vld [vmem:[#allocation3 + $0x170] sm:$0xff] }
 0x88a   :  { %v22092_v7 = vpack.c.bf16 %v9424_v45, %v9423_v9  ;;  %v10254_v9 = vld [vmem:[#allocation3 + $0x9a] sm:$0xff] }
 0x88b   :  { %v22147_v26 = vpack.c.bf16 %v10254_v9, %v10253_v0  ;;  %v10271_v9 = vld [vmem:[#allocation3 + $0x122] sm:$0xff] }
 0x88c   :  { %15919 = vmatpush3.bf16.msra.mxu1 %v17362_v28  ;;  %v22078_v28 = vpack.c.bf16 %v9418_v18, %v9417_v41  ;;  %v10245_v18 = vld [vmem:[#allocation3 + $0x52] sm:$0xff]  ;;  %v22133_v41 = vpack.c.bf16 %v10248_v51, %v10247_v40  ;;  %v10266_v40 = vld [vmem:[#allocation3 + $0xfa] sm:$0xff]  ;;  %v10267_v51 = vld [vmem:[#allocation3 + $0x102] sm:$0xff] }
 0x88d   :  { %15920 = vmatprep.subr.bf16.mxu1 %v17363_v11 }
 0x88f   :  { %15869 = vmatmul.mubr.msk.bf16.gmra.mrb[12].mxu1 %vm9319_vm2, %v22003_v34 }
 0x890   :  { %15872 = vmatprep.mubr.msk.bf16.mxu1 %vm9319_vm2, %v22008_v8  ;;  %15921 = vmatpush3.bf16.msra.mxu1 %v17363_v11  ;;  %v9420_v11 = vld [vmem:[#allocation3 + $0x158] sm:$0xff] }
 0x891   :  { %15922 = vmatprep.subr.bf16.mxu1 %v17364_v43  ;;  %v22084_v1 = vpack.c.bf16 %v9420_v11, %v9419_v36  ;;  %v10250_v11 = vld [vmem:[#allocation3 + $0x7a] sm:$0xff]  ;;  %v10252_v36 = vld [vmem:[#allocation3 + $0x8a] sm:$0xff] }
 0x894   :  { %15923 = vmatpush3.bf16.msra.mxu1 %v17364_v43  ;;  %v22086_v43 = vpack.c.bf16 %v9422_v19, %v9421_v56  ;;  %v10251_v19 = vld [vmem:[#allocation3 + $0x82] sm:$0xff]  ;;  %v10249_v56 = vld [vmem:[#allocation3 + $0x72] sm:$0xff] }
 0x895   :  { %15976 = vmatprep.subr.bf16.mxu1 %v22049_v13  ;;  %v22139_v45 = vpack.c.bf16 %v10250_v11, %v10249_v56  ;;  %v22141_v29 = vpack.c.bf16 %v10252_v36, %v10251_v19  ;;  %v10265_v11 = vld [vmem:[#allocation3 + $0xf2] sm:$0xff]  ;;  %v10270_v56 = vld [vmem:[#allocation3 + $0x11a] sm:$0xff] }
 0x896   :  { %v22174_v19 = vpack.c.bf16 %v10266_v40, %v10265_v11  ;;  %v10279_v40 = vld [vmem:[#allocation3 + $0x162] sm:$0xff] }
 0x897   :  { %15873 = vmatmul.mubr.msk.bf16.gmra.mrb[16].mxu1 %vm9319_vm2, %v22014_v5 }
 0x898   :  { %15876 = vmatprep.mubr.msk.bf16.mxu1 %vm9319_vm2, %v22016_v27 }
 0x89f   :  { %15877 = vmatmul.mubr.msk.bf16.gmra.mrb[20].mxu1 %vm9319_vm2, %v22022_v14 }
 0x8a0   :  { %15880 = vmatprep.mubr.msk.bf16.mxu1 %vm9319_vm2, %v22024_v16 }
 0x8a7   :  { %15881 = vmatmul.mubr.msk.bf16.gmra.mrb[24].mxu1 %vm9319_vm2, %v22030_v53 }
 0x8a8   :  { %15884 = vmatprep.mubr.msk.bf16.mxu1 %vm9319_vm2, %v22032_v3 }
 0x8af   :  { %15885 = vmatmul.mubr.msk.bf16.gmra.mrb[28].mxu1 %vm9319_vm2, %v22038_v46 }
 0x8b0   :  { %15888 = vmatprep.mubr.msk.bf16.mxu1 %vm9319_vm2, %v22040_v62 }
 0x8b7   :  { %15889 = vmatmul.mubr.msk.bf16.gmra.mrb[32].mxu1 %vm9319_vm2, %v22052_v54 }
 0x8b8   :  { %15892 = vmatprep.mubr.msk.bf16.mxu1 %vm9319_vm2, %v22054_v49 }
 0x8bf   :  { %15893 = vmatmul.mubr.msk.bf16.gmra.mrb[36].mxu1 %vm9319_vm2, %v22060_v44 }
 0x8c0   :  { %15896 = vmatprep.mubr.msk.bf16.mxu1 %vm9319_vm2, %v22062_v35 }
 0x8c7   :  { %15897 = vmatmul.mubr.msk.bf16.gmra.mrb[40].mxu1 %vm9319_vm2, %v22068_v25 }
 0x8c8   :  { %15900 = vmatprep.mubr.msk.bf16.mxu1 %vm9319_vm2, %v22070_v57 }
 0x8cf   :  { %15901 = vmatmul.mubr.msk.bf16.gmra.mrb[44].mxu1 %vm9319_vm2, %v22076_v31 }
 0x8d0   :  { %15904 = vmatprep.mubr.msk.bf16.mxu1 %vm9319_vm2, %v22078_v28 }
 0x8d7   :  { %15905 = vmatmul.mubr.msk.bf16.gmra.mrb[48].mxu1 %vm9319_vm2, %v22084_v1 }
 0x8d8   :  { %15908 = vmatprep.mubr.msk.bf16.mxu1 %vm9319_vm2, %v22086_v43 }
 0x8df   :  { %15909 = vmatmul.mubr.msk.bf16.gmra.mrb[52].mxu1 %vm9319_vm2, %v22092_v7 }
 0x8e0   :  { %15912 = vmatprep.mubr.msk.bf16.mxu1 %vm9319_vm2, %v22094_v17 }
 0x8e7   :  { %15913 = vmatmul.mubr.msk.bf16.gmra.mrb[56].mxu1 %vm9319_vm2, %v9454_v47  ;;  %v22149_v47 = vpack.c.bf16 %v10256_v2, %v10255_v61  ;;  %v10272_v61 = vld [vmem:[#allocation3 + $0x12a] sm:$0xff]  ;;  %v10269_v2 = vld [vmem:[#allocation3 + $0x112] sm:$0xff] }
 0x8e8   :  { %15924 = vmatprep.mubr.msk.bf16.mxu1 %vm9319_vm2, %v10287_v30  ;;  %v10258_v30 = vld [vmem:[#allocation3 + $0xba] sm:$0xff]  ;;  %v22182_v0 = vpack.c.bf16 %v10270_v56, %v10269_v2  ;;  %v10284_v2 = vld [vmem:[#allocation3 + $0x18a] sm:$0xff] }
 0x8e9   :  { %v22155_v37 = vpack.c.bf16 %v10258_v30, %v10257_v32  ;;  %v22184_v30 = vpack.c.bf16 %v10272_v61, %v10271_v9  ;;  %v10276_v32 = vld [vmem:[#allocation3 + $0x14a] sm:$0xff]  ;;  %v10282_v9 = vld [vmem:[#allocation3 + $0x17a] sm:$0xff]  ;;  %v10283_v61 = vld [vmem:[#allocation3 + $0x182] sm:$0xff] }
 0x8ef   :  { %15925 = vmatmul.mubr.msk.bf16.vlgmr.msra.gmra.mrb[8].mxu1 %vm9319_vm2, %v22105_v4 }
 0x8f0   :  { %15928 = vmatprep.mubr.msk.bf16.mxu1 %vm9319_vm2, %v22110_v6  ;;  %15977 = vmatpush3.bf16.msra.mxu1 %v22049_v13  ;;  %v10246_v13 = vld [vmem:[#allocation3 + $0x5a] sm:$0xff] }
 0x8f1   :  { %15978 = vmatprep.subr.bf16.mxu1 %v17366_v33  ;;  %v22131_v12 = vpack.c.bf16 %v10246_v13, %v10245_v18  ;;  %v22168_v13 = vpack.c.bf16 %v10264_v58, %v10263_v42  ;;  %v10268_v18 = vld [vmem:[#allocation3 + $0x10a] sm:$0xff] }
 0x8f2   :  { %v22176_v36 = vpack.c.bf16 %v10268_v18, %v10267_v51  ;;  %v10280_v51 = vld [vmem:[#allocation3 + $0x16a] sm:$0xff]  ;;  %v10277_v18 = vld [vmem:[#allocation3 + $0x152] sm:$0xff] }
 0x8f3   :  { %v22200_v56 = vpack.c.bf16 %v10280_v51, %v10279_v40  ;;  %v17370_v51 = vld [vmem:[%s22928_s5 + $0x88] sm:$0xff]  }
 0x8f4   :  { %15979 = vmatpush3.bf16.msra.mxu1 %v17366_v33  ;;  %v22157_v33 = vpack.c.bf16 %v10260_v10, %v10259_v50  ;;  %v10274_v50 = vld [vmem:[#allocation3 + $0x13a] sm:$0xff]  ;;  %v10275_v10 = vld [vmem:[#allocation3 + $0x142] sm:$0xff] }
 0x8f5   :  { %15980 = vmatprep.subr.bf16.mxu1 %v17367_v60  ;;  %v22192_v58 = vpack.c.bf16 %v10276_v32, %v10275_v10  ;;  %v22208_v32 = vpack.c.bf16 %v10284_v2, %v10283_v61  ;;  %v11210_v61 = vld [vmem:[#allocation3 + $0x79] sm:$0xff] }
 0x8f7   :  { %15929 = vmatmul.mubr.msk.bf16.gmra.mrb[12].mxu1 %vm9319_vm2, %v22120_v15 }
 0x8f8   :  { %15932 = vmatprep.mubr.msk.bf16.mxu1 %vm9319_vm2, %v22125_v20  ;;  %15981 = vmatpush3.bf16.msra.mxu1 %v17367_v60  ;;  %v17369_v60 = vld [vmem:[%s22928_s5 + $0x80] sm:$0xff]  }
 0x8f9   :  { %15982 = vmatprep.subr.bf16.mxu1 %v17368_v21 }
 0x8fc   :  { %15983 = vmatpush3.bf16.msra.mxu1 %v17368_v21  ;;  %v22166_v21 = vpack.c.bf16 %v10262_v63, %v10261_v38  ;;  %v10273_v63 = vld [vmem:[#allocation3 + $0x132] sm:$0xff]  ;;  %v10278_v38 = vld [vmem:[#allocation3 + $0x15a] sm:$0xff] }
 0x8fd   :  { %16036 = vmatprep.subr.bf16.mxu1 %v17369_v60  ;;  %v22190_v42 = vpack.c.bf16 %v10274_v50, %v10273_v63  ;;  %v22198_v11 = vpack.c.bf16 %v10278_v38, %v10277_v18  ;;  %v10281_v50 = vld [vmem:[#allocation3 + $0x172] sm:$0xff]  ;;  %v10286_v38 = vld [vmem:[#allocation3 + $0x19a] sm:$0x3] }
 0x8fe   :  { %v22206_v10 = vpack.c.bf16 %v10282_v9, %v10281_v50  ;;  %v22214_v63 = vld [vmem:[#allocation3 + $0x192] sm:$0xff]  ;;  %v11208_v9 = vld [vmem:[#allocation3 + $0x69] sm:$0xff] }
 0x8ff   :  { %15933 = vmatmul.mubr.msk.bf16.gmra.mrb[16].mxu1 %vm9319_vm2, %v22131_v12  ;;  %v10312_v40 = vpack.c.bf16 %v10286_v38, %v22214_v63  ;;  %v17371_v18 = vld [vmem:[%s22928_s5 + $0x90] sm:$0xff]  }
 0x900   :  { %15936 = vmatprep.mubr.msk.bf16.mxu1 %vm9319_vm2, %v22133_v41  ;;  %v11209_v50 = vld [vmem:[#allocation3 + $0x71] sm:$0xff] }
 0x901   :  { %v22315_v38 = vpack.c.bf16 %v11210_v61, %v11209_v50  ;;  %v11227_v50 = vld [vmem:[#allocation3 + $0x101] sm:$0xff] }
 0x907   :  { %15937 = vmatmul.mubr.msk.bf16.gmra.mrb[20].mxu1 %vm9319_vm2, %v22139_v45 }
 0x908   :  { %15940 = vmatprep.mubr.msk.bf16.mxu1 %vm9319_vm2, %v22141_v29 }
 0x90f   :  { %15941 = vmatmul.mubr.msk.bf16.gmra.mrb[24].mxu1 %vm9319_vm2, %v22147_v26 }
 0x910   :  { %15944 = vmatprep.mubr.msk.bf16.mxu1 %vm9319_vm2, %v22149_v47 }
 0x917   :  { %15945 = vmatmul.mubr.msk.bf16.gmra.mrb[28].mxu1 %vm9319_vm2, %v22155_v37 }
 0x918   :  { %15948 = vmatprep.mubr.msk.bf16.mxu1 %vm9319_vm2, %v22157_v33 }
 0x91f   :  { %15949 = vmatmul.mubr.msk.bf16.gmra.mrb[32].mxu1 %vm9319_vm2, %v22166_v21 }
 0x920   :  { %15952 = vmatprep.mubr.msk.bf16.mxu1 %vm9319_vm2, %v22168_v13 }
 0x927   :  { %15953 = vmatmul.mubr.msk.bf16.gmra.mrb[36].mxu1 %vm9319_vm2, %v22174_v19 }
 0x928   :  { %15956 = vmatprep.mubr.msk.bf16.mxu1 %vm9319_vm2, %v22176_v36 }
 0x92f   :  { %15957 = vmatmul.mubr.msk.bf16.gmra.mrb[40].mxu1 %vm9319_vm2, %v22182_v0 }
 0x930   :  { %15960 = vmatprep.mubr.msk.bf16.mxu1 %vm9319_vm2, %v22184_v30 }
 0x937   :  { %15961 = vmatmul.mubr.msk.bf16.gmra.mrb[44].mxu1 %vm9319_vm2, %v22190_v42 }
 0x938   :  { %15964 = vmatprep.mubr.msk.bf16.mxu1 %vm9319_vm2, %v22192_v58 }
 0x93f   :  { %15965 = vmatmul.mubr.msk.bf16.gmra.mrb[48].mxu1 %vm9319_vm2, %v22198_v11 }
 0x940   :  { %15968 = vmatprep.mubr.msk.bf16.mxu1 %vm9319_vm2, %v22200_v56 }
 0x947   :  { %15969 = vmatmul.mubr.msk.bf16.gmra.mrb[52].mxu1 %vm9319_vm2, %v22206_v10 }
 0x948   :  { %15972 = vmatprep.mubr.msk.bf16.mxu1 %vm9319_vm2, %v22208_v32 }
 0x94f   :  { %15973 = vmatmul.mubr.msk.bf16.gmra.mrb[56].mxu1 %vm9319_vm2, %v10312_v40  ;;  %v11211_v40 = vld [vmem:[#allocation3 + $0x81] sm:$0xff] }
 0x950   :  { %15984 = vmatprep.mubr.msk.bf16.mxu1 %vm9319_vm2, %v21988_v52  ;;  %v17372_v52 = vld [vmem:[%s22928_s5 + $0x98] sm:$0xff]  }
 0x957   :  { %15985 = vmatmul.mubr.msk.bf16.vlgmr.msra.gmra.mrb[8].mxu1 %vm9319_vm2, %v21993_v59  ;;  %v17373_v59 = vld [vmem:[%s22928_s5 + $0xa0] sm:$0xff]  }
 0x958   :  { %15988 = vmatprep.mubr.msk.bf16.mxu1 %vm9319_vm2, %v22003_v34  ;;  %16037 = vmatpush3.bf16.msra.mxu1 %v17369_v60  ;;  %v22276_v34 = vld [vmem:[#allocation3 + $0x198] sm:$0xff]  ;;  %v11207_v60 = vld [vmem:[#allocation3 + $0x61] sm:$0xff] }
 0x959   :  { %16038 = vmatprep.subr.bf16.mxu1 %v17370_v51  ;;  %v22313_v2 = vpack.c.bf16 %v11208_v9, %v11207_v60  ;;  %v11225_v9 = vld [vmem:[#allocation3 + $0xf1] sm:$0xff] }
 0x95c   :  { %16039 = vmatpush3.bf16.msra.mxu1 %v17370_v51  ;;  %v11212_v51 = vld [vmem:[#allocation3 + $0x89] sm:$0xff] }
 0x95d   :  { %16040 = vmatprep.subr.bf16.mxu1 %v17371_v18 }
 0x95f   :  { %15989 = vmatmul.mubr.msk.bf16.gmra.mrb[12].mxu1 %vm9319_vm2, %v22008_v8  ;;  %v10792_v8 = vpack.c.bf16 %v22276_v34, %v22100_v24 }
 0x960   :  { %15992 = vmatprep.mubr.msk.bf16.mxu1 %vm9319_vm2, %v22014_v5  ;;  %16041 = vmatpush3.bf16.msra.mxu1 %v17371_v18  ;;  %v10767_v5 = vld [vmem:[#allocation3 + $0x1a8] sm:$0x3]  ;;  %v11214_v18 = vld [vmem:[#allocation3 + $0x99] sm:$0xff] }
 0x961   :  { %16042 = vmatprep.subr.bf16.mxu1 %v17372_v52 }
 0x964   :  { %16043 = vmatpush3.bf16.msra.mxu1 %v17372_v52  ;;  %v22321_v52 = vpack.c.bf16 %v11212_v51, %v11211_v40  ;;  %v11228_v40 = vld [vmem:[#allocation3 + $0x109] sm:$0xff]  ;;  %v11230_v51 = vld [vmem:[#allocation3 + $0x119] sm:$0xff] }
 0x965   :  { %16096 = vmatprep.subr.bf16.mxu1 %v17373_v59 }
 0x967   :  { %15993 = vmatmul.mubr.msk.bf16.gmra.mrb[16].mxu1 %vm9319_vm2, %v22016_v27  ;;  %v11198_v27 = vld [vmem:[#allocation3 + $0x19] sm:$0xff] }
 0x968   :  { %15996 = vmatprep.mubr.msk.bf16.mxu1 %vm9319_vm2, %v22022_v14  ;;  %v22283_v14 = vld [vmem:[#allocation3 + $0x1a0] sm:$0xff] }
 0x96f   :  { %15997 = vmatmul.mubr.msk.bf16.gmra.mrb[20].mxu1 %vm9319_vm2, %v22024_v16  ;;  %v10793_v16 = vpack.c.bf16 %v10767_v5, %v22283_v14  ;;  %v11215_v5 = vld [vmem:[#allocation3 + $0xa1] sm:$0xff] }
 0x970   :  { %16000 = vmatprep.mubr.msk.bf16.mxu1 %vm9319_vm2, %v22030_v53  ;;  %v11197_v53 = vld [vmem:[#allocation3 + $0x11] sm:$0xff] }
 0x977   :  { %16001 = vmatmul.mubr.msk.bf16.gmra.mrb[24].mxu1 %vm9319_vm2, %v22032_v3  ;;  %v11249_v3 = vpack.c.bf16 %v11198_v27, %v11197_v53  ;;  %v11216_v27 = vld [vmem:[#allocation3 + $0xa9] sm:$0xff] }
 0x978   :  { %16004 = vmatprep.mubr.msk.bf16.mxu1 %vm9319_vm2, %v22038_v46  ;;  %v11199_v46 = vld [vmem:[#allocation3 + $0x21] sm:$0xff]  ;;  %v22329_v53 = vpack.c.bf16 %v11216_v27, %v11215_v5 }
 0x979   :  { %v11231_v27 = vld [vmem:[#allocation3 + $0x121] sm:$0xff] }
 0x97f   :  { %16005 = vmatmul.mubr.msk.bf16.gmra.mrb[28].mxu1 %vm9319_vm2, %v22040_v62  ;;  %v11200_v62 = vld [vmem:[#allocation3 + $0x29] sm:$0xff] }
 0x980   :  { %16008 = vmatprep.mubr.msk.bf16.mxu1 %vm9319_vm2, %v22052_v54  ;;  %v11202_v54 = vld [vmem:[#allocation3 + $0x39] sm:$0xff] }
 0x987   :  { %16009 = vmatmul.mubr.msk.bf16.gmra.mrb[32].mxu1 %vm9319_vm2, %v22054_v49  ;;  %v22288_v49 = vpack.c.bf16 %v11200_v62, %v11199_v46  ;;  %v11219_v62 = vld [vmem:[#allocation3 + $0xc1] sm:$0xff] }
 0x988   :  { %16012 = vmatprep.mubr.msk.bf16.mxu1 %vm9319_vm2, %v22060_v44  ;;  %v11201_v44 = vld [vmem:[#allocation3 + $0x31] sm:$0xff] }
 0x98f   :  { %16013 = vmatmul.mubr.msk.bf16.gmra.mrb[36].mxu1 %vm9319_vm2, %v22062_v35  ;;  %v17374_v35 = vld [vmem:[%s22928_s5 + $0xa8] sm:$0xff]  }
 0x990   :  { %16016 = vmatprep.mubr.msk.bf16.mxu1 %vm9319_vm2, %v22068_v25  ;;  %v22293_v25 = vpack.c.bf16 %v11202_v54, %v11201_v44  ;;  %v11220_v54 = vld [vmem:[#allocation3 + $0xc9] sm:$0xff]  ;;  %v11222_v44 = vld [vmem:[#allocation3 + $0xd9] sm:$0xff] }
 0x997   :  { %16017 = vmatmul.mubr.msk.bf16.gmra.mrb[40].mxu1 %vm9319_vm2, %v22070_v57  ;;  %v17375_v57 = vld [vmem:[%s22928_s5 + $0xb0] sm:$0xff]  }
 0x998   :  { %16020 = vmatprep.mubr.msk.bf16.mxu1 %vm9319_vm2, %v22076_v31  ;;  %v11203_v31 = vld [vmem:[#allocation3 + $0x41] sm:$0xff] }
 0x99f   :  { %16021 = vmatmul.mubr.msk.bf16.gmra.mrb[44].mxu1 %vm9319_vm2, %v22078_v28  ;;  %v11204_v28 = vld [vmem:[#allocation3 + $0x49] sm:$0xff] }
 0x9a0   :  { %16024 = vmatprep.mubr.msk.bf16.mxu1 %vm9319_vm2, %v22084_v1  ;;  %v11206_v1 = vld [vmem:[#allocation3 + $0x59] sm:$0xff] }
 0x9a7   :  { %16025 = vmatmul.mubr.msk.bf16.gmra.mrb[48].mxu1 %vm9319_vm2, %v22086_v43  ;;  %v22302_v43 = vpack.c.bf16 %v11204_v28, %v11203_v31  ;;  %v17377_v28 = vld [vmem:[%s22928_s5 + $0xc0] sm:$0xff]  }
 0x9a8   :  { %16028 = vmatprep.mubr.msk.bf16.mxu1 %vm9319_vm2, %v22092_v7  ;;  %v11205_v7 = vld [vmem:[#allocation3 + $0x51] sm:$0xff] }
 0x9a9   :  { %v22307_v24 = vpack.c.bf16 %v11206_v1, %v11205_v7  ;;  %v11223_v1 = vld [vmem:[#allocation3 + $0xe1] sm:$0xff]  ;;  %v11224_v7 = vld [vmem:[#allocation3 + $0xe9] sm:$0xff] }
 0x9aa   :  { %v22348_v60 = vpack.c.bf16 %v11224_v7, %v11223_v1  ;;  %v11236_v1 = vld [vmem:[#allocation3 + $0x149] sm:$0xff] }
 0x9af   :  { %16029 = vmatmul.mubr.msk.bf16.gmra.mrb[52].mxu1 %vm9319_vm2, %v22094_v17  ;;  %v17376_v17 = vld [vmem:[%s22928_s5 + $0xb8] sm:$0xff]  }
 0x9b0   :  { %16032 = vmatprep.mubr.msk.bf16.mxu1 %vm9319_vm2, %v10792_v8 }
 0x9b7   :  { %16033 = vmatmul.mubr.msk.bf16.gmra.mrb[56].mxu1 %vm9319_vm2, %v10793_v16  ;;  %v11218_v16 = vld [vmem:[#allocation3 + $0xb9] sm:$0xff] }
 0x9b8   :  { %16044 = vmatprep.mubr.msk.bf16.mxu1 %vm9319_vm2, %v11249_v3  ;;  %v11217_v3 = vld [vmem:[#allocation3 + $0xb1] sm:$0xff] }
 0x9b9   :  { %v22331_v46 = vpack.c.bf16 %v11218_v16, %v11217_v3  ;;  %v11232_v16 = vld [vmem:[#allocation3 + $0x129] sm:$0xff]  ;;  %v11234_v3 = vld [vmem:[#allocation3 + $0x139] sm:$0xff] }
 0x9bf   :  { %16045 = vmatmul.mubr.msk.bf16.vlgmr.msra.gmra.mrb[8].mxu1 %vm9319_vm2, %v22288_v49 }
 0x9c0   :  { %16048 = vmatprep.mubr.msk.bf16.mxu1 %vm9319_vm2, %v22293_v25  ;;  %16097 = vmatpush3.bf16.msra.mxu1 %v17373_v59  ;;  %v11213_v59 = vld [vmem:[#allocation3 + $0x91] sm:$0xff] }
 0x9c1   :  { %16098 = vmatprep.subr.bf16.mxu1 %v17374_v35  ;;  %v22323_v8 = vpack.c.bf16 %v11214_v18, %v11213_v59  ;;  %v22356_v18 = vpack.c.bf16 %v11228_v40, %v11227_v50  ;;  %v11229_v59 = vld [vmem:[#allocation3 + $0x111] sm:$0xff]  ;;  %v22389_v50 = vld [vmem:[#allocation3 + $0x1a1] sm:$0xff]  ;;  %v11248_v40 = vld [vmem:[#allocation3 + $0x1a9] sm:$0x3] }
 0x9c2   :  { %v22358_v5 = vpack.c.bf16 %v11230_v51, %v11229_v59  ;;  %v12171_v59 = vld [vmem:[#allocation3 + $0x80] sm:$0xff] }
 0x9c4   :  { %16099 = vmatpush3.bf16.msra.mxu1 %v17374_v35  ;;  %v22337_v35 = vpack.c.bf16 %v11220_v54, %v11219_v62  ;;  %v22364_v62 = vpack.c.bf16 %v11232_v16, %v11231_v27  ;;  %v11233_v54 = vld [vmem:[#allocation3 + $0x131] sm:$0xff] }
 0x9c5   :  { %16100 = vmatprep.subr.bf16.mxu1 %v17375_v57  ;;  %v12174_v16 = vld [vmem:[#allocation3 + $0x98] sm:$0xff] }
 0x9c7   :  { %16049 = vmatmul.mubr.msk.bf16.gmra.mrb[12].mxu1 %vm9319_vm2, %v22302_v43 }
 0x9c8   :  { %16052 = vmatprep.mubr.msk.bf16.mxu1 %vm9319_vm2, %v22307_v24  ;;  %16101 = vmatpush3.bf16.msra.mxu1 %v17375_v57  ;;  %v11221_v57 = vld [vmem:[#allocation3 + $0xd1] sm:$0xff] }
 0x9c9   :  { %16102 = vmatprep.subr.bf16.mxu1 %v17376_v17  ;;  %v22339_v31 = vpack.c.bf16 %v11222_v44, %v11221_v57  ;;  %v22366_v44 = vpack.c.bf16 %v11234_v3, %v11233_v54  ;;  %v11235_v57 = vld [vmem:[#allocation3 + $0x141] sm:$0xff]  ;;  %v12173_v54 = vld [vmem:[#allocation3 + $0x90] sm:$0xff] }
 0x9ca   :  { %v22372_v7 = vpack.c.bf16 %v11236_v1, %v11235_v57  ;;  %v12176_v3 = vld [vmem:[#allocation3 + $0xa8] sm:$0xff]  ;;  %v12218_v57 = vpack.c.bf16 %v12174_v16, %v12173_v54  ;;  %v12175_v1 = vld [vmem:[#allocation3 + $0xa0] sm:$0xff]  ;;  %v12197_v16 = vld [vmem:[#allocation3 + $0x150] sm:$0xff] }
 0x9cb   :  { %v12199_v54 = vld [vmem:[#allocation3 + $0x160] sm:$0xff] }
 0x9cc   :  { %16103 = vmatpush3.bf16.msra.mxu1 %v17376_v17  ;;  %v11226_v17 = vld [vmem:[#allocation3 + $0xf9] sm:$0xff] }
 0x9cd   :  { %16156 = vmatprep.subr.bf16.mxu1 %v17377_v28  ;;  %v22350_v61 = vpack.c.bf16 %v11226_v17, %v11225_v9  ;;  %v22382_v17 = vld [vmem:[#allocation3 + $0x199] sm:$0xff] }
 0x9ce   :  { %v11273_v9 = vpack.c.bf16 %v22382_v17, %v21983_v22  ;;  %v17381_v22 = vld [vmem:[%s22928_s5 + $0xe0] sm:$0xff]  }
 0x9cf   :  { %16053 = vmatmul.mubr.msk.bf16.gmra.mrb[16].mxu1 %vm9319_vm2, %v22313_v2 }
 0x9d0   :  { %16056 = vmatprep.mubr.msk.bf16.mxu1 %vm9319_vm2, %v22315_v38 }
 0x9d7   :  { %16057 = vmatmul.mubr.msk.bf16.gmra.mrb[20].mxu1 %vm9319_vm2, %v22321_v52 }
 0x9d8   :  { %16060 = vmatprep.mubr.msk.bf16.mxu1 %vm9319_vm2, %v22323_v8 }
 0x9df   :  { %16061 = vmatmul.mubr.msk.bf16.gmra.mrb[24].mxu1 %vm9319_vm2, %v22329_v53 }
 0x9e0   :  { %16064 = vmatprep.mubr.msk.bf16.mxu1 %vm9319_vm2, %v22331_v46 }
 0x9e7   :  { %16065 = vmatmul.mubr.msk.bf16.gmra.mrb[28].mxu1 %vm9319_vm2, %v22337_v35 }
 0x9e8   :  { %16068 = vmatprep.mubr.msk.bf16.mxu1 %vm9319_vm2, %v22339_v31 }
 0x9ef   :  { %16069 = vmatmul.mubr.msk.bf16.gmra.mrb[32].mxu1 %vm9319_vm2, %v22348_v60 }
 0x9f0   :  { %16072 = vmatprep.mubr.msk.bf16.mxu1 %vm9319_vm2, %v22350_v61 }
 0x9f7   :  { %16073 = vmatmul.mubr.msk.bf16.gmra.mrb[36].mxu1 %vm9319_vm2, %v22356_v18 }
 0x9f8   :  { %16076 = vmatprep.mubr.msk.bf16.mxu1 %vm9319_vm2, %v22358_v5 }
 0x9ff   :  { %16077 = vmatmul.mubr.msk.bf16.gmra.mrb[40].mxu1 %vm9319_vm2, %v22364_v62 }
 0xa00   :  { %16080 = vmatprep.mubr.msk.bf16.mxu1 %vm9319_vm2, %v22366_v44 }
 0xa07   :  { %16081 = vmatmul.mubr.msk.bf16.gmra.mrb[44].mxu1 %vm9319_vm2, %v22372_v7 }
 0xa08   :  { %16084 = vmatprep.mubr.msk.bf16.mxu1 %vm9319_vm2, %v21944_v23  ;;  %v11274_v23 = vpack.c.bf16 %v11248_v40, %v22389_v50  ;;  %v12178_v40 = vld [vmem:[#allocation3 + $0xb8] sm:$0xff] }
 0xa0f   :  { %16085 = vmatmul.mubr.msk.bf16.gmra.mrb[48].mxu1 %vm9319_vm2, %v21956_v48  ;;  %v17378_v48 = vld [vmem:[%s22928_s5 + $0xc8] sm:$0xff]  }
 0xa10   :  { %16088 = vmatprep.mubr.msk.bf16.mxu1 %vm9319_vm2, %v21974_v55  ;;  %v17379_v55 = vld [vmem:[%s22928_s5 + $0xd0] sm:$0xff]  }
 0xa17   :  { %16089 = vmatmul.mubr.msk.bf16.gmra.mrb[52].mxu1 %vm9319_vm2, %v21979_v39  ;;  %v17380_v39 = vld [vmem:[%s22928_s5 + $0xd8] sm:$0xff]  }
 0xa18   :  { %16092 = vmatprep.mubr.msk.bf16.mxu1 %vm9319_vm2, %v11273_v9  ;;  %v12219_v9 = vpack.c.bf16 %v12176_v3, %v12175_v1  ;;  %v12202_v1 = vld [vmem:[#allocation3 + $0x178] sm:$0xff] }
 0xa1f   :  { %16093 = vmatmul.mubr.msk.bf16.gmra.mrb[56].mxu1 %vm9319_vm2, %v11274_v23  ;;  %v12180_v23 = vld [vmem:[#allocation3 + $0xc8] sm:$0xff] }
 0xa20   :  { %16104 = vmatprep.mubr.msk.bf16.mxu1 %vm9319_vm2, %v22105_v4  ;;  %v22451_v4 = vld [vmem:[#allocation3 + $0x19a] sm:$0xff] }
 0xa27   :  { %16105 = vmatmul.mubr.msk.bf16.vlgmr.msra.gmra.mrb[8].mxu1 %vm9319_vm2, %v22110_v6  ;;  %v11754_v6 = vpack.c.bf16 %v22451_v4, %v22214_v63  ;;  %v12172_v63 = vld [vmem:[#allocation3 + $0x88] sm:$0xff] }
 0xa28   :  { %16108 = vmatprep.mubr.msk.bf16.mxu1 %vm9319_vm2, %v22120_v15  ;;  %16157 = vmatpush3.bf16.msra.mxu1 %v17377_v28  ;;  %v22458_v15 = vld [vmem:[#allocation3 + $0x1a2] sm:$0xff]  ;;  %v12169_v28 = vld [vmem:[#allocation3 + $0x70] sm:$0xff]  ;;  %v12217_v27 = vpack.c.bf16 %v12172_v63, %v12171_v59  ;;  %v12198_v59 = vld [vmem:[#allocation3 + $0x158] sm:$0xff] }
 0xa29   :  { %16158 = vmatprep.subr.bf16.mxu1 %v17378_v48  ;;  %v12230_v3 = vpack.c.bf16 %v12198_v59, %v12197_v16  ;;  %v13136_v59 = vld [vmem:[#allocation3 + $0x9a] sm:$0xff]  ;;  %v13138_v16 = vld [vmem:[#allocation3 + $0xaa] sm:$0xff] }
 0xa2c   :  { %16159 = vmatpush3.bf16.msra.mxu1 %v17378_v48  ;;  %v12177_v48 = vld [vmem:[#allocation3 + $0xb0] sm:$0xff] }
 0xa2d   :  { %16160 = vmatprep.subr.bf16.mxu1 %v17379_v55 }
 0xa2f   :  { %16109 = vmatmul.mubr.msk.bf16.gmra.mrb[12].mxu1 %vm9319_vm2, %v22125_v20  ;;  %v11729_v20 = vld [vmem:[#allocation3 + $0x1aa] sm:$0x3] }
 0xa30   :  { %16112 = vmatprep.mubr.msk.bf16.mxu1 %vm9319_vm2, %v22131_v12  ;;  %16161 = vmatpush3.bf16.msra.mxu1 %v17379_v55  ;;  %v12160_v12 = vld [vmem:[#allocation3 + $0x28] sm:$0xff]  ;;  %v12220_v55 = vpack.c.bf16 %v12178_v40, %v12177_v48  ;;  %v12201_v40 = vld [vmem:[#allocation3 + $0x170] sm:$0xff]  ;;  %v12203_v48 = vld [vmem:[#allocation3 + $0x180] sm:$0xff] }
 0xa31   :  { %16162 = vmatprep.subr.bf16.mxu1 %v17380_v39 }
 0xa34   :  { %16163 = vmatpush3.bf16.msra.mxu1 %v17380_v39  ;;  %v12179_v39 = vld [vmem:[#allocation3 + $0xc0] sm:$0xff] }
 0xa35   :  { %16216 = vmatprep.subr.bf16.mxu1 %v17381_v22 }
 0xa37   :  { %16113 = vmatmul.mubr.msk.bf16.gmra.mrb[16].mxu1 %vm9319_vm2, %v22133_v41  ;;  %v11755_v41 = vpack.c.bf16 %v11729_v20, %v22458_v15  ;;  %v12184_v20 = vld [vmem:[#allocation3 + $0xe8] sm:$0xff] }
 0xa38   :  { %16116 = vmatprep.mubr.msk.bf16.mxu1 %vm9319_vm2, %v22139_v45  ;;  %v12159_v45 = vld [vmem:[#allocation3 + $0x20] sm:$0xff] }
 0xa3f   :  { %16117 = vmatmul.mubr.msk.bf16.gmra.mrb[20].mxu1 %vm9319_vm2, %v22141_v29  ;;  %v12211_v29 = vpack.c.bf16 %v12160_v12, %v12159_v45  ;;  %v12181_v12 = vld [vmem:[#allocation3 + $0xd0] sm:$0xff]  ;;  %v12183_v45 = vld [vmem:[#allocation3 + $0xe0] sm:$0xff] }
 0xa40   :  { %16120 = vmatprep.mubr.msk.bf16.mxu1 %vm9319_vm2, %v22147_v26  ;;  %v12162_v26 = vld [vmem:[#allocation3 + $0x38] sm:$0xff] }
 0xa47   :  { %16121 = vmatmul.mubr.msk.bf16.gmra.mrb[24].mxu1 %vm9319_vm2, %v22149_v47  ;;  %v12164_v47 = vld [vmem:[#allocation3 + $0x48] sm:$0xff] }
 0xa48   :  { %16124 = vmatprep.mubr.msk.bf16.mxu1 %vm9319_vm2, %v22155_v37  ;;  %v12161_v37 = vld [vmem:[#allocation3 + $0x30] sm:$0xff] }
 0xa4f   :  { %16125 = vmatmul.mubr.msk.bf16.gmra.mrb[28].mxu1 %vm9319_vm2, %v22157_v33  ;;  %v12212_v33 = vpack.c.bf16 %v12162_v26, %v12161_v37  ;;  %v17385_v26 = vld [vmem:[%s22928_s5 + $0x100] sm:$0xff]   ;;  %v12188_v37 = vld [vmem:[#allocation3 + $0x108] sm:$0xff] }
 0xa50   :  { %16128 = vmatprep.mubr.msk.bf16.mxu1 %vm9319_vm2, %v22166_v21  ;;  %v12163_v21 = vld [vmem:[#allocation3 + $0x40] sm:$0xff] }
 0xa57   :  { %16129 = vmatmul.mubr.msk.bf16.gmra.mrb[32].mxu1 %vm9319_vm2, %v22168_v13  ;;  %v17382_v13 = vld [vmem:[%s22928_s5 + $0xe8] sm:$0xff]  }
 0xa58   :  { %16132 = vmatprep.mubr.msk.bf16.mxu1 %vm9319_vm2, %v22174_v19  ;;  %v12213_v19 = vpack.c.bf16 %v12164_v47, %v12163_v21  ;;  %v12186_v47 = vld [vmem:[#allocation3 + $0xf8] sm:$0xff] }
 0xa5f   :  { %16133 = vmatmul.mubr.msk.bf16.gmra.mrb[36].mxu1 %vm9319_vm2, %v22176_v36  ;;  %v17383_v36 = vld [vmem:[%s22928_s5 + $0xf0] sm:$0xff]  }
 0xa60   :  { %16136 = vmatprep.mubr.msk.bf16.mxu1 %vm9319_vm2, %v22182_v0  ;;  %v12166_v0 = vld [vmem:[#allocation3 + $0x58] sm:$0xff] }
 0xa67   :  { %16137 = vmatmul.mubr.msk.bf16.gmra.mrb[40].mxu1 %vm9319_vm2, %v22184_v30  ;;  %v12168_v30 = vld [vmem:[#allocation3 + $0x68] sm:$0xff] }
 0xa68   :  { %16140 = vmatprep.mubr.msk.bf16.mxu1 %vm9319_vm2, %v22190_v42  ;;  %v12165_v42 = vld [vmem:[#allocation3 + $0x50] sm:$0xff] }
 0xa6f   :  { %16141 = vmatmul.mubr.msk.bf16.gmra.mrb[44].mxu1 %vm9319_vm2, %v22192_v58  ;;  %v12214_v58 = vpack.c.bf16 %v12166_v0, %v12165_v42  ;;  %v12192_v0 = vld [vmem:[#allocation3 + $0x128] sm:$0xff] }
 0xa70   :  { %16144 = vmatprep.mubr.msk.bf16.mxu1 %vm9319_vm2, %v22198_v11  ;;  %v12167_v11 = vld [vmem:[#allocation3 + $0x60] sm:$0xff] }
 0xa77   :  { %16145 = vmatmul.mubr.msk.bf16.gmra.mrb[48].mxu1 %vm9319_vm2, %v22200_v56  ;;  %v17384_v56 = vld [vmem:[%s22928_s5 + $0xf8] sm:$0xff]  }
 0xa78   :  { %16148 = vmatprep.mubr.msk.bf16.mxu1 %vm9319_vm2, %v22206_v10  ;;  %v12215_v10 = vpack.c.bf16 %v12168_v30, %v12167_v11  ;;  %v12189_v30 = vld [vmem:[#allocation3 + $0x110] sm:$0xff] }
 0xa7f   :  { %16149 = vmatmul.mubr.msk.bf16.gmra.mrb[52].mxu1 %vm9319_vm2, %v22208_v32  ;;  %v12170_v32 = vld [vmem:[#allocation3 + $0x78] sm:$0xff] }
 0xa80   :  { %16152 = vmatprep.mubr.msk.bf16.mxu1 %vm9319_vm2, %v11754_v6  ;;  %v12216_v51 = vpack.c.bf16 %v12170_v32, %v12169_v28  ;;  %v12182_v6 = vld [vmem:[#allocation3 + $0xd8] sm:$0xff]  ;;  %v12193_v32 = vld [vmem:[#allocation3 + $0x130] sm:$0xff]  ;;  %v12195_v28 = vld [vmem:[#allocation3 + $0x140] sm:$0xff] }
 0xa87   :  { %16153 = vmatmul.mubr.msk.bf16.gmra.mrb[56].mxu1 %vm9319_vm2, %v11755_v41  ;;  %v12222_v41 = vpack.c.bf16 %v12182_v6, %v12181_v12  ;;  %v12210_v12 = vld [vmem:[#allocation3 + $0x1b8] sm:$0x3] }
 0xa88   :  { %16164 = vmatprep.mubr.msk.bf16.mxu1 %vm9319_vm2, %v12211_v29  ;;  %v12223_v29 = vpack.c.bf16 %v12184_v20, %v12183_v45 }
 0xa8f   :  { %16165 = vmatmul.mubr.msk.bf16.vlgmr.msra.gmra.mrb[8].mxu1 %vm9319_vm2, %v12212_v33  ;;  %v12185_v33 = vld [vmem:[#allocation3 + $0xf0] sm:$0xff] }
 0xa90   :  { %16168 = vmatprep.mubr.msk.bf16.mxu1 %vm9319_vm2, %v12213_v19  ;;  %16217 = vmatpush3.bf16.msra.mxu1 %v17381_v22  ;;  %v12221_v22 = vpack.c.bf16 %v12180_v23, %v12179_v39  ;;  %v12224_v21 = vpack.c.bf16 %v12186_v47, %v12185_v33  ;;  %v12232_v23 = vpack.c.bf16 %v12202_v1, %v12201_v40  ;;  %v12208_v39 = vld [vmem:[#allocation3 + $0x1a8] sm:$0xff]  ;;  %v13124_v33 = vld [vmem:[#allocation3 + $0x3a] sm:$0xff] }
 0xa91   :  { %16218 = vmatprep.subr.bf16.mxu1 %v17382_v13  ;;  %v12235_v20 = vpack.c.bf16 %v12208_v39, %v22283_v14  ;;  %v17388_v14 = vld [vmem:[%s22928_s5 + $0x118] sm:$0xff]   ;;  %v13142_v40 = vld [vmem:[#allocation3 + $0xca] sm:$0xff] }
 0xa92   :  { %v13140_v1 = vld [vmem:[#allocation3 + $0xba] sm:$0xff] }
 0xa93   :  { %v13144_v39 = vld [vmem:[#allocation3 + $0xda] sm:$0xff] }
 0xa94   :  { %16219 = vmatpush3.bf16.msra.mxu1 %v17382_v13  ;;  %v12187_v13 = vld [vmem:[#allocation3 + $0x100] sm:$0xff] }
 0xa95   :  { %16220 = vmatprep.subr.bf16.mxu1 %v17383_v36  ;;  %v12225_v19 = vpack.c.bf16 %v12188_v37, %v12187_v13  ;;  %v13126_v13 = vld [vmem:[#allocation3 + $0x4a] sm:$0xff] }
 0xa97   :  { %16169 = vmatmul.mubr.msk.bf16.gmra.mrb[12].mxu1 %vm9319_vm2, %v12214_v58  ;;  %v12191_v58 = vld [vmem:[#allocation3 + $0x120] sm:$0xff] }
 0xa98   :  { %16172 = vmatprep.mubr.msk.bf16.mxu1 %vm9319_vm2, %v12215_v10  ;;  %16221 = vmatpush3.bf16.msra.mxu1 %v17383_v36  ;;  %v12190_v36 = vld [vmem:[#allocation3 + $0x118] sm:$0xff]  ;;  %v12227_v11 = vpack.c.bf16 %v12192_v0, %v12191_v58  ;;  %v12196_v10 = vld [vmem:[#allocation3 + $0x148] sm:$0xff] }
 0xa99   :  { %16222 = vmatprep.subr.bf16.mxu1 %v17384_v56  ;;  %v12226_v42 = vpack.c.bf16 %v12190_v36, %v12189_v30  ;;  %v13128_v36 = vld [vmem:[#allocation3 + $0x5a] sm:$0xff]  ;;  %v13129_v0 = vld [vmem:[#allocation3 + $0x62] sm:$0xff]  ;;  %v13130_v30 = vld [vmem:[#allocation3 + $0x6a] sm:$0xff] }
 0xa9c   :  { %16223 = vmatpush3.bf16.msra.mxu1 %v17384_v56  ;;  %v12194_v56 = vld [vmem:[#allocation3 + $0x138] sm:$0xff] }
 0xa9d   :  { %16276 = vmatprep.subr.bf16.mxu1 %v17385_v26  ;;  %v12228_v63 = vpack.c.bf16 %v12194_v56, %v12193_v32  ;;  %v13132_v56 = vld [vmem:[#allocation3 + $0x7a] sm:$0xff]  ;;  %v13134_v32 = vld [vmem:[#allocation3 + $0x8a] sm:$0xff] }
 0xa9f   :  { %16173 = vmatmul.mubr.msk.bf16.gmra.mrb[16].mxu1 %vm9319_vm2, %v12216_v51  ;;  %v12229_v51 = vpack.c.bf16 %v12196_v10, %v12195_v28  ;;  %v13133_v10 = vld [vmem:[#allocation3 + $0x82] sm:$0xff] }
 0xaa0   :  { %16176 = vmatprep.mubr.msk.bf16.mxu1 %vm9319_vm2, %v12217_v27  ;;  %v12200_v27 = vld [vmem:[#allocation3 + $0x168] sm:$0xff] }
 0xaa7   :  { %16177 = vmatmul.mubr.msk.bf16.gmra.mrb[20].mxu1 %vm9319_vm2, %v12218_v57  ;;  %v12231_v57 = vpack.c.bf16 %v12200_v27, %v12199_v54  ;;  %v13137_v27 = vld [vmem:[#allocation3 + $0xa2] sm:$0xff] }
 0xaa8   :  { %16180 = vmatprep.mubr.msk.bf16.mxu1 %vm9319_vm2, %v12219_v9  ;;  %v12204_v9 = vld [vmem:[#allocation3 + $0x188] sm:$0xff] }
 0xaaf   :  { %16181 = vmatmul.mubr.msk.bf16.gmra.mrb[24].mxu1 %vm9319_vm2, %v12220_v55  ;;  %v12233_v55 = vpack.c.bf16 %v12204_v9, %v12203_v48  ;;  %v13141_v9 = vld [vmem:[#allocation3 + $0xc2] sm:$0xff] }
 0xab0   :  { %16184 = vmatprep.mubr.msk.bf16.mxu1 %vm9319_vm2, %v12221_v22  ;;  %v12205_v22 = vld [vmem:[#allocation3 + $0x190] sm:$0xff] }
 0xab1   :  { %v12234_v6 = vpack.c.bf16 %v22276_v34, %v12205_v22  ;;  %v17387_v34 = vld [vmem:[%s22928_s5 + $0x110] sm:$0xff]   ;;  %v13145_v22 = vld [vmem:[#allocation3 + $0xe2] sm:$0xff] }
 0xab7   :  { %16185 = vmatmul.mubr.msk.bf16.gmra.mrb[28].mxu1 %vm9319_vm2, %v12222_v41  ;;  %v12209_v41 = vld [vmem:[#allocation3 + $0x1b0] sm:$0xff] }
 0xab8   :  { %16188 = vmatprep.mubr.msk.bf16.mxu1 %vm9319_vm2, %v12223_v29  ;;  %v12236_v45 = vpack.c.bf16 %v12210_v12, %v12209_v41  ;;  %v17386_v29 = vld [vmem:[%s22928_s5 + $0x108] sm:$0xff]  }
 0xabf   :  { %16189 = vmatmul.mubr.msk.bf16.gmra.mrb[32].mxu1 %vm9319_vm2, %v12224_v21  ;;  %v13125_v21 = vld [vmem:[#allocation3 + $0x42] sm:$0xff] }
 0xac0   :  { %16192 = vmatprep.mubr.msk.bf16.mxu1 %vm9319_vm2, %v12225_v19 }
 0xac7   :  { %16193 = vmatmul.mubr.msk.bf16.gmra.mrb[36].mxu1 %vm9319_vm2, %v12226_v42  ;;  %v13127_v42 = vld [vmem:[#allocation3 + $0x52] sm:$0xff] }
 0xac8   :  { %16196 = vmatprep.mubr.msk.bf16.mxu1 %vm9319_vm2, %v12227_v11  ;;  %v13176_v58 = vpack.c.bf16 %v13128_v36, %v13127_v42  ;;  %v13177_v11 = vpack.c.bf16 %v13130_v30, %v13129_v0  ;;  %v13171_v30 = vld [vmem:[#allocation3 + $0x1b2] sm:$0xff]  ;;  %v13172_v42 = vld [vmem:[#allocation3 + $0x1ba] sm:$0x3] }
 0xacf   :  { %16197 = vmatmul.mubr.msk.bf16.gmra.mrb[40].mxu1 %vm9319_vm2, %v12228_v63  ;;  %v13131_v63 = vld [vmem:[#allocation3 + $0x72] sm:$0xff] }
 0xad0   :  { %16200 = vmatprep.mubr.msk.bf16.mxu1 %vm9319_vm2, %v12229_v51  ;;  %v13178_v28 = vpack.c.bf16 %v13132_v56, %v13131_v63  ;;  %v13179_v51 = vpack.c.bf16 %v13134_v32, %v13133_v10  ;;  %v13831_v10 = vlaneseq }
 0xad2   :  { %v13832_v63 = vshrl.u32 %v13831_v10, 7 }
 0xad7   :  { %16201 = vmatmul.mubr.msk.bf16.gmra.mrb[44].mxu1 %vm9319_vm2, %v12230_v3  ;;  %v13135_v3 = vld [vmem:[#allocation3 + $0x92] sm:$0xff] }
 0xad8   :  { %16204 = vmatprep.mubr.msk.bf16.mxu1 %vm9319_vm2, %v12231_v57  ;;  %v13180_v54 = vpack.c.bf16 %v13136_v59, %v13135_v3  ;;  %v13181_v57 = vpack.c.bf16 %v13138_v16, %v13137_v27  ;;  %v13994_v3 = vld [vmem:[%s22931_s8] sm:$0xff] }
 0xadf   :  { %16205 = vmatmul.mubr.msk.bf16.gmra.mrb[48].mxu1 %vm9319_vm2, %v12232_v23  ;;  %v13139_v23 = vld [vmem:[#allocation3 + $0xb2] sm:$0xff] }
 0xae0   :  { %16208 = vmatprep.mubr.msk.bf16.mxu1 %vm9319_vm2, %v12233_v55  ;;  %v13182_v48 = vpack.c.bf16 %v13140_v1, %v13139_v23  ;;  %v13183_v55 = vpack.c.bf16 %v13142_v40, %v13141_v9  ;;  %v13997_v9 = vld [vmem:[%s22931_s8 + $0x18] sm:$0xff]  ;;  %v13998_v23 = vld [vmem:[%s22931_s8 + $0x20] sm:$0xff] }
 0xae7   :  { %16209 = vmatmul.mubr.msk.bf16.gmra.mrb[52].mxu1 %vm9319_vm2, %v12234_v6  ;;  %v13146_v6 = vld [vmem:[#allocation3 + $0xea] sm:$0xff] }
 0xae8   :  { %16212 = vmatprep.mubr.msk.bf16.mxu1 %vm9319_vm2, %v12235_v20  ;;  %v13143_v20 = vld [vmem:[#allocation3 + $0xd2] sm:$0xff]  ;;  %v13185_v41 = vpack.c.bf16 %v13146_v6, %v13145_v22 }
 0xae9   :  { %v13184_v12 = vpack.c.bf16 %v13144_v39, %v13143_v20  ;;  %v22618_v39 = vld [vmem:[%s22929_s6] ss:$0 sm:$0xff]  ;;  %v14000_v22 = vld [vmem:[%s22931_s8 + $0x30] sm:$0xff]  ;;  %v14001_v6 = vld [vmem:[%s22931_s8 + $0x38] sm:$0xff] }
 0xaef   :  { %16213 = vmatmul.mubr.msk.bf16.gmra.mrb[56].mxu1 %vm9319_vm2, %v12236_v45  ;;  %v13148_v45 = vld [vmem:[#allocation3 + $0xfa] sm:$0xff] }
 0xaf0   :  { %16224 = vmatprep.mubr.msk.bf16.mxu1 %vm9319_vm2, %v22288_v49  ;;  %v12679_v49 = vld [vmem:[#allocation3 + $0x159] sm:$0xff] }
 0xaf7   :  { %16225 = vmatmul.mubr.msk.bf16.vlgmr.msra.gmra.mrb[8].mxu1 %vm9319_vm2, %v22293_v25  ;;  %v12680_v25 = vld [vmem:[#allocation3 + $0x161] sm:$0xff] }
 0xaf8   :  { %16228 = vmatprep.mubr.msk.bf16.mxu1 %vm9319_vm2, %v22302_v43  ;;  %16277 = vmatpush3.bf16.msra.mxu1 %v17385_v26  ;;  %v12681_v43 = vld [vmem:[#allocation3 + $0x169] sm:$0xff] }
 0xaf9   :  { %16278 = vmatprep.subr.bf16.mxu1 %v17386_v29  ;;  %v13122_v26 = vld [vmem:[#allocation3 + $0x2a] sm:$0xff] }
 0xafc   :  { %16279 = vmatpush3.bf16.msra.mxu1 %v17386_v29  ;;  %v13149_v29 = vld [vmem:[#allocation3 + $0x102] sm:$0xff] }
 0xafd   :  { %16280 = vmatprep.subr.bf16.mxu1 %v17387_v34 }
 0xaff   :  { %16229 = vmatmul.mubr.msk.bf16.gmra.mrb[12].mxu1 %vm9319_vm2, %v22307_v24  ;;  %v12678_v24 = vld [vmem:[#allocation3 + $0x151] sm:$0xff] }
 0xb00   :  { %16232 = vmatprep.mubr.msk.bf16.mxu1 %vm9319_vm2, %v22313_v2  ;;  %16281 = vmatpush3.bf16.msra.mxu1 %v17387_v34  ;;  %v12711_v2 = vpack.c.bf16 %v12679_v49, %v12678_v24  ;;  %v13150_v34 = vld [vmem:[#allocation3 + $0x10a] sm:$0xff]  ;;  %v13153_v24 = vld [vmem:[#allocation3 + $0x122] sm:$0xff] }
 0xb01   :  { %16282 = vmatprep.subr.bf16.mxu1 %v17388_v14 }
 0xb04   :  { %16283 = vmatpush3.bf16.msra.mxu1 %v17388_v14  ;;  %v13147_v14 = vld [vmem:[#allocation3 + $0xf2] sm:$0xff] }
 0xb05   :  { %v13186_v49 = vpack.c.bf16 %v13148_v45, %v13147_v14  ;;  %v16444_v45 = vpack.c.bf16 %v14001_v6, %v14000_v22 }
 0xb07   :  { %16233 = vmatmul.mubr.msk.bf16.gmra.mrb[16].mxu1 %vm9319_vm2, %v22315_v38  ;;  %v12712_v38 = vpack.c.bf16 %v12681_v43, %v12680_v25  ;;  %v13187_v25 = vpack.c.bf16 %v13150_v34, %v13149_v29  ;;  %v13152_v43 = vld [vmem:[#allocation3 + $0x11a] sm:$0xff] }
 0xb08   :  { %16236 = vmatprep.mubr.msk.bf16.mxu1 %vm9319_vm2, %v22321_v52  ;;  %v12683_v52 = vld [vmem:[#allocation3 + $0x179] sm:$0xff]  ;;  %v22631_v29 = vld [vmem:[%s22929_s6 + $0x1] ss:$0 sm:$0xff] }
 0xb0f   :  { %16237 = vmatmul.mubr.msk.bf16.gmra.mrb[20].mxu1 %vm9319_vm2, %v22323_v8  ;;  %v12684_v8 = vld [vmem:[#allocation3 + $0x181] sm:$0xff] }
 0xb10   :  { %16240 = vmatprep.mubr.msk.bf16.mxu1 %vm9319_vm2, %v22329_v53  ;;  %v12685_v53 = vld [vmem:[#allocation3 + $0x189] sm:$0xff] }
 0xb17   :  { %16241 = vmatmul.mubr.msk.bf16.gmra.mrb[24].mxu1 %vm9319_vm2, %v22331_v46  ;;  %v12682_v46 = vld [vmem:[#allocation3 + $0x171] sm:$0xff] }
 0xb18   :  { %16244 = vmatprep.mubr.msk.bf16.mxu1 %vm9319_vm2, %v22337_v35  ;;  %v12713_v35 = vpack.c.bf16 %v12683_v52, %v12682_v46  ;;  %v13157_v46 = vld [vmem:[#allocation3 + $0x142] sm:$0xff] }
 0xb1f   :  { %16245 = vmatmul.mubr.msk.bf16.gmra.mrb[28].mxu1 %vm9319_vm2, %v22339_v31  ;;  %v12714_v31 = vpack.c.bf16 %v12685_v53, %v12684_v8  ;;  %v13156_v53 = vld [vmem:[#allocation3 + $0x13a] sm:$0xff] }
 0xb20   :  { %16248 = vmatprep.mubr.msk.bf16.mxu1 %vm9319_vm2, %v22348_v60  ;;  %v12689_v60 = vld [vmem:[#allocation3 + $0x1a9] sm:$0xff] }
 0xb27   :  { %16249 = vmatmul.mubr.msk.bf16.gmra.mrb[32].mxu1 %vm9319_vm2, %v22350_v61  ;;  %v12686_v61 = vld [vmem:[#allocation3 + $0x191] sm:$0xff] }
 0xb28   :  { %16252 = vmatprep.mubr.msk.bf16.mxu1 %vm9319_vm2, %v22356_v18  ;;  %v12715_v18 = vpack.c.bf16 %v22382_v17, %v12686_v61  ;;  %v13123_v17 = vld [vmem:[#allocation3 + $0x32] sm:$0xff] }
 0xb29   :  { %v13174_v19 = vpack.c.bf16 %v13124_v33, %v13123_v17  ;;  %v13166_v33 = vld [vmem:[#allocation3 + $0x18a] sm:$0xff] }
 0xb2f   :  { %16253 = vmatmul.mubr.msk.bf16.gmra.mrb[36].mxu1 %vm9319_vm2, %v22358_v5  ;;  %v12716_v5 = vpack.c.bf16 %v12689_v60, %v22389_v50  ;;  %v13175_v50 = vpack.c.bf16 %v13126_v13, %v13125_v21  ;;  %v13163_v21 = vld [vmem:[#allocation3 + $0x172] sm:$0xff] }
 0xb30   :  { %16256 = vmatprep.mubr.msk.bf16.mxu1 %vm9319_vm2, %v22364_v62  ;;  %v12690_v62 = vld [vmem:[#allocation3 + $0x1b1] sm:$0xff] }
 0xb37   :  { %16257 = vmatmul.mubr.msk.bf16.gmra.mrb[40].mxu1 %vm9319_vm2, %v22366_v44  ;;  %v12691_v44 = vld [vmem:[#allocation3 + $0x1b9] sm:$0x3] }
 0xb38   :  { %16260 = vmatprep.mubr.msk.bf16.mxu1 %vm9319_vm2, %v22372_v7  ;;  %v13121_v7 = vld [vmem:[#allocation3 + $0x22] sm:$0xff]  ;;  %v12717_v47 = vpack.c.bf16 %v12691_v44, %v12690_v62  ;;  %v13162_v62 = vld [vmem:[#allocation3 + $0x16a] sm:$0xff]  ;;  %v13159_v44 = vld [vmem:[#allocation3 + $0x152] sm:$0xff] }
 0xb39   :  { %v13173_v37 = vpack.c.bf16 %v13122_v26, %v13121_v7 }
 0xb3f   :  { %16261 = vmatmul.mubr.msk.bf16.gmra.mrb[44].mxu1 %vm9319_vm2, %v12711_v2  ;;  %v13154_v2 = vld [vmem:[#allocation3 + $0x12a] sm:$0xff] }
 0xb40   :  { %16264 = vmatprep.mubr.msk.bf16.mxu1 %vm9319_vm2, %v12712_v38  ;;  %v13151_v38 = vld [vmem:[#allocation3 + $0x112] sm:$0xff]  ;;  %v13189_v8 = vpack.c.bf16 %v13154_v2, %v13153_v24 }
 0xb41   :  { %v13188_v52 = vpack.c.bf16 %v13152_v43, %v13151_v38 }
 0xb47   :  { %16265 = vmatmul.mubr.msk.bf16.gmra.mrb[48].mxu1 %vm9319_vm2, %v12713_v35  ;;  %v13158_v35 = vld [vmem:[#allocation3 + $0x14a] sm:$0xff] }
 0xb48   :  { %16268 = vmatprep.mubr.msk.bf16.mxu1 %vm9319_vm2, %v12714_v31  ;;  %v13155_v31 = vld [vmem:[#allocation3 + $0x132] sm:$0xff]  ;;  %v13191_v61 = vpack.c.bf16 %v13158_v35, %v13157_v46  ;;  %v22647_v35 = vld [vmem:[%s22929_s6 + $0x2] ss:$0 sm:$0xff] }
 0xb49   :  { %v13190_v60 = vpack.c.bf16 %v13156_v53, %v13155_v31 }
 0xb4f   :  { %16269 = vmatmul.mubr.msk.bf16.gmra.mrb[52].mxu1 %vm9319_vm2, %v12715_v18  ;;  %v13160_v18 = vld [vmem:[#allocation3 + $0x15a] sm:$0xff] }
 0xb50   :  { %16272 = vmatprep.mubr.msk.bf16.mxu1 %vm9319_vm2, %v12716_v5  ;;  %v13161_v5 = vld [vmem:[#allocation3 + $0x162] sm:$0xff]  ;;  %v13192_v7 = vpack.c.bf16 %v13160_v18, %v13159_v44  ;;  %v14005_v18 = vld [vmem:[%s22931_s8 + $0x58] sm:$0xff] }
 0xb51   :  { %v13193_v26 = vpack.c.bf16 %v13162_v62, %v13161_v5 }
 0xb57   :  { %16273 = vmatmul.mubr.msk.bf16.gmra.mrb[56].mxu1 %vm9319_vm2, %v12717_v47  ;;  %v13164_v47 = vld [vmem:[#allocation3 + $0x17a] sm:$0xff] }
 0xb58   :  { %16284 = vmatprep.mubr.msk.bf16.mxu1 %vm9319_vm2, %v13173_v37  ;;  %v13165_v37 = vld [vmem:[#allocation3 + $0x182] sm:$0xff]  ;;  %v13194_v13 = vpack.c.bf16 %v13164_v47, %v13163_v21 }
 0xb59   :  { %v13195_v17 = vpack.c.bf16 %v13166_v33, %v13165_v37 }
 0xb5f   :  { %16285 = vmatmul.mubr.msk.bf16.vlgmr.msra.gmra.mrb[8].mxu1 %vm9319_vm2, %v13174_v19  ;;  %v13170_v19 = vld [vmem:[#allocation3 + $0x1aa] sm:$0xff] }
 0xb60   :  { %16288 = vmatprep.mubr.msk.bf16.mxu1 %vm9319_vm2, %v13175_v50  ;;  %v13167_v50 = vld [vmem:[#allocation3 + $0x192] sm:$0xff]  ;;  %v13197_v0 = vpack.c.bf16 %v13170_v19, %v22458_v15  ;;  %v17464_v15 = vmov 0.0|0.0  }
 0xb61   :  { %v13196_v36 = vpack.c.bf16 %v22451_v4, %v13167_v50  ;;  %v13825_v4 = vld [vmem:[%s22930_s7] sm:$0xff]  ;;  %16434 = vmatprep.subr.bf16.mxu0 %v17464_v15 }
 0xb62   :  { %v13827_v27 = vcombine.high %v13825_v4, %v13825_v4  ;;  %v14006_v50 = vld [vmem:[%s22931_s8 + $0x60] sm:$0xff] }
 0xb67   :  { %16289 = vmatmul.mubr.msk.bf16.gmra.mrb[12].mxu1 %vm9319_vm2, %v13176_v58  ;;  %v13198_v58 = vpack.c.bf16 %v13172_v42, %v13171_v30 }
 0xb68   :  { %16292 = vmatprep.mubr.msk.bf16.mxu1 %vm9319_vm2, %v13177_v11  ;;  %v17463_v11 = vmov 1983009808  }
 0xb69   :  { %v13829_v56 = vunpack.c.l.s4 %v17463_v11 }
 0xb6b   :  { %v13830_v32 = vunpack.c.0.s8 %v13829_v56 }
 0xb6f   :  { %16293 = vmatmul.mubr.msk.bf16.gmra.mrb[16].mxu1 %vm9319_vm2, %v13178_v28  ;;  %v13833_v28 = vsub.s32 %v13830_v32, %v13832_v63 }
 0xb70   :  { %16296 = vmatprep.mubr.msk.bf16.mxu1 %vm9319_vm2, %v13179_v51 }
 0xb71   :  { %v22590_v51 = vrot.slane %v13825_v4, %v13833_v28  ;;  %v22594_v16 = vrot.slane %v13827_v27, %v13833_v28 }
 0xb73   :  { %v13842_v59 = vcombine.high %v22590_v51, %v22590_v51 }
 0xb77   :  { %16297 = vmatmul.mubr.msk.bf16.gmra.mrb[20].mxu1 %vm9319_vm2, %v13180_v54  ;;  %v13995_v54 = vld [vmem:[%s22931_s8 + $0x8] sm:$0xff] }
 0xb78   :  { %16300 = vmatprep.mubr.msk.bf16.mxu1 %vm9319_vm2, %v13181_v57  ;;  %v13996_v57 = vld [vmem:[%s22931_s8 + $0x10] sm:$0xff]  ;;  %v16435_v1 = vpack.c.bf16 %v13995_v54, %v13994_v3 }
 0xb79   :  { %v16438_v40 = vpack.c.bf16 %v13997_v9, %v13996_v57 }
 0xb7a   :  { %16436 = vmatpush3.bf16.msra.mxu0 %v16435_v1 }
 0xb7b   :  { %16437 = vmatprep.subr.bf16.mxu0 %v17464_v15 }
 0xb7e   :  { %16439 = vmatpush3.bf16.msra.mxu0 %v16438_v40 }
 0xb7f   :  { %16301 = vmatmul.mubr.msk.bf16.gmra.mrb[24].mxu1 %vm9319_vm2, %v13182_v48  ;;  %v13999_v48 = vld [vmem:[%s22931_s8 + $0x28] sm:$0xff]  ;;  %16440 = vmatprep.subr.bf16.mxu0 %v17464_v15 }
 0xb80   :  { %16304 = vmatprep.mubr.msk.bf16.mxu1 %vm9319_vm2, %v13183_v55  ;;  %v16441_v55 = vpack.c.bf16 %v13999_v48, %v13998_v23 }
 0xb82   :  { %16442 = vmatpush3.bf16.msra.mxu0 %v16441_v55 }
 0xb83   :  { %16443 = vmatprep.subr.bf16.mxu0 %v17464_v15 }
 0xb86   :  { %16445 = vmatpush3.bf16.msra.mxu0 %v16444_v45 }
 0xb87   :  { %16305 = vmatmul.mubr.msk.bf16.gmra.mrb[28].mxu1 %vm9319_vm2, %v13184_v12  ;;  %16446 = vmatprep.subr.bf16.mxu0 %v17464_v15 }
 0xb88   :  { %16308 = vmatprep.mubr.msk.bf16.mxu1 %vm9319_vm2, %v13185_v41 }
 0xb8f   :  { %16309 = vmatmul.mubr.msk.bf16.gmra.mrb[32].mxu1 %vm9319_vm2, %v13186_v49  ;;  %v14002_v49 = vld [vmem:[%s22931_s8 + $0x40] sm:$0xff] }
 0xb90   :  { %16312 = vmatprep.mubr.msk.bf16.mxu1 %vm9319_vm2, %v13187_v25  ;;  %v14003_v25 = vld [vmem:[%s22931_s8 + $0x48] sm:$0xff] }
 0xb91   :  { %v16447_v46 = vpack.c.bf16 %v14003_v25, %v14002_v49 }
 0xb93   :  { %16448 = vmatpush3.bf16.msra.mxu0 %v16447_v46 }
 0xb94   :  { %16449 = vmatprep.subr.bf16.mxu0 %v17464_v15 }
 0xb97   :  { %16313 = vmatmul.mubr.msk.bf16.gmra.mrb[36].mxu1 %vm9319_vm2, %v13188_v52 }
 0xb98   :  { %16316 = vmatprep.mubr.msk.bf16.mxu1 %vm9319_vm2, %v13189_v8 }
 0xb9f   :  { %16317 = vmatmul.mubr.msk.bf16.gmra.mrb[40].mxu1 %vm9319_vm2, %v13190_v60 }
 0xba0   :  { %16320 = vmatprep.mubr.msk.bf16.mxu1 %vm9319_vm2, %v13191_v61  ;;  %v14004_v61 = vld [vmem:[%s22931_s8 + $0x50] sm:$0xff] }
 0xba1   :  { %v16450_v33 = vpack.c.bf16 %v14005_v18, %v14004_v61 }
 0xba3   :  { %16451 = vmatpush3.bf16.msra.mxu0 %v16450_v33 }
 0xba4   :  { %16452 = vmatprep.subr.bf16.mxu0 %v17464_v15 }
 0xba7   :  { %16321 = vmatmul.mubr.msk.bf16.gmra.mrb[44].mxu1 %vm9319_vm2, %v13192_v7 }
 0xba8   :  { %16324 = vmatprep.mubr.msk.bf16.mxu1 %vm9319_vm2, %v13193_v26 }
 0xbaf   :  { %16325 = vmatmul.mubr.msk.bf16.gmra.mrb[48].mxu1 %vm9319_vm2, %v13194_v13 }
 0xbb0   :  { %16328 = vmatprep.mubr.msk.bf16.mxu1 %vm9319_vm2, %v13195_v17 }
 0xbb7   :  { %16329 = vmatmul.mubr.msk.bf16.gmra.mrb[52].mxu1 %vm9319_vm2, %v13196_v36  ;;  %v14007_v36 = vld [vmem:[%s22931_s8 + $0x68] sm:$0xff] }
 0xbb8   :  { %16332 = vmatprep.mubr.msk.bf16.mxu1 %vm9319_vm2, %v13197_v0  ;;  %v16453_v4 = vpack.c.bf16 %v14007_v36, %v14006_v50 }
 0xbba   :  { %16454 = vmatpush3.bf16.msra.mxu0 %v16453_v4 }
 0xbbb   :  { %16455 = vmatprep.subr.bf16.mxu0 %v17464_v15 }
 0xbbf   :  { %16333 = vmatmul.mubr.msk.bf16.gmra.mrb[56].mxu1 %vm9319_vm2, %v13198_v58 }
 0xbc0   :  { %13918 = vmatprep.mubr.f32.mxu1 %v13842_v59 }
 0xc32   :  { %v16286_v20 = vpop.f32.mrb[8].mxu1 }
 0xc33   :  { %v13611_v12 = vadd.f32 %v16286_v20, %v22618_v39  ;;  %v13343_v41 = vpop.f32.mrb[9].mxu1 }
 0xc34   :  { %v13609_v34 = vadd.f32 %v22618_v39, %v13343_v41  ;;  %v16287_v14 = vpop.f32.mrb[10].mxu1 }
 0xc35   :  { %v13663_v43 = vmax.f32 %v13611_v12, 0.0  ;;  %v13612_v24 = vadd.f32 %v16287_v14, %v22618_v39  ;;  %v13346_v2 = vpop.f32.mrb[11].mxu1 }
 0xc36   :  { %v13661_v38 = vmax.f32 %v13609_v34, 0.0  ;;  %v13610_v52 = vadd.f32 %v22618_v39, %v13346_v2 }
 0xc37   :  { %v13719_v8 = vmul.f32 %v22631_v29, %v13663_v43  ;;  %v13664_v53 = vmax.f32 %v13612_v24, 0.0 }
 0xc38   :  { %v13717_v31 = vmul.f32 %v22631_v29, %v13661_v38  ;;  %v13662_v60 = vmax.f32 %v13610_v52, 0.0 }
 0xc39   :  { %v13720_v5 = vmul.f32 %v22631_v29, %v13664_v53  ;;  %v22660_v7 = vadd.f32 %v22647_v35, %v13719_v8 }
 0xc3a   :  { %v13718_v62 = vmul.f32 %v22631_v29, %v13662_v60  ;;  %v16290_v44 = vpop.f32.mrb[12].mxu1  ;;  %v22667_v21 = vadd.f32 %v22647_v35, %v13717_v31 }
 0xc3b   :  { %v22663_v26 = vadd.f32 %v22647_v35, %v13720_v5  ;;  %v13615_v47 = vadd.f32 %v16290_v44, %v22618_v39  ;;  %v13359_v37 = vpop.f32.mrb[13].mxu1 }
 0xc3c   :  { %v22670_v13 = vadd.f32 %v22647_v35, %v13718_v62  ;;  %v13613_v17 = vadd.f32 %v22618_v39, %v13359_v37  ;;  %v16291_v19 = vpop.f32.mrb[14].mxu1 }
 0xc3d   :  { %v16377_v0 = vpack.c.bf16 %v22663_v26, %v22660_v7  ;;  %v13667_v30 = vmax.f32 %v13615_v47, 0.0  ;;  %v13616_v42 = vadd.f32 %v16291_v19, %v22618_v39  ;;  %v13362_v58 = vpop.f32.mrb[15].mxu1 }
 0xc3e   :  { %v16373_v11 = vpack.c.bf16 %v22670_v13, %v22667_v21  ;;  %v13665_v56 = vmax.f32 %v13613_v17, 0.0  ;;  %v13614_v10 = vadd.f32 %v22618_v39, %v13362_v58 }
 0xc3f   :  { %v13723_v32 = vmul.f32 %v22631_v29, %v13667_v30  ;;  %v13668_v63 = vmax.f32 %v13616_v42, 0.0 }
 0xc40   :  { %v13721_v28 = vmul.f32 %v22631_v29, %v13665_v56  ;;  %v13666_v59 = vmax.f32 %v13614_v10, 0.0 }
 0xc41   :  { %v13724_v27 = vmul.f32 %v22631_v29, %v13668_v63  ;;  %v22692_v57 = vadd.f32 %v22647_v35, %v13723_v32 }
 0xc42   :  { %v13722_v3 = vmul.f32 %v22631_v29, %v13666_v59  ;;  %v16294_v54 = vpop.f32.mrb[16].mxu1  ;;  %v22699_v23 = vadd.f32 %v22647_v35, %v13721_v28 }
 0xc43   :  { %v22695_v1 = vadd.f32 %v22647_v35, %v13724_v27  ;;  %v13619_v9 = vadd.f32 %v16294_v54, %v22618_v39  ;;  %v13375_v40 = vpop.f32.mrb[17].mxu1 }
 0xc44   :  { %v22702_v48 = vadd.f32 %v22647_v35, %v13722_v3  ;;  %v13617_v55 = vadd.f32 %v22618_v39, %v13375_v40  ;;  %v16295_v22 = vpop.f32.mrb[18].mxu1 }
 0xc45   :  { %v16385_v6 = vpack.c.bf16 %v22695_v1, %v22692_v57  ;;  %v13671_v20 = vmax.f32 %v13619_v9, 0.0  ;;  %v13620_v12 = vadd.f32 %v16295_v22, %v22618_v39  ;;  %v13378_v41 = vpop.f32.mrb[19].mxu1 }
 0xc46   :  { %v16381_v45 = vpack.c.bf16 %v22702_v48, %v22699_v23  ;;  %v13669_v34 = vmax.f32 %v13617_v55, 0.0  ;;  %v13618_v14 = vadd.f32 %v22618_v39, %v13378_v41 }
 0xc47   :  { %v13727_v49 = vmul.f32 %v22631_v29, %v13671_v20  ;;  %v13672_v25 = vmax.f32 %v13620_v12, 0.0 }
 0xc48   :  { %v13725_v43 = vmul.f32 %v22631_v29, %v13669_v34  ;;  %v13670_v24 = vmax.f32 %v13618_v14, 0.0 }
 0xc49   :  { %v13728_v2 = vmul.f32 %v22631_v29, %v13672_v25  ;;  %v22717_v8 = vadd.f32 %v22647_v35, %v13727_v49 }
 0xc4a   :  { %v13726_v38 = vmul.f32 %v22631_v29, %v13670_v24  ;;  %v16298_v52 = vpop.f32.mrb[20].mxu1  ;;  %v22724_v60 = vadd.f32 %v22647_v35, %v13725_v43 }
 0xc4b   :  { %v22720_v53 = vadd.f32 %v22647_v35, %v13728_v2  ;;  %v13623_v46 = vadd.f32 %v16298_v52, %v22618_v39  ;;  %v13391_v31 = vpop.f32.mrb[21].mxu1 }
 0xc4c   :  { %v22727_v61 = vadd.f32 %v22647_v35, %v13726_v38  ;;  %v13621_v18 = vadd.f32 %v22618_v39, %v13391_v31  ;;  %v16299_v5 = vpop.f32.mrb[22].mxu1 }
 0xc4d   :  { %v16393_v62 = vpack.c.bf16 %v22720_v53, %v22717_v8  ;;  %v13675_v44 = vmax.f32 %v13623_v46, 0.0  ;;  %v13624_v47 = vadd.f32 %v16299_v5, %v22618_v39  ;;  %v13394_v37 = vpop.f32.mrb[23].mxu1 }
 0xc4e   :  { %v16389_v33 = vpack.c.bf16 %v22727_v61, %v22724_v60  ;;  %v13673_v17 = vmax.f32 %v13621_v18, 0.0  ;;  %v13622_v19 = vadd.f32 %v22618_v39, %v13394_v37 }
 0xc4f   :  { %v13731_v50 = vmul.f32 %v22631_v29, %v13675_v44  ;;  %v13676_v36 = vmax.f32 %v13624_v47, 0.0 }
 0xc50   :  { %v13729_v30 = vmul.f32 %v22631_v29, %v13673_v17  ;;  %v13674_v42 = vmax.f32 %v13622_v19, 0.0 }
 0xc51   :  { %v13732_v58 = vmul.f32 %v22631_v29, %v13676_v36  ;;  %v22741_v32 = vadd.f32 %v22647_v35, %v13731_v50 }
 0xc52   :  { %v13730_v56 = vmul.f32 %v22631_v29, %v13674_v42  ;;  %v16302_v10 = vpop.f32.mrb[24].mxu1  ;;  %v22748_v59 = vadd.f32 %v22647_v35, %v13729_v30 }
 0xc53   :  { %v22744_v63 = vadd.f32 %v22647_v35, %v13732_v58  ;;  %v13627_v4 = vadd.f32 %v16302_v10, %v22618_v39  ;;  %v13407_v28 = vpop.f32.mrb[25].mxu1 }
 0xc54   :  { %v22751_v27 = vadd.f32 %v22647_v35, %v13730_v56  ;;  %v13625_v3 = vadd.f32 %v22618_v39, %v13407_v28  ;;  %v16303_v54 = vpop.f32.mrb[26].mxu1 }
 0xc55   :  { %v16401_v9 = vpack.c.bf16 %v22744_v63, %v22741_v32  ;;  %v13679_v40 = vmax.f32 %v13627_v4, 0.0  ;;  %v13628_v55 = vadd.f32 %v16303_v54, %v22618_v39  ;;  %v13410_v22 = vpop.f32.mrb[27].mxu1 }
 0xc56   :  { %v16397_v20 = vpack.c.bf16 %v22751_v27, %v22748_v59  ;;  %v13677_v12 = vmax.f32 %v13625_v3, 0.0  ;;  %v13626_v41 = vadd.f32 %v22618_v39, %v13410_v22 }
 0xc57   :  { %v13735_v34 = vmul.f32 %v22631_v29, %v13679_v40  ;;  %v13680_v14 = vmax.f32 %v13628_v55, 0.0 }
 0xc58   :  { %v13733_v49 = vmul.f32 %v22631_v29, %v13677_v12  ;;  %v13678_v25 = vmax.f32 %v13626_v41, 0.0 }
 0xc59   :  { %v13736_v43 = vmul.f32 %v22631_v29, %v13680_v14  ;;  %v13791_v38 = vadd.f32 %v22647_v35, %v13735_v34 }
 0xc5a   :  { %v13734_v24 = vmul.f32 %v22631_v29, %v13678_v25  ;;  %v16306_v2 = vpop.f32.mrb[28].mxu1  ;;  %v13789_v18 = vadd.f32 %v22647_v35, %v13733_v49 }
 0xc5b   :  { %v13792_v52 = vadd.f32 %v22647_v35, %v13736_v43  ;;  %v13631_v46 = vadd.f32 %v16306_v2, %v22618_v39  ;;  %v13423_v31 = vpop.f32.mrb[29].mxu1 }
 0xc5c   :  { %v13790_v5 = vadd.f32 %v22647_v35, %v13734_v24  ;;  %v13629_v44 = vadd.f32 %v22618_v39, %v13423_v31  ;;  %v16307_v47 = vpop.f32.mrb[30].mxu1 }
 0xc5d   :  { %v13683_v37 = vmax.f32 %v13631_v46, 0.0  ;;  %v13632_v17 = vadd.f32 %v16307_v47, %v22618_v39  ;;  %v13426_v19 = vpop.f32.mrb[31].mxu1  ;;  %v16375_v50 = vpack.c.bf16 %v13792_v52, %v13791_v38 }
 0xc5e   :  { %v13681_v36 = vmax.f32 %v13629_v44, 0.0  ;;  %v13630_v30 = vadd.f32 %v22618_v39, %v13426_v19  ;;  %v16371_v42 = vpack.c.bf16 %v13790_v5, %v13789_v18 }
 0xc5f   :  { %v13739_v58 = vmul.f32 %v22631_v29, %v13683_v37  ;;  %v13684_v56 = vmax.f32 %v13632_v17, 0.0 }
 0xc60   :  { %v13737_v10 = vmul.f32 %v22631_v29, %v13681_v36  ;;  %v13682_v4 = vmax.f32 %v13630_v30, 0.0  ;;  %16372 = vmatprep.subr.bf16.mxu1 %v16371_v42 }
 0xc61   :  { %v13740_v28 = vmul.f32 %v22631_v29, %v13684_v56  ;;  %16374 = vmatpush3.bf16.msra.mxu1 %v16373_v11  ;;  %v13795_v40 = vadd.f32 %v22647_v35, %v13739_v58 }
 0xc62   :  { %v13738_v3 = vmul.f32 %v22631_v29, %v13682_v4  ;;  %v16310_v54 = vpop.f32.mrb[32].mxu1  ;;  %16376 = vmatprep.subr.bf16.mxu1 %v16375_v50  ;;  %v13793_v41 = vadd.f32 %v22647_v35, %v13737_v10 }
 0xc63   :  { %v13796_v55 = vadd.f32 %v22647_v35, %v13740_v28  ;;  %v13635_v22 = vadd.f32 %v16310_v54, %v22618_v39  ;;  %v13439_v12 = vpop.f32.mrb[33].mxu1 }
 0xc64   :  { %v13794_v34 = vadd.f32 %v22647_v35, %v13738_v3  ;;  %v13633_v14 = vadd.f32 %v22618_v39, %v13439_v12  ;;  %v16311_v49 = vpop.f32.mrb[34].mxu1 }
 0xc65   :  { %v13687_v21 = vmax.f32 %v13635_v22, 0.0  ;;  %v13636_v13 = vadd.f32 %v16311_v49, %v22618_v39  ;;  %v13442_v11 = vpop.f32.mrb[35].mxu1  ;;  %16378 = vmatpush3.bf16.msra.mxu1 %v16377_v0  ;;  %v16383_v25 = vpack.c.bf16 %v13796_v55, %v13795_v40 }
 0xc66   :  { %v13685_v43 = vmax.f32 %v13633_v14, 0.0  ;;  %v13634_v24 = vadd.f32 %v22618_v39, %v13442_v11  ;;  %v16379_v2 = vpack.c.bf16 %v13794_v34, %v13793_v41 }
 0xc67   :  { %v13743_v38 = vmul.f32 %v22631_v29, %v13687_v21  ;;  %v13688_v52 = vmax.f32 %v13636_v13, 0.0 }
 0xc68   :  { %v13741_v46 = vmul.f32 %v22631_v29, %v13685_v43  ;;  %v13686_v31 = vmax.f32 %v13634_v24, 0.0  ;;  %16380 = vmatprep.subr.bf16.mxu1 %v16379_v2 }
 0xc69   :  { %v13744_v18 = vmul.f32 %v22631_v29, %v13688_v52  ;;  %16382 = vmatpush3.bf16.msra.mxu1 %v16381_v45  ;;  %v13799_v0 = vadd.f32 %v22647_v35, %v13743_v38 }
 0xc6a   :  { %v13742_v7 = vmul.f32 %v22631_v29, %v13686_v31  ;;  %v16314_v26 = vpop.f32.mrb[36].mxu1  ;;  %16384 = vmatprep.subr.bf16.mxu1 %v16383_v25  ;;  %v13797_v37 = vadd.f32 %v22647_v35, %v13741_v46 }
 0xc6b   :  { %v13800_v5 = vadd.f32 %v22647_v35, %v13744_v18  ;;  %v13639_v44 = vadd.f32 %v16314_v26, %v22618_v39  ;;  %v13455_v47 = vpop.f32.mrb[37].mxu1 }
 0xc6c   :  { %v13798_v17 = vadd.f32 %v22647_v35, %v13742_v7  ;;  %v13637_v19 = vadd.f32 %v22618_v39, %v13455_v47  ;;  %v16315_v50 = vpop.f32.mrb[38].mxu1 }
 0xc6d   :  { %v13691_v23 = vmax.f32 %v13639_v44, 0.0  ;;  %v13640_v48 = vadd.f32 %v16315_v50, %v22618_v39  ;;  %v13458_v45 = vpop.f32.mrb[39].mxu1  ;;  %16386 = vmatpush3.bf16.msra.mxu1 %v16385_v6  ;;  %v16391_v36 = vpack.c.bf16 %v13800_v5, %v13799_v0  ;;  %v13843_v5 = vcombine.high %v22594_v16, %v22594_v16 }
 0xc6e   :  { %v13689_v30 = vmax.f32 %v13637_v19, 0.0  ;;  %v13638_v42 = vadd.f32 %v22618_v39, %v13458_v45  ;;  %v16387_v58 = vpack.c.bf16 %v13798_v17, %v13797_v37 }
 0xc6f   :  { %v13747_v56 = vmul.f32 %v22631_v29, %v13691_v23  ;;  %v13692_v10 = vmax.f32 %v13640_v48, 0.0 }
 0xc70   :  { %v13745_v4 = vmul.f32 %v22631_v29, %v13689_v30  ;;  %v13690_v28 = vmax.f32 %v13638_v42, 0.0  ;;  %16388 = vmatprep.subr.bf16.mxu1 %v16387_v58 }
 0xc71   :  { %v13748_v3 = vmul.f32 %v22631_v29, %v13692_v10  ;;  %16390 = vmatpush3.bf16.msra.mxu1 %v16389_v33  ;;  %v13803_v6 = vadd.f32 %v22647_v35, %v13747_v56 }
 0xc72   :  { %v13746_v57 = vmul.f32 %v22631_v29, %v13690_v28  ;;  %v16318_v1 = vpop.f32.mrb[40].mxu1  ;;  %16392 = vmatprep.subr.bf16.mxu1 %v16391_v36  ;;  %v13801_v22 = vadd.f32 %v22647_v35, %v13745_v4 }
 0xc73   :  { %v13804_v54 = vadd.f32 %v22647_v35, %v13748_v3  ;;  %v13643_v40 = vadd.f32 %v16318_v1, %v22618_v39  ;;  %v13471_v55 = vpop.f32.mrb[41].mxu1 }
 0xc74   :  { %v13802_v12 = vadd.f32 %v22647_v35, %v13746_v57  ;;  %v13641_v41 = vadd.f32 %v22618_v39, %v13471_v55  ;;  %v16319_v34 = vpop.f32.mrb[42].mxu1 }
 0xc75   :  { %v13695_v60 = vmax.f32 %v13643_v40, 0.0  ;;  %v13644_v61 = vadd.f32 %v16319_v34, %v22618_v39  ;;  %v13474_v33 = vpop.f32.mrb[43].mxu1  ;;  %16394 = vmatpush3.bf16.msra.mxu1 %v16393_v62  ;;  %v16399_v14 = vpack.c.bf16 %v13804_v54, %v13803_v6 }
 0xc76   :  { %v13693_v49 = vmax.f32 %v13641_v41, 0.0  ;;  %v13642_v21 = vadd.f32 %v22618_v39, %v13474_v33  ;;  %v16395_v13 = vpack.c.bf16 %v13802_v12, %v13801_v22 }
 0xc77   :  { %v13751_v11 = vmul.f32 %v22631_v29, %v13695_v60  ;;  %v13696_v25 = vmax.f32 %v13644_v61, 0.0 }
 0xc78   :  { %v13749_v43 = vmul.f32 %v22631_v29, %v13693_v49  ;;  %v13694_v24 = vmax.f32 %v13642_v21, 0.0  ;;  %16396 = vmatprep.subr.bf16.mxu1 %v16395_v13 }
 0xc79   :  { %v13752_v2 = vmul.f32 %v22631_v29, %v13696_v25  ;;  %16398 = vmatpush3.bf16.msra.mxu1 %v16397_v20  ;;  %v13807_v62 = vadd.f32 %v22647_v35, %v13751_v11 }
 0xc7a   :  { %v13750_v8 = vmul.f32 %v22631_v29, %v13694_v24  ;;  %v16322_v53 = vpop.f32.mrb[44].mxu1  ;;  %16400 = vmatprep.subr.bf16.mxu1 %v16399_v14  ;;  %v13805_v31 = vadd.f32 %v22647_v35, %v13749_v43 }
 0xc7b   :  { %v13808_v38 = vadd.f32 %v22647_v35, %v13752_v2  ;;  %v13647_v52 = vadd.f32 %v16322_v53, %v22618_v39  ;;  %v13487_v46 = vpop.f32.mrb[45].mxu1 }
 0xc7c   :  { %v13806_v18 = vadd.f32 %v22647_v35, %v13750_v8  ;;  %v13645_v7 = vadd.f32 %v22618_v39, %v13487_v46  ;;  %v16323_v26 = vpop.f32.mrb[46].mxu1 }
 0xc7d   :  { %v16407_v59 = vpack.c.bf16 %v13808_v38, %v13807_v62  ;;  %v13699_v27 = vmax.f32 %v13647_v52, 0.0  ;;  %v13648_v20 = vadd.f32 %v16323_v26, %v22618_v39  ;;  %v13490_v0 = vpop.f32.mrb[47].mxu1  ;;  %16402 = vmatpush3.bf16.msra.mxu1 %v16401_v9 }
 0xc7e   :  { %v16404_v44 = vpack.c.bf16 %v13806_v18, %v13805_v31  ;;  %v13697_v47 = vmax.f32 %v13645_v7, 0.0  ;;  %v13646_v37 = vadd.f32 %v22618_v39, %v13490_v0  ;;  %16403 = vmatprep.subr.bf16.mxu1 %v17464_v15 }
 0xc7f   :  { %v13755_v17 = vmul.f32 %v22631_v29, %v13699_v27  ;;  %v13700_v19 = vmax.f32 %v13648_v20, 0.0 }
 0xc80   :  { %v13753_v50 = vmul.f32 %v22631_v29, %v13697_v47  ;;  %v13698_v23 = vmax.f32 %v13646_v37, 0.0  ;;  %13919 = vmatmul.mubr.f32.vlgmr.msra.gmra.mrb[60].mxu1 %v22590_v51 }
 0xc81   :  { %v13756_v32 = vmul.f32 %v22631_v29, %v13700_v19  ;;  %16405 = vmatpush1.bf16.msra.mxu1 %v16404_v44  ;;  %14662 = vmatprep.mubr.msk.f32.mxu1 %vm13847_vm4, %v13843_v5  ;;  %v13811_v48 = vadd.f32 %v22647_v35, %v13755_v17 }
 0xc82   :  { %v13754_v63 = vmul.f32 %v22631_v29, %v13698_v23  ;;  %v16326_v9 = vpop.f32.mrb[48].mxu1  ;;  %16406 = vmatprep.subr.bf16.mxu1 %v17464_v15  ;;  %v13809_v42 = vadd.f32 %v22647_v35, %v13753_v50 }
 0xc83   :  { %v13812_v45 = vadd.f32 %v22647_v35, %v13756_v32  ;;  %v13651_v36 = vadd.f32 %v16326_v9, %v22618_v39  ;;  %v13503_v30 = vpop.f32.mrb[49].mxu1 }
 0xc84   :  { %v13810_v51 = vadd.f32 %v22647_v35, %v13754_v63  ;;  %v13649_v58 = vadd.f32 %v22618_v39, %v13503_v30  ;;  %v16327_v56 = vpop.f32.mrb[50].mxu1 }
 0xc85   :  { %v16413_v10 = vpack.c.bf16 %v13812_v45, %v13811_v48  ;;  %v13703_v4 = vmax.f32 %v13651_v36, 0.0  ;;  %v13652_v28 = vadd.f32 %v16327_v56, %v22618_v39  ;;  %v13506_v3 = vpop.f32.mrb[51].mxu1  ;;  %16408 = vmatpush1.bf16.msra.mxu1 %v16407_v59 }
 0xc86   :  { %v16410_v57 = vpack.c.bf16 %v13810_v51, %v13809_v42  ;;  %v13701_v1 = vmax.f32 %v13649_v58, 0.0  ;;  %v13650_v6 = vadd.f32 %v22618_v39, %v13506_v3  ;;  %16409 = vmatprep.subr.bf16.mxu1 %v17464_v15 }
 0xc87   :  { %v13759_v54 = vmul.f32 %v22631_v29, %v13703_v4  ;;  %v13704_v40 = vmax.f32 %v13652_v28, 0.0 }
 0xc88   :  { %v13757_v55 = vmul.f32 %v22631_v29, %v13701_v1  ;;  %v13702_v22 = vmax.f32 %v13650_v6, 0.0 }
 0xc89   :  { %v13760_v12 = vmul.f32 %v22631_v29, %v13704_v40  ;;  %16411 = vmatpush1.bf16.msra.mxu1 %v16410_v57  ;;  %v13815_v60 = vadd.f32 %v22647_v35, %v13759_v54  ;;  %v17467_v57 = vmov 0.0  }
 0xc8a   :  { %v13758_v41 = vmul.f32 %v22631_v29, %v13702_v22  ;;  %v16330_v34 = vpop.f32.mrb[52].mxu1  ;;  %16412 = vmatprep.subr.bf16.mxu1 %v17464_v15  ;;  %v13813_v49 = vadd.f32 %v22647_v35, %v13757_v55  ;;  %16368 = vmatprep.mubr.msk.f32.mxu0 %vm17466_vm8, %v17467_v57 }
 0xc8b   :  { %v13816_v61 = vadd.f32 %v22647_v35, %v13760_v12  ;;  %v13655_v33 = vadd.f32 %v16330_v34, %v22618_v39  ;;  %v13519_v14 = vpop.f32.mrb[53].mxu1 }
 0xc8c   :  { %v13814_v21 = vadd.f32 %v22647_v35, %v13758_v41  ;;  %v13653_v13 = vadd.f32 %v22618_v39, %v13519_v14  ;;  %v16331_v11 = vpop.f32.mrb[54].mxu1 }
 0xc8d   :  { %v16419_v25 = vpack.c.bf16 %v13816_v61, %v13815_v60  ;;  %v13707_v43 = vmax.f32 %v13655_v33, 0.0  ;;  %v13656_v24 = vadd.f32 %v16331_v11, %v22618_v39  ;;  %v13522_v2 = vpop.f32.mrb[55].mxu1  ;;  %16414 = vmatpush1.bf16.msra.mxu1 %v16413_v10 }
 0xc8e   :  { %v16416_v8 = vpack.c.bf16 %v13814_v21, %v13813_v49  ;;  %v13705_v53 = vmax.f32 %v13653_v13, 0.0  ;;  %v13654_v62 = vadd.f32 %v22618_v39, %v13522_v2  ;;  %16415 = vmatprep.subr.bf16.mxu1 %v17464_v15 }
 0xc8f   :  { %v13763_v38 = vmul.f32 %v22631_v29, %v13707_v43  ;;  %v13708_v52 = vmax.f32 %v13656_v24, 0.0 }
 0xc90   :  { %v13761_v46 = vmul.f32 %v22631_v29, %v13705_v53  ;;  %v13706_v31 = vmax.f32 %v13654_v62, 0.0 }
 0xc91   :  { %v13764_v18 = vmul.f32 %v22631_v29, %v13708_v52  ;;  %16417 = vmatpush1.bf16.msra.mxu1 %v16416_v8  ;;  %v13819_v59 = vadd.f32 %v22647_v35, %v13763_v38 }
 0xc92   :  { %v13762_v7 = vmul.f32 %v22631_v29, %v13706_v31  ;;  %v16334_v26 = vpop.f32.mrb[56].mxu1  ;;  %16418 = vmatprep.subr.bf16.mxu1 %v17464_v15  ;;  %v13817_v5 = vadd.f32 %v22647_v35, %v13761_v46 }
 0xc93   :  { %v13820_v27 = vadd.f32 %v22647_v35, %v13764_v18  ;;  %v13659_v20 = vadd.f32 %v16334_v26, %v22618_v39  ;;  %v13535_v0 = vpop.f32.mrb[57].mxu1 }
 0xc94   :  { %v13818_v44 = vadd.f32 %v22647_v35, %v13762_v7  ;;  %v13657_v47 = vadd.f32 %v22618_v39, %v13535_v0  ;;  %v16335_v37 = vpop.f32.mrb[58].mxu1 }
 0xc95   :  { %v16425_v17 = vpack.c.bf16 %v13820_v27, %v13819_v59  ;;  %v13711_v19 = vmax.f32 %v13659_v20, 0.0  ;;  %v13660_v50 = vadd.f32 %v16335_v37, %v22618_v39  ;;  %v13538_v23 = vpop.f32.mrb[59].mxu1  ;;  %16420 = vmatpush1.bf16.msra.mxu1 %v16419_v25 }
 0xc96   :  { %v16422_v32 = vpack.c.bf16 %v13818_v44, %v13817_v5  ;;  %v13709_v63 = vmax.f32 %v13657_v47, 0.0  ;;  %v13658_v9 = vadd.f32 %v22618_v39, %v13538_v23  ;;  %16421 = vmatprep.subr.bf16.mxu1 %v17464_v15 }
 0xc97   :  { %v13767_v48 = vmul.f32 %v22631_v29, %v13711_v19  ;;  %v13712_v45 = vmax.f32 %v13660_v50, 0.0 }
 0xc98   :  { %v13765_v36 = vmul.f32 %v22631_v29, %v13709_v63  ;;  %v13710_v30 = vmax.f32 %v13658_v9, 0.0 }
 0xc99   :  { %v13768_v42 = vmul.f32 %v22631_v29, %v13712_v45  ;;  %16423 = vmatpush1.bf16.msra.mxu1 %v16422_v32  ;;  %v13823_v58 = vadd.f32 %v22647_v35, %v13767_v48 }
 0xc9a   :  { %v13766_v51 = vmul.f32 %v22631_v29, %v13710_v30  ;;  %16424 = vmatprep.subr.bf16.mxu1 %v17464_v15  ;;  %v13821_v39 = vadd.f32 %v22647_v35, %v13765_v36  ;;  %v14008_v29 = vld [vmem:[%s22931_s8 + $0x70] sm:$0xff] }
 0xc9b   :  { %v13824_v56 = vadd.f32 %v22647_v35, %v13768_v42 }
 0xc9c   :  { %v13822_v10 = vadd.f32 %v22647_v35, %v13766_v51  ;;  %v14009_v35 = vld [vmem:[%s22931_s8 + $0x78] sm:$0xff]  ;;  %s17438_s8 = scalar_lea.vmem %s14096_s4, 32 }
 0xc9d   :  { %v16431_v4 = vpack.c.bf16 %v13824_v56, %v13823_v58  ;;  %16426 = vmatpush1.bf16.msra.mxu1 %v16425_v17  ;;  %v16456_v3 = vpack.c.bf16 %v14009_v35, %v14008_v29  ;;  %p17439_p0 = scmp.ne.s32.totalorder %s14096_s4, %s17438_s8  ;;  %p17444_p2 = scmp.lt.s32.totalorder %s17438_s8, %s17438_s8 }
 0xc9e   :  { %v16428_v28 = vpack.c.bf16 %v13822_v10, %v13821_v39  ;;  %16427 = vmatprep.subr.bf16.mxu1 %v17464_v15 }
 0xc9f   :  { %16457 = vmatpush3.bf16.msra.mxu0 %v16456_v3  ;;  %p17445_p3 = por %p17444_p2, %p17443_p1 }
 0xca1   :  { %16429 = vmatpush1.bf16.msra.mxu1 %v16428_v28  ;;  %p17446_p4 = pnand %p17445_p3, %p17439_p0 }
 0xca2   :  { %16430 = vmatprep.subr.bf16.mxu1 %v17464_v15 }
 0xca5   :  { %16433 = vmatpush1.bf16.msk.msra.mxu1 %vm16432_vm7, %v16431_v4 }
 0xca8   :  { %13989 = vmatmul.mubr.f32.vlgmr.msra.gmra.mrb[62].mxu1 %v22594_v16  ;;  %v14663_v16 = vld [vmem:[%s22932_s9] ss:$0 sm:$0xff] }
 0xd53   :  { %v15236_v1 = vpop.f32.mrb[60].mxu1 }
 0xd54   :  { %v15237_v15 = vpop.f32.mrb[61].mxu1 }
 0xd55   :  { %v15238_v6 = vadd.f32 %v15237_v15, %v15236_v1 }
 0xd7b   :  { %v13990_v54 = vpop.f32.mrb[62].mxu1 }
 0xd7c   :  { %v13991_v40 = vadd.f32 %v15238_v6, %v13990_v54  ;;  %v13992_v55 = vpop.f32.mrb[63].mxu1 }
 0xd7e   :  { %16369 = vmatmul.mubr.f32.vlgmr.msra.gmra.mrb[56].mxu0 %v13991_v40 }
 0xe51   :  { %v14083_v22 = vpop.f32.mrb[56].mxu0 }
 0xe52   :  { %v14084_v12 = vadd.f32 %v14663_v16, %v14083_v22  ;;  %v16370_v41 = vpop.f32.mrb[57].mxu0 }
 0xe54   :  { %14088 = vst.msk [vmem:[#allocation4] sm:$0x3] %vm14087_vm9, %v14084_v12 }
 0xe55   :  { %17449 = shalt.err (!%p17446_p4)
}
 0xe56   :  { %s17450_s14 = scalar_lea.hbm %s22933_s10, 32 }
 0xe57   :  { %p17451_p5 = scmp.ne.s32.totalorder %s22933_s10, %s17450_s14  ;;  %p17454_p6 = scmp.lt.u32.totalorder %s17450_s14, %s22933_s10 }
 0xe59   :  { %p17456_p7 = pnand %p17454_p6, %p17451_p5 }
 0xe5b   :  { %17459 = shalt.err (!%p17456_p7)
}
 0xe5c   :  { %14098 = dma.vmem_to_hbm [thread:$0]  %s14096_s4, 32, %s22933_s10, [#allocation5]  }
 0xe5d   :  { %17460 = dma.done.wait [#allocation5], 32  }
 0xe5e   :  { %17461 = vsyncadd [#allocation5], 4294967264 }
 0xe5f   :  { %14102 = vsyncpa [#allocation5], 1 }

</bundles_post_ra>
